<compile_context>
chip_gen: v7x
topology: tpu7x:2x2x1
jax: 0.10.0
libtpu: 0.0.40
codegen_flags: <defaults>
</compile_context>

<pallas_src>
import jax
import jax.numpy as jnp
from jax.experimental import pallas as pl
from jax.experimental.pallas import tpu as pltpu

# ----------------------------- model hyperparams -----------------------------
N_NODES = 128          # number of graph nodes (one full (8,128)-aligned tile)
NUM_FEATS = 8          # num_node_features
FEAT_PAD = 128         # input feature dim padded to a full lane width
HIDDEN = 128           # hidden_channels (PyTorch default)
NUM_REL = 20           # num_unique_edge_attrs (PyTorch default)
NUM_CLASSES = 3        # > 2  -> softmax head
CLS_PAD = 128          # class dim padded to a full lane width for the output
NUM_LAYERS = 2         # PyTorch default
NUM_EDGES = 512
BN_EPS = 1e-5


# --------------------------------- kernel ------------------------------------
def make_fused_kernel(num_layers, num_rel, n_nodes, hidden):
    def kernel(*refs):
        x_ref, a_ref, w_in_ref, b_in_ref, bn0_s_ref, bn0_b_ref = refs[:6]
        layer_refs = refs[6:6 + 2 * num_layers]
        w_fin_ref, b_fin_ref, o_ref, agg2 = refs[6 + 2 * num_layers:]

        # ---- input block: Linear -> ReLU -> BatchNorm1d(eval) -> Dropout(id)
        h = jnp.dot(x_ref[...], w_in_ref[...],
                    preferred_element_type=jnp.float32) + b_in_ref[...]
        h = jnp.maximum(h, 0.0)
        h = h * bn0_s_ref[...] + bn0_b_ref[...]
        h_bf = h.astype(jnp.bfloat16)

        a_stack = a_ref[...]                       # (R*N, N) bf16

        for l in range(num_layers):
            w_stack_ref, b_ref = layer_refs[2 * l], layer_refs[2 * l + 1]
            # one long-M matmul: mean-aggregated neighbours for ALL relations
            #   (R*N, N) @ (N, H) -> (R*N, H), f32 accumulation
            agg = jnp.dot(a_stack, h_bf, preferred_element_type=jnp.float32)
            # repack the R row-blocks lane-wise into (N, (R+1)*H) bf16 scratch
            # (static full-tile copies: pure vld/vst, no XLU)
            for r in range(num_rel):
                agg2[:, r * hidden:(r + 1) * hidden] = (
                    agg[r * n_nodes:(r + 1) * n_nodes, :].astype(jnp.bfloat16))
            # root/self term folded in as block R
            agg2[:, num_rel * hidden:(num_rel + 1) * hidden] = h_bf
            # ONE long-K matmul; eval-BN scale already folded into w_stack,
            # BN shift + conv bias folded into b_ref.  Then ReLU (Dropout = id).
            out = jnp.dot(agg2[...], w_stack_ref[...],
                          preferred_element_type=jnp.float32) + b_ref[...]
            h_bf = jnp.maximum(out, 0.0).astype(jnp.bfloat16)

        # ---- final Linear (classes zero-padded to 128 lanes) -> Softmax(dim=1)
        # padded lanes carry f32 bias -1e30 -> exp underflows to exactly 0, so
        # the softmax over 128 lanes equals the softmax over NUM_CLASSES.
        logits = jnp.dot(h_bf, w_fin_ref[...],
                         preferred_element_type=jnp.float32) + b_fin_ref[...]
        m = jnp.max(logits, axis=1, keepdims=True)
        e = jnp.exp(logits - m)
        o_ref[...] = e * pl.reciprocal(jnp.sum(e, axis=1, keepdims=True),
                                       approx=True)

    return kernel


# -------------------------------- glue ---------------------------------------
def build_relation_adjacency_stack(edge_index, edge_type, n_nodes, n_rel):
    """A_stack[(r*N + dst), src] = 1/deg_r(dst)  (PyG RGCNConv default aggr='mean').

    Built with an MXU-friendly one-hot matmul instead of a 512-update scatter
    (scatters lower to serialized dynamic-update-slices on TPU).
    """
    # TODO(synk): for large graphs, replace this dense O(R*N^2) build with a
    #             PrefetchScalarGridSpec gather kernel over sorted edge lists.
    src, dst = edge_index[0], edge_index[1]
    row_key = edge_type * n_nodes + dst                                   # (E,)
    row_oh = jax.nn.one_hot(row_key, n_rel * n_nodes, dtype=jnp.float32)  # (E, R*N)
    col_oh = jax.nn.one_hot(src, n_nodes, dtype=jnp.float32)              # (E, N)
    counts = row_oh.T @ col_oh            # (R*N, N), exact small-integer counts
    deg = counts.sum(axis=1, keepdims=True)
    return counts / jnp.maximum(deg, 1.0)


def prepare_kernel_params(p):
    """Fold eval-BN into conv weights, stack relation+root weights row-wise,
    pad in/out dims to full lanes, and cast every matmul operand to bf16."""
    prep = {}
    w_in_pad = (jnp.zeros((FEAT_PAD, HIDDEN), jnp.float32)
                .at[:NUM_FEATS].set(p["w_in"]))
    prep["w_in"] = w_in_pad.astype(jnp.bfloat16)
    prep["b_in"] = p["b_in"]                       # f32
    prep["bn0_scale"] = p["bn0_scale"]             # f32 (ReLU precedes bn0: no fold)
    prep["bn0_shift"] = p["bn0_shift"]
    prep["w_stack"], prep["b_fold"] = [], []
    for l in range(NUM_LAYERS):
        s, sh = p["bn_scale"][l], p["bn_shift"][l]             # (1, H)
        w_rel_f = p["w_rel"][l] * s.reshape(1, 1, HIDDEN)      # scale output cols
        w_root_f = p["w_root"][l] * s
        w_stack = jnp.concatenate(
            [w_rel_f.reshape(NUM_REL * HIDDEN, HIDDEN), w_root_f], axis=0)
        prep["w_stack"].append(w_stack.astype(jnp.bfloat16))   # ((R+1)*H, H)
        prep["b_fold"].append(p["b_conv"][l] * s + sh)         # f32 (1, H)
    w_fin_pad = (jnp.zeros((HIDDEN, CLS_PAD), jnp.float32)
                 .at[:, :NUM_CLASSES].set(p["w_fin"]))
    prep["w_fin"] = w_fin_pad.astype(jnp.bfloat16)
    # -1e30 stays in the f32 bias (added after the f32-accumulated matmul).
    prep["b_fin"] = (jnp.full((1, CLS_PAD), -1e30, jnp.float32)
                     .at[:, :NUM_CLASSES].set(p["b_fin"]))
    return prep


@jax.jit
def pyg_model_forward(x, edge_index, edge_type, params):
    n = x.shape[0]
    prep = prepare_kernel_params(params)
    a_stack = build_relation_adjacency_stack(
        edge_index, edge_type, n, NUM_REL).astype(jnp.bfloat16)
    x_pad = (jnp.zeros((n, FEAT_PAD), jnp.float32)
             .at[:, :NUM_FEATS].set(x).astype(jnp.bfloat16))

    args = [x_pad, a_stack, prep["w_in"], prep["b_in"],
            prep["bn0_scale"], prep["bn0_shift"]]
    for l in range(NUM_LAYERS):
        args += [prep["w_stack"][l], prep["b_fold"][l]]
    args += [prep["w_fin"], prep["b_fin"]]

    # TODO(synk): for N >> 128, add a grid over dst-row blocks with
    #             dimension_semantics=("parallel",) (v7x has 2 TCs) and/or
    #             stream a_stack/w_stack via pltpu.emit_pipeline; at N=128
    #             everything fits comfortably in one VMEM-resident shot.
    out_pad = pl.pallas_call(
        make_fused_kernel(NUM_LAYERS, NUM_REL, n, HIDDEN),
        out_shape=jax.ShapeDtypeStruct((n, CLS_PAD), jnp.float32),
        scratch_shapes=[pltpu.VMEM((n, (NUM_REL + 1) * HIDDEN), jnp.bfloat16)],
    )(*args)

    # graph_level == False (default) -> node-level predictions, no pooling
    # TODO(synk): graph_level=True global_mean_pool head not implemented.
    return out_pad[:, :NUM_CLASSES]


# ---------------------------- deterministic params ----------------------------
def _folded_bn(key, dim):
    k1, k2, k3, k4 = jax.random.split(key, 4)
    gamma = 1.0 + 0.1 * jax.random.normal(k1, (dim,), jnp.float32)
    beta = 0.1 * jax.random.normal(k2, (dim,), jnp.float32)
    run_mean = 0.1 * jax.random.normal(k3, (dim,), jnp.float32)
    run_var = 0.5 + jax.random.uniform(k4, (dim,), jnp.float32)
    scale = gamma / jnp.sqrt(run_var + BN_EPS)
    shift = beta - run_mean * scale
    return scale.reshape(1, dim), shift.reshape(1, dim)


def init_params(key):
    ks = list(jax.random.split(key, 16))
    dense = lambda k, shp: 0.1 * jax.random.normal(k, shp, jnp.float32)
    p = {
        "w_in": dense(ks[0], (NUM_FEATS, HIDDEN)),
        "b_in": dense(ks[1], (1, HIDDEN)),
        "w_rel": [], "w_root": [], "b_conv": [], "bn_scale": [], "bn_shift": [],
        "w_fin": dense(ks[2], (HIDDEN, NUM_CLASSES)),
        "b_fin": dense(ks[3], (1, NUM_CLASSES)),
    }
    p["bn0_scale"], p["bn0_shift"] = _folded_bn(ks[4], HIDDEN)
    for l in range(NUM_LAYERS):
        base = 5 + 3 * l
        p["w_rel"].append(dense(ks[base], (NUM_REL, HIDDEN, HIDDEN)))
        p["w_root"].append(dense(ks[base + 1], (HIDDEN, HIDDEN)))
        p["b_conv"].append(dense(ks[base + 2], (1, HIDDEN)))
        s, sh = _folded_bn(ks[11 + l], HIDDEN)
        p["bn_scale"].append(s)
        p["bn_shift"].append(sh)
    return p


# ------------------------------ pure-JAX reference -----------------------------
def reference_forward(x, edge_index, edge_type, p):
    """f32 reference with scatter-built adjacency (independently checks the
    one-hot adjacency construction and the bf16 kernel)."""
    src, dst = edge_index[0], edge_index[1]
    adj = jnp.zeros((NUM_REL, x.shape[0], x.shape[0]), jnp.float32)
    adj = adj.at[edge_type, dst, src].add(1.0)
    deg = adj.sum(axis=2, keepdims=True)
    adj = adj / jnp.maximum(deg, 1.0)

    h = jnp.maximum(x @ p["w_in"] + p["b_in"], 0.0)
    h = h * p["bn0_scale"] + p["bn0_shift"]
    for l in range(NUM_LAYERS):
        out = h @ p["w_root"][l] + p["b_conv"][l]
        agg = jnp.einsum("rij,jh->rih", adj, h)
        out = out + jnp.einsum("rih,rho->io", agg, p["w_rel"][l])
        h = jnp.maximum(out * p["bn_scale"][l] + p["bn_shift"][l], 0.0)
    logits = h @ p["w_fin"] + p["b_fin"]
    return jax.nn.softmax(logits, axis=1)


# ----------------------------------- main --------------------------------------
if __name__ == "__main__":
    key = jax.random.PRNGKey(0)
    k_x, k_ei, k_et, k_p = jax.random.split(key, 4)

    x = jax.random.normal(k_x, (N_NODES, NUM_FEATS), jnp.float32)
    edge_index = jax.random.randint(k_ei, (2, NUM_EDGES), 0, N_NODES, jnp.int32)
    edge_type = jax.random.randint(k_et, (NUM_EDGES,), 0, NUM_REL, jnp.int32)
    params = init_params(k_p)

    out = pyg_model_forward(x, edge_index, edge_type, params)
    out = jax.block_until_ready(out)

    ref = jax.block_until_ready(reference_forward(x, edge_index, edge_type, params))

    assert out.shape == (N_NODES, NUM_CLASSES)
    assert bool(jnp.all(jnp.isfinite(out)))
    # softmax rows sum to 1 (approx reciprocal -> slightly relaxed)
    assert bool(jnp.allclose(out.sum(axis=1), 1.0, atol=5e-3))
    # matches the pure-f32 JAX reference (kernel uses explicit bf16 operands)
    assert bool(jnp.allclose(out, ref, atol=2e-2, rtol=2e-2))

    print("KERNEL_OK")
</pallas_src>

<mosaic_0001>
module attributes {stable_mosaic.version = 11 : i64} {
  func.func @kernel(%arg0: memref<128x128xbf16, #tpu.memory_space<vmem>>, %arg1: memref<2560x128xbf16, #tpu.memory_space<vmem>>, %arg2: memref<128x128xbf16, #tpu.memory_space<vmem>>, %arg3: memref<1x128xf32, #tpu.memory_space<vmem>>, %arg4: memref<1x128xf32, #tpu.memory_space<vmem>>, %arg5: memref<1x128xf32, #tpu.memory_space<vmem>>, %arg6: memref<2688x128xbf16, #tpu.memory_space<vmem>>, %arg7: memref<1x128xf32, #tpu.memory_space<vmem>>, %arg8: memref<2688x128xbf16, #tpu.memory_space<vmem>>, %arg9: memref<1x128xf32, #tpu.memory_space<vmem>>, %arg10: memref<128x128xbf16, #tpu.memory_space<vmem>>, %arg11: memref<1x128xf32, #tpu.memory_space<vmem>>, %arg12: memref<128x128xf32, #tpu.memory_space<vmem>>, %arg13: memref<128x2688xbf16, #tpu.memory_space<vmem>>) attributes {dimension_semantics = [], scalar_prefetch = 0 : i64, scratch_operands = 1 : i64, tpu.core_type = #tpu.core_type<tc>} {
    %c0 = arith.constant 0 : index
    %c0_0 = arith.constant 0 : index
    %0 = vector.load %arg0[%c0, %c0_0] : memref<128x128xbf16, #tpu.memory_space<vmem>>, vector<128x128xbf16>
    %c0_1 = arith.constant 0 : index
    %c0_2 = arith.constant 0 : index
    %1 = vector.load %arg2[%c0_1, %c0_2] : memref<128x128xbf16, #tpu.memory_space<vmem>>, vector<128x128xbf16>
    %cst = arith.constant dense<0.000000e+00> : vector<128x128xf32>
    %2 = tpu.matmul %0, %1, %cst {dimension_numbers = #tpu.dot_dimension_numbers<[1], [0], [0], [1], [0, 0, 1, 1], [], []>} : vector<128x128xbf16>, vector<128x128xbf16>, vector<128x128xf32> -> vector<128x128xf32>
    %c0_3 = arith.constant 0 : index
    %c0_4 = arith.constant 0 : index
    %3 = vector.load %arg3[%c0_3, %c0_4] : memref<1x128xf32, #tpu.memory_space<vmem>>, vector<1x128xf32>
    %4 = vector.broadcast %3 : vector<1x128xf32> to vector<128x128xf32>
    %5 = arith.addf %2, %4 : vector<128x128xf32>
    %cst_5 = arith.constant 0.000000e+00 : f32
    %6 = vector.broadcast %cst_5 : f32 to vector<128x128xf32>
    %7 = arith.maximumf %5, %6 : vector<128x128xf32>
    %c0_6 = arith.constant 0 : index
    %c0_7 = arith.constant 0 : index
    %8 = vector.load %arg4[%c0_6, %c0_7] : memref<1x128xf32, #tpu.memory_space<vmem>>, vector<1x128xf32>
    %9 = vector.broadcast %8 : vector<1x128xf32> to vector<128x128xf32>
    %10 = arith.mulf %7, %9 : vector<128x128xf32>
    %c0_8 = arith.constant 0 : index
    %c0_9 = arith.constant 0 : index
    %11 = vector.load %arg5[%c0_8, %c0_9] : memref<1x128xf32, #tpu.memory_space<vmem>>, vector<1x128xf32>
    %12 = vector.broadcast %11 : vector<1x128xf32> to vector<128x128xf32>
    %13 = arith.addf %10, %12 : vector<128x128xf32>
    %14 = arith.truncf %13 : vector<128x128xf32> to vector<128x128xbf16>
    %c0_10 = arith.constant 0 : index
    %c0_11 = arith.constant 0 : index
    %15 = vector.load %arg1[%c0_10, %c0_11] : memref<2560x128xbf16, #tpu.memory_space<vmem>>, vector<2560x128xbf16>
    %cst_12 = arith.constant dense<0.000000e+00> : vector<2560x128xf32>
    %16 = tpu.matmul %15, %14, %cst_12 {dimension_numbers = #tpu.dot_dimension_numbers<[1], [0], [0], [1], [0, 0, 1, 1], [], []>} : vector<2560x128xbf16>, vector<128x128xbf16>, vector<2560x128xf32> -> vector<2560x128xf32>
    %17 = vector.extract_strided_slice %16 {offsets = [0, 0], sizes = [128, 128], strides = [1, 1]} : vector<2560x128xf32> to vector<128x128xf32>
    %18 = arith.truncf %17 : vector<128x128xf32> to vector<128x128xbf16>
    %c0_13 = arith.constant 0 : index
    %c0_14 = arith.constant 0 : index
    %19 = vector.load %arg13[%c0_13, %c0_14] : memref<128x2688xbf16, #tpu.memory_space<vmem>>, vector<128x128xbf16>
    tpu.vector_store %arg13[%c0_13, %c0_14], %18 {strides = array<i32>} : memref<128x2688xbf16, #tpu.memory_space<vmem>>, vector<128x128xbf16>,
    %20 = vector.extract_strided_slice %16 {offsets = [128, 0], sizes = [128, 128], strides = [1, 1]} : vector<2560x128xf32> to vector<128x128xf32>
    %21 = arith.truncf %20 : vector<128x128xf32> to vector<128x128xbf16>
    %c0_15 = arith.constant 0 : index
    %c128 = arith.constant 128 : index
    %22 = vector.load %arg13[%c0_15, %c128] : memref<128x2688xbf16, #tpu.memory_space<vmem>>, vector<128x128xbf16>
    tpu.vector_store %arg13[%c0_15, %c128], %21 {strides = array<i32>} : memref<128x2688xbf16, #tpu.memory_space<vmem>>, vector<128x128xbf16>,
    %23 = vector.extract_strided_slice %16 {offsets = [256, 0], sizes = [128, 128], strides = [1, 1]} : vector<2560x128xf32> to vector<128x128xf32>
    %24 = arith.truncf %23 : vector<128x128xf32> to vector<128x128xbf16>
    %c0_16 = arith.constant 0 : index
    %c256 = arith.constant 256 : index
    %25 = vector.load %arg13[%c0_16, %c256] : memref<128x2688xbf16, #tpu.memory_space<vmem>>, vector<128x128xbf16>
    tpu.vector_store %arg13[%c0_16, %c256], %24 {strides = array<i32>} : memref<128x2688xbf16, #tpu.memory_space<vmem>>, vector<128x128xbf16>,
    %26 = vector.extract_strided_slice %16 {offsets = [384, 0], sizes = [128, 128], strides = [1, 1]} : vector<2560x128xf32> to vector<128x128xf32>
    %27 = arith.truncf %26 : vector<128x128xf32> to vector<128x128xbf16>
    %c0_17 = arith.constant 0 : index
    %c384 = arith.constant 384 : index
    %28 = vector.load %arg13[%c0_17, %c384] : memref<128x2688xbf16, #tpu.memory_space<vmem>>, vector<128x128xbf16>
    tpu.vector_store %arg13[%c0_17, %c384], %27 {strides = array<i32>} : memref<128x2688xbf16, #tpu.memory_space<vmem>>, vector<128x128xbf16>,
    %29 = vector.extract_strided_slice %16 {offsets = [512, 0], sizes = [128, 128], strides = [1, 1]} : vector<2560x128xf32> to vector<128x128xf32>
    %30 = arith.truncf %29 : vector<128x128xf32> to vector<128x128xbf16>
    %c0_18 = arith.constant 0 : index
    %c512 = arith.constant 512 : index
    %31 = vector.load %arg13[%c0_18, %c512] : memref<128x2688xbf16, #tpu.memory_space<vmem>>, vector<128x128xbf16>
    tpu.vector_store %arg13[%c0_18, %c512], %30 {strides = array<i32>} : memref<128x2688xbf16, #tpu.memory_space<vmem>>, vector<128x128xbf16>,
    %32 = vector.extract_strided_slice %16 {offsets = [640, 0], sizes = [128, 128], strides = [1, 1]} : vector<2560x128xf32> to vector<128x128xf32>
    %33 = arith.truncf %32 : vector<128x128xf32> to vector<128x128xbf16>
    %c0_19 = arith.constant 0 : index
    %c640 = arith.constant 640 : index
    %34 = vector.load %arg13[%c0_19, %c640] : memref<128x2688xbf16, #tpu.memory_space<vmem>>, vector<128x128xbf16>
    tpu.vector_store %arg13[%c0_19, %c640], %33 {strides = array<i32>} : memref<128x2688xbf16, #tpu.memory_space<vmem>>, vector<128x128xbf16>,
    %35 = vector.extract_strided_slice %16 {offsets = [768, 0], sizes = [128, 128], strides = [1, 1]} : vector<2560x128xf32> to vector<128x128xf32>
    %36 = arith.truncf %35 : vector<128x128xf32> to vector<128x128xbf16>
    %c0_20 = arith.constant 0 : index
    %c768 = arith.constant 768 : index
    %37 = vector.load %arg13[%c0_20, %c768] : memref<128x2688xbf16, #tpu.memory_space<vmem>>, vector<128x128xbf16>
    tpu.vector_store %arg13[%c0_20, %c768], %36 {strides = array<i32>} : memref<128x2688xbf16, #tpu.memory_space<vmem>>, vector<128x128xbf16>,
    %38 = vector.extract_strided_slice %16 {offsets = [896, 0], sizes = [128, 128], strides = [1, 1]} : vector<2560x128xf32> to vector<128x128xf32>
    %39 = arith.truncf %38 : vector<128x128xf32> to vector<128x128xbf16>
    %c0_21 = arith.constant 0 : index
    %c896 = arith.constant 896 : index
    %40 = vector.load %arg13[%c0_21, %c896] : memref<128x2688xbf16, #tpu.memory_space<vmem>>, vector<128x128xbf16>
    tpu.vector_store %arg13[%c0_21, %c896], %39 {strides = array<i32>} : memref<128x2688xbf16, #tpu.memory_space<vmem>>, vector<128x128xbf16>,
    %41 = vector.extract_strided_slice %16 {offsets = [1024, 0], sizes = [128, 128], strides = [1, 1]} : vector<2560x128xf32> to vector<128x128xf32>
    %42 = arith.truncf %41 : vector<128x128xf32> to vector<128x128xbf16>
    %c0_22 = arith.constant 0 : index
    %c1024 = arith.constant 1024 : index
    %43 = vector.load %arg13[%c0_22, %c1024] : memref<128x2688xbf16, #tpu.memory_space<vmem>>, vector<128x128xbf16>
    tpu.vector_store %arg13[%c0_22, %c1024], %42 {strides = array<i32>} : memref<128x2688xbf16, #tpu.memory_space<vmem>>, vector<128x128xbf16>,
    %44 = vector.extract_strided_slice %16 {offsets = [1152, 0], sizes = [128, 128], strides = [1, 1]} : vector<2560x128xf32> to vector<128x128xf32>
    %45 = arith.truncf %44 : vector<128x128xf32> to vector<128x128xbf16>
    %c0_23 = arith.constant 0 : index
    %c1152 = arith.constant 1152 : index
    %46 = vector.load %arg13[%c0_23, %c1152] : memref<128x2688xbf16, #tpu.memory_space<vmem>>, vector<128x128xbf16>
    tpu.vector_store %arg13[%c0_23, %c1152], %45 {strides = array<i32>} : memref<128x2688xbf16, #tpu.memory_space<vmem>>, vector<128x128xbf16>,
    %47 = vector.extract_strided_slice %16 {offsets = [1280, 0], sizes = [128, 128], strides = [1, 1]} : vector<2560x128xf32> to vector<128x128xf32>
    %48 = arith.truncf %47 : vector<128x128xf32> to vector<128x128xbf16>
    %c0_24 = arith.constant 0 : index
    %c1280 = arith.constant 1280 : index
    %49 = vector.load %arg13[%c0_24, %c1280] : memref<128x2688xbf16, #tpu.memory_space<vmem>>, vector<128x128xbf16>
    tpu.vector_store %arg13[%c0_24, %c1280], %48 {strides = array<i32>} : memref<128x2688xbf16, #tpu.memory_space<vmem>>, vector<128x128xbf16>,
    %50 = vector.extract_strided_slice %16 {offsets = [1408, 0], sizes = [128, 128], strides = [1, 1]} : vector<2560x128xf32> to vector<128x128xf32>
    %51 = arith.truncf %50 : vector<128x128xf32> to vector<128x128xbf16>
    %c0_25 = arith.constant 0 : index
    %c1408 = arith.constant 1408 : index
    %52 = vector.load %arg13[%c0_25, %c1408] : memref<128x2688xbf16, #tpu.memory_space<vmem>>, vector<128x128xbf16>
    tpu.vector_store %arg13[%c0_25, %c1408], %51 {strides = array<i32>} : memref<128x2688xbf16, #tpu.memory_space<vmem>>, vector<128x128xbf16>,
    %53 = vector.extract_strided_slice %16 {offsets = [1536, 0], sizes = [128, 128], strides = [1, 1]} : vector<2560x128xf32> to vector<128x128xf32>
    %54 = arith.truncf %53 : vector<128x128xf32> to vector<128x128xbf16>
    %c0_26 = arith.constant 0 : index
    %c1536 = arith.constant 1536 : index
    %55 = vector.load %arg13[%c0_26, %c1536] : memref<128x2688xbf16, #tpu.memory_space<vmem>>, vector<128x128xbf16>
    tpu.vector_store %arg13[%c0_26, %c1536], %54 {strides = array<i32>} : memref<128x2688xbf16, #tpu.memory_space<vmem>>, vector<128x128xbf16>,
    %56 = vector.extract_strided_slice %16 {offsets = [1664, 0], sizes = [128, 128], strides = [1, 1]} : vector<2560x128xf32> to vector<128x128xf32>
    %57 = arith.truncf %56 : vector<128x128xf32> to vector<128x128xbf16>
    %c0_27 = arith.constant 0 : index
    %c1664 = arith.constant 1664 : index
    %58 = vector.load %arg13[%c0_27, %c1664] : memref<128x2688xbf16, #tpu.memory_space<vmem>>, vector<128x128xbf16>
    tpu.vector_store %arg13[%c0_27, %c1664], %57 {strides = array<i32>} : memref<128x2688xbf16, #tpu.memory_space<vmem>>, vector<128x128xbf16>,
    %59 = vector.extract_strided_slice %16 {offsets = [1792, 0], sizes = [128, 128], strides = [1, 1]} : vector<2560x128xf32> to vector<128x128xf32>
    %60 = arith.truncf %59 : vector<128x128xf32> to vector<128x128xbf16>
    %c0_28 = arith.constant 0 : index
    %c1792 = arith.constant 1792 : index
    %61 = vector.load %arg13[%c0_28, %c1792] : memref<128x2688xbf16, #tpu.memory_space<vmem>>, vector<128x128xbf16>
    tpu.vector_store %arg13[%c0_28, %c1792], %60 {strides = array<i32>} : memref<128x2688xbf16, #tpu.memory_space<vmem>>, vector<128x128xbf16>,
    %62 = vector.extract_strided_slice %16 {offsets = [1920, 0], sizes = [128, 128], strides = [1, 1]} : vector<2560x128xf32> to vector<128x128xf32>
    %63 = arith.truncf %62 : vector<128x128xf32> to vector<128x128xbf16>
    %c0_29 = arith.constant 0 : index
    %c1920 = arith.constant 1920 : index
    %64 = vector.load %arg13[%c0_29, %c1920] : memref<128x2688xbf16, #tpu.memory_space<vmem>>, vector<128x128xbf16>
    tpu.vector_store %arg13[%c0_29, %c1920], %63 {strides = array<i32>} : memref<128x2688xbf16, #tpu.memory_space<vmem>>, vector<128x128xbf16>,
    %65 = vector.extract_strided_slice %16 {offsets = [2048, 0], sizes = [128, 128], strides = [1, 1]} : vector<2560x128xf32> to vector<128x128xf32>
    %66 = arith.truncf %65 : vector<128x128xf32> to vector<128x128xbf16>
    %c0_30 = arith.constant 0 : index
    %c2048 = arith.constant 2048 : index
    %67 = vector.load %arg13[%c0_30, %c2048] : memref<128x2688xbf16, #tpu.memory_space<vmem>>, vector<128x128xbf16>
    tpu.vector_store %arg13[%c0_30, %c2048], %66 {strides = array<i32>} : memref<128x2688xbf16, #tpu.memory_space<vmem>>, vector<128x128xbf16>,
    %68 = vector.extract_strided_slice %16 {offsets = [2176, 0], sizes = [128, 128], strides = [1, 1]} : vector<2560x128xf32> to vector<128x128xf32>
    %69 = arith.truncf %68 : vector<128x128xf32> to vector<128x128xbf16>
    %c0_31 = arith.constant 0 : index
    %c2176 = arith.constant 2176 : index
    %70 = vector.load %arg13[%c0_31, %c2176] : memref<128x2688xbf16, #tpu.memory_space<vmem>>, vector<128x128xbf16>
    tpu.vector_store %arg13[%c0_31, %c2176], %69 {strides = array<i32>} : memref<128x2688xbf16, #tpu.memory_space<vmem>>, vector<128x128xbf16>,
    %71 = vector.extract_strided_slice %16 {offsets = [2304, 0], sizes = [128, 128], strides = [1, 1]} : vector<2560x128xf32> to vector<128x128xf32>
    %72 = arith.truncf %71 : vector<128x128xf32> to vector<128x128xbf16>
    %c0_32 = arith.constant 0 : index
    %c2304 = arith.constant 2304 : index
    %73 = vector.load %arg13[%c0_32, %c2304] : memref<128x2688xbf16, #tpu.memory_space<vmem>>, vector<128x128xbf16>
    tpu.vector_store %arg13[%c0_32, %c2304], %72 {strides = array<i32>} : memref<128x2688xbf16, #tpu.memory_space<vmem>>, vector<128x128xbf16>,
    %74 = vector.extract_strided_slice %16 {offsets = [2432, 0], sizes = [128, 128], strides = [1, 1]} : vector<2560x128xf32> to vector<128x128xf32>
    %75 = arith.truncf %74 : vector<128x128xf32> to vector<128x128xbf16>
    %c0_33 = arith.constant 0 : index
    %c2432 = arith.constant 2432 : index
    %76 = vector.load %arg13[%c0_33, %c2432] : memref<128x2688xbf16, #tpu.memory_space<vmem>>, vector<128x128xbf16>
    tpu.vector_store %arg13[%c0_33, %c2432], %75 {strides = array<i32>} : memref<128x2688xbf16, #tpu.memory_space<vmem>>, vector<128x128xbf16>,
    %c0_34 = arith.constant 0 : index
    %c2560 = arith.constant 2560 : index
    %77 = vector.load %arg13[%c0_34, %c2560] : memref<128x2688xbf16, #tpu.memory_space<vmem>>, vector<128x128xbf16>
    tpu.vector_store %arg13[%c0_34, %c2560], %14 {strides = array<i32>} : memref<128x2688xbf16, #tpu.memory_space<vmem>>, vector<128x128xbf16>,
    %c0_35 = arith.constant 0 : index
    %c0_36 = arith.constant 0 : index
    %78 = vector.load %arg13[%c0_35, %c0_36] : memref<128x2688xbf16, #tpu.memory_space<vmem>>, vector<128x2688xbf16>
    %c0_37 = arith.constant 0 : index
    %c0_38 = arith.constant 0 : index
    %79 = vector.load %arg6[%c0_37, %c0_38] : memref<2688x128xbf16, #tpu.memory_space<vmem>>, vector<2688x128xbf16>
    %cst_39 = arith.constant dense<0.000000e+00> : vector<128x128xf32>
    %80 = tpu.matmul %78, %79, %cst_39 {dimension_numbers = #tpu.dot_dimension_numbers<[1], [0], [0], [1], [0, 0, 1, 1], [], []>} : vector<128x2688xbf16>, vector<2688x128xbf16>, vector<128x128xf32> -> vector<128x128xf32>
    %c0_40 = arith.constant 0 : index
    %c0_41 = arith.constant 0 : index
    %81 = vector.load %arg7[%c0_40, %c0_41] : memref<1x128xf32, #tpu.memory_space<vmem>>, vector<1x128xf32>
    %82 = vector.broadcast %81 : vector<1x128xf32> to vector<128x128xf32>
    %83 = arith.addf %80, %82 : vector<128x128xf32>
    %cst_42 = arith.constant 0.000000e+00 : f32
    %84 = vector.broadcast %cst_42 : f32 to vector<128x128xf32>
    %85 = arith.maximumf %83, %84 : vector<128x128xf32>
    %86 = arith.truncf %85 : vector<128x128xf32> to vector<128x128xbf16>
    %cst_43 = arith.constant dense<0.000000e+00> : vector<2560x128xf32>
    %87 = tpu.matmul %15, %86, %cst_43 {dimension_numbers = #tpu.dot_dimension_numbers<[1], [0], [0], [1], [0, 0, 1, 1], [], []>} : vector<2560x128xbf16>, vector<128x128xbf16>, vector<2560x128xf32> -> vector<2560x128xf32>
    %88 = vector.extract_strided_slice %87 {offsets = [0, 0], sizes = [128, 128], strides = [1, 1]} : vector<2560x128xf32> to vector<128x128xf32>
    %89 = arith.truncf %88 : vector<128x128xf32> to vector<128x128xbf16>
    %c0_44 = arith.constant 0 : index
    %c0_45 = arith.constant 0 : index
    %90 = vector.load %arg13[%c0_44, %c0_45] : memref<128x2688xbf16, #tpu.memory_space<vmem>>, vector<128x128xbf16>
    tpu.vector_store %arg13[%c0_44, %c0_45], %89 {strides = array<i32>} : memref<128x2688xbf16, #tpu.memory_space<vmem>>, vector<128x128xbf16>,
    %91 = vector.extract_strided_slice %87 {offsets = [128, 0], sizes = [128, 128], strides = [1, 1]} : vector<2560x128xf32> to vector<128x128xf32>
    %92 = arith.truncf %91 : vector<128x128xf32> to vector<128x128xbf16>
    %c0_46 = arith.constant 0 : index
    %c128_47 = arith.constant 128 : index
    %93 = vector.load %arg13[%c0_46, %c128_47] : memref<128x2688xbf16, #tpu.memory_space<vmem>>, vector<128x128xbf16>
    tpu.vector_store %arg13[%c0_46, %c128_47], %92 {strides = array<i32>} : memref<128x2688xbf16, #tpu.memory_space<vmem>>, vector<128x128xbf16>,
    %94 = vector.extract_strided_slice %87 {offsets = [256, 0], sizes = [128, 128], strides = [1, 1]} : vector<2560x128xf32> to vector<128x128xf32>
    %95 = arith.truncf %94 : vector<128x128xf32> to vector<128x128xbf16>
    %c0_48 = arith.constant 0 : index
    %c256_49 = arith.constant 256 : index
    %96 = vector.load %arg13[%c0_48, %c256_49] : memref<128x2688xbf16, #tpu.memory_space<vmem>>, vector<128x128xbf16>
    tpu.vector_store %arg13[%c0_48, %c256_49], %95 {strides = array<i32>} : memref<128x2688xbf16, #tpu.memory_space<vmem>>, vector<128x128xbf16>,
    %97 = vector.extract_strided_slice %87 {offsets = [384, 0], sizes = [128, 128], strides = [1, 1]} : vector<2560x128xf32> to vector<128x128xf32>
    %98 = arith.truncf %97 : vector<128x128xf32> to vector<128x128xbf16>
    %c0_50 = arith.constant 0 : index
    %c384_51 = arith.constant 384 : index
    %99 = vector.load %arg13[%c0_50, %c384_51] : memref<128x2688xbf16, #tpu.memory_space<vmem>>, vector<128x128xbf16>
    tpu.vector_store %arg13[%c0_50, %c384_51], %98 {strides = array<i32>} : memref<128x2688xbf16, #tpu.memory_space<vmem>>, vector<128x128xbf16>,
    %100 = vector.extract_strided_slice %87 {offsets = [512, 0], sizes = [128, 128], strides = [1, 1]} : vector<2560x128xf32> to vector<128x128xf32>
    %101 = arith.truncf %100 : vector<128x128xf32> to vector<128x128xbf16>
    %c0_52 = arith.constant 0 : index
    %c512_53 = arith.constant 512 : index
    %102 = vector.load %arg13[%c0_52, %c512_53] : memref<128x2688xbf16, #tpu.memory_space<vmem>>, vector<128x128xbf16>
    tpu.vector_store %arg13[%c0_52, %c512_53], %101 {strides = array<i32>} : memref<128x2688xbf16, #tpu.memory_space<vmem>>, vector<128x128xbf16>,
    %103 = vector.extract_strided_slice %87 {offsets = [640, 0], sizes = [128, 128], strides = [1, 1]} : vector<2560x128xf32> to vector<128x128xf32>
    %104 = arith.truncf %103 : vector<128x128xf32> to vector<128x128xbf16>
    %c0_54 = arith.constant 0 : index
    %c640_55 = arith.constant 640 : index
    %105 = vector.load %arg13[%c0_54, %c640_55] : memref<128x2688xbf16, #tpu.memory_space<vmem>>, vector<128x128xbf16>
    tpu.vector_store %arg13[%c0_54, %c640_55], %104 {strides = array<i32>} : memref<128x2688xbf16, #tpu.memory_space<vmem>>, vector<128x128xbf16>,
    %106 = vector.extract_strided_slice %87 {offsets = [768, 0], sizes = [128, 128], strides = [1, 1]} : vector<2560x128xf32> to vector<128x128xf32>
    %107 = arith.truncf %106 : vector<128x128xf32> to vector<128x128xbf16>
    %c0_56 = arith.constant 0 : index
    %c768_57 = arith.constant 768 : index
    %108 = vector.load %arg13[%c0_56, %c768_57] : memref<128x2688xbf16, #tpu.memory_space<vmem>>, vector<128x128xbf16>
    tpu.vector_store %arg13[%c0_56, %c768_57], %107 {strides = array<i32>} : memref<128x2688xbf16, #tpu.memory_space<vmem>>, vector<128x128xbf16>,
    %109 = vector.extract_strided_slice %87 {offsets = [896, 0], sizes = [128, 128], strides = [1, 1]} : vector<2560x128xf32> to vector<128x128xf32>
    %110 = arith.truncf %109 : vector<128x128xf32> to vector<128x128xbf16>
    %c0_58 = arith.constant 0 : index
    %c896_59 = arith.constant 896 : index
    %111 = vector.load %arg13[%c0_58, %c896_59] : memref<128x2688xbf16, #tpu.memory_space<vmem>>, vector<128x128xbf16>
    tpu.vector_store %arg13[%c0_58, %c896_59], %110 {strides = array<i32>} : memref<128x2688xbf16, #tpu.memory_space<vmem>>, vector<128x128xbf16>,
    %112 = vector.extract_strided_slice %87 {offsets = [1024, 0], sizes = [128, 128], strides = [1, 1]} : vector<2560x128xf32> to vector<128x128xf32>
    %113 = arith.truncf %112 : vector<128x128xf32> to vector<128x128xbf16>
    %c0_60 = arith.constant 0 : index
    %c1024_61 = arith.constant 1024 : index
    %114 = vector.load %arg13[%c0_60, %c1024_61] : memref<128x2688xbf16, #tpu.memory_space<vmem>>, vector<128x128xbf16>
    tpu.vector_store %arg13[%c0_60, %c1024_61], %113 {strides = array<i32>} : memref<128x2688xbf16, #tpu.memory_space<vmem>>, vector<128x128xbf16>,
    %115 = vector.extract_strided_slice %87 {offsets = [1152, 0], sizes = [128, 128], strides = [1, 1]} : vector<2560x128xf32> to vector<128x128xf32>
    %116 = arith.truncf %115 : vector<128x128xf32> to vector<128x128xbf16>
    %c0_62 = arith.constant 0 : index
    %c1152_63 = arith.constant 1152 : index
    %117 = vector.load %arg13[%c0_62, %c1152_63] : memref<128x2688xbf16, #tpu.memory_space<vmem>>, vector<128x128xbf16>
    tpu.vector_store %arg13[%c0_62, %c1152_63], %116 {strides = array<i32>} : memref<128x2688xbf16, #tpu.memory_space<vmem>>, vector<128x128xbf16>,
    %118 = vector.extract_strided_slice %87 {offsets = [1280, 0], sizes = [128, 128], strides = [1, 1]} : vector<2560x128xf32> to vector<128x128xf32>
    %119 = arith.truncf %118 : vector<128x128xf32> to vector<128x128xbf16>
    %c0_64 = arith.constant 0 : index
    %c1280_65 = arith.constant 1280 : index
    %120 = vector.load %arg13[%c0_64, %c1280_65] : memref<128x2688xbf16, #tpu.memory_space<vmem>>, vector<128x128xbf16>
    tpu.vector_store %arg13[%c0_64, %c1280_65], %119 {strides = array<i32>} : memref<128x2688xbf16, #tpu.memory_space<vmem>>, vector<128x128xbf16>,
    %121 = vector.extract_strided_slice %87 {offsets = [1408, 0], sizes = [128, 128], strides = [1, 1]} : vector<2560x128xf32> to vector<128x128xf32>
    %122 = arith.truncf %121 : vector<128x128xf32> to vector<128x128xbf16>
    %c0_66 = arith.constant 0 : index
    %c1408_67 = arith.constant 1408 : index
    %123 = vector.load %arg13[%c0_66, %c1408_67] : memref<128x2688xbf16, #tpu.memory_space<vmem>>, vector<128x128xbf16>
    tpu.vector_store %arg13[%c0_66, %c1408_67], %122 {strides = array<i32>} : memref<128x2688xbf16, #tpu.memory_space<vmem>>, vector<128x128xbf16>,
    %124 = vector.extract_strided_slice %87 {offsets = [1536, 0], sizes = [128, 128], strides = [1, 1]} : vector<2560x128xf32> to vector<128x128xf32>
    %125 = arith.truncf %124 : vector<128x128xf32> to vector<128x128xbf16>
    %c0_68 = arith.constant 0 : index
    %c1536_69 = arith.constant 1536 : index
    %126 = vector.load %arg13[%c0_68, %c1536_69] : memref<128x2688xbf16, #tpu.memory_space<vmem>>, vector<128x128xbf16>
    tpu.vector_store %arg13[%c0_68, %c1536_69], %125 {strides = array<i32>} : memref<128x2688xbf16, #tpu.memory_space<vmem>>, vector<128x128xbf16>,
    %127 = vector.extract_strided_slice %87 {offsets = [1664, 0], sizes = [128, 128], strides = [1, 1]} : vector<2560x128xf32> to vector<128x128xf32>
    %128 = arith.truncf %127 : vector<128x128xf32> to vector<128x128xbf16>
    %c0_70 = arith.constant 0 : index
    %c1664_71 = arith.constant 1664 : index
    %129 = vector.load %arg13[%c0_70, %c1664_71] : memref<128x2688xbf16, #tpu.memory_space<vmem>>, vector<128x128xbf16>
    tpu.vector_store %arg13[%c0_70, %c1664_71], %128 {strides = array<i32>} : memref<128x2688xbf16, #tpu.memory_space<vmem>>, vector<128x128xbf16>,
    %130 = vector.extract_strided_slice %87 {offsets = [1792, 0], sizes = [128, 128], strides = [1, 1]} : vector<2560x128xf32> to vector<128x128xf32>
    %131 = arith.truncf %130 : vector<128x128xf32> to vector<128x128xbf16>
    %c0_72 = arith.constant 0 : index
    %c1792_73 = arith.constant 1792 : index
    %132 = vector.load %arg13[%c0_72, %c1792_73] : memref<128x2688xbf16, #tpu.memory_space<vmem>>, vector<128x128xbf16>
    tpu.vector_store %arg13[%c0_72, %c1792_73], %131 {strides = array<i32>} : memref<128x2688xbf16, #tpu.memory_space<vmem>>, vector<128x128xbf16>,
    %133 = vector.extract_strided_slice %87 {offsets = [1920, 0], sizes = [128, 128], strides = [1, 1]} : vector<2560x128xf32> to vector<128x128xf32>
    %134 = arith.truncf %133 : vector<128x128xf32> to vector<128x128xbf16>
    %c0_74 = arith.constant 0 : index
    %c1920_75 = arith.constant 1920 : index
    %135 = vector.load %arg13[%c0_74, %c1920_75] : memref<128x2688xbf16, #tpu.memory_space<vmem>>, vector<128x128xbf16>
    tpu.vector_store %arg13[%c0_74, %c1920_75], %134 {strides = array<i32>} : memref<128x2688xbf16, #tpu.memory_space<vmem>>, vector<128x128xbf16>,
    %136 = vector.extract_strided_slice %87 {offsets = [2048, 0], sizes = [128, 128], strides = [1, 1]} : vector<2560x128xf32> to vector<128x128xf32>
    %137 = arith.truncf %136 : vector<128x128xf32> to vector<128x128xbf16>
    %c0_76 = arith.constant 0 : index
    %c2048_77 = arith.constant 2048 : index
    %138 = vector.load %arg13[%c0_76, %c2048_77] : memref<128x2688xbf16, #tpu.memory_space<vmem>>, vector<128x128xbf16>
    tpu.vector_store %arg13[%c0_76, %c2048_77], %137 {strides = array<i32>} : memref<128x2688xbf16, #tpu.memory_space<vmem>>, vector<128x128xbf16>,
    %139 = vector.extract_strided_slice %87 {offsets = [2176, 0], sizes = [128, 128], strides = [1, 1]} : vector<2560x128xf32> to vector<128x128xf32>
    %140 = arith.truncf %139 : vector<128x128xf32> to vector<128x128xbf16>
    %c0_78 = arith.constant 0 : index
    %c2176_79 = arith.constant 2176 : index
    %141 = vector.load %arg13[%c0_78, %c2176_79] : memref<128x2688xbf16, #tpu.memory_space<vmem>>, vector<128x128xbf16>
    tpu.vector_store %arg13[%c0_78, %c2176_79], %140 {strides = array<i32>} : memref<128x2688xbf16, #tpu.memory_space<vmem>>, vector<128x128xbf16>,
    %142 = vector.extract_strided_slice %87 {offsets = [2304, 0], sizes = [128, 128], strides = [1, 1]} : vector<2560x128xf32> to vector<128x128xf32>
    %143 = arith.truncf %142 : vector<128x128xf32> to vector<128x128xbf16>
    %c0_80 = arith.constant 0 : index
    %c2304_81 = arith.constant 2304 : index
    %144 = vector.load %arg13[%c0_80, %c2304_81] : memref<128x2688xbf16, #tpu.memory_space<vmem>>, vector<128x128xbf16>
    tpu.vector_store %arg13[%c0_80, %c2304_81], %143 {strides = array<i32>} : memref<128x2688xbf16, #tpu.memory_space<vmem>>, vector<128x128xbf16>,
    %145 = vector.extract_strided_slice %87 {offsets = [2432, 0], sizes = [128, 128], strides = [1, 1]} : vector<2560x128xf32> to vector<128x128xf32>
    %146 = arith.truncf %145 : vector<128x128xf32> to vector<128x128xbf16>
    %c0_82 = arith.constant 0 : index
    %c2432_83 = arith.constant 2432 : index
    %147 = vector.load %arg13[%c0_82, %c2432_83] : memref<128x2688xbf16, #tpu.memory_space<vmem>>, vector<128x128xbf16>
    tpu.vector_store %arg13[%c0_82, %c2432_83], %146 {strides = array<i32>} : memref<128x2688xbf16, #tpu.memory_space<vmem>>, vector<128x128xbf16>,
    %c0_84 = arith.constant 0 : index
    %c2560_85 = arith.constant 2560 : index
    %148 = vector.load %arg13[%c0_84, %c2560_85] : memref<128x2688xbf16, #tpu.memory_space<vmem>>, vector<128x128xbf16>
    tpu.vector_store %arg13[%c0_84, %c2560_85], %86 {strides = array<i32>} : memref<128x2688xbf16, #tpu.memory_space<vmem>>, vector<128x128xbf16>,
    %c0_86 = arith.constant 0 : index
    %c0_87 = arith.constant 0 : index
    %149 = vector.load %arg13[%c0_86, %c0_87] : memref<128x2688xbf16, #tpu.memory_space<vmem>>, vector<128x2688xbf16>
    %c0_88 = arith.constant 0 : index
    %c0_89 = arith.constant 0 : index
    %150 = vector.load %arg8[%c0_88, %c0_89] : memref<2688x128xbf16, #tpu.memory_space<vmem>>, vector<2688x128xbf16>
    %cst_90 = arith.constant dense<0.000000e+00> : vector<128x128xf32>
    %151 = tpu.matmul %149, %150, %cst_90 {dimension_numbers = #tpu.dot_dimension_numbers<[1], [0], [0], [1], [0, 0, 1, 1], [], []>} : vector<128x2688xbf16>, vector<2688x128xbf16>, vector<128x128xf32> -> vector<128x128xf32>
    %c0_91 = arith.constant 0 : index
    %c0_92 = arith.constant 0 : index
    %152 = vector.load %arg9[%c0_91, %c0_92] : memref<1x128xf32, #tpu.memory_space<vmem>>, vector<1x128xf32>
    %153 = vector.broadcast %152 : vector<1x128xf32> to vector<128x128xf32>
    %154 = arith.addf %151, %153 : vector<128x128xf32>
    %cst_93 = arith.constant 0.000000e+00 : f32
    %155 = vector.broadcast %cst_93 : f32 to vector<128x128xf32>
    %156 = arith.maximumf %154, %155 : vector<128x128xf32>
    %157 = arith.truncf %156 : vector<128x128xf32> to vector<128x128xbf16>
    %c0_94 = arith.constant 0 : index
    %c0_95 = arith.constant 0 : index
    %158 = vector.load %arg10[%c0_94, %c0_95] : memref<128x128xbf16, #tpu.memory_space<vmem>>, vector<128x128xbf16>
    %cst_96 = arith.constant dense<0.000000e+00> : vector<128x128xf32>
    %159 = tpu.matmul %157, %158, %cst_96 {dimension_numbers = #tpu.dot_dimension_numbers<[1], [0], [0], [1], [0, 0, 1, 1], [], []>} : vector<128x128xbf16>, vector<128x128xbf16>, vector<128x128xf32> -> vector<128x128xf32>
    %c0_97 = arith.constant 0 : index
    %c0_98 = arith.constant 0 : index
    %160 = vector.load %arg11[%c0_97, %c0_98] : memref<1x128xf32, #tpu.memory_space<vmem>>, vector<1x128xf32>
    %161 = vector.broadcast %160 : vector<1x128xf32> to vector<128x128xf32>
    %162 = arith.addf %159, %161 : vector<128x128xf32>
    %cst_99 = arith.constant dense<0xFF800000> : vector<128xf32>
    %163 = vector.multi_reduction <maximumf>, %162, %cst_99 [1] : vector<128x128xf32> to vector<128xf32>
    %164 = vector.shape_cast %163 : vector<128xf32> to vector<128x1xf32>
    %165 = vector.broadcast %164 : vector<128x1xf32> to vector<128x128xf32>
    %166 = arith.subf %162, %165 : vector<128x128xf32>
    %167 = math.exp %166 : vector<128x128xf32>
    %cst_100 = arith.constant dense<0.000000e+00> : vector<128xf32>
    %168 = vector.multi_reduction <add>, %167, %cst_100 [1] : vector<128x128xf32> to vector<128xf32>
    %169 = vector.shape_cast %168 : vector<128xf32> to vector<128x1xf32>
    %170 = tpu.reciprocal %169 {approx = true} : vector<128x1xf32> -> vector<128x1xf32>
    %171 = vector.broadcast %170 : vector<128x1xf32> to vector<128x128xf32>
    %172 = arith.mulf %167, %171 : vector<128x128xf32>
    %c0_101 = arith.constant 0 : index
    %c0_102 = arith.constant 0 : index
    %173 = vector.load %arg12[%c0_101, %c0_102] : memref<128x128xf32, #tpu.memory_space<vmem>>, vector<128x128xf32>
    tpu.vector_store %arg12[%c0_101, %c0_102], %172 {strides = array<i32>} : memref<128x128xf32, #tpu.memory_space<vmem>>, vector<128x128xf32>,
    return
  }
}

</mosaic_0001>

<bundles_post_ra>
// kernel: pyg_model_forward.1
= control target key start
LH: loop header
LB: loop body
LE: loop exit
PB: predicated region body
PF: predicated region fallthrough
CT: control target
= control target key end

     0   :  { %s19236_s2 = inlined_call_operand.vmem [shape: bf16[128,128], index: 2, kind: input, shape index: {}]   ;;  %s19237_s0 = inlined_call_operand.vmem [shape: bf16[128,128], index: 0, kind: input, shape index: {}]   ;;  %s19238_s1 = inlined_call_operand.vmem [shape: bf16[2560,128], index: 1, kind: input, shape index: {}]   ;;  %s19239_s3 = inlined_call_operand.vmem [shape: f32[1,128], index: 3, kind: input, shape index: {}]   ;;  %s19240_s4 = inlined_call_operand.vmem [shape: f32[1,128], index: 4, kind: input, shape index: {}]   ;;  %s19241_s5 = inlined_call_operand.vmem [shape: f32[1,128], index: 5, kind: input, shape index: {}]   ;;  %s19242_s6 = inlined_call_operand.vmem [shape: bf16[2688,128], index: 6, kind: input, shape index: {}]   ;;  %s19243_s7 = inlined_call_operand.vmem [shape: f32[1,128], index: 7, kind: input, shape index: {}]   ;;  %s19244_s8 = inlined_call_operand.vmem [shape: bf16[2688,128], index: 8, kind: input, shape index: {}]   ;;  %s19245_s9 = inlined_call_operand.vmem [shape: f32[1,128], index: 9, kind: input, shape index: {}]   ;;  %s19246_s10 = inlined_call_operand.vmem [shape: bf16[128,128], index: 10, kind: input, shape index: {}]   ;;  %s19247_s11 = inlined_call_operand.vmem [shape: f32[1,128], index: 11, kind: input, shape index: {}]   ;;  %s19248_s12 = inlined_call_operand.vmem [shape: f32[128,128], index: 12, kind: output, shape index: {}]  }
   0x1   :  { %v13464_v0 = vld [vmem:[%s19236_s2] sm:$0xff]   ;;  %v13465_v1 = vld [vmem:[%s19236_s2 + $0x8] sm:$0xff]   ;;  %v13466_v2 = vld [vmem:[%s19236_s2 + $0x10] sm:$0xff]  }
   0x2   :  { %12664 = vmatprep.subr.bf16.mxu0 %v13464_v0  ;;  %v13467_v3 = vld [vmem:[%s19236_s2 + $0x18] sm:$0xff]   ;;  %v13472_v4 = vld [vmem:[%s19237_s0] sm:$0xff]   ;;  %v13469_v6 = vld [vmem:[%s19236_s2 + $0x28] sm:$0xff]  }
   0x3   :  { %12665 = vmatpush3.bf16.msra.mxu0 %v13464_v0  ;;  %12680 = vmatprep.mubr.bf16.mxu0 %v13472_v4  ;;  %v13468_v5 = vld [vmem:[%s19236_s2 + $0x20] sm:$0xff]   ;;  %v13470_v7 = vld [vmem:[%s19236_s2 + $0x30] sm:$0xff]   ;;  %v13471_v8 = vld [vmem:[%s19236_s2 + $0x38] sm:$0xff]  }
   0x4   :  { %12666 = vmatprep.subr.bf16.mxu0 %v13465_v1  ;;  %v13473_v9 = vld [vmem:[%s19237_s0 + $0x8] sm:$0xff]   ;;  %v13474_v10 = vld [vmem:[%s19237_s0 + $0x10] sm:$0xff]   ;;  %v13475_v11 = vld [vmem:[%s19237_s0 + $0x18] sm:$0xff]  }
   0x5   :  { %v13476_v12 = vld [vmem:[%s19237_s0 + $0x20] sm:$0xff]   ;;  %v13477_v13 = vld [vmem:[%s19237_s0 + $0x28] sm:$0xff]   ;;  %v13478_v14 = vld [vmem:[%s19237_s0 + $0x30] sm:$0xff]  }
   0x6   :  { %v13479_v15 = vld [vmem:[%s19237_s0 + $0x38] sm:$0xff]   ;;  %v13480_v16 = vld [vmem:[%s19238_s1] sm:$0xff]  }
   0x7   :  { %12667 = vmatpush3.bf16.msra.mxu0 %v13465_v1  ;;  %12712 = vmatprep.mubr.bf16.mxu1 %v13480_v16  ;;  %v14327_v17 = vld [vmem:[%s19239_s3] ss:$0 sm:$0xff] }
   0x8   :  { %12668 = vmatprep.subr.bf16.mxu0 %v13466_v2  ;;  %v14332_v19 = vld [vmem:[%s19240_s4] ss:$0 sm:$0xff] }
   0x9   :  { %v14341_v29 = vld [vmem:[%s19241_s5] ss:$0 sm:$0xff] }
   0xb   :  { %12669 = vmatpush3.bf16.msra.mxu0 %v13466_v2 }
   0xc   :  { %12670 = vmatprep.subr.bf16.mxu0 %v13467_v3 }
   0xf   :  { %12671 = vmatpush3.bf16.msra.mxu0 %v13467_v3 }
  0x10   :  { %12672 = vmatprep.subr.bf16.mxu0 %v13468_v5 }
  0x13   :  { %12673 = vmatpush3.bf16.msra.mxu0 %v13468_v5 }
  0x14   :  { %12674 = vmatprep.subr.bf16.mxu0 %v13469_v6 }
  0x17   :  { %12675 = vmatpush3.bf16.msra.mxu0 %v13469_v6 }
  0x18   :  { %12676 = vmatprep.subr.bf16.mxu0 %v13470_v7 }
  0x1b   :  { %12677 = vmatpush3.bf16.msra.mxu0 %v13470_v7 }
  0x1c   :  { %12678 = vmatprep.subr.bf16.mxu0 %v13471_v8 }
  0x1f   :  { %12679 = vmatpush3.bf16.msra.mxu0 %v13471_v8 }
  0x22   :  { %12681 = vmatmul.mubr.bf16.vlgmr.msra.gmra.mrb[0].mxu0 %v13473_v9 }
  0x23   :  { %12684 = vmatprep.mubr.bf16.mxu0 %v13474_v10 }
  0x2a   :  { %12685 = vmatmul.mubr.bf16.gmra.mrb[4].mxu0 %v13475_v11 }
  0x2b   :  { %12688 = vmatprep.mubr.bf16.mxu0 %v13476_v12 }
  0x32   :  { %12689 = vmatmul.mubr.bf16.gmra.mrb[8].mxu0 %v13477_v13 }
  0x33   :  { %12692 = vmatprep.mubr.bf16.mxu0 %v13478_v14 }
  0x3a   :  { %12693 = vmatmul.mubr.bf16.gmra.mrb[12].mxu0 %v13479_v15 }
  0xf5   :  { %v12682_v18 = vpop.f32.mrb[0].mxu0 }
  0xf6   :  { %v220_v20 = vadd.f32 %v12682_v18, %v14327_v17  ;;  %v211_v21 = vpop.f32.mrb[1].mxu0 }
  0xf7   :  { %v212_v22 = vadd.f32 %v14327_v17, %v211_v21  ;;  %v12683_v23 = vpop.f32.mrb[2].mxu0 }
  0xf8   :  { %v276_v24 = vmax.f32 %v220_v20, 0.0  ;;  %v223_v25 = vadd.f32 %v12683_v23, %v14327_v17  ;;  %v214_v26 = vpop.f32.mrb[3].mxu0 }
  0xf9   :  { %v274_v27 = vmax.f32 %v212_v22, 0.0  ;;  %v215_v28 = vadd.f32 %v14327_v17, %v214_v26 }
  0xfa   :  { %v299_v30 = vmul.f32 %v14332_v19, %v276_v24  ;;  %v277_v31 = vmax.f32 %v223_v25, 0.0 }
  0xfb   :  { %v297_v32 = vmul.f32 %v14332_v19, %v274_v27  ;;  %v275_v33 = vmax.f32 %v215_v28, 0.0 }
  0xfc   :  { %v300_v34 = vmul.f32 %v14332_v19, %v277_v31  ;;  %v322_v39 = vadd.f32 %v14341_v29, %v299_v30 }
  0xfd   :  { %v298_v35 = vmul.f32 %v14332_v19, %v275_v33  ;;  %v12686_v36 = vpop.f32.mrb[4].mxu0  ;;  %v320_v43 = vadd.f32 %v14341_v29, %v297_v32 }
  0xfe   :  { %v236_v37 = vadd.f32 %v12686_v36, %v14327_v17  ;;  %v227_v38 = vpop.f32.mrb[5].mxu0  ;;  %v323_v40 = vadd.f32 %v14341_v29, %v300_v34 }
  0xff   :  { %v228_v41 = vadd.f32 %v14327_v17, %v227_v38  ;;  %v12687_v42 = vpop.f32.mrb[6].mxu0  ;;  %v321_v44 = vadd.f32 %v14341_v29, %v298_v35 }
 0x100   :  { %v280_v45 = vmax.f32 %v236_v37, 0.0  ;;  %v239_v46 = vadd.f32 %v12687_v42, %v14327_v17  ;;  %v230_v47 = vpop.f32.mrb[7].mxu0  ;;  %v14354_v48 = vpack.c.bf16 %v323_v40, %v322_v39 }
 0x101   :  { %v278_v49 = vmax.f32 %v228_v41, 0.0  ;;  %v231_v50 = vadd.f32 %v14327_v17, %v230_v47  ;;  %v14357_v51 = vpack.c.bf16 %v321_v44, %v320_v43  ;;  %v13484_v47 = vld [vmem:[%s19238_s1 + $0x20] sm:$0xff]  }
 0x102   :  { %v303_v52 = vmul.f32 %v14332_v19, %v280_v45  ;;  %v281_v53 = vmax.f32 %v239_v46, 0.0  ;;  %v13483_v46 = vld [vmem:[%s19238_s1 + $0x18] sm:$0xff]  }
 0x103   :  { %v301_v54 = vmul.f32 %v14332_v19, %v278_v49  ;;  %v279_v55 = vmax.f32 %v231_v50, 0.0  ;;  %12696 = vmatprep.subr.bf16.mxu1 %v14357_v51  ;;  %v13485_v49 = vld [vmem:[%s19238_s1 + $0x28] sm:$0xff]   ;;  %v13486_v50 = vld [vmem:[%s19238_s1 + $0x30] sm:$0xff]  }
 0x104   :  { %v304_v56 = vmul.f32 %v14332_v19, %v281_v53  ;;  %12697 = vmatpush3.bf16.msra.mxu1 %v14357_v51  ;;  %v326_v61 = vadd.f32 %v14341_v29, %v303_v52  ;;  %v13487_v52 = vld [vmem:[%s19238_s1 + $0x38] sm:$0xff]   ;;  %v13488_v53 = vld [vmem:[%s19238_s1 + $0x40] sm:$0xff]  }
 0x105   :  { %v302_v57 = vmul.f32 %v14332_v19, %v279_v55  ;;  %v12690_v58 = vpop.f32.mrb[8].mxu0  ;;  %12698 = vmatprep.subr.bf16.mxu1 %v14354_v48  ;;  %v324_v1 = vadd.f32 %v14341_v29, %v301_v54  ;;  %v13489_v54 = vld [vmem:[%s19238_s1 + $0x48] sm:$0xff]   ;;  %v13490_v55 = vld [vmem:[%s19238_s1 + $0x50] sm:$0xff]  }
 0x106   :  { %v252_v59 = vadd.f32 %v12690_v58, %v14327_v17  ;;  %v243_v60 = vpop.f32.mrb[9].mxu0  ;;  %v327_v62 = vadd.f32 %v14341_v29, %v304_v56  ;;  %v13491_v56 = vld [vmem:[%s19238_s1 + $0x58] sm:$0xff]   ;;  %v13493_v58 = vld [vmem:[%s19238_s1 + $0x68] sm:$0xff]  }
 0x107   :  { %v244_v63 = vadd.f32 %v14327_v17, %v243_v60  ;;  %v12691_v0 = vpop.f32.mrb[10].mxu0  ;;  %v325_v2 = vadd.f32 %v14341_v29, %v302_v57  ;;  %v13492_v57 = vld [vmem:[%s19238_s1 + $0x60] sm:$0xff]   ;;  %v13495_v60 = vld [vmem:[%s19238_s1 + $0x78] sm:$0xff]  }
 0x108   :  { %v284_v3 = vmax.f32 %v252_v59, 0.0  ;;  %v255_v4 = vadd.f32 %v12691_v0, %v14327_v17  ;;  %v246_v5 = vpop.f32.mrb[11].mxu0  ;;  %12699 = vmatpush3.bf16.msra.mxu1 %v14354_v48  ;;  %v14374_v6 = vpack.c.bf16 %v327_v62, %v326_v61  ;;  %v13494_v59 = vld [vmem:[%s19238_s1 + $0x70] sm:$0xff]   ;;  %v13496_v61 = vld [vmem:[%s19238_s1 + $0x80] sm:$0xff]   ;;  %v13497_v62 = vld [vmem:[%s19238_s1 + $0x88] sm:$0xff]  }
 0x109   :  { %v282_v7 = vmax.f32 %v244_v63, 0.0  ;;  %v247_v8 = vadd.f32 %v14327_v17, %v246_v5  ;;  %v14377_v9 = vpack.c.bf16 %v325_v2, %v324_v1  ;;  %v13498_v63 = vld [vmem:[%s19238_s1 + $0x90] sm:$0xff]   ;;  %v13499_v0 = vld [vmem:[%s19238_s1 + $0x98] sm:$0xff]   ;;  %v13500_v1 = vld [vmem:[%s19238_s1 + $0xa0] sm:$0xff]  }
 0x10a   :  { %v307_v10 = vmul.f32 %v14332_v19, %v284_v3  ;;  %v285_v11 = vmax.f32 %v255_v4, 0.0  ;;  %v13501_v2 = vld [vmem:[%s19238_s1 + $0xa8] sm:$0xff]   ;;  %v13502_v3 = vld [vmem:[%s19238_s1 + $0xb0] sm:$0xff]   ;;  %v13503_v4 = vld [vmem:[%s19238_s1 + $0xb8] sm:$0xff]  }
 0x10b   :  { %v305_v12 = vmul.f32 %v14332_v19, %v282_v7  ;;  %v283_v13 = vmax.f32 %v247_v8, 0.0  ;;  %12700 = vmatprep.subr.bf16.mxu1 %v14377_v9  ;;  %v13504_v5 = vld [vmem:[%s19238_s1 + $0xc0] sm:$0xff]  }
 0x10c   :  { %v308_v14 = vmul.f32 %v14332_v19, %v285_v11  ;;  %12701 = vmatpush3.bf16.msra.mxu1 %v14377_v9  ;;  %v330_v21 = vadd.f32 %v14341_v29, %v307_v10  ;;  %v13536_v7 = vld [vmem:[%s19242_s6 + $0x40] sm:$0xff]   ;;  %v13505_v10 = vld [vmem:[%s19238_s1 + $0xc8] sm:$0xff]  }
 0x10d   :  { %v306_v15 = vmul.f32 %v14332_v19, %v283_v13  ;;  %v12694_v16 = vpop.f32.mrb[12].mxu0  ;;  %12702 = vmatprep.subr.bf16.mxu1 %v14374_v6  ;;  %v328_v25 = vadd.f32 %v14341_v29, %v305_v12  ;;  %v13537_v8 = vld [vmem:[%s19242_s6] sm:$0xff]   ;;  %11168 = vmatprep.subr.bf16.mxu0 %v13536_v7  ;;  %v13538_v11 = vld [vmem:[%s19242_s6 + $0x48] sm:$0xff]   ;;  %v13506_v12 = vld [vmem:[%s19238_s1 + $0xd0] sm:$0xff]  }
 0x10e   :  { %v268_v18 = vadd.f32 %v12694_v16, %v14327_v17  ;;  %v259_v20 = vpop.f32.mrb[13].mxu0  ;;  %v331_v22 = vadd.f32 %v14341_v29, %v308_v14  ;;  %11169 = vmatpush3.bf16.msra.mxu0 %v13537_v8  ;;  %v13541_v13 = vld [vmem:[%s19242_s6 + $0x8] sm:$0xff]   ;;  %v13539_v14 = vld [vmem:[%s19242_s6 + $0x500] sm:$0xff]   ;;  %v13544_v16 = vld [vmem:[%s19242_s6 + $0x10] sm:$0xff]  }
 0x10f   :  { %v260_v23 = vadd.f32 %v14327_v17, %v259_v20  ;;  %v12695_v24 = vpop.f32.mrb[14].mxu0  ;;  %v329_v26 = vadd.f32 %v14341_v29, %v306_v15  ;;  %11170 = vmatprep.subr.bf16.mxu0 %v13538_v11  ;;  %v13543_v15 = vld [vmem:[%s19242_s6 + $0x50] sm:$0xff]   ;;  %v13545_v20 = vld [vmem:[%s19242_s6 + $0x58] sm:$0xff]   ;;  %v13542_v11 = vld [vmem:[%s19238_s1 + $0x1c8] sm:$0xff]  }
 0x110   :  { %v288_v27 = vmax.f32 %v268_v18, 0.0  ;;  %v271_v28 = vadd.f32 %v12695_v24, %v14327_v17  ;;  %v262_v30 = vpop.f32.mrb[15].mxu0  ;;  %12703 = vmatpush3.bf16.msra.mxu1 %v14374_v6  ;;  %v14394_v31 = vpack.c.bf16 %v331_v22, %v330_v21  ;;  %v13507_v18 = vld [vmem:[%s19238_s1 + $0xd8] sm:$0xff]   ;;  %v13508_v21 = vld [vmem:[%s19238_s1 + $0xe0] sm:$0xff]  }
 0x111   :  { %v286_v32 = vmax.f32 %v260_v23, 0.0  ;;  %v263_v33 = vadd.f32 %v14327_v17, %v262_v30  ;;  %v14397_v34 = vpack.c.bf16 %v329_v26, %v328_v25  ;;  %v13547_v22 = vld [vmem:[%s19242_s6 + $0x18] sm:$0xff]   ;;  %v13549_v23 = vld [vmem:[%s19242_s6 + $0x60] sm:$0xff]   ;;  %v13509_v25 = vld [vmem:[%s19238_s1 + $0xe8] sm:$0xff]  }
 0x112   :  { %v311_v35 = vmul.f32 %v14332_v19, %v288_v27  ;;  %v289_v36 = vmax.f32 %v271_v28, 0.0  ;;  %11171 = vmatpush3.bf16.msra.mxu0 %v13541_v13  ;;  %v13550_v24 = vld [vmem:[%s19242_s6 + $0x20] sm:$0xff]   ;;  %v13551_v26 = vld [vmem:[%s19242_s6 + $0x68] sm:$0xff]   ;;  %v13510_v27 = vld [vmem:[%s19238_s1 + $0xf0] sm:$0xff]  }
 0x113   :  { %v309_v37 = vmul.f32 %v14332_v19, %v286_v32  ;;  %v287_v38 = vmax.f32 %v263_v33, 0.0  ;;  %12704 = vmatprep.subr.bf16.mxu1 %v14397_v34  ;;  %11172 = vmatprep.subr.bf16.mxu0 %v13543_v15  ;;  %v13553_v28 = vld [vmem:[%s19242_s6 + $0x28] sm:$0xff]   ;;  %v13555_v30 = vld [vmem:[%s19242_s6 + $0x70] sm:$0xff]   ;;  %v13511_v33 = vld [vmem:[%s19238_s1 + $0xf8] sm:$0xff]  }
 0x114   :  { %v312_v39 = vmul.f32 %v14332_v19, %v289_v36  ;;  %12705 = vmatpush3.bf16.msra.mxu1 %v14397_v34  ;;  %v334_v17 = vadd.f32 %v14341_v29, %v311_v35  ;;  %v13556_v32 = vld [vmem:[%s19242_s6 + $0x30] sm:$0xff]   ;;  %v13557_v35 = vld [vmem:[%s19242_s6 + $0x78] sm:$0xff]   ;;  %v13512_v36 = vld [vmem:[%s19238_s1 + $0x100] sm:$0xff]  }
 0x115   :  { %v310_v40 = vmul.f32 %v14332_v19, %v287_v38  ;;  %12706 = vmatprep.subr.bf16.mxu1 %v14394_v31  ;;  %v332_v42 = vadd.f32 %v14341_v29, %v309_v37  ;;  %v13481_v19 = vld [vmem:[%s19238_s1 + $0x8] sm:$0xff]   ;;  %v13559_v37 = vld [vmem:[%s19242_s6 + $0x38] sm:$0xff]   ;;  %v13546_v13 = vld [vmem:[%s19238_s1 + $0x1d0] sm:$0xff]  }
 0x116   :  { %v335_v41 = vadd.f32 %v14341_v29, %v312_v39  ;;  %11173 = vmatpush3.bf16.msra.mxu0 %v13544_v16  ;;  %v13513_v38 = vld [vmem:[%s19238_s1 + $0x108] sm:$0xff]   ;;  %v13514_v39 = vld [vmem:[%s19238_s1 + $0x110] sm:$0xff]  }
 0x117   :  { %v333_v43 = vadd.f32 %v14341_v29, %v310_v40  ;;  %v13482_v29 = vld [vmem:[%s19238_s1 + $0x10] sm:$0xff]   ;;  %11174 = vmatprep.subr.bf16.mxu0 %v13545_v20  ;;  %v13561_v40 = vld [vmem:[%s19242_s6 + $0xc0] sm:$0xff]  }
 0x118   :  { %12707 = vmatpush3.bf16.msra.mxu1 %v14394_v31  ;;  %v14411_v44 = vpack.c.bf16 %v335_v41, %v334_v17  ;;  %v13515_v17 = vld [vmem:[%s19238_s1 + $0x118] sm:$0xff]   ;;  %v13516_v41 = vld [vmem:[%s19238_s1 + $0x120] sm:$0xff]  }
 0x119   :  { %v14413_v45 = vpack.c.bf16 %v333_v43, %v332_v42  ;;  %v13517_v42 = vld [vmem:[%s19238_s1 + $0x128] sm:$0xff]   ;;  %v13518_v43 = vld [vmem:[%s19238_s1 + $0x130] sm:$0xff]  }
 0x11a   :  { %11175 = vmatpush3.bf16.msra.mxu0 %v13547_v22 }
 0x11b   :  { %12708 = vmatprep.subr.bf16.mxu1 %v14413_v45  ;;  %11176 = vmatprep.subr.bf16.mxu0 %v13549_v23  ;;  %v13552_v23 = vld [vmem:[%s19238_s1 + $0x1e0] sm:$0xff]  }
 0x11c   :  { %12709 = vmatpush3.bf16.msra.mxu1 %v14413_v45 }
 0x11d   :  { %12710 = vmatprep.subr.bf16.mxu1 %v14411_v44 }
 0x11e   :  { %11177 = vmatpush3.bf16.msra.mxu0 %v13550_v24 }
 0x11f   :  { %11178 = vmatprep.subr.bf16.mxu0 %v13551_v26 }
 0x120   :  { %12711 = vmatpush3.bf16.msra.mxu1 %v14411_v44 }
 0x121   :  { %13032 = vmatprep.subr.bf16.mxu1 %v13539_v14 }
 0x122   :  { %11179 = vmatpush3.bf16.msra.mxu0 %v13553_v28 }
 0x123   :  { %12713 = vmatmul.mubr.bf16.vlgmr.msra.gmra.mrb[0].mxu1 %v13481_v19  ;;  %11180 = vmatprep.subr.bf16.mxu0 %v13555_v30  ;;  %v13519_v19 = vld [vmem:[%s19238_s1 + $0x138] sm:$0xff]   ;;  %v13554_v30 = vld [vmem:[%s19238_s1 + $0x1e8] sm:$0xff]  }
 0x124   :  { %12716 = vmatprep.mubr.bf16.mxu1 %v13482_v29  ;;  %13033 = vmatpush3.bf16.msra.mxu1 %v13539_v14  ;;  %v13520_v29 = vld [vmem:[%s19238_s1 + $0x140] sm:$0xff]  }
 0x126   :  { %11181 = vmatpush3.bf16.msra.mxu0 %v13556_v32 }
 0x127   :  { %11182 = vmatprep.subr.bf16.mxu0 %v13557_v35 }
 0x12a   :  { %11183 = vmatpush3.bf16.msra.mxu0 %v13559_v37 }
 0x12b   :  { %12717 = vmatmul.mubr.bf16.gmra.mrb[4].mxu1 %v13483_v46  ;;  %11232 = vmatprep.subr.bf16.mxu0 %v13561_v40  ;;  %v13521_v46 = vld [vmem:[%s19238_s1 + $0x148] sm:$0xff]   ;;  %v13560_v40 = vld [vmem:[%s19238_s1 + $0x1f8] sm:$0xff]  }
 0x12c   :  { %12720 = vmatprep.mubr.bf16.mxu1 %v13484_v47  ;;  %v13522_v47 = vld [vmem:[%s19238_s1 + $0x150] sm:$0xff]  }
 0x133   :  { %12721 = vmatmul.mubr.bf16.gmra.mrb[8].mxu1 %v13485_v49  ;;  %v13523_v49 = vld [vmem:[%s19238_s1 + $0x158] sm:$0xff]  }
 0x134   :  { %12724 = vmatprep.mubr.bf16.mxu1 %v13486_v50  ;;  %v13524_v50 = vld [vmem:[%s19238_s1 + $0x160] sm:$0xff]  }
 0x13b   :  { %12725 = vmatmul.mubr.bf16.gmra.mrb[12].mxu1 %v13487_v52  ;;  %v13525_v52 = vld [vmem:[%s19238_s1 + $0x168] sm:$0xff]  }
 0x13c   :  { %12728 = vmatprep.mubr.bf16.mxu1 %v13488_v53  ;;  %v13526_v53 = vld [vmem:[%s19238_s1 + $0x170] sm:$0xff]  }
 0x143   :  { %12729 = vmatmul.mubr.bf16.gmra.mrb[16].mxu1 %v13489_v54  ;;  %v13586_v54 = vld [vmem:[%s19242_s6 + $0x508] sm:$0xff]  }
 0x144   :  { %12732 = vmatprep.mubr.bf16.mxu1 %v13490_v55  ;;  %13034 = vmatprep.subr.bf16.mxu1 %v13586_v54  ;;  %v13527_v55 = vld [vmem:[%s19238_s1 + $0x178] sm:$0xff]  }
 0x145   :  { %13035 = vmatpush3.bf16.msra.mxu1 %v13586_v54 }
 0x14b   :  { %12733 = vmatmul.mubr.bf16.gmra.mrb[20].mxu1 %v13491_v56  ;;  %v13528_v56 = vld [vmem:[%s19238_s1 + $0x180] sm:$0xff]  }
 0x14c   :  { %12736 = vmatprep.mubr.bf16.mxu1 %v13492_v57  ;;  %v13529_v57 = vld [vmem:[%s19238_s1 + $0x188] sm:$0xff]  }
 0x153   :  { %12737 = vmatmul.mubr.bf16.gmra.mrb[24].mxu1 %v13493_v58  ;;  %v13530_v58 = vld [vmem:[%s19238_s1 + $0x190] sm:$0xff]  }
 0x154   :  { %12740 = vmatprep.mubr.bf16.mxu1 %v13494_v59  ;;  %v13531_v59 = vld [vmem:[%s19238_s1 + $0x198] sm:$0xff]  }
 0x15b   :  { %12741 = vmatmul.mubr.bf16.gmra.mrb[28].mxu1 %v13495_v60  ;;  %v13532_v60 = vld [vmem:[%s19238_s1 + $0x1a0] sm:$0xff]  }
 0x15c   :  { %12744 = vmatprep.mubr.bf16.mxu1 %v13496_v61  ;;  %v13533_v61 = vld [vmem:[%s19238_s1 + $0x1a8] sm:$0xff]  }
 0x163   :  { %12745 = vmatmul.mubr.bf16.gmra.mrb[32].mxu1 %v13497_v62  ;;  %v13534_v62 = vld [vmem:[%s19238_s1 + $0x1b0] sm:$0xff]  }
 0x164   :  { %12748 = vmatprep.mubr.bf16.mxu1 %v13498_v63 }
 0x16b   :  { %12749 = vmatmul.mubr.bf16.gmra.mrb[36].mxu1 %v13499_v0 }
 0x16c   :  { %12752 = vmatprep.mubr.bf16.mxu1 %v13500_v1  ;;  %v13535_v1 = vld [vmem:[%s19238_s1 + $0x1b8] sm:$0xff]  }
 0x173   :  { %12753 = vmatmul.mubr.bf16.gmra.mrb[40].mxu1 %v13501_v2 }
 0x174   :  { %12756 = vmatprep.mubr.bf16.mxu1 %v13502_v3  ;;  %v13540_v3 = vld [vmem:[%s19238_s1 + $0x1c0] sm:$0xff]  }
 0x17b   :  { %12757 = vmatmul.mubr.bf16.gmra.mrb[44].mxu1 %v13503_v4 }
 0x17c   :  { %12760 = vmatprep.mubr.bf16.mxu1 %v13504_v5 }
 0x183   :  { %12761 = vmatmul.mubr.bf16.gmra.mrb[48].mxu1 %v13505_v10 }
 0x184   :  { %12764 = vmatprep.mubr.bf16.mxu1 %v13506_v12 }
 0x18b   :  { %12765 = vmatmul.mubr.bf16.gmra.mrb[52].mxu1 %v13507_v18 }
 0x18c   :  { %12768 = vmatprep.mubr.bf16.mxu1 %v13508_v21  ;;  %v13548_v21 = vld [vmem:[%s19238_s1 + $0x1d8] sm:$0xff]  }
 0x193   :  { %12769 = vmatmul.mubr.bf16.gmra.mrb[56].mxu1 %v13509_v25 }
 0x194   :  { %12772 = vmatprep.mubr.bf16.mxu1 %v13510_v27 }
 0x19b   :  { %12773 = vmatmul.mubr.bf16.gmra.mrb[60].mxu1 %v13511_v33  ;;  %v13558_v33 = vld [vmem:[%s19238_s1 + $0x1f0] sm:$0xff]  }
 0x19c   :  { %12776 = vmatprep.mubr.bf16.mxu1 %v13512_v36 }
 0x1a3   :  { %12777 = vmatmul.mubr.bf16.gmra.mrb[64].mxu1 %v13513_v38 }
 0x1a4   :  { %12780 = vmatprep.mubr.bf16.mxu1 %v13514_v39 }
 0x1ab   :  { %12781 = vmatmul.mubr.bf16.gmra.mrb[68].mxu1 %v13515_v17 }
 0x1ac   :  { %12784 = vmatprep.mubr.bf16.mxu1 %v13516_v41  ;;  %v13562_v41 = vld [vmem:[%s19238_s1 + $0x200] sm:$0xff]  }
 0x1b3   :  { %12785 = vmatmul.mubr.bf16.gmra.mrb[72].mxu1 %v13517_v42 }
 0x1b4   :  { %12788 = vmatprep.mubr.bf16.mxu1 %v13518_v43 }
 0x1bb   :  { %12789 = vmatmul.mubr.bf16.gmra.mrb[76].mxu1 %v13519_v19 }
 0x1bc   :  { %12792 = vmatprep.mubr.bf16.mxu1 %v13520_v29  ;;  %v13563_v29 = vld [vmem:[%s19242_s6 + $0x80] sm:$0xff]  }
 0x1c3   :  { %12793 = vmatmul.mubr.bf16.gmra.mrb[80].mxu1 %v13521_v46  ;;  %v13565_v46 = vld [vmem:[%s19242_s6 + $0xc8] sm:$0xff]  }
 0x1c4   :  { %12796 = vmatprep.mubr.bf16.mxu1 %v13522_v47 }
 0x1cb   :  { %12797 = vmatmul.mubr.bf16.gmra.mrb[84].mxu1 %v13523_v49  ;;  %v13567_v49 = vld [vmem:[%s19242_s6 + $0x88] sm:$0xff]  }
 0x1cc   :  { %12800 = vmatprep.mubr.bf16.mxu1 %v13524_v50 }
 0x1d3   :  { %12801 = vmatmul.mubr.bf16.gmra.mrb[88].mxu1 %v13525_v52  ;;  %v13564_v52 = vld [vmem:[%s19238_s1 + $0x208] sm:$0xff]  }
 0x1d4   :  { %12804 = vmatprep.mubr.bf16.mxu1 %v13526_v53  ;;  %v13569_v53 = vld [vmem:[%s19242_s6 + $0xd0] sm:$0xff]  }
 0x1db   :  { %12805 = vmatmul.mubr.bf16.gmra.mrb[92].mxu1 %v13527_v55  ;;  %v13566_v55 = vld [vmem:[%s19238_s1 + $0x210] sm:$0xff]  }
 0x1dc   :  { %12808 = vmatprep.mubr.bf16.mxu1 %v13528_v56 }
 0x1e3   :  { %12809 = vmatmul.mubr.bf16.gmra.mrb[96].mxu1 %v13529_v57 }
 0x1e4   :  { %12812 = vmatprep.mubr.bf16.mxu1 %v13530_v58 }
 0x1eb   :  { %12813 = vmatmul.mubr.bf16.gmra.mrb[100].mxu1 %v13531_v59  ;;  %v13571_v59 = vld [vmem:[%s19242_s6 + $0x90] sm:$0xff]  }
 0x1ec   :  { %12816 = vmatprep.mubr.bf16.mxu1 %v13532_v60  ;;  %v13627_v60 = vld [vmem:[%s19242_s6 + $0x510] sm:$0xff]  }
 0x1ed   :  { %13036 = vmatprep.subr.bf16.mxu1 %v13627_v60 }
 0x1ee   :  { %13037 = vmatpush3.bf16.msra.mxu1 %v13627_v60 }
 0x1f3   :  { %12817 = vmatmul.mubr.bf16.gmra.mrb[104].mxu1 %v13533_v61  ;;  %v13573_v61 = vld [vmem:[%s19242_s6 + $0xd8] sm:$0xff]  }
 0x1f4   :  { %12820 = vmatprep.mubr.bf16.mxu1 %v13534_v62 }
 0x1f6   :  { %v14638_v63 = vpop.f32.mrb[0].mxu1 }
 0x1f7   :  { %v1658_v0 = vpop.f32.mrb[1].mxu1 }
 0x1f8   :  { %v14643_v2 = vpop.f32.mrb[2].mxu1 }
 0x1f9   :  { %v2938_v4 = vpack.c.bf16 %v14643_v2, %v14638_v63  ;;  %v1661_v5 = vpop.f32.mrb[3].mxu1  ;;  %v13570_v2 = vld [vmem:[%s19238_s1 + $0x220] sm:$0xff]  }
 0x1fa   :  { %v2937_v7 = vpack.c.bf16 %v1661_v5, %v1658_v0  ;;  %v13575_v0 = vld [vmem:[%s19242_s6 + $0x98] sm:$0xff]   ;;  %v13577_v5 = vld [vmem:[%s19242_s6 + $0xe0] sm:$0xff]  }
 0x1fb   :  { %12821 = vmatmul.mubr.bf16.gmra.mrb[108].mxu1 %v13535_v1 }
 0x1fc   :  { %12824 = vmatprep.mubr.bf16.mxu1 %v13540_v3  ;;  %v13568_v3 = vld [vmem:[%s19238_s1 + $0x218] sm:$0xff]  }
 0x1fe   :  { %v14650_v8 = vpop.f32.mrb[4].mxu1 }
 0x1ff   :  { %v14652_v10 = vpop.f32.mrb[5].mxu1 }
 0x200   :  { %v14657_v12 = vpop.f32.mrb[6].mxu1 }
 0x201   :  { %v2940_v14 = vpack.c.bf16 %v14657_v12, %v14650_v8  ;;  %v14664_v15 = vpop.f32.mrb[7].mxu1  ;;  %v13594_v8 = vld [vmem:[%s19242_s6 + $0x140] sm:$0xff]  }
 0x202   :  { %v2939_v16 = vpack.c.bf16 %v14664_v15, %v14652_v10  ;;  %v13574_v15 = vld [vmem:[%s19238_s1 + $0x230] sm:$0xff]  }
 0x203   :  { %12825 = vmatmul.mubr.bf16.gmra.mrb[112].mxu1 %v13542_v11 }
 0x204   :  { %12828 = vmatprep.mubr.bf16.mxu1 %v13546_v13  ;;  %v13579_v13 = vld [vmem:[%s19242_s6 + $0xa0] sm:$0xff]  }
 0x206   :  { %v14668_v18 = vpop.f32.mrb[8].mxu1 }
 0x207   :  { %v14670_v20 = vpop.f32.mrb[9].mxu1 }
 0x208   :  { %v14675_v22 = vpop.f32.mrb[10].mxu1 }
 0x209   :  { %v2942_v24 = vpack.c.bf16 %v14675_v22, %v14668_v18  ;;  %v14682_v25 = vpop.f32.mrb[11].mxu1 }
 0x20a   :  { %v2941_v26 = vpack.c.bf16 %v14682_v25, %v14670_v20 }
 0x20b   :  { %12829 = vmatmul.mubr.bf16.gmra.mrb[116].mxu1 %v13548_v21  ;;  %v13581_v21 = vld [vmem:[%s19242_s6 + $0xe8] sm:$0xff]  }
 0x20c   :  { %12832 = vmatprep.mubr.bf16.mxu1 %v13552_v23 }
 0x20e   :  { %v14686_v27 = vpop.f32.mrb[12].mxu1 }
 0x20f   :  { %v14688_v28 = vpop.f32.mrb[13].mxu1 }
 0x210   :  { %v14693_v32 = vpop.f32.mrb[14].mxu1 }
 0x211   :  { %v2944_v35 = vpack.c.bf16 %v14693_v32, %v14686_v27  ;;  %v14700_v36 = vpop.f32.mrb[15].mxu1  ;;  %v13598_v27 = vld [vmem:[%s19242_s6 + $0x148] sm:$0xff]  }
 0x212   :  { %v2943_v37 = vpack.c.bf16 %v14700_v36, %v14688_v28 }
 0x213   :  { %12833 = vmatmul.mubr.bf16.gmra.mrb[120].mxu1 %v13554_v30  ;;  %v13583_v30 = vld [vmem:[%s19242_s6 + $0xa8] sm:$0xff]  }
 0x214   :  { %12836 = vmatprep.mubr.bf16.mxu1 %v13558_v33 }
 0x216   :  { %v12730_v38 = vpop.f32.mrb[16].mxu1 }
 0x217   :  { %v1722_v39 = vpop.f32.mrb[17].mxu1 }
 0x218   :  { %v12731_v17 = vpop.f32.mrb[18].mxu1 }
 0x219   :  { %v2954_v42 = vpack.c.bf16 %v12731_v17, %v12730_v38  ;;  %v1725_v43 = vpop.f32.mrb[19].mxu1  ;;  %v13572_v38 = vld [vmem:[%s19238_s1 + $0x228] sm:$0xff]  }
 0x21a   :  { %v2953_v19 = vpack.c.bf16 %v1725_v43, %v1722_v39  ;;  %v13585_v39 = vld [vmem:[%s19242_s6 + $0xf0] sm:$0xff]  }
 0x21b   :  { %12837 = vmatmul.mubr.bf16.gmra.mrb[124].mxu1 %v13560_v40 }
 0x21c   :  { %4816 = vmatprep.mubr.bf16.mxu0 %v2953_v19  ;;  %12840 = vmatprep.mubr.bf16.mxu1 %v13562_v41  ;;  %v13588_v41 = vld [vmem:[%s19242_s6 + $0xb0] sm:$0xff]   ;;  %v13592_v19 = vld [vmem:[%s19242_s6 + $0xb8] sm:$0xff]  }
 0x21d   :  { %4817 = vmatmul.mubr.bf16.vlgmr.msra.gmra.mrb[16].mxu0 %v2937_v7 }
 0x21e   :  { %v12734_v47 = vpop.f32.mrb[20].mxu1  ;;  %4824 = vmatprep.mubr.bf16.mxu0 %v2954_v42  ;;  %11233 = vmatpush3.bf16.msra.mxu0 %v13563_v29  ;;  %v13590_v42 = vld [vmem:[%s19242_s6 + $0xf8] sm:$0xff]  }
 0x21f   :  { %v1738_v50 = vpop.f32.mrb[21].mxu1  ;;  %11234 = vmatprep.subr.bf16.mxu0 %v13565_v46  ;;  %v13576_v46 = vld [vmem:[%s19238_s1 + $0x238] sm:$0xff]  }
 0x220   :  { %v12735_v54 = vpop.f32.mrb[22].mxu1 }
 0x221   :  { %v2956_v56 = vpack.c.bf16 %v12735_v54, %v12734_v47  ;;  %v1741_v57 = vpop.f32.mrb[23].mxu1  ;;  %v13580_v54 = vld [vmem:[%s19238_s1 + $0x248] sm:$0xff]  }
 0x222   :  { %v2955_v58 = vpack.c.bf16 %v1741_v57, %v1738_v50  ;;  %11235 = vmatpush3.bf16.msra.mxu0 %v13567_v49 }
 0x223   :  { %12841 = vmatmul.mubr.bf16.gmra.mrb[128].mxu1 %v13564_v52  ;;  %11236 = vmatprep.subr.bf16.mxu0 %v13569_v53 }
 0x224   :  { %12844 = vmatprep.mubr.bf16.mxu1 %v13566_v55 }
 0x225   :  { %4825 = vmatmul.mubr.bf16.gmra.mrb[20].mxu0 %v2938_v4 }
 0x226   :  { %v12738_v62 = vpop.f32.mrb[24].mxu1  ;;  %4832 = vmatprep.mubr.bf16.mxu0 %v2955_v58  ;;  %11237 = vmatpush3.bf16.msra.mxu0 %v13571_v59  ;;  %v13584_v59 = vld [vmem:[%s19238_s1 + $0x258] sm:$0xff]  }
 0x227   :  { %v1754_v1 = vpop.f32.mrb[25].mxu1  ;;  %11238 = vmatprep.subr.bf16.mxu0 %v13573_v61  ;;  %v13587_v61 = vld [vmem:[%s19238_s1 + $0x260] sm:$0xff]  }
 0x228   :  { %v12739_v63 = vpop.f32.mrb[26].mxu1 }
 0x229   :  { %v2958_v4 = vpack.c.bf16 %v12739_v63, %v12738_v62  ;;  %v1757_v7 = vpop.f32.mrb[27].mxu1 }
 0x22a   :  { %v2957_v11 = vpack.c.bf16 %v1757_v7, %v1754_v1  ;;  %11239 = vmatpush3.bf16.msra.mxu0 %v13575_v0  ;;  %v13589_v1 = vld [vmem:[%s19238_s1 + $0x268] sm:$0xff]  }
 0x22b   :  { %12845 = vmatmul.mubr.bf16.gmra.mrb[132].mxu1 %v13568_v3  ;;  %11240 = vmatprep.subr.bf16.mxu0 %v13577_v5  ;;  %v13591_v5 = vld [vmem:[%s19238_s1 + $0x270] sm:$0xff]  }
 0x22c   :  { %12848 = vmatprep.mubr.bf16.mxu1 %v13570_v2 }
 0x22d   :  { %4833 = vmatmul.mubr.bf16.gmra.mrb[24].mxu0 %v2939_v16 }
 0x22e   :  { %v14761_v23 = vpop.f32.mrb[28].mxu1  ;;  %4840 = vmatprep.mubr.bf16.mxu0 %v2956_v56  ;;  %11241 = vmatpush3.bf16.msra.mxu0 %v13579_v13  ;;  %v13582_v56 = vld [vmem:[%s19238_s1 + $0x250] sm:$0xff]  }
 0x22f   :  { %v1770_v33 = vpop.f32.mrb[29].mxu1  ;;  %11242 = vmatprep.subr.bf16.mxu0 %v13581_v21 }
 0x230   :  { %v12743_v10 = vpop.f32.mrb[30].mxu1 }
 0x231   :  { %v2960_v16 = vpack.c.bf16 %v12743_v10, %v14761_v23  ;;  %v1773_v40 = vpop.f32.mrb[31].mxu1 }
 0x232   :  { %v2959_v17 = vpack.c.bf16 %v1773_v40, %v1770_v33  ;;  %11243 = vmatpush3.bf16.msra.mxu0 %v13583_v30  ;;  %v13596_v30 = vld [vmem:[%s19242_s6 + $0x100] sm:$0xff]  }
 0x233   :  { %12849 = vmatmul.mubr.bf16.gmra.mrb[136].mxu1 %v13572_v38  ;;  %11244 = vmatprep.subr.bf16.mxu0 %v13585_v39  ;;  %v13597_v38 = vld [vmem:[%s19238_s1 + $0x288] sm:$0xff]   ;;  %v13602_v39 = vld [vmem:[%s19242_s6 + $0x150] sm:$0xff]  }
 0x234   :  { %12852 = vmatprep.mubr.bf16.mxu1 %v13574_v15  ;;  %v13599_v15 = vld [vmem:[%s19238_s1 + $0x290] sm:$0xff]  }
 0x235   :  { %4841 = vmatmul.mubr.bf16.gmra.mrb[28].mxu0 %v2940_v14  ;;  %v13578_v14 = vld [vmem:[%s19238_s1 + $0x240] sm:$0xff]  }
 0x236   :  { %v14785_v43 = vpop.f32.mrb[32].mxu1  ;;  %4848 = vmatprep.mubr.bf16.mxu0 %v2957_v11  ;;  %11245 = vmatpush3.bf16.msra.mxu0 %v13588_v41  ;;  %v13595_v11 = vld [vmem:[%s19238_s1 + $0x280] sm:$0xff]   ;;  %v13604_v41 = vld [vmem:[%s19242_s6 + $0x110] sm:$0xff]  }
 0x237   :  { %v14790_v29 = vpop.f32.mrb[33].mxu1  ;;  %11246 = vmatprep.subr.bf16.mxu0 %v13590_v42  ;;  %v13606_v42 = vld [vmem:[%s19242_s6 + $0x158] sm:$0xff]  }
 0x238   :  { %v14798_v12 = vpop.f32.mrb[34].mxu1 }
 0x239   :  { %v2970_v47 = vpack.c.bf16 %v14798_v12, %v14785_v43  ;;  %v1789_v49 = vpop.f32.mrb[35].mxu1  ;;  %v13603_v43 = vld [vmem:[%s19238_s1 + $0x2a0] sm:$0xff]  }
 0x23a   :  { %v2969_v50 = vpack.c.bf16 %v1789_v49, %v14790_v29  ;;  %11247 = vmatpush3.bf16.msra.mxu0 %v13592_v19  ;;  %v13608_v29 = vld [vmem:[%s19242_s6 + $0x118] sm:$0xff]  }
 0x23b   :  { %12853 = vmatmul.mubr.bf16.gmra.mrb[140].mxu1 %v13576_v46  ;;  %11296 = vmatprep.subr.bf16.mxu0 %v13594_v8  ;;  %v13601_v8 = vld [vmem:[%s19238_s1 + $0x298] sm:$0xff]  }
 0x23c   :  { %12856 = vmatprep.mubr.bf16.mxu1 %v13578_v14  ;;  %v13610_v14 = vld [vmem:[%s19242_s6 + $0x160] sm:$0xff]  }
 0x23d   :  { %4849 = vmatmul.mubr.bf16.gmra.mrb[32].mxu0 %v2941_v26 }
 0x23e   :  { %v14809_v52 = vpop.f32.mrb[36].mxu1  ;;  %4856 = vmatprep.mubr.bf16.mxu0 %v2958_v4  ;;  %v13593_v4 = vld [vmem:[%s19238_s1 + $0x278] sm:$0xff]  }
 0x23f   :  { %v14811_v53 = vpop.f32.mrb[37].mxu1 }
 0x240   :  { %v14816_v55 = vpop.f32.mrb[38].mxu1 }
 0x241   :  { %v2972_v57 = vpack.c.bf16 %v14816_v55, %v14809_v52  ;;  %v14823_v20 = vpop.f32.mrb[39].mxu1  ;;  %v13626_v52 = vld [vmem:[%s19242_s6 + $0x1c0] sm:$0xff]  }
 0x242   :  { %v2971_v25 = vpack.c.bf16 %v14823_v20, %v14811_v53  ;;  %v13607_v20 = vld [vmem:[%s19238_s1 + $0x2b0] sm:$0xff]  }
 0x243   :  { %12857 = vmatmul.mubr.bf16.gmra.mrb[144].mxu1 %v13580_v54  ;;  %v13612_v54 = vld [vmem:[%s19242_s6 + $0x120] sm:$0xff]  }
 0x244   :  { %12860 = vmatprep.mubr.bf16.mxu1 %v13582_v56  ;;  %v13614_v56 = vld [vmem:[%s19242_s6 + $0x168] sm:$0xff]  }
 0x245   :  { %4857 = vmatmul.mubr.bf16.gmra.mrb[36].mxu0 %v2942_v24 }
 0x246   :  { %v14830_v26 = vpop.f32.mrb[40].mxu1  ;;  %4864 = vmatprep.mubr.bf16.mxu0 %v2959_v17 }
 0x247   :  { %v14832_v58 = vpop.f32.mrb[41].mxu1 }
 0x248   :  { %v14837_v60 = vpop.f32.mrb[42].mxu1 }
 0x249   :  { %v2974_v62 = vpack.c.bf16 %v14837_v60, %v14830_v26  ;;  %v14844_v18 = vpop.f32.mrb[43].mxu1 }
 0x24a   :  { %v2973_v22 = vpack.c.bf16 %v14844_v18, %v14832_v58 }
 0x24b   :  { %12861 = vmatmul.mubr.bf16.gmra.mrb[148].mxu1 %v13584_v59 }
 0x24c   :  { %12864 = vmatprep.mubr.bf16.mxu1 %v13587_v61  ;;  %v13616_v61 = vld [vmem:[%s19242_s6 + $0x128] sm:$0xff]  }
 0x24d   :  { %4865 = vmatmul.mubr.bf16.gmra.mrb[40].mxu0 %v2943_v37 }
 0x24e   :  { %v14851_v24 = vpop.f32.mrb[44].mxu1  ;;  %4872 = vmatprep.mubr.bf16.mxu0 %v2960_v16 }
 0x24f   :  { %v14853_v0 = vpop.f32.mrb[45].mxu1 }
 0x250   :  { %v14858_v3 = vpop.f32.mrb[46].mxu1 }
 0x251   :  { %v2976_v63 = vpack.c.bf16 %v14858_v3, %v14851_v24  ;;  %v14865_v28 = vpop.f32.mrb[47].mxu1  ;;  %v13631_v24 = vld [vmem:[%s19242_s6 + $0x1c8] sm:$0xff]  }
 0x252   :  { %v2975_v36 = vpack.c.bf16 %v14865_v28, %v14853_v0 }
 0x253   :  { %12865 = vmatmul.mubr.bf16.gmra.mrb[152].mxu1 %v13589_v1 }
 0x254   :  { %12868 = vmatprep.mubr.bf16.mxu1 %v13591_v5  ;;  %v13605_v5 = vld [vmem:[%s19238_s1 + $0x2a8] sm:$0xff]  }
 0x255   :  { %4873 = vmatmul.mubr.bf16.gmra.mrb[44].mxu0 %v2944_v35  ;;  %v13600_v35 = vld [vmem:[%s19242_s6 + $0x108] sm:$0xff]  }
 0x256   :  { %v12762_v37 = vpop.f32.mrb[48].mxu1 }
 0x257   :  { %v1850_v2 = vpop.f32.mrb[49].mxu1 }
 0x258   :  { %v12763_v7 = vpop.f32.mrb[50].mxu1 }
 0x259   :  { %v2986_v13 = vpack.c.bf16 %v12763_v7, %v12762_v37  ;;  %v1853_v21 = vpop.f32.mrb[51].mxu1  ;;  %v13618_v37 = vld [vmem:[%s19242_s6 + $0x170] sm:$0xff]  }
 0x25a   :  { %v2985_v23 = vpack.c.bf16 %v1853_v21, %v1850_v2  ;;  %v13620_v7 = vld [vmem:[%s19242_s6 + $0x130] sm:$0xff]  }
 0x25b   :  { %12869 = vmatmul.mubr.bf16.gmra.mrb[156].mxu1 %v13593_v4 }
 0x25c   :  { %4913 = vmatprep.mubr.bf16.mxu0 %v2985_v23  ;;  %12872 = vmatprep.mubr.bf16.mxu1 %v13595_v11  ;;  %v13622_v11 = vld [vmem:[%s19242_s6 + $0x178] sm:$0xff]  }
 0x25d   :  { %4914 = vmatmul.mubr.bf16.vlgmr.msra.gmra.mrb[48].mxu0 %v2969_v50  ;;  %v13624_v23 = vld [vmem:[%s19242_s6 + $0x138] sm:$0xff]  }
 0x25e   :  { %v12766_v32 = vpop.f32.mrb[52].mxu1  ;;  %4921 = vmatprep.mubr.bf16.mxu0 %v2986_v13  ;;  %11297 = vmatpush3.bf16.msra.mxu0 %v13596_v30  ;;  %v13668_v13 = vld [vmem:[%s19242_s6 + $0x518] sm:$0xff]  }
 0x25f   :  { %v1866_v33 = vpop.f32.mrb[53].mxu1  ;;  %11298 = vmatprep.subr.bf16.mxu0 %v13598_v27  ;;  %v13609_v27 = vld [vmem:[%s19238_s1 + $0x2b8] sm:$0xff]   ;;  %13038 = vmatprep.subr.bf16.mxu1 %v13668_v13 }
 0x260   :  { %v12767_v10 = vpop.f32.mrb[54].mxu1  ;;  %13039 = vmatpush3.bf16.msra.mxu1 %v13668_v13  ;;  %v13639_v13 = vld [vmem:[%s19242_s6 + $0x1d8] sm:$0xff]  }
 0x261   :  { %v2988_v16 = vpack.c.bf16 %v12767_v10, %v12766_v32  ;;  %v1869_v40 = vpop.f32.mrb[55].mxu1  ;;  %v13613_v10 = vld [vmem:[%s19238_s1 + $0x2c8] sm:$0xff]  }
 0x262   :  { %v2987_v17 = vpack.c.bf16 %v1869_v40, %v1866_v33  ;;  %11299 = vmatpush3.bf16.msra.mxu0 %v13600_v35 }
 0x263   :  { %12873 = vmatmul.mubr.bf16.gmra.mrb[160].mxu1 %v13597_v38  ;;  %11300 = vmatprep.subr.bf16.mxu0 %v13602_v39 }
 0x264   :  { %12876 = vmatprep.mubr.bf16.mxu1 %v13599_v15 }
 0x265   :  { %4922 = vmatmul.mubr.bf16.gmra.mrb[52].mxu0 %v2970_v47 }
 0x266   :  { %v12770_v19 = vpop.f32.mrb[56].mxu1  ;;  %4929 = vmatprep.mubr.bf16.mxu0 %v2987_v17  ;;  %11301 = vmatpush3.bf16.msra.mxu0 %v13604_v41  ;;  %v13617_v41 = vld [vmem:[%s19238_s1 + $0x2d8] sm:$0xff]  }
 0x267   :  { %v1882_v46 = vpop.f32.mrb[57].mxu1  ;;  %11302 = vmatprep.subr.bf16.mxu0 %v13606_v42 }
 0x268   :  { %v12771_v49 = vpop.f32.mrb[58].mxu1 }
 0x269   :  { %v2990_v12 = vpack.c.bf16 %v12771_v49, %v12770_v19  ;;  %v1885_v47 = vpop.f32.mrb[59].mxu1  ;;  %v13619_v19 = vld [vmem:[%s19238_s1 + $0x2e0] sm:$0xff]   ;;  %v13623_v49 = vld [vmem:[%s19238_s1 + $0x2f0] sm:$0xff]  }
 0x26a   :  { %v2989_v50 = vpack.c.bf16 %v1885_v47, %v1882_v46  ;;  %11303 = vmatpush3.bf16.msra.mxu0 %v13608_v29  ;;  %v13625_v47 = vld [vmem:[%s19238_s1 + $0x2f8] sm:$0xff]  }
 0x26b   :  { %12877 = vmatmul.mubr.bf16.gmra.mrb[164].mxu1 %v13601_v8  ;;  %11304 = vmatprep.subr.bf16.mxu0 %v13610_v14  ;;  %v13621_v8 = vld [vmem:[%s19238_s1 + $0x2e8] sm:$0xff]  }
 0x26c   :  { %12880 = vmatprep.mubr.bf16.mxu1 %v13603_v43 }
 0x26d   :  { %4930 = vmatmul.mubr.bf16.gmra.mrb[56].mxu0 %v2971_v25 }
 0x26e   :  { %v14926_v59 = vpop.f32.mrb[60].mxu1  ;;  %4937 = vmatprep.mubr.bf16.mxu0 %v2988_v16  ;;  %11305 = vmatpush3.bf16.msra.mxu0 %v13612_v54  ;;  %v13615_v16 = vld [vmem:[%s19238_s1 + $0x2d0] sm:$0xff]   ;;  %v13628_v54 = vld [vmem:[%s19238_s1 + $0x300] sm:$0xff]  }
 0x26f   :  { %v1898_v1 = vpop.f32.mrb[61].mxu1  ;;  %11306 = vmatprep.subr.bf16.mxu0 %v13614_v56 }
 0x270   :  { %v12775_v53 = vpop.f32.mrb[62].mxu1 }
 0x271   :  { %v2992_v25 = vpack.c.bf16 %v12775_v53, %v14926_v59  ;;  %v1901_v2 = vpop.f32.mrb[63].mxu1  ;;  %v13635_v53 = vld [vmem:[%s19242_s6 + $0x1d0] sm:$0xff]  }
 0x272   :  { %v2991_v4 = vpack.c.bf16 %v1901_v2, %v1898_v1  ;;  %11307 = vmatpush3.bf16.msra.mxu0 %v13616_v61  ;;  %v13629_v1 = vld [vmem:[%s19242_s6 + $0x180] sm:$0xff]  }
 0x273   :  { %12881 = vmatmul.mubr.bf16.gmra.mrb[168].mxu1 %v13605_v5  ;;  %11308 = vmatprep.subr.bf16.mxu0 %v13618_v37  ;;  %v13630_v37 = vld [vmem:[%s19238_s1 + $0x308] sm:$0xff]  }
 0x274   :  { %12884 = vmatprep.mubr.bf16.mxu1 %v13607_v20 }
 0x275   :  { %4938 = vmatmul.mubr.bf16.gmra.mrb[60].mxu0 %v2972_v57  ;;  %v13611_v57 = vld [vmem:[%s19238_s1 + $0x2c0] sm:$0xff]  }
 0x276   :  { %v14953_v21 = vpop.f32.mrb[64].mxu1  ;;  %4945 = vmatprep.mubr.bf16.mxu0 %v2989_v50  ;;  %11309 = vmatpush3.bf16.msra.mxu0 %v13620_v7 }
 0x277   :  { %v14958_v30 = vpop.f32.mrb[65].mxu1  ;;  %11310 = vmatprep.subr.bf16.mxu0 %v13622_v11  ;;  %v13637_v11 = vld [vmem:[%s19242_s6 + $0x190] sm:$0xff]  }
 0x278   :  { %v14966_v55 = vpop.f32.mrb[66].mxu1 }
 0x279   :  { %v3002_v32 = vpack.c.bf16 %v14966_v55, %v14953_v21  ;;  %v1917_v35 = vpop.f32.mrb[67].mxu1  ;;  %v13636_v21 = vld [vmem:[%s19238_s1 + $0x320] sm:$0xff]  }
 0x27a   :  { %v3001_v33 = vpack.c.bf16 %v1917_v35, %v14958_v30  ;;  %11311 = vmatpush3.bf16.msra.mxu0 %v13624_v23  ;;  %v13641_v30 = vld [vmem:[%s19242_s6 + $0x198] sm:$0xff]  }
 0x27b   :  { %12885 = vmatmul.mubr.bf16.gmra.mrb[172].mxu1 %v13609_v27  ;;  %11360 = vmatprep.subr.bf16.mxu0 %v13626_v52  ;;  %v13634_v52 = vld [vmem:[%s19238_s1 + $0x318] sm:$0xff]  }
 0x27c   :  { %12888 = vmatprep.mubr.bf16.mxu1 %v13611_v57  ;;  %v13643_v57 = vld [vmem:[%s19242_s6 + $0x1e0] sm:$0xff]  }
 0x27d   :  { %4946 = vmatmul.mubr.bf16.gmra.mrb[64].mxu0 %v2973_v22 }
 0x27e   :  { %v14977_v38 = vpop.f32.mrb[68].mxu1  ;;  %4953 = vmatprep.mubr.bf16.mxu0 %v2990_v12 }
 0x27f   :  { %v14979_v39 = vpop.f32.mrb[69].mxu1 }
 0x280   :  { %v14984_v15 = vpop.f32.mrb[70].mxu1 }
 0x281   :  { %v3004_v40 = vpack.c.bf16 %v14984_v15, %v14977_v38  ;;  %v14991_v58 = vpop.f32.mrb[71].mxu1  ;;  %v13659_v38 = vld [vmem:[%s19242_s6 + $0x240] sm:$0xff]  }
 0x282   :  { %v3003_v18 = vpack.c.bf16 %v14991_v58, %v14979_v39  ;;  %v13640_v58 = vld [vmem:[%s19238_s1 + $0x330] sm:$0xff]  }
 0x283   :  { %12889 = vmatmul.mubr.bf16.gmra.mrb[176].mxu1 %v13613_v10  ;;  %v13645_v10 = vld [vmem:[%s19242_s6 + $0x1a0] sm:$0xff]  }
 0x284   :  { %12892 = vmatprep.mubr.bf16.mxu1 %v13615_v16  ;;  %v13647_v16 = vld [vmem:[%s19242_s6 + $0x1e8] sm:$0xff]  }
 0x285   :  { %4954 = vmatmul.mubr.bf16.gmra.mrb[68].mxu0 %v2974_v62 }
 0x286   :  { %v14998_v22 = vpop.f32.mrb[72].mxu1  ;;  %4961 = vmatprep.mubr.bf16.mxu0 %v2991_v4 }
 0x287   :  { %v15000_v17 = vpop.f32.mrb[73].mxu1 }
 0x288   :  { %v15005_v42 = vpop.f32.mrb[74].mxu1 }
 0x289   :  { %v3006_v29 = vpack.c.bf16 %v15005_v42, %v14998_v22  ;;  %v15012_v26 = vpop.f32.mrb[75].mxu1 }
 0x28a   :  { %v3005_v60 = vpack.c.bf16 %v15012_v26, %v15000_v17 }
 0x28b   :  { %12893 = vmatmul.mubr.bf16.gmra.mrb[180].mxu1 %v13617_v41 }
 0x28c   :  { %12896 = vmatprep.mubr.bf16.mxu1 %v13619_v19  ;;  %v13649_v19 = vld [vmem:[%s19242_s6 + $0x1a8] sm:$0xff]  }
 0x28d   :  { %4962 = vmatmul.mubr.bf16.gmra.mrb[72].mxu0 %v2975_v36 }
 0x28e   :  { %v15019_v62 = vpop.f32.mrb[76].mxu1  ;;  %4969 = vmatprep.mubr.bf16.mxu0 %v2992_v25  ;;  %v13632_v25 = vld [vmem:[%s19238_s1 + $0x310] sm:$0xff]  }
 0x28f   :  { %v15021_v46 = vpop.f32.mrb[77].mxu1 }
 0x290   :  { %v15026_v14 = vpop.f32.mrb[78].mxu1 }
 0x291   :  { %v3008_v43 = vpack.c.bf16 %v15026_v14, %v15019_v62  ;;  %v15033_v0 = vpop.f32.mrb[79].mxu1  ;;  %v13663_v62 = vld [vmem:[%s19242_s6 + $0x248] sm:$0xff]  }
 0x292   :  { %v3007_v28 = vpack.c.bf16 %v15033_v0, %v15021_v46 }
 0x293   :  { %12897 = vmatmul.mubr.bf16.gmra.mrb[184].mxu1 %v13621_v8 }
 0x294   :  { %12900 = vmatprep.mubr.bf16.mxu1 %v13623_v49  ;;  %v13638_v49 = vld [vmem:[%s19238_s1 + $0x328] sm:$0xff]  }
 0x295   :  { %4970 = vmatmul.mubr.bf16.gmra.mrb[76].mxu0 %v2976_v63  ;;  %v13633_v63 = vld [vmem:[%s19242_s6 + $0x188] sm:$0xff]  }
 0x296   :  { %v12794_v36 = vpop.f32.mrb[80].mxu1 }
 0x297   :  { %v1978_v12 = vpop.f32.mrb[81].mxu1 }
 0x298   :  { %v12795_v50 = vpop.f32.mrb[82].mxu1 }
 0x299   :  { %v3018_v56 = vpack.c.bf16 %v12795_v50, %v12794_v36  ;;  %v1981_v59 = vpop.f32.mrb[83].mxu1  ;;  %v13651_v36 = vld [vmem:[%s19242_s6 + $0x1f0] sm:$0xff]  }
 0x29a   :  { %v3017_v61 = vpack.c.bf16 %v1981_v59, %v1978_v12  ;;  %v13653_v50 = vld [vmem:[%s19242_s6 + $0x1b0] sm:$0xff]   ;;  %v13657_v59 = vld [vmem:[%s19242_s6 + $0x1b8] sm:$0xff]  }
 0x29b   :  { %12901 = vmatmul.mubr.bf16.gmra.mrb[188].mxu1 %v13625_v47 }
 0x29c   :  { %5010 = vmatprep.mubr.bf16.mxu0 %v3017_v61  ;;  %12904 = vmatprep.mubr.bf16.mxu1 %v13628_v54  ;;  %v13655_v54 = vld [vmem:[%s19242_s6 + $0x1f8] sm:$0xff]  }
 0x29d   :  { %5011 = vmatmul.mubr.bf16.vlgmr.msra.gmra.mrb[80].mxu0 %v3001_v33 }
 0x29e   :  { %v12798_v3 = vpop.f32.mrb[84].mxu1  ;;  %5018 = vmatprep.mubr.bf16.mxu0 %v3018_v56  ;;  %11361 = vmatpush3.bf16.msra.mxu0 %v13629_v1  ;;  %v13642_v1 = vld [vmem:[%s19238_s1 + $0x338] sm:$0xff]  }
 0x29f   :  { %v1994_v5 = vpop.f32.mrb[85].mxu1  ;;  %11362 = vmatprep.subr.bf16.mxu0 %v13631_v24 }
 0x2a0   :  { %v12799_v20 = vpop.f32.mrb[86].mxu1 }
 0x2a1   :  { %v3020_v2 = vpack.c.bf16 %v12799_v20, %v12798_v3  ;;  %v1997_v4 = vpop.f32.mrb[87].mxu1 }
 0x2a2   :  { %v3019_v7 = vpack.c.bf16 %v1997_v4, %v1994_v5  ;;  %11363 = vmatpush3.bf16.msra.mxu0 %v13633_v63 }
 0x2a3   :  { %12905 = vmatmul.mubr.bf16.gmra.mrb[192].mxu1 %v13630_v37  ;;  %11364 = vmatprep.subr.bf16.mxu0 %v13635_v53  ;;  %v13646_v53 = vld [vmem:[%s19238_s1 + $0x348] sm:$0xff]  }
 0x2a4   :  { %12908 = vmatprep.mubr.bf16.mxu1 %v13632_v25  ;;  %v13648_v25 = vld [vmem:[%s19238_s1 + $0x350] sm:$0xff]  }
 0x2a5   :  { %5019 = vmatmul.mubr.bf16.gmra.mrb[84].mxu0 %v3002_v32 }
 0x2a6   :  { %v12802_v23 = vpop.f32.mrb[88].mxu1  ;;  %5026 = vmatprep.mubr.bf16.mxu0 %v3019_v7  ;;  %11365 = vmatpush3.bf16.msra.mxu0 %v13637_v11  ;;  %v13650_v11 = vld [vmem:[%s19238_s1 + $0x358] sm:$0xff]  }
 0x2a7   :  { %v2010_v27 = vpop.f32.mrb[89].mxu1  ;;  %11366 = vmatprep.subr.bf16.mxu0 %v13639_v13 }
 0x2a8   :  { %v12803_v35 = vpop.f32.mrb[90].mxu1 }
 0x2a9   :  { %v3022_v55 = vpack.c.bf16 %v12803_v35, %v12802_v23  ;;  %v2013_v32 = vpop.f32.mrb[91].mxu1  ;;  %v13652_v23 = vld [vmem:[%s19238_s1 + $0x360] sm:$0xff]   ;;  %v13656_v35 = vld [vmem:[%s19238_s1 + $0x370] sm:$0xff]  }
 0x2aa   :  { %v3021_v33 = vpack.c.bf16 %v2013_v32, %v2010_v27  ;;  %11367 = vmatpush3.bf16.msra.mxu0 %v13641_v30  ;;  %v13658_v32 = vld [vmem:[%s19238_s1 + $0x378] sm:$0xff]  }
 0x2ab   :  { %12909 = vmatmul.mubr.bf16.gmra.mrb[196].mxu1 %v13634_v52  ;;  %11368 = vmatprep.subr.bf16.mxu0 %v13643_v57  ;;  %v13654_v52 = vld [vmem:[%s19238_s1 + $0x368] sm:$0xff]  }
 0x2ac   :  { %12912 = vmatprep.mubr.bf16.mxu1 %v13636_v21 }
 0x2ad   :  { %5027 = vmatmul.mubr.bf16.gmra.mrb[88].mxu0 %v3003_v18 }
 0x2ae   :  { %v15094_v41 = vpop.f32.mrb[92].mxu1  ;;  %5034 = vmatprep.mubr.bf16.mxu0 %v3020_v2  ;;  %11369 = vmatpush3.bf16.msra.mxu0 %v13645_v10  ;;  %v13660_v10 = vld [vmem:[%s19238_s1 + $0x380] sm:$0xff]  }
 0x2af   :  { %v2026_v8 = vpop.f32.mrb[93].mxu1  ;;  %11370 = vmatprep.subr.bf16.mxu0 %v13647_v16 }
 0x2b0   :  { %v12807_v39 = vpop.f32.mrb[94].mxu1 }
 0x2b1   :  { %v3024_v18 = vpack.c.bf16 %v12807_v39, %v15094_v41  ;;  %v2029_v12 = vpop.f32.mrb[95].mxu1  ;;  %v13667_v39 = vld [vmem:[%s19242_s6 + $0x250] sm:$0xff]  }
 0x2b2   :  { %v3023_v47 = vpack.c.bf16 %v2029_v12, %v2026_v8  ;;  %11371 = vmatpush3.bf16.msra.mxu0 %v13649_v19  ;;  %v13661_v8 = vld [vmem:[%s19242_s6 + $0x200] sm:$0xff]  }
 0x2b3   :  { %12913 = vmatmul.mubr.bf16.gmra.mrb[200].mxu1 %v13638_v49  ;;  %11372 = vmatprep.subr.bf16.mxu0 %v13651_v36  ;;  %v13662_v36 = vld [vmem:[%s19238_s1 + $0x388] sm:$0xff]  }
 0x2b4   :  { %12916 = vmatprep.mubr.bf16.mxu1 %v13640_v58 }
 0x2b5   :  { %5035 = vmatmul.mubr.bf16.gmra.mrb[92].mxu0 %v3004_v40  ;;  %v13644_v40 = vld [vmem:[%s19238_s1 + $0x340] sm:$0xff]  }
 0x2b6   :  { %v15118_v56 = vpop.f32.mrb[96].mxu1  ;;  %5042 = vmatprep.mubr.bf16.mxu0 %v3021_v33  ;;  %11373 = vmatpush3.bf16.msra.mxu0 %v13653_v50 }
 0x2b7   :  { %v15123_v61 = vpop.f32.mrb[97].mxu1  ;;  %11374 = vmatprep.subr.bf16.mxu0 %v13655_v54  ;;  %v13670_v54 = vld [vmem:[%s19242_s6 + $0x210] sm:$0xff]  }
 0x2b8   :  { %v15131_v15 = vpop.f32.mrb[98].mxu1 }
 0x2b9   :  { %v3034_v24 = vpack.c.bf16 %v15131_v15, %v15118_v56  ;;  %v2045_v3 = vpop.f32.mrb[99].mxu1  ;;  %v13669_v15 = vld [vmem:[%s19238_s1 + $0x3a0] sm:$0xff]  }
 0x2ba   :  { %v3033_v63 = vpack.c.bf16 %v2045_v3, %v15123_v61  ;;  %11375 = vmatpush3.bf16.msra.mxu0 %v13657_v59  ;;  %v13672_v59 = vld [vmem:[%s19242_s6 + $0x258] sm:$0xff]   ;;  %v13676_v3 = vld [vmem:[%s19242_s6 + $0x260] sm:$0xff]  }
 0x2bb   :  { %12917 = vmatmul.mubr.bf16.gmra.mrb[204].mxu1 %v13642_v1  ;;  %11424 = vmatprep.subr.bf16.mxu0 %v13659_v38  ;;  %v13674_v1 = vld [vmem:[%s19242_s6 + $0x218] sm:$0xff]  }
 0x2bc   :  { %12920 = vmatprep.mubr.bf16.mxu1 %v13644_v40  ;;  %v13666_v40 = vld [vmem:[%s19238_s1 + $0x398] sm:$0xff]  }
 0x2bd   :  { %5043 = vmatmul.mubr.bf16.gmra.mrb[96].mxu0 %v3005_v60  ;;  %v13709_v60 = vld [vmem:[%s19242_s6 + $0x520] sm:$0xff]  }
 0x2be   :  { %v15142_v5 = vpop.f32.mrb[100].mxu1  ;;  %5050 = vmatprep.mubr.bf16.mxu0 %v3022_v55  ;;  %13040 = vmatprep.subr.bf16.mxu1 %v13709_v60 }
 0x2bf   :  { %v15144_v37 = vpop.f32.mrb[101].mxu1  ;;  %13041 = vmatpush3.bf16.msra.mxu1 %v13709_v60  ;;  %v13680_v60 = vld [vmem:[%s19242_s6 + $0x268] sm:$0xff]  }
 0x2c0   :  { %v15149_v20 = vpop.f32.mrb[102].mxu1 }
 0x2c1   :  { %v3036_v2 = vpack.c.bf16 %v15149_v20, %v15142_v5  ;;  %v15156_v17 = vpop.f32.mrb[103].mxu1  ;;  %v13692_v5 = vld [vmem:[%s19242_s6 + $0x2c0] sm:$0xff]  }
 0x2c2   :  { %v3035_v26 = vpack.c.bf16 %v15156_v17, %v15144_v37  ;;  %v13684_v37 = vld [vmem:[%s19242_s6 + $0x270] sm:$0xff]  }
 0x2c3   :  { %12921 = vmatmul.mubr.bf16.gmra.mrb[208].mxu1 %v13646_v53 }
 0x2c4   :  { %12924 = vmatprep.mubr.bf16.mxu1 %v13648_v25  ;;  %v13678_v25 = vld [vmem:[%s19242_s6 + $0x220] sm:$0xff]  }
 0x2c5   :  { %5051 = vmatmul.mubr.bf16.gmra.mrb[100].mxu0 %v3006_v29 }
 0x2c6   :  { %v15166_v4 = vpop.f32.mrb[104].mxu1  ;;  %5058 = vmatprep.mubr.bf16.mxu0 %v3023_v47 }
 0x2c7   :  { %v15168_v7 = vpop.f32.mrb[105].mxu1 }
 0x2c8   :  { %v15173_v13 = vpop.f32.mrb[106].mxu1 }
 0x2c9   :  { %v3038_v22 = vpack.c.bf16 %v15173_v13, %v15166_v4  ;;  %v15180_v42 = vpop.f32.mrb[107].mxu1 }
 0x2ca   :  { %v3037_v29 = vpack.c.bf16 %v15180_v42, %v15168_v7 }
 0x2cb   :  { %12925 = vmatmul.mubr.bf16.gmra.mrb[212].mxu1 %v13650_v11 }
 0x2cc   :  { %12928 = vmatprep.mubr.bf16.mxu1 %v13652_v23  ;;  %v13682_v23 = vld [vmem:[%s19242_s6 + $0x228] sm:$0xff]  }
 0x2cd   :  { %5059 = vmatmul.mubr.bf16.gmra.mrb[104].mxu0 %v3007_v28 }
 0x2ce   :  { %v15187_v30 = vpop.f32.mrb[108].mxu1  ;;  %5066 = vmatprep.mubr.bf16.mxu0 %v3024_v18  ;;  %v13664_v18 = vld [vmem:[%s19238_s1 + $0x390] sm:$0xff]  }
 0x2cf   :  { %v15189_v27 = vpop.f32.mrb[109].mxu1 }
 0x2d0   :  { %v15194_v57 = vpop.f32.mrb[110].mxu1 }
 0x2d1   :  { %v3040_v21 = vpack.c.bf16 %v15194_v57, %v15187_v30  ;;  %v15201_v46 = vpop.f32.mrb[111].mxu1  ;;  %v13758_v30 = vld [vmem:[%s19242_s6 + $0x530] sm:$0xff]  }
 0x2d2   :  { %v3039_v0 = vpack.c.bf16 %v15201_v46, %v15189_v27  ;;  %v13689_v27 = vld [vmem:[%s19238_s1 + $0x3f0] sm:$0xff]  }
 0x2d3   :  { %12929 = vmatmul.mubr.bf16.gmra.mrb[216].mxu1 %v13654_v52 }
 0x2d4   :  { %12932 = vmatprep.mubr.bf16.mxu1 %v13656_v35  ;;  %v13671_v35 = vld [vmem:[%s19238_s1 + $0x3a8] sm:$0xff]  }
 0x2d5   :  { %5067 = vmatmul.mubr.bf16.gmra.mrb[108].mxu0 %v3008_v43  ;;  %v13665_v43 = vld [vmem:[%s19242_s6 + $0x208] sm:$0xff]  }
 0x2d6   :  { %v12826_v28 = vpop.f32.mrb[112].mxu1 }
 0x2d7   :  { %v2106_v55 = vpop.f32.mrb[113].mxu1 }
 0x2d8   :  { %v12827_v33 = vpop.f32.mrb[114].mxu1 }
 0x2d9   :  { %v3050_v16 = vpack.c.bf16 %v12827_v33, %v12826_v28  ;;  %v2109_v41 = vpop.f32.mrb[115].mxu1  ;;  %v13673_v28 = vld [vmem:[%s19238_s1 + $0x3b0] sm:$0xff]  }
 0x2da   :  { %v3049_v19 = vpack.c.bf16 %v2109_v41, %v2106_v55 }
 0x2db   :  { %12933 = vmatmul.mubr.bf16.gmra.mrb[220].mxu1 %v13658_v32 }
 0x2dc   :  { %5107 = vmatprep.mubr.bf16.mxu0 %v3049_v19  ;;  %12936 = vmatprep.mubr.bf16.mxu1 %v13660_v10  ;;  %v13686_v19 = vld [vmem:[%s19242_s6 + $0x230] sm:$0xff]  }
 0x2dd   :  { %5108 = vmatmul.mubr.bf16.vlgmr.msra.gmra.mrb[112].mxu0 %v3033_v63 }
 0x2de   :  { %v12830_v14 = vpop.f32.mrb[116].mxu1  ;;  %5115 = vmatprep.mubr.bf16.mxu0 %v3050_v16  ;;  %11425 = vmatpush3.bf16.msra.mxu0 %v13661_v8 }
 0x2df   :  { %v2122_v49 = vpop.f32.mrb[117].mxu1  ;;  %11426 = vmatprep.subr.bf16.mxu0 %v13663_v62  ;;  %v13688_v62 = vld [vmem:[%s19242_s6 + $0x278] sm:$0xff]  }
 0x2e0   :  { %v12831_v58 = vpop.f32.mrb[118].mxu1 }
 0x2e1   :  { %v3052_v12 = vpack.c.bf16 %v12831_v58, %v12830_v14  ;;  %v2125_v47 = vpop.f32.mrb[119].mxu1  ;;  %v13677_v58 = vld [vmem:[%s19238_s1 + $0x3c0] sm:$0xff]  }
 0x2e2   :  { %v3051_v50 = vpack.c.bf16 %v2125_v47, %v2122_v49  ;;  %11427 = vmatpush3.bf16.msra.mxu0 %v13665_v43  ;;  %v13690_v49 = vld [vmem:[%s19242_s6 + $0x238] sm:$0xff]  }
 0x2e3   :  { %12937 = vmatmul.mubr.bf16.gmra.mrb[224].mxu1 %v13662_v36  ;;  %11428 = vmatprep.subr.bf16.mxu0 %v13667_v39  ;;  %v13675_v39 = vld [vmem:[%s19238_s1 + $0x3b8] sm:$0xff]  }
 0x2e4   :  { %12940 = vmatprep.mubr.bf16.mxu1 %v13664_v18 }
 0x2e5   :  { %5116 = vmatmul.mubr.bf16.gmra.mrb[116].mxu0 %v3034_v24 }
 0x2e6   :  { %v15241_v61 = vpop.f32.mrb[120].mxu1  ;;  %5123 = vmatprep.mubr.bf16.mxu0 %v3051_v50  ;;  %11429 = vmatpush3.bf16.msra.mxu0 %v13670_v54 }
 0x2e7   :  { %v2138_v38 = vpop.f32.mrb[121].mxu1  ;;  %11430 = vmatprep.subr.bf16.mxu0 %v13672_v59 }
 0x2e8   :  { %v15252_v56 = vpop.f32.mrb[122].mxu1 }
 0x2e9   :  { %v3054_v24 = vpack.c.bf16 %v15252_v56, %v15241_v61  ;;  %v2141_v63 = vpop.f32.mrb[123].mxu1 }
 0x2ea   :  { %v3053_v53 = vpack.c.bf16 %v2141_v63, %v2138_v38  ;;  %11431 = vmatpush3.bf16.msra.mxu0 %v13674_v1  ;;  %v13681_v63 = vld [vmem:[%s19238_s1 + $0x3d0] sm:$0xff]  }
 0x2eb   :  { %12941 = vmatmul.mubr.bf16.gmra.mrb[228].mxu1 %v13666_v40  ;;  %11432 = vmatprep.subr.bf16.mxu0 %v13676_v3  ;;  %v13679_v3 = vld [vmem:[%s19238_s1 + $0x3c8] sm:$0xff]  }
 0x2ec   :  { %12944 = vmatprep.mubr.bf16.mxu1 %v13669_v15 }
 0x2ed   :  { %5124 = vmatmul.mubr.bf16.gmra.mrb[120].mxu0 %v3035_v26 }
 0x2ee   :  { %v15268_v11 = vpop.f32.mrb[124].mxu1  ;;  %5131 = vmatprep.mubr.bf16.mxu0 %v3052_v12  ;;  %11433 = vmatpush3.bf16.msra.mxu0 %v13678_v25 }
 0x2ef   :  { %v15273_v52 = vpop.f32.mrb[125].mxu1  ;;  %11434 = vmatprep.subr.bf16.mxu0 %v13680_v60 }
 0x2f0   :  { %v15281_v17 = vpop.f32.mrb[126].mxu1  ;;  %v11184_v26 = vpop.f32.mrb[16].mxu0 }
 0x2f1   :  { %v3056_v55 = vpack.c.bf16 %v15281_v17, %v15268_v11  ;;  %v2157_v32 = vpop.f32.mrb[127].mxu1  ;;  %v11185_v33 = vpop.f32.mrb[17].mxu0 }
 0x2f2   :  { %v3055_v10 = vpack.c.bf16 %v2157_v32, %v15273_v52  ;;  %v15289_v16 = vadd.f32 %v11185_v33, %v11184_v26  ;;  %v11187_v41 = vpop.f32.mrb[18].mxu0  ;;  %11435 = vmatpush3.bf16.msra.mxu0 %v13682_v23  ;;  %v13685_v32 = vld [vmem:[%s19238_s1 + $0x3e0] sm:$0xff]  }
 0x2f3   :  { %12945 = vmatmul.mubr.bf16.gmra.mrb[232].mxu1 %v13671_v35  ;;  %v11188_v8 = vpop.f32.mrb[19].mxu0  ;;  %11436 = vmatprep.subr.bf16.mxu0 %v13684_v37  ;;  %v13683_v37 = vld [vmem:[%s19238_s1 + $0x3d8] sm:$0xff]  }
 0x2f4   :  { %v15297_v14 = vadd.f32 %v11188_v8, %v11187_v41  ;;  %12948 = vmatprep.mubr.bf16.mxu1 %v13673_v28 }
 0x2f5   :  { %5132 = vmatmul.mubr.bf16.gmra.mrb[124].mxu0 %v3036_v2 }
 0x2f6   :  { %v15302_v43 = vpop.f32.mrb[128].mxu1  ;;  %5139 = vmatprep.mubr.bf16.mxu0 %v3053_v53  ;;  %11437 = vmatpush3.bf16.msra.mxu0 %v13686_v19 }
 0x2f7   :  { %v15307_v36 = vpop.f32.mrb[129].mxu1  ;;  %11438 = vmatprep.subr.bf16.mxu0 %v13688_v62 }
 0x2f8   :  { %v15315_v20 = vpop.f32.mrb[130].mxu1  ;;  %v11190_v2 = vpop.f32.mrb[20].mxu0 }
 0x2f9   :  { %v3066_v18 = vpack.c.bf16 %v15315_v20, %v15302_v43  ;;  %v15322_v12 = vpop.f32.mrb[131].mxu1  ;;  %v11191_v47 = vpop.f32.mrb[21].mxu0 }
 0x2fa   :  { %v3065_v50 = vpack.c.bf16 %v15322_v12, %v15307_v36  ;;  %v15326_v54 = vadd.f32 %v11191_v47, %v11190_v2  ;;  %v11193_v59 = vpop.f32.mrb[22].mxu0  ;;  %11439 = vmatpush3.bf16.msra.mxu0 %v13690_v49  ;;  %v13700_v36 = vld [vmem:[%s19242_s6 + $0x2d0] sm:$0xff]  }
 0x2fb   :  { %12949 = vmatmul.mubr.bf16.gmra.mrb[236].mxu1 %v13675_v39  ;;  %v11194_v61 = vpop.f32.mrb[23].mxu0  ;;  %11488 = vmatprep.subr.bf16.mxu0 %v13692_v5  ;;  %v13687_v39 = vld [vmem:[%s19238_s1 + $0x3e8] sm:$0xff]  }
 0x2fc   :  { %v15328_v1 = vadd.f32 %v11194_v61, %v11193_v59  ;;  %12952 = vmatprep.mubr.bf16.mxu1 %v13677_v58  ;;  %v13750_v61 = vld [vmem:[%s19242_s6 + $0x528] sm:$0xff]  }
 0x2fd   :  { %5140 = vmatmul.mubr.bf16.gmra.mrb[128].mxu0 %v3037_v29  ;;  %13042 = vmatprep.subr.bf16.mxu1 %v13750_v61 }
 0x2fe   :  { %v15333_v38 = vpop.f32.mrb[132].mxu1  ;;  %5147 = vmatprep.mubr.bf16.mxu0 %v3054_v24  ;;  %13043 = vmatpush3.bf16.msra.mxu1 %v13750_v61  ;;  %v13695_v61 = vld [vmem:[%s19238_s1 + $0x408] sm:$0xff]  }
 0x2ff   :  { %v15335_v40 = vpop.f32.mrb[133].mxu1  ;;  %13044 = vmatprep.subr.bf16.mxu1 %v13758_v30 }
 0x300   :  { %v15340_v56 = vpop.f32.mrb[134].mxu1  ;;  %v11196_v15 = vpop.f32.mrb[24].mxu0 }
 0x301   :  { %v3068_v7 = vpack.c.bf16 %v15340_v56, %v15333_v38  ;;  %v15347_v42 = vpop.f32.mrb[135].mxu1  ;;  %v11197_v29 = vpop.f32.mrb[25].mxu0  ;;  %v13725_v38 = vld [vmem:[%s19242_s6 + $0x340] sm:$0xff]  }
 0x302   :  { %v3067_v24 = vpack.c.bf16 %v15347_v42, %v15335_v40  ;;  %v15351_v53 = vadd.f32 %v11197_v29, %v11196_v15  ;;  %v11199_v25 = vpop.f32.mrb[26].mxu0  ;;  %13045 = vmatpush3.bf16.msra.mxu1 %v13758_v30  ;;  %v13704_v30 = vld [vmem:[%s19242_s6 + $0x2d8] sm:$0xff]   ;;  %v13703_v40 = vld [vmem:[%s19238_s1 + $0x428] sm:$0xff]   ;;  %v13717_v42 = vld [vmem:[%s19242_s6 + $0x2f0] sm:$0xff]  }
 0x303   :  { %12953 = vmatmul.mubr.bf16.gmra.mrb[240].mxu1 %v13679_v3  ;;  %v11200_v60 = vpop.f32.mrb[27].mxu0 }
 0x304   :  { %v15353_v23 = vadd.f32 %v11200_v60, %v11199_v25  ;;  %12956 = vmatprep.mubr.bf16.mxu1 %v13681_v63  ;;  %v13691_v63 = vld [vmem:[%s19238_s1 + $0x3f8] sm:$0xff]   ;;  %v13693_v60 = vld [vmem:[%s19238_s1 + $0x400] sm:$0xff]  }
 0x305   :  { %5148 = vmatmul.mubr.bf16.gmra.mrb[132].mxu0 %v3038_v22 }
 0x306   :  { %v15358_v52 = vpop.f32.mrb[136].mxu1  ;;  %5155 = vmatprep.mubr.bf16.mxu0 %v3055_v10 }
 0x307   :  { %v15360_v35 = vpop.f32.mrb[137].mxu1 }
 0x308   :  { %v15365_v26 = vpop.f32.mrb[138].mxu1  ;;  %v11202_v28 = vpop.f32.mrb[28].mxu0 }
 0x309   :  { %v3070_v4 = vpack.c.bf16 %v15365_v26, %v15358_v52  ;;  %v15372_v13 = vpop.f32.mrb[139].mxu1  ;;  %v11203_v22 = vpop.f32.mrb[29].mxu0  ;;  %v13718_v52 = vld [vmem:[%s19238_s1 + $0x460] sm:$0xff]  }
 0x30a   :  { %v3069_v33 = vpack.c.bf16 %v15372_v13, %v15360_v35  ;;  %v15376_v10 = vadd.f32 %v11203_v22, %v11202_v28  ;;  %v11205_v41 = vpop.f32.mrb[30].mxu0  ;;  %v13714_v35 = vld [vmem:[%s19238_s1 + $0x450] sm:$0xff]  }
 0x30b   :  { %12957 = vmatmul.mubr.bf16.gmra.mrb[244].mxu1 %v13683_v37  ;;  %v11206_v19 = vpop.f32.mrb[31].mxu0 }
 0x30c   :  { %v15378_v8 = vadd.f32 %v11206_v19, %v11205_v41  ;;  %12960 = vmatprep.mubr.bf16.mxu1 %v13685_v32  ;;  %v13694_v41 = vld [vmem:[%s19242_s6 + $0x280] sm:$0xff]  }
 0x30d   :  { %5156 = vmatmul.mubr.bf16.gmra.mrb[136].mxu0 %v3039_v0 }
 0x30e   :  { %v15383_v62 = vpop.f32.mrb[140].mxu1  ;;  %5163 = vmatprep.mubr.bf16.mxu0 %v3056_v55 }
 0x30f   :  { %v15388_v49 = vpop.f32.mrb[141].mxu1 }
 0x310   :  { %v15393_v5 = vpop.f32.mrb[142].mxu1  ;;  %v11208_v2 = vpop.f32.mrb[32].mxu0 }
 0x311   :  { %v3072_v46 = vpack.c.bf16 %v15393_v5, %v15383_v62  ;;  %v15400_v0 = vpop.f32.mrb[143].mxu1  ;;  %v11209_v11 = vpop.f32.mrb[33].mxu0 }
 0x312   :  { %v3071_v17 = vpack.c.bf16 %v15400_v0, %v15388_v49  ;;  %v15404_v55 = vadd.f32 %v11209_v11, %v11208_v2  ;;  %v11211_v58 = vpop.f32.mrb[34].mxu0  ;;  %v13722_v49 = vld [vmem:[%s19238_s1 + $0x470] sm:$0xff]  }
 0x313   :  { %12961 = vmatmul.mubr.bf16.gmra.mrb[248].mxu1 %v13687_v39  ;;  %v11212_v47 = vpop.f32.mrb[35].mxu0  ;;  %v13696_v39 = vld [vmem:[%s19242_s6 + $0x2c8] sm:$0xff]  }
 0x314   :  { %v15406_v59 = vadd.f32 %v11212_v47, %v11211_v58  ;;  %12964 = vmatprep.mubr.bf16.mxu1 %v13689_v27  ;;  %v13759_v27 = vld [vmem:[%s19242_s6 + $0x538] sm:$0xff]   ;;  %v13698_v58 = vld [vmem:[%s19242_s6 + $0x288] sm:$0xff]  }
 0x315   :  { %5164 = vmatmul.mubr.bf16.gmra.mrb[140].mxu0 %v3040_v21  ;;  %13046 = vmatprep.subr.bf16.mxu1 %v13759_v27 }
 0x316   :  { %v12858_v3 = vpop.f32.mrb[144].mxu1  ;;  %13047 = vmatpush3.bf16.msra.mxu1 %v13759_v27  ;;  %v13708_v27 = vld [vmem:[%s19242_s6 + $0x2e0] sm:$0xff]  }
 0x317   :  { %v2234_v15 = vpop.f32.mrb[145].mxu1 }
 0x318   :  { %v12859_v29 = vpop.f32.mrb[146].mxu1  ;;  %v11214_v25 = vpop.f32.mrb[36].mxu0 }
 0x319   :  { %v3082_v37 = vpack.c.bf16 %v12859_v29, %v12858_v3  ;;  %v2237_v28 = vpop.f32.mrb[147].mxu1  ;;  %v11215_v32 = vpop.f32.mrb[37].mxu0  ;;  %v13697_v3 = vld [vmem:[%s19238_s1 + $0x410] sm:$0xff]  }
 0x31a   :  { %v3081_v57 = vpack.c.bf16 %v2237_v28, %v2234_v15  ;;  %v15423_v21 = vadd.f32 %v11215_v32, %v11214_v25  ;;  %v11217_v22 = vpop.f32.mrb[38].mxu0  ;;  %v13702_v28 = vld [vmem:[%s19242_s6 + $0x290] sm:$0xff]  }
 0x31b   :  { %12965 = vmatmul.mubr.bf16.gmra.mrb[252].mxu1 %v13691_v63  ;;  %v11218_v19 = vpop.f32.mrb[39].mxu0 }
 0x31c   :  { %v15431_v2 = vadd.f32 %v11218_v19, %v11217_v22  ;;  %5204 = vmatprep.mubr.bf16.mxu0 %v3081_v57  ;;  %12968 = vmatprep.mubr.bf16.mxu1 %v13693_v60 }
 0x31d   :  { %5205 = vmatmul.mubr.bf16.vlgmr.msra.gmra.mrb[144].mxu0 %v3065_v50 }
 0x31e   :  { %v12862_v11 = vpop.f32.mrb[148].mxu1  ;;  %5212 = vmatprep.mubr.bf16.mxu0 %v3082_v37  ;;  %11489 = vmatpush3.bf16.msra.mxu0 %v13694_v41  ;;  %v13706_v41 = vld [vmem:[%s19242_s6 + $0x298] sm:$0xff]  }
 0x31f   :  { %v2250_v47 = vpop.f32.mrb[149].mxu1  ;;  %11490 = vmatprep.subr.bf16.mxu0 %v13696_v39  ;;  %v13699_v39 = vld [vmem:[%s19238_s1 + $0x418] sm:$0xff]  }
 0x320   :  { %v12863_v12 = vpop.f32.mrb[150].mxu1  ;;  %v11220_v50 = vpop.f32.mrb[40].mxu0 }
 0x321   :  { %v3084_v15 = vpack.c.bf16 %v12863_v12, %v12862_v11  ;;  %v2253_v63 = vpop.f32.mrb[151].mxu1  ;;  %v11221_v29 = vpop.f32.mrb[41].mxu0 }
 0x322   :  { %v3083_v25 = vpack.c.bf16 %v2253_v63, %v2250_v47  ;;  %v15451_v60 = vadd.f32 %v11221_v29, %v11220_v50  ;;  %v11223_v37 = vpop.f32.mrb[42].mxu0  ;;  %11491 = vmatpush3.bf16.msra.mxu0 %v13698_v58  ;;  %v13711_v50 = vld [vmem:[%s19242_s6 + $0x2a0] sm:$0xff]   ;;  %v13713_v63 = vld [vmem:[%s19242_s6 + $0x2e8] sm:$0xff]  }
 0x323   :  { %12969 = vmatmul.mubr.bf16.gmra.mrb[0].mxu1 %v13695_v61  ;;  %v11224_v32 = vpop.f32.mrb[43].mxu0  ;;  %11492 = vmatprep.subr.bf16.mxu0 %v13700_v36 }
 0x324   :  { %v15459_v57 = vadd.f32 %v11224_v32, %v11223_v37  ;;  %12972 = vmatprep.mubr.bf16.mxu1 %v13697_v3  ;;  %v13715_v37 = vld [vmem:[%s19242_s6 + $0x2a8] sm:$0xff]  }
 0x325   :  { %5213 = vmatmul.mubr.bf16.gmra.mrb[148].mxu0 %v3066_v18  ;;  %v13701_v18 = vld [vmem:[%s19238_s1 + $0x420] sm:$0xff]  }
 0x326   :  { %v15464_v22 = vpop.f32.mrb[152].mxu1  ;;  %5220 = vmatprep.mubr.bf16.mxu0 %v3083_v25  ;;  %11493 = vmatpush3.bf16.msra.mxu0 %v13702_v28  ;;  %v15503_v28 = vld [vmem:[%s19243_s7] ss:$0 sm:$0xff] }
 0x327   :  { %v2266_v19 = vpop.f32.mrb[153].mxu1  ;;  %11494 = vmatprep.subr.bf16.mxu0 %v13704_v30  ;;  %v13705_v30 = vld [vmem:[%s19238_s1 + $0x430] sm:$0xff]   ;;  %v4859_v62 = vadd.f32 %v15423_v21, %v15503_v28 }
 0x328   :  { %v15475_v43 = vpop.f32.mrb[154].mxu1  ;;  %v11226_v20 = vpop.f32.mrb[44].mxu0 }
 0x329   :  { %v3086_v11 = vpack.c.bf16 %v15475_v43, %v15464_v22  ;;  %v2269_v58 = vpop.f32.mrb[155].mxu1  ;;  %v11227_v47 = vpop.f32.mrb[45].mxu0  ;;  %v4835_v43 = vadd.f32 %v15351_v53, %v15503_v28 }
 0x32a   :  { %v3085_v61 = vpack.c.bf16 %v2269_v58, %v2266_v19  ;;  %v15482_v36 = vadd.f32 %v11227_v47, %v11226_v20  ;;  %v11229_v12 = vpop.f32.mrb[46].mxu0  ;;  %11495 = vmatpush3.bf16.msra.mxu0 %v13706_v41  ;;  %v13719_v47 = vld [vmem:[%s19242_s6 + $0x2b0] sm:$0xff]  }
 0x32b   :  { %12973 = vmatmul.mubr.bf16.gmra.mrb[4].mxu1 %v13699_v39  ;;  %v11230_v3 = vpop.f32.mrb[47].mxu0  ;;  %11496 = vmatprep.subr.bf16.mxu0 %v13708_v27  ;;  %v4819_v27 = vadd.f32 %v15289_v16, %v15503_v28  ;;  %v4822_v16 = vadd.f32 %v15297_v14, %v15503_v28  ;;  %v13707_v14 = vld [vmem:[%s19238_s1 + $0x438] sm:$0xff]  }
 0x32c   :  { %v15490_v29 = vadd.f32 %v11230_v3, %v11229_v12  ;;  %12976 = vmatprep.mubr.bf16.mxu1 %v13701_v18 }
 0x32d   :  { %5221 = vmatmul.mubr.bf16.gmra.mrb[152].mxu0 %v3067_v24 }
 0x32e   :  { %v15495_v25 = vpop.f32.mrb[156].mxu1  ;;  %5228 = vmatprep.mubr.bf16.mxu0 %v3084_v15  ;;  %11497 = vmatpush3.bf16.msra.mxu0 %v13711_v50  ;;  %v13721_v50 = vld [vmem:[%s19242_s6 + $0x2f8] sm:$0xff]  }
 0x32f   :  { %v15505_v32 = vpop.f32.mrb[157].mxu1  ;;  %11498 = vmatprep.subr.bf16.mxu0 %v13713_v63 }
 0x330   :  { %v15513_v24 = vpop.f32.mrb[158].mxu1  ;;  %v11248_v15 = vpop.f32.mrb[48].mxu0 }
 0x331   :  { %v3088_v41 = vpack.c.bf16 %v15513_v24, %v15495_v25  ;;  %v15520_v19 = vpop.f32.mrb[159].mxu1  ;;  %v11249_v39 = vpop.f32.mrb[49].mxu0  ;;  %v4851_v24 = vadd.f32 %v15404_v55, %v15503_v28 }
 0x332   :  { %v3087_v20 = vpack.c.bf16 %v15520_v19, %v15505_v32  ;;  %v11250_v18 = vadd.f32 %v11249_v39, %v11248_v15  ;;  %v11251_v58 = vpop.f32.mrb[50].mxu0  ;;  %11499 = vmatpush3.bf16.msra.mxu0 %v13715_v37  ;;  %v4843_v19 = vadd.f32 %v15376_v10, %v15503_v28 }
 0x333   :  { %12977 = vmatmul.mubr.bf16.gmra.mrb[8].mxu1 %v13703_v40  ;;  %v11252_v12 = vpop.f32.mrb[51].mxu0  ;;  %11500 = vmatprep.subr.bf16.mxu0 %v13717_v42  ;;  %v13723_v42 = vld [vmem:[%s19242_s6 + $0x2b8] sm:$0xff]  }
 0x334   :  { %v15534_v3 = vadd.f32 %v11250_v18, %v4819_v27  ;;  %v11253_v63 = vadd.f32 %v11252_v12, %v11251_v58  ;;  %12980 = vmatprep.mubr.bf16.mxu1 %v13705_v30  ;;  %v4827_v18 = vadd.f32 %v15326_v54, %v15503_v28 }
 0x335   :  { %5229 = vmatmul.mubr.bf16.gmra.mrb[156].mxu0 %v3068_v7 }
 0x336   :  { %v15539_v37 = vadd.f32 %v11253_v63, %v4822_v16  ;;  %v15541_v40 = vpop.f32.mrb[160].mxu1  ;;  %5236 = vmatprep.mubr.bf16.mxu0 %v3085_v61  ;;  %11501 = vmatpush3.bf16.msra.mxu0 %v13719_v47  ;;  %v13710_v61 = vld [vmem:[%s19238_s1 + $0x440] sm:$0xff]   ;;  %v4830_v16 = vadd.f32 %v15328_v1, %v15503_v28  ;;  %v13712_v1 = vld [vmem:[%s19238_s1 + $0x448] sm:$0xff]  }
 0x337   :  { %v15546_v15 = vpop.f32.mrb[161].mxu1  ;;  %11502 = vmatprep.subr.bf16.mxu0 %v13721_v50 }
 0x338   :  { %v15554_v56 = vpop.f32.mrb[162].mxu1  ;;  %v11254_v7 = vpop.f32.mrb[52].mxu0 }
 0x339   :  { %v15561_v39 = vpop.f32.mrb[163].mxu1  ;;  %v11255_v27 = vpop.f32.mrb[53].mxu0 }
 0x33a   :  { %v11256_v47 = vadd.f32 %v11255_v27, %v11254_v7  ;;  %v11257_v12 = vpop.f32.mrb[54].mxu0  ;;  %11503 = vmatpush3.bf16.msra.mxu0 %v13723_v42  ;;  %v4838_v27 = vadd.f32 %v15353_v23, %v15503_v28  ;;  %v13716_v23 = vld [vmem:[%s19238_s1 + $0x458] sm:$0xff]   ;;  %v19249_v21 = vpack.c.bf16 %v15561_v39, %v15546_v15  ;;  %v13733_v15 = vld [vmem:[%s19242_s6 + $0x350] sm:$0xff]  }
 0x33b   :  { %12981 = vmatmul.mubr.bf16.gmra.mrb[12].mxu1 %v13707_v14  ;;  %v11258_v50 = vpop.f32.mrb[55].mxu0  ;;  %11552 = vmatprep.subr.bf16.mxu0 %v13725_v38 }
 0x33c   :  { %v15569_v63 = vadd.f32 %v11256_v47, %v4827_v18  ;;  %v11259_v30 = vadd.f32 %v11258_v50, %v11257_v12  ;;  %12984 = vmatprep.mubr.bf16.mxu1 %v13710_v61 }
 0x33d   :  { %5237 = vmatmul.mubr.bf16.gmra.mrb[160].mxu0 %v3069_v33 }
 0x33e   :  { %v15574_v54 = vadd.f32 %v11259_v30, %v4830_v16  ;;  %v15576_v58 = vpop.f32.mrb[164].mxu1  ;;  %5244 = vmatprep.mubr.bf16.mxu0 %v3086_v11 }
 0x33f   :  { %v15581_v42 = vpop.f32.mrb[165].mxu1 }
 0x340   :  { %v15586_v14 = vpop.f32.mrb[166].mxu1  ;;  %v11260_v38 = vpop.f32.mrb[56].mxu0 }
 0x341   :  { %v3100_v13 = vpack.c.bf16 %v15586_v14, %v15576_v58  ;;  %v15593_v33 = vpop.f32.mrb[167].mxu1  ;;  %v11261_v22 = vpop.f32.mrb[57].mxu0 }
 0x342   :  { %v3099_v11 = vpack.c.bf16 %v15593_v33, %v15581_v42  ;;  %v11262_v7 = vadd.f32 %v11261_v22, %v11260_v38  ;;  %v11263_v61 = vpop.f32.mrb[58].mxu0 }
 0x343   :  { %12985 = vmatmul.mubr.bf16.gmra.mrb[16].mxu1 %v13712_v1  ;;  %v11264_v30 = vpop.f32.mrb[59].mxu0 }
 0x344   :  { %v15601_v18 = vadd.f32 %v11262_v7, %v4835_v43  ;;  %v11265_v47 = vadd.f32 %v11264_v30, %v11263_v61  ;;  %12988 = vmatprep.mubr.bf16.mxu1 %v13714_v35  ;;  %v4846_v43 = vadd.f32 %v15378_v8, %v15503_v28  ;;  %v13720_v8 = vld [vmem:[%s19238_s1 + $0x468] sm:$0xff]  }
 0x345   :  { %5245 = vmatmul.mubr.bf16.gmra.mrb[164].mxu0 %v3070_v4 }
 0x346   :  { %v15606_v12 = vadd.f32 %v11265_v47, %v4838_v27  ;;  %v15608_v53 = vpop.f32.mrb[168].mxu1  ;;  %5252 = vmatprep.mubr.bf16.mxu0 %v3087_v20 }
 0x347   :  { %v15613_v50 = vpop.f32.mrb[169].mxu1 }
 0x348   :  { %v15618_v16 = vpop.f32.mrb[170].mxu1  ;;  %v11266_v1 = vpop.f32.mrb[60].mxu0 }
 0x349   :  { %v3102_v26 = vpack.c.bf16 %v15618_v16, %v15608_v53  ;;  %v15625_v4 = vpop.f32.mrb[171].mxu1  ;;  %v11267_v32 = vpop.f32.mrb[61].mxu0  ;;  %v13751_v53 = vld [vmem:[%s19238_s1 + $0x4e0] sm:$0xff]  }
 0x34a   :  { %v3101_v20 = vpack.c.bf16 %v15625_v4, %v15613_v50  ;;  %v11268_v38 = vadd.f32 %v11267_v32, %v11266_v1  ;;  %v11269_v35 = vpop.f32.mrb[62].mxu0 }
 0x34b   :  { %12989 = vmatmul.mubr.bf16.gmra.mrb[20].mxu1 %v13716_v23  ;;  %v11270_v22 = vpop.f32.mrb[63].mxu0 }
 0x34c   :  { %v15633_v7 = vadd.f32 %v11268_v38, %v4843_v19  ;;  %v11271_v61 = vadd.f32 %v11270_v22, %v11269_v35  ;;  %12992 = vmatprep.mubr.bf16.mxu1 %v13718_v52  ;;  %v4854_v19 = vadd.f32 %v15406_v59, %v15503_v28  ;;  %v13726_v59 = vld [vmem:[%s19238_s1 + $0x480] sm:$0xff]  }
 0x34d   :  { %5253 = vmatmul.mubr.bf16.gmra.mrb[168].mxu0 %v3071_v17 }
 0x34e   :  { %v15638_v30 = vadd.f32 %v11271_v61, %v4846_v43  ;;  %v15640_v10 = vpop.f32.mrb[172].mxu1  ;;  %5260 = vmatprep.mubr.bf16.mxu0 %v3088_v41  ;;  %v13724_v61 = vld [vmem:[%s19238_s1 + $0x478] sm:$0xff]  }
 0x34f   :  { %v15645_v27 = vpop.f32.mrb[173].mxu1 }
 0x350   :  { %v15650_v47 = vpop.f32.mrb[174].mxu1  ;;  %v11272_v23 = vpop.f32.mrb[64].mxu0 }
 0x351   :  { %v3104_v0 = vpack.c.bf16 %v15650_v47, %v15640_v10  ;;  %v15657_v17 = vpop.f32.mrb[175].mxu1  ;;  %v11273_v25 = vpop.f32.mrb[65].mxu0  ;;  %v13761_v10 = vld [vmem:[%s19242_s6 + $0x380] sm:$0xff]  }
 0x352   :  { %v3103_v41 = vpack.c.bf16 %v15657_v17, %v15645_v27  ;;  %v11274_v1 = vadd.f32 %v11273_v25, %v11272_v23  ;;  %v11275_v52 = vpop.f32.mrb[66].mxu0 }
 0x353   :  { %12993 = vmatmul.mubr.bf16.gmra.mrb[24].mxu1 %v13720_v8  ;;  %v11276_v32 = vpop.f32.mrb[67].mxu0 }
 0x354   :  { %v15665_v38 = vadd.f32 %v11274_v1, %v4851_v24  ;;  %v11277_v35 = vadd.f32 %v11276_v32, %v11275_v52  ;;  %12996 = vmatprep.mubr.bf16.mxu1 %v13722_v49  ;;  %v13727_v52 = vld [vmem:[%s19242_s6 + $0x300] sm:$0xff]  }
 0x355   :  { %5261 = vmatmul.mubr.bf16.gmra.mrb[172].mxu0 %v3072_v46 }
 0x356   :  { %v15670_v22 = vadd.f32 %v11277_v35, %v4854_v19  ;;  %v12890_v55 = vpop.f32.mrb[176].mxu1  ;;  %v13729_v19 = vld [vmem:[%s19242_s6 + $0x348] sm:$0xff]   ;;  %v4862_v35 = vadd.f32 %v15431_v2, %v15503_v28 }
 0x357   :  { %v2362_v43 = vpop.f32.mrb[177].mxu1  ;;  %v13728_v2 = vld [vmem:[%s19238_s1 + $0x488] sm:$0xff]  }
 0x358   :  { %v12891_v8 = vpop.f32.mrb[178].mxu1  ;;  %v11278_v23 = vpop.f32.mrb[68].mxu0 }
 0x359   :  { %v3114_v25 = vpack.c.bf16 %v12891_v8, %v12890_v55  ;;  %v2365_v49 = vpop.f32.mrb[179].mxu1  ;;  %v11279_v24 = vpop.f32.mrb[69].mxu0 }
 0x35a   :  { %v3113_v5 = vpack.c.bf16 %v2365_v49, %v2362_v43  ;;  %v11280_v46 = vadd.f32 %v11279_v24, %v11278_v23  ;;  %v11281_v1 = vpop.f32.mrb[70].mxu0  ;;  %v13731_v23 = vld [vmem:[%s19242_s6 + $0x308] sm:$0xff]  }
 0x35b   :  { %12997 = vmatmul.mubr.bf16.gmra.mrb[28].mxu1 %v13724_v61  ;;  %v11282_v32 = vpop.f32.mrb[71].mxu0 }
 0x35c   :  { %v15688_v55 = vadd.f32 %v11280_v46, %v4859_v62  ;;  %v11283_v8 = vadd.f32 %v11282_v32, %v11281_v1  ;;  %5301 = vmatprep.mubr.bf16.mxu0 %v3113_v5  ;;  %13000 = vmatprep.mubr.bf16.mxu1 %v13726_v59  ;;  %v4867_v46 = vadd.f32 %v15451_v60, %v15503_v28 }
 0x35d   :  { %5302 = vmatmul.mubr.bf16.vlgmr.msra.gmra.mrb[176].mxu0 %v19249_v21  ;;  %v4870_v21 = vadd.f32 %v15459_v57, %v15503_v28  ;;  %v13732_v57 = vld [vmem:[%s19238_s1 + $0x498] sm:$0xff]  }
 0x35e   :  { %v15693_v43 = vadd.f32 %v11283_v8, %v4862_v35  ;;  %v12894_v61 = vpop.f32.mrb[180].mxu1  ;;  %5309 = vmatprep.mubr.bf16.mxu0 %v3114_v25  ;;  %11553 = vmatpush3.bf16.msra.mxu0 %v13727_v52  ;;  %v13730_v25 = vld [vmem:[%s19238_s1 + $0x490] sm:$0xff]   ;;  %v13737_v8 = vld [vmem:[%s19242_s6 + $0x358] sm:$0xff]  }
 0x35f   :  { %v2378_v49 = vpop.f32.mrb[181].mxu1  ;;  %11554 = vmatprep.subr.bf16.mxu0 %v13729_v19  ;;  %v13735_v19 = vld [vmem:[%s19242_s6 + $0x310] sm:$0xff]  }
 0x360   :  { %v12895_v39 = vpop.f32.mrb[182].mxu1  ;;  %v11284_v59 = vpop.f32.mrb[72].mxu0 }
 0x361   :  { %v3116_v24 = vpack.c.bf16 %v12895_v39, %v12894_v61  ;;  %v2381_v62 = vpop.f32.mrb[183].mxu1  ;;  %v11285_v5 = vpop.f32.mrb[73].mxu0 }
 0x362   :  { %v3115_v1 = vpack.c.bf16 %v2381_v62, %v2378_v49  ;;  %v11286_v52 = vadd.f32 %v11285_v5, %v11284_v59  ;;  %v11287_v32 = vpop.f32.mrb[74].mxu0  ;;  %11555 = vmatpush3.bf16.msra.mxu0 %v13731_v23  ;;  %v19250_v23 = vpack.c.bf16 %v15554_v56, %v15541_v40  ;;  %v13741_v40 = vld [vmem:[%s19242_s6 + $0x360] sm:$0xff]  }
 0x363   :  { %13001 = vmatmul.mubr.bf16.gmra.mrb[32].mxu1 %v13728_v2  ;;  %v11288_v35 = vpop.f32.mrb[75].mxu0  ;;  %11556 = vmatprep.subr.bf16.mxu0 %v13733_v15  ;;  %v13739_v15 = vld [vmem:[%s19242_s6 + $0x318] sm:$0xff]  }
 0x364   :  { %v15717_v61 = vadd.f32 %v11286_v52, %v4867_v46  ;;  %v11289_v60 = vadd.f32 %v11288_v35, %v11287_v32  ;;  %13004 = vmatprep.mubr.bf16.mxu1 %v13730_v25  ;;  %v13734_v25 = vld [vmem:[%s19238_s1 + $0x4a0] sm:$0xff]  }
 0x365   :  { %5310 = vmatmul.mubr.bf16.gmra.mrb[180].mxu0 %v19250_v23  ;;  %v13743_v35 = vld [vmem:[%s19242_s6 + $0x320] sm:$0xff]  }
 0x366   :  { %v15722_v49 = vadd.f32 %v11289_v60, %v4870_v21  ;;  %v15724_v2 = vpop.f32.mrb[184].mxu1  ;;  %5317 = vmatprep.mubr.bf16.mxu0 %v3115_v1  ;;  %11557 = vmatpush3.bf16.msra.mxu0 %v13735_v19  ;;  %v4875_v1 = vadd.f32 %v15482_v36, %v15503_v28  ;;  %v13745_v21 = vld [vmem:[%s19242_s6 + $0x368] sm:$0xff]   ;;  %v4878_v60 = vadd.f32 %v15490_v29, %v15503_v28  ;;  %v13749_v28 = vld [vmem:[%s19242_s6 + $0x370] sm:$0xff]  }
 0x367   :  { %v2394_v39 = vpop.f32.mrb[185].mxu1  ;;  %11558 = vmatprep.subr.bf16.mxu0 %v13737_v8  ;;  %v13736_v29 = vld [vmem:[%s19238_s1 + $0x4a8] sm:$0xff]  }
 0x368   :  { %v15735_v56 = vpop.f32.mrb[186].mxu1  ;;  %v11290_v59 = vpop.f32.mrb[76].mxu0 }
 0x369   :  { %v3118_v62 = vpack.c.bf16 %v15735_v56, %v15724_v2  ;;  %v2397_v5 = vpop.f32.mrb[187].mxu1  ;;  %v11291_v46 = vpop.f32.mrb[77].mxu0 }
 0x36a   :  { %v3117_v52 = vpack.c.bf16 %v2397_v5, %v2394_v39  ;;  %v11292_v32 = vadd.f32 %v11291_v46, %v11290_v59  ;;  %v11293_v19 = vpop.f32.mrb[78].mxu0  ;;  %11559 = vmatpush3.bf16.msra.mxu0 %v13739_v15 }
 0x36b   :  { %13005 = vmatmul.mubr.bf16.gmra.mrb[36].mxu1 %v13732_v57  ;;  %v11294_v8 = vpop.f32.mrb[79].mxu0  ;;  %11560 = vmatprep.subr.bf16.mxu0 %v13741_v40  ;;  %v13747_v57 = vld [vmem:[%s19242_s6 + $0x328] sm:$0xff]  }
 0x36c   :  { %v15752_v23 = vadd.f32 %v11292_v32, %v4875_v1  ;;  %v11295_v36 = vadd.f32 %v11294_v8, %v11293_v19  ;;  %13008 = vmatprep.mubr.bf16.mxu1 %v13734_v25  ;;  %v13752_v32 = vld [vmem:[%s19242_s6 + $0x330] sm:$0xff]  }
 0x36d   :  { %5318 = vmatmul.mubr.bf16.gmra.mrb[184].mxu0 %v3099_v11  ;;  %v13738_v11 = vld [vmem:[%s19238_s1 + $0x4b0] sm:$0xff]  }
 0x36e   :  { %v15757_v15 = vadd.f32 %v11295_v36, %v4878_v60  ;;  %v15759_v39 = vpop.f32.mrb[188].mxu1  ;;  %5325 = vmatprep.mubr.bf16.mxu0 %v3116_v24  ;;  %11561 = vmatpush3.bf16.msra.mxu0 %v13743_v35  ;;  %v13754_v35 = vld [vmem:[%s19242_s6 + $0x378] sm:$0xff]  }
 0x36f   :  { %v15764_v40 = vpop.f32.mrb[189].mxu1  ;;  %11562 = vmatprep.subr.bf16.mxu0 %v13745_v21 }
 0x370   :  { %v15772_v42 = vpop.f32.mrb[190].mxu1  ;;  %v11312_v33 = vpop.f32.mrb[80].mxu0 }
 0x371   :  { %v3120_v24 = vpack.c.bf16 %v15772_v42, %v15759_v39  ;;  %v15779_v59 = vpop.f32.mrb[191].mxu1  ;;  %v11313_v25 = vpop.f32.mrb[81].mxu0 }
 0x372   :  { %v3119_v5 = vpack.c.bf16 %v15779_v59, %v15764_v40  ;;  %v11314_v46 = vadd.f32 %v11313_v25, %v11312_v33  ;;  %v11315_v1 = vpop.f32.mrb[82].mxu0  ;;  %11563 = vmatpush3.bf16.msra.mxu0 %v13747_v57  ;;  %v13756_v57 = vld [vmem:[%s19242_s6 + $0x338] sm:$0xff]  }
 0x373   :  { %13009 = vmatmul.mubr.bf16.gmra.mrb[40].mxu1 %v13736_v29  ;;  %v11316_v19 = vpop.f32.mrb[83].mxu0  ;;  %11564 = vmatprep.subr.bf16.mxu0 %v13749_v28 }
 0x374   :  { %v15790_v8 = vadd.f32 %v11314_v46, %v15534_v3  ;;  %v11317_v21 = vadd.f32 %v11316_v19, %v11315_v1  ;;  %13012 = vmatprep.mubr.bf16.mxu1 %v13738_v11  ;;  %v13740_v3 = vld [vmem:[%s19238_s1 + $0x4b8] sm:$0xff]  }
 0x375   :  { %5326 = vmatmul.mubr.bf16.gmra.mrb[188].mxu0 %v3100_v13  ;;  %v13742_v13 = vld [vmem:[%s19238_s1 + $0x4c0] sm:$0xff]  }
 0x376   :  { %v15796_v60 = vadd.f32 %v11317_v21, %v15539_v37  ;;  %v15798_v36 = vpop.f32.mrb[192].mxu1  ;;  %5333 = vmatprep.mubr.bf16.mxu0 %v3117_v52  ;;  %11565 = vmatpush3.bf16.msra.mxu0 %v13752_v32  ;;  %v13760_v37 = vld [vmem:[%s19242_s6 + $0x3c0] sm:$0xff]  }
 0x377   :  { %v15803_v40 = vpop.f32.mrb[193].mxu1  ;;  %11566 = vmatprep.subr.bf16.mxu0 %v13754_v35 }
 0x378   :  { %v15811_v58 = vpop.f32.mrb[194].mxu1  ;;  %v11318_v14 = vpop.f32.mrb[84].mxu0 }
 0x379   :  { %v3130_v52 = vpack.c.bf16 %v15811_v58, %v15798_v36  ;;  %v15818_v29 = vpop.f32.mrb[195].mxu1  ;;  %v11319_v28 = vpop.f32.mrb[85].mxu0 }
 0x37a   :  { %v3129_v33 = vpack.c.bf16 %v15818_v29, %v15803_v40  ;;  %v11320_v11 = vadd.f32 %v11319_v28, %v11318_v14  ;;  %v11321_v59 = vpop.f32.mrb[86].mxu0  ;;  %11567 = vmatpush3.bf16.msra.mxu0 %v13756_v57 }
 0x37b   :  { %13013 = vmatmul.mubr.bf16.gmra.mrb[44].mxu1 %v13740_v3  ;;  %v11322_v25 = vpop.f32.mrb[87].mxu0  ;;  %11616 = vmatprep.subr.bf16.mxu0 %v13760_v37 }
 0x37c   :  { %v15823_v46 = vadd.f32 %v11320_v11, %v15569_v63  ;;  %v11323_v1 = vadd.f32 %v11322_v25, %v11321_v59  ;;  %13016 = vmatprep.mubr.bf16.mxu1 %v13742_v13  ;;  %v13744_v63 = vld [vmem:[%s19238_s1 + $0x4c8] sm:$0xff]   ;;  %v13748_v59 = vld [vmem:[%s19238_s1 + $0x4d8] sm:$0xff]  }
 0x37d   :  { %5334 = vmatmul.mubr.bf16.gmra.mrb[192].mxu0 %v3101_v20 }
 0x37e   :  { %v15829_v32 = vadd.f32 %v11323_v1, %v15574_v54  ;;  %v15831_v19 = vpop.f32.mrb[196].mxu1  ;;  %5341 = vmatprep.mubr.bf16.mxu0 %v3118_v62  ;;  %v13746_v54 = vld [vmem:[%s19238_s1 + $0x4d0] sm:$0xff]  }
 0x37f   :  { %v15836_v35 = vpop.f32.mrb[197].mxu1 }
 0x380   :  { %v15841_v21 = vpop.f32.mrb[198].mxu1  ;;  %v11324_v57 = vpop.f32.mrb[88].mxu0 }
 0x381   :  { %v3132_v50 = vpack.c.bf16 %v15841_v21, %v15831_v19  ;;  %v15848_v4 = vpop.f32.mrb[199].mxu1  ;;  %v11325_v20 = vpop.f32.mrb[89].mxu0 }
 0x382   :  { %v3131_v2 = vpack.c.bf16 %v15848_v4, %v15836_v35  ;;  %v11326_v56 = vadd.f32 %v11325_v20, %v11324_v57  ;;  %v11327_v62 = vpop.f32.mrb[90].mxu0 }
 0x383   :  { %13017 = vmatmul.mubr.bf16.gmra.mrb[48].mxu1 %v13744_v63  ;;  %v11328_v3 = vpop.f32.mrb[91].mxu0 }
 0x384   :  { %v15853_v37 = vadd.f32 %v11326_v56, %v15601_v18  ;;  %v11329_v14 = vadd.f32 %v11328_v3, %v11327_v62  ;;  %13020 = vmatprep.mubr.bf16.mxu1 %v13746_v54 }
 0x385   :  { %5342 = vmatmul.mubr.bf16.gmra.mrb[196].mxu0 %v3102_v26 }
 0x386   :  { %v15859_v13 = vadd.f32 %v11329_v14, %v15606_v12  ;;  %v15861_v28 = vpop.f32.mrb[200].mxu1  ;;  %5349 = vmatprep.mubr.bf16.mxu0 %v3119_v5 }
 0x387   :  { %v15863_v11 = vpop.f32.mrb[201].mxu1 }
 0x388   :  { %v15868_v18 = vpop.f32.mrb[202].mxu1  ;;  %v11330_v25 = vpop.f32.mrb[92].mxu0 }
 0x389   :  { %v3134_v12 = vpack.c.bf16 %v15868_v18, %v15861_v28  ;;  %v15875_v16 = vpop.f32.mrb[203].mxu1  ;;  %v11331_v26 = vpop.f32.mrb[93].mxu0 }
 0x38a   :  { %v3133_v5 = vpack.c.bf16 %v15875_v16, %v15863_v11  ;;  %v11332_v1 = vadd.f32 %v11331_v26, %v11330_v25  ;;  %v11333_v63 = vpop.f32.mrb[94].mxu0 }
 0x38b   :  { %13021 = vmatmul.mubr.bf16.gmra.mrb[52].mxu1 %v13748_v59  ;;  %v11334_v57 = vpop.f32.mrb[95].mxu0 }
 0x38c   :  { %v15880_v54 = vadd.f32 %v11332_v1, %v15633_v7  ;;  %v11335_v20 = vadd.f32 %v11334_v57, %v11333_v63  ;;  %13024 = vmatprep.mubr.bf16.mxu1 %v13751_v53  ;;  %v13753_v7 = vld [vmem:[%s19238_s1 + $0x4e8] sm:$0xff]  }
 0x38d   :  { %5350 = vmatmul.mubr.bf16.gmra.mrb[200].mxu0 %v3103_v41 }
 0x38e   :  { %v15886_v56 = vadd.f32 %v11335_v20, %v15638_v30  ;;  %v15888_v62 = vpop.f32.mrb[204].mxu1  ;;  %5357 = vmatprep.mubr.bf16.mxu0 %v3120_v24  ;;  %v13755_v30 = vld [vmem:[%s19238_s1 + $0x4f0] sm:$0xff]   ;;  %v13757_v20 = vld [vmem:[%s19238_s1 + $0x4f8] sm:$0xff]  }
 0x38f   :  { %v15893_v3 = vpop.f32.mrb[205].mxu1 }
 0x390   :  { %v15898_v14 = vpop.f32.mrb[206].mxu1  ;;  %v11336_v59 = vpop.f32.mrb[96].mxu0 }
 0x391   :  { %v3136_v27 = vpack.c.bf16 %v15898_v14, %v15888_v62  ;;  %v15905_v17 = vpop.f32.mrb[207].mxu1  ;;  %v11337_v41 = vpop.f32.mrb[97].mxu0  ;;  %v13778_v62 = vld [vmem:[%s19242_s6 + $0x448] sm:$0xff]  }
 0x392   :  { %v3135_v39 = vpack.c.bf16 %v15905_v17, %v15893_v3  ;;  %v11338_v42 = vadd.f32 %v11337_v41, %v11336_v59  ;;  %v11339_v24 = vpop.f32.mrb[98].mxu0 }
 0x393   :  { %13025 = vmatmul.mubr.bf16.gmra.mrb[56].mxu1 %v13753_v7  ;;  %v11340_v25 = vpop.f32.mrb[99].mxu0 }
 0x394   :  { %v15910_v53 = vadd.f32 %v11338_v42, %v15665_v38  ;;  %v11341_v26 = vadd.f32 %v11340_v25, %v11339_v24  ;;  %13028 = vmatprep.mubr.bf16.mxu1 %v13755_v30 }
 0x395   :  { %5358 = vmatmul.mubr.bf16.gmra.mrb[204].mxu0 %v3104_v0  ;;  %v13762_v0 = vld [vmem:[%s19242_s6 + $0x3c8] sm:$0xff]  }
 0x396   :  { %v15916_v1 = vadd.f32 %v11341_v26, %v15670_v22  ;;  %v12922_v63 = vpop.f32.mrb[208].mxu1 }
 0x397   :  { %v2490_v57 = vpop.f32.mrb[209].mxu1 }
 0x398   :  { %v12923_v7 = vpop.f32.mrb[210].mxu1  ;;  %v11342_v59 = vpop.f32.mrb[100].mxu0 }
 0x399   :  { %v3146_v41 = vpack.c.bf16 %v12923_v7, %v12922_v63  ;;  %v2493_v38 = vpop.f32.mrb[211].mxu1  ;;  %v11343_v42 = vpop.f32.mrb[101].mxu0 }
 0x39a   :  { %v3145_v24 = vpack.c.bf16 %v2493_v38, %v2490_v57  ;;  %v11344_v30 = vadd.f32 %v11343_v42, %v11342_v59  ;;  %v11345_v25 = vpop.f32.mrb[102].mxu0 }
 0x39b   :  { %13029 = vmatmul.mubr.bf16.gmra.mrb[60].mxu1 %v13757_v20  ;;  %v11346_v47 = vpop.f32.mrb[103].mxu0  ;;  %v13763_v20 = vld [vmem:[%s19242_s6 + $0x388] sm:$0xff]  }
 0x39c   :  { %v15928_v22 = vadd.f32 %v11344_v30, %v15688_v55  ;;  %v11347_v26 = vadd.f32 %v11346_v47, %v11345_v25  ;;  %5398 = vmatprep.mubr.bf16.mxu0 %v3145_v24  ;;  %13048 = vmatprep.mubr.bf16.mxu1 %v14357_v51  ;;  %v13764_v51 = vld [vmem:[%s19242_s6 + $0x3d0] sm:$0xff]   ;;  %v13766_v30 = vld [vmem:[%s19242_s6 + $0x3d8] sm:$0xff]  }
 0x39d   :  { %5399 = vmatmul.mubr.bf16.vlgmr.msra.gmra.mrb[208].mxu0 %v3129_v33 }
 0x39e   :  { %v15935_v63 = vadd.f32 %v11347_v26, %v15693_v43  ;;  %v12926_v57 = vpop.f32.mrb[212].mxu1  ;;  %5406 = vmatprep.mubr.bf16.mxu0 %v3146_v41  ;;  %11617 = vmatpush3.bf16.msra.mxu0 %v13761_v10  ;;  %v13765_v41 = vld [vmem:[%s19242_s6 + $0x390] sm:$0xff]  }
 0x39f   :  { %v2506_v55 = vpop.f32.mrb[213].mxu1  ;;  %11618 = vmatprep.subr.bf16.mxu0 %v13762_v0 }
 0x3a0   :  { %v12927_v7 = vpop.f32.mrb[214].mxu1  ;;  %v11348_v59 = vpop.f32.mrb[104].mxu0 }
 0x3a1   :  { %v3148_v40 = vpack.c.bf16 %v12927_v7, %v12926_v57  ;;  %v2509_v29 = vpop.f32.mrb[215].mxu1  ;;  %v11349_v33 = vpop.f32.mrb[105].mxu0 }
 0x3a2   :  { %v3147_v43 = vpack.c.bf16 %v2509_v29, %v2506_v55  ;;  %v11350_v38 = vadd.f32 %v11349_v33, %v11348_v59  ;;  %v11351_v42 = vpop.f32.mrb[106].mxu0  ;;  %11619 = vmatpush3.bf16.msra.mxu0 %v13763_v20  ;;  %v13770_v59 = vld [vmem:[%s19242_s6 + $0x3e8] sm:$0xff]  }
 0x3a3   :  { %v11352_v24 = vpop.f32.mrb[107].mxu0  ;;  %13049 = vmatmul.mubr.bf16.vlgmr.msra.gmra.mrb[64].mxu1 %v14354_v48  ;;  %11620 = vmatprep.subr.bf16.mxu0 %v13764_v51  ;;  %v13767_v48 = vld [vmem:[%s19242_s6 + $0x398] sm:$0xff]   ;;  %v13769_v51 = vld [vmem:[%s19242_s6 + $0x3a0] sm:$0xff]  }
 0x3a4   :  { %v15951_v25 = vadd.f32 %v11350_v38, %v15717_v61  ;;  %v11353_v10 = vadd.f32 %v11352_v24, %v11351_v42  ;;  %13052 = vmatprep.mubr.bf16.mxu1 %v14377_v9  ;;  %v13768_v9 = vld [vmem:[%s19242_s6 + $0x3e0] sm:$0xff]  }
 0x3a5   :  { %5407 = vmatmul.mubr.bf16.gmra.mrb[212].mxu0 %v3130_v52 }
 0x3a6   :  { %v15958_v47 = vadd.f32 %v11353_v10, %v15722_v49  ;;  %v15960_v0 = vpop.f32.mrb[216].mxu1  ;;  %5414 = vmatprep.mubr.bf16.mxu0 %v3147_v43  ;;  %11621 = vmatpush3.bf16.msra.mxu0 %v13765_v41 }
 0x3a7   :  { %v2522_v61 = vpop.f32.mrb[217].mxu1  ;;  %11622 = vmatprep.subr.bf16.mxu0 %v13766_v30  ;;  %v13773_v30 = vld [vmem:[%s19242_s6 + $0x3b0] sm:$0xff]  }
 0x3a8   :  { %v15968_v26 = vpop.f32.mrb[218].mxu1  ;;  %v11354_v36 = vpop.f32.mrb[108].mxu0 }
 0x3a9   :  { %v3150_v49 = vpack.c.bf16 %v15968_v26, %v15960_v0  ;;  %v2525_v58 = vpop.f32.mrb[219].mxu1  ;;  %v11355_v52 = vpop.f32.mrb[109].mxu0 }
 0x3aa   :  { %v3149_v57 = vpack.c.bf16 %v2525_v58, %v2522_v61  ;;  %v11356_v20 = vadd.f32 %v11355_v52, %v11354_v36  ;;  %v11357_v55 = vpop.f32.mrb[110].mxu0  ;;  %11623 = vmatpush3.bf16.msra.mxu0 %v13767_v48  ;;  %v13774_v48 = vld [vmem:[%s19242_s6 + $0x3f8] sm:$0xff]  }
 0x3ab   :  { %v11358_v7 = vpop.f32.mrb[111].mxu0  ;;  %13053 = vmatmul.mubr.bf16.gmra.mrb[68].mxu1 %v14374_v6  ;;  %11624 = vmatprep.subr.bf16.mxu0 %v13768_v9  ;;  %v13771_v6 = vld [vmem:[%s19242_s6 + $0x3a8] sm:$0xff]  }
 0x3ac   :  { %v15980_v29 = vadd.f32 %v11356_v20, %v15752_v23  ;;  %v11359_v33 = vadd.f32 %v11358_v7, %v11357_v55  ;;  %13056 = vmatprep.mubr.bf16.mxu1 %v14397_v34  ;;  %v13772_v34 = vld [vmem:[%s19242_s6 + $0x3f0] sm:$0xff]  }
 0x3ad   :  { %5415 = vmatmul.mubr.bf16.gmra.mrb[216].mxu0 %v3131_v2 }
 0x3ae   :  { %v15987_v43 = vadd.f32 %v11359_v33, %v15757_v15  ;;  %v15989_v38 = vpop.f32.mrb[220].mxu1  ;;  %5422 = vmatprep.mubr.bf16.mxu0 %v3148_v40  ;;  %11625 = vmatpush3.bf16.msra.mxu0 %v13769_v51 }
 0x3af   :  { %v2538_v23 = vpop.f32.mrb[221].mxu1  ;;  %11626 = vmatprep.subr.bf16.mxu0 %v13770_v59 }
 0x3b0   :  { %v15997_v42 = vpop.f32.mrb[222].mxu1  ;;  %v11376_v35 = vpop.f32.mrb[112].mxu0 }
 0x3b1   :  { %v3152_v15 = vpack.c.bf16 %v15997_v42, %v15989_v38  ;;  %v2541_v4 = vpop.f32.mrb[223].mxu1  ;;  %v11377_v2 = vpop.f32.mrb[113].mxu0 }
 0x3b2   :  { %v3151_v40 = vpack.c.bf16 %v2541_v4, %v2538_v23  ;;  %v11378_v41 = vadd.f32 %v11377_v2, %v11376_v35  ;;  %v11379_v24 = vpop.f32.mrb[114].mxu0  ;;  %11627 = vmatpush3.bf16.msra.mxu0 %v13771_v6 }
 0x3b3   :  { %v11380_v10 = vpop.f32.mrb[115].mxu0  ;;  %13057 = vmatmul.mubr.bf16.gmra.mrb[72].mxu1 %v14394_v31  ;;  %11628 = vmatprep.subr.bf16.mxu0 %v13772_v34  ;;  %v13775_v31 = vld [vmem:[%s19242_s6 + $0x3b8] sm:$0xff]  }
 0x3b4   :  { %v16009_v61 = vadd.f32 %v11378_v41, %v15790_v8  ;;  %v11381_v9 = vadd.f32 %v11380_v10, %v11379_v24  ;;  %13060 = vmatprep.mubr.bf16.mxu1 %v14413_v45  ;;  %v13776_v45 = vld [vmem:[%s19242_s6 + $0x440] sm:$0xff]  }
 0x3b5   :  { %5423 = vmatmul.mubr.bf16.gmra.mrb[220].mxu0 %v3132_v50 }
 0x3b6   :  { %v16016_v36 = vadd.f32 %v11381_v9, %v15796_v60  ;;  %v16018_v58 = vpop.f32.mrb[224].mxu1  ;;  %5430 = vmatprep.mubr.bf16.mxu0 %v3149_v57  ;;  %11629 = vmatpush3.bf16.msra.mxu0 %v13773_v30 }
 0x3b7   :  { %v16023_v8 = vpop.f32.mrb[225].mxu1  ;;  %11630 = vmatprep.subr.bf16.mxu0 %v13774_v48 }
 0x3b8   :  { %v16028_v19 = vpop.f32.mrb[226].mxu1  ;;  %v11382_v21 = vpop.f32.mrb[116].mxu0 }
 0x3b9   :  { %v3162_v60 = vpack.c.bf16 %v16028_v19, %v16018_v58  ;;  %v16032_v50 = vpop.f32.mrb[227].mxu1  ;;  %v11383_v52 = vpop.f32.mrb[117].mxu0 }
 0x3ba   :  { %v3161_v57 = vpack.c.bf16 %v16032_v50, %v16023_v8  ;;  %v11384_v20 = vadd.f32 %v11383_v52, %v11382_v21  ;;  %v11385_v55 = vpop.f32.mrb[118].mxu0  ;;  %11631 = vmatpush3.bf16.msra.mxu0 %v13775_v31 }
 0x3bb   :  { %v11386_v51 = vpop.f32.mrb[119].mxu0  ;;  %13061 = vmatmul.mubr.bf16.gmra.mrb[76].mxu1 %v14411_v44  ;;  %11680 = vmatprep.subr.bf16.mxu0 %v13776_v45 }
 0x3bc   :  { %v16038_v7 = vadd.f32 %v11384_v20, %v15823_v46  ;;  %v11387_v59 = vadd.f32 %v11386_v51, %v11385_v55 }
 0x3bd   :  { %5431 = vmatmul.mubr.bf16.gmra.mrb[224].mxu0 %v3133_v5 }
 0x3be   :  { %v16044_v33 = vadd.f32 %v11387_v59, %v15829_v32  ;;  %v16046_v6 = vpop.f32.mrb[228].mxu1  ;;  %5438 = vmatprep.mubr.bf16.mxu0 %v3150_v49 }
 0x3bf   :  { %v16051_v23 = vpop.f32.mrb[229].mxu1 }
 0x3c0   :  { %v16053_v44 = vpop.f32.mrb[230].mxu1  ;;  %v11388_v46 = vpop.f32.mrb[120].mxu0 }
 0x3c1   :  { %v3164_v34 = vpack.c.bf16 %v16053_v44, %v16046_v6  ;;  %v16057_v35 = vpop.f32.mrb[231].mxu1  ;;  %v11389_v11 = vpop.f32.mrb[121].mxu0 }
 0x3c2   :  { %v3163_v32 = vpack.c.bf16 %v16057_v35, %v16051_v23  ;;  %v11390_v16 = vadd.f32 %v11389_v11, %v11388_v46  ;;  %v11391_v5 = vpop.f32.mrb[122].mxu0 }
 0x3c3   :  { %v11392_v4 = vpop.f32.mrb[123].mxu0 }
 0x3c4   :  { %v16062_v0 = vadd.f32 %v11390_v16, %v15853_v37  ;;  %v11393_v26 = vadd.f32 %v11392_v4, %v11391_v5 }
 0x3c5   :  { %5439 = vmatmul.mubr.bf16.gmra.mrb[228].mxu0 %v3134_v12 }
 0x3c6   :  { %v16068_v49 = vadd.f32 %v11393_v26, %v15859_v13  ;;  %v16070_v2 = vpop.f32.mrb[232].mxu1  ;;  %5446 = vmatprep.mubr.bf16.mxu0 %v3151_v40 }
 0x3c7   :  { %v16072_v41 = vpop.f32.mrb[233].mxu1 }
 0x3c8   :  { %v16074_v24 = vpop.f32.mrb[234].mxu1  ;;  %v11394_v30 = vpop.f32.mrb[124].mxu0 }
 0x3c9   :  { %v3166_v37 = vpack.c.bf16 %v16074_v24, %v16070_v2  ;;  %v16078_v10 = vpop.f32.mrb[235].mxu1  ;;  %v11395_v48 = vpop.f32.mrb[125].mxu0 }
 0x3ca   :  { %v3165_v28 = vpack.c.bf16 %v16078_v10, %v16072_v41  ;;  %v11396_v18 = vadd.f32 %v11395_v48, %v11394_v30  ;;  %v11397_v13 = vpop.f32.mrb[126].mxu0 }
 0x3cb   :  { %v11398_v12 = vpop.f32.mrb[127].mxu0 }
 0x3cc   :  { %v16083_v9 = vadd.f32 %v11396_v18, %v15880_v54  ;;  %v11399_v40 = vadd.f32 %v11398_v12, %v11397_v13 }
 0x3cd   :  { %5447 = vmatmul.mubr.bf16.gmra.mrb[232].mxu0 %v3135_v39 }
 0x3ce   :  { %v16089_v31 = vadd.f32 %v11399_v40, %v15886_v56  ;;  %v16091_v45 = vpop.f32.mrb[236].mxu1  ;;  %5454 = vmatprep.mubr.bf16.mxu0 %v3152_v15  ;;  %v13779_v40 = vld [vmem:[%s19242_s6 + $0x408] sm:$0xff]  }
 0x3cf   :  { %v16096_v21 = vpop.f32.mrb[237].mxu1 }
 0x3d0   :  { %v16098_v52 = vpop.f32.mrb[238].mxu1  ;;  %v11400_v54 = vpop.f32.mrb[128].mxu0 }
 0x3d1   :  { %v3168_v20 = vpack.c.bf16 %v16098_v52, %v16091_v45  ;;  %v16102_v55 = vpop.f32.mrb[239].mxu1  ;;  %v11401_v3 = vpop.f32.mrb[129].mxu0  ;;  %v13794_v45 = vld [vmem:[%s19242_s6 + $0x4c8] sm:$0xff]  }
 0x3d2   :  { %v3167_v56 = vpack.c.bf16 %v16102_v55, %v16096_v21  ;;  %v11402_v17 = vadd.f32 %v11401_v3, %v11400_v54  ;;  %v11403_v39 = vpop.f32.mrb[130].mxu0 }
 0x3d3   :  { %v11404_v51 = vpop.f32.mrb[131].mxu0 }
 0x3d4   :  { %v16107_v38 = vadd.f32 %v11402_v17, %v15910_v53  ;;  %v11405_v42 = vadd.f32 %v11404_v51, %v11403_v39  ;;  %v13777_v53 = vld [vmem:[%s19242_s6 + $0x400] sm:$0xff]  }
 0x3d5   :  { %5455 = vmatmul.mubr.bf16.gmra.mrb[236].mxu0 %v3136_v27 }
 0x3d6   :  { %v16113_v15 = vadd.f32 %v11405_v42, %v15916_v1  ;;  %v12954_v59 = vpop.f32.mrb[240].mxu1  ;;  %v13781_v42 = vld [vmem:[%s19242_s6 + $0x410] sm:$0xff]  }
 0x3d7   :  { %v2618_v46 = vpop.f32.mrb[241].mxu1 }
 0x3d8   :  { %v12955_v11 = vpop.f32.mrb[242].mxu1  ;;  %v11406_v16 = vpop.f32.mrb[132].mxu0 }
 0x3d9   :  { %v3178_v5 = vpack.c.bf16 %v12955_v11, %v12954_v59  ;;  %v2621_v4 = vpop.f32.mrb[243].mxu1  ;;  %v11407_v26 = vpop.f32.mrb[133].mxu0 }
 0x3da   :  { %v3177_v30 = vpack.c.bf16 %v2621_v4, %v2618_v46  ;;  %v11408_v48 = vadd.f32 %v11407_v26, %v11406_v16  ;;  %v11409_v18 = vpop.f32.mrb[134].mxu0  ;;  %v13782_v46 = vld [vmem:[%s19242_s6 + $0x458] sm:$0xff]  }
 0x3db   :  { %v11410_v13 = vpop.f32.mrb[135].mxu0  ;;  %v13783_v26 = vld [vmem:[%s19242_s6 + $0x418] sm:$0xff]  }
 0x3dc   :  { %v16122_v14 = vadd.f32 %v11408_v48, %v15928_v22  ;;  %v11411_v27 = vadd.f32 %v11410_v13, %v11409_v18  ;;  %5495 = vmatprep.mubr.bf16.mxu0 %v3177_v30  ;;  %v13780_v22 = vld [vmem:[%s19242_s6 + $0x450] sm:$0xff]  }
 0x3dd   :  { %5496 = vmatmul.mubr.bf16.vlgmr.msra.gmra.mrb[240].mxu0 %v3161_v57 }
 0x3de   :  { %v16128_v1 = vadd.f32 %v11411_v27, %v15935_v63  ;;  %v12958_v12 = vpop.f32.mrb[244].mxu1  ;;  %5503 = vmatprep.mubr.bf16.mxu0 %v3178_v5  ;;  %11681 = vmatpush3.bf16.msra.mxu0 %v13777_v53 }
 0x3df   :  { %v2634_v54 = vpop.f32.mrb[245].mxu1  ;;  %11682 = vmatprep.subr.bf16.mxu0 %v13778_v62  ;;  %v13785_v62 = vld [vmem:[%s19242_s6 + $0x420] sm:$0xff]  }
 0x3e0   :  { %v12959_v3 = vpop.f32.mrb[246].mxu1  ;;  %v11412_v17 = vpop.f32.mrb[136].mxu0 }
 0x3e1   :  { %v3180_v8 = vpack.c.bf16 %v12959_v3, %v12958_v12  ;;  %v2637_v50 = vpop.f32.mrb[247].mxu1  ;;  %v11413_v57 = vpop.f32.mrb[137].mxu0  ;;  %v13786_v12 = vld [vmem:[%s19242_s6 + $0x468] sm:$0xff]  }
 0x3e2   :  { %v3179_v63 = vpack.c.bf16 %v2637_v50, %v2634_v54  ;;  %v11414_v39 = vadd.f32 %v11413_v57, %v11412_v17  ;;  %v11415_v51 = vpop.f32.mrb[138].mxu0  ;;  %11683 = vmatpush3.bf16.msra.mxu0 %v13779_v40  ;;  %v13787_v17 = vld [vmem:[%s19242_s6 + $0x428] sm:$0xff]  }
 0x3e3   :  { %v11416_v59 = vpop.f32.mrb[139].mxu0  ;;  %11684 = vmatprep.subr.bf16.mxu0 %v13780_v22 }
 0x3e4   :  { %v16143_v11 = vadd.f32 %v11414_v39, %v15951_v25  ;;  %v11417_v16 = vadd.f32 %v11416_v59, %v11415_v51  ;;  %v13784_v25 = vld [vmem:[%s19242_s6 + $0x460] sm:$0xff]   ;;  %v13789_v51 = vld [vmem:[%s19242_s6 + $0x430] sm:$0xff]   ;;  %v13790_v59 = vld [vmem:[%s19242_s6 + $0x478] sm:$0xff]  }
 0x3e5   :  { %5504 = vmatmul.mubr.bf16.gmra.mrb[244].mxu0 %v3162_v60 }
 0x3e6   :  { %v16149_v5 = vadd.f32 %v11417_v16, %v15958_v47  ;;  %v16151_v4 = vpop.f32.mrb[248].mxu1  ;;  %5511 = vmatprep.mubr.bf16.mxu0 %v3179_v63  ;;  %11685 = vmatpush3.bf16.msra.mxu0 %v13781_v42 }
 0x3e7   :  { %v2650_v30 = vpop.f32.mrb[249].mxu1  ;;  %11686 = vmatprep.subr.bf16.mxu0 %v13782_v46 }
 0x3e8   :  { %v16159_v48 = vpop.f32.mrb[250].mxu1  ;;  %v11418_v58 = vpop.f32.mrb[140].mxu0 }
 0x3e9   :  { %v3182_v47 = vpack.c.bf16 %v16159_v48, %v16151_v4  ;;  %v2653_v19 = vpop.f32.mrb[251].mxu1  ;;  %v11419_v60 = vpop.f32.mrb[141].mxu0 }
 0x3ea   :  { %v3181_v18 = vpack.c.bf16 %v2653_v19, %v2650_v30  ;;  %v11420_v53 = vadd.f32 %v11419_v60, %v11418_v58  ;;  %v11421_v13 = vpop.f32.mrb[142].mxu0  ;;  %11687 = vmatpush3.bf16.msra.mxu0 %v13783_v26  ;;  %v13791_v30 = vld [vmem:[%s19242_s6 + $0x438] sm:$0xff]  }
 0x3eb   :  { %v11422_v27 = vpop.f32.mrb[143].mxu0  ;;  %11688 = vmatprep.subr.bf16.mxu0 %v13784_v25 }
 0x3ec   :  { %v16170_v40 = vadd.f32 %v11420_v53, %v15980_v29  ;;  %v11423_v54 = vadd.f32 %v11422_v27, %v11421_v13  ;;  %v13788_v29 = vld [vmem:[%s19242_s6 + $0x470] sm:$0xff]  }
 0x3ed   :  { %5512 = vmatmul.mubr.bf16.gmra.mrb[248].mxu0 %v3163_v32 }
 0x3ee   :  { %v16176_v22 = vadd.f32 %v11423_v54, %v15987_v43  ;;  %v16178_v3 = vpop.f32.mrb[252].mxu1  ;;  %5519 = vmatprep.mubr.bf16.mxu0 %v3180_v8  ;;  %11689 = vmatpush3.bf16.msra.mxu0 %v13785_v62 }
 0x3ef   :  { %v2666_v50 = vpop.f32.mrb[253].mxu1  ;;  %11690 = vmatprep.subr.bf16.mxu0 %v13786_v12 }
 0x3f0   :  { %v16186_v57 = vpop.f32.mrb[254].mxu1  ;;  %v11440_v23 = vpop.f32.mrb[144].mxu0 }
 0x3f1   :  { %v3184_v43 = vpack.c.bf16 %v16186_v57, %v16178_v3  ;;  %v2669_v35 = vpop.f32.mrb[255].mxu1  ;;  %v11441_v32 = vpop.f32.mrb[145].mxu0 }
 0x3f2   :  { %v3183_v8 = vpack.c.bf16 %v2669_v35, %v2666_v50  ;;  %v11442_v63 = vadd.f32 %v11441_v32, %v11440_v23  ;;  %v11443_v39 = vpop.f32.mrb[146].mxu0  ;;  %11691 = vmatpush3.bf16.msra.mxu0 %v13787_v17 }
 0x3f3   :  { %v11444_v42 = vpop.f32.mrb[147].mxu0  ;;  %11692 = vmatprep.subr.bf16.mxu0 %v13788_v29 }
 0x3f4   :  { %v16197_v46 = vadd.f32 %v11442_v63, %v16009_v61  ;;  %v11445_v16 = vadd.f32 %v11444_v42, %v11443_v39  ;;  %v13792_v61 = vld [vmem:[%s19242_s6 + $0x4c0] sm:$0xff]  }
 0x3f5   :  { %5520 = vmatmul.mubr.bf16.gmra.mrb[252].mxu0 %v3164_v34 }
 0x3f6   :  { %v16203_v4 = vadd.f32 %v11445_v16, %v16016_v36  ;;  %v16205_v26 = vpop.f32.mrb[0].mxu1  ;;  %5527 = vmatprep.mubr.bf16.mxu0 %v3181_v18  ;;  %11693 = vmatpush3.bf16.msra.mxu0 %v13789_v51 }
 0x3f7   :  { %v16210_v25 = vpop.f32.mrb[1].mxu1  ;;  %11694 = vmatprep.subr.bf16.mxu0 %v13790_v59 }
 0x3f8   :  { %v16215_v6 = vpop.f32.mrb[2].mxu1  ;;  %v11446_v44 = vpop.f32.mrb[148].mxu0 }
 0x3f9   :  { %v3194_v36 = vpack.c.bf16 %v16215_v6, %v16205_v26  ;;  %v16219_v34 = vpop.f32.mrb[3].mxu1  ;;  %v11447_v48 = vpop.f32.mrb[149].mxu0 }
 0x3fa   :  { %v3193_v58 = vpack.c.bf16 %v16219_v34, %v16210_v25  ;;  %v11448_v19 = vadd.f32 %v11447_v48, %v11446_v44  ;;  %v11449_v60 = vpop.f32.mrb[150].mxu0  ;;  %11695 = vmatpush3.bf16.msra.mxu0 %v13791_v30 }
 0x3fb   :  { %v11450_v18 = vpop.f32.mrb[151].mxu0  ;;  %11744 = vmatprep.subr.bf16.mxu0 %v13792_v61 }
 0x3fc   :  { %v16224_v53 = vadd.f32 %v11448_v19, %v16038_v7  ;;  %v11451_v13 = vadd.f32 %v11450_v18, %v11449_v60 }
 0x3fd   :  { %5528 = vmatmul.mubr.bf16.gmra.mrb[0].mxu0 %v3165_v28 }
 0x3fe   :  { %v16230_v62 = vadd.f32 %v11451_v13, %v16044_v33  ;;  %v16232_v27 = vpop.f32.mrb[4].mxu1  ;;  %5535 = vmatprep.mubr.bf16.mxu0 %v3182_v47 }
 0x3ff   :  { %v16234_v12 = vpop.f32.mrb[5].mxu1 }
 0x400   :  { %v16236_v54 = vpop.f32.mrb[6].mxu1  ;;  %v11452_v17 = vpop.f32.mrb[152].mxu0 }
 0x401   :  { %v3196_v7 = vpack.c.bf16 %v16236_v54, %v16232_v27  ;;  %v16240_v50 = vpop.f32.mrb[7].mxu1  ;;  %v11453_v29 = vpop.f32.mrb[153].mxu0 }
 0x402   :  { %v3195_v41 = vpack.c.bf16 %v16240_v50, %v16234_v12  ;;  %v11454_v10 = vadd.f32 %v11453_v29, %v11452_v17  ;;  %v11455_v33 = vpop.f32.mrb[154].mxu0 }
 0x403   :  { %v11456_v28 = vpop.f32.mrb[155].mxu0 }
 0x404   :  { %v16245_v23 = vadd.f32 %v11454_v10, %v16062_v0  ;;  %v11457_v47 = vadd.f32 %v11456_v28, %v11455_v33 }
 0x405   :  { %5536 = vmatmul.mubr.bf16.gmra.mrb[4].mxu0 %v3166_v37 }
 0x406   :  { %v16251_v35 = vadd.f32 %v11457_v47, %v16068_v49  ;;  %v16253_v32 = vpop.f32.mrb[8].mxu1  ;;  %5543 = vmatprep.mubr.bf16.mxu0 %v3183_v8 }
 0x407   :  { %v16255_v63 = vpop.f32.mrb[9].mxu1 }
 0x408   :  { %v16257_v39 = vpop.f32.mrb[10].mxu1  ;;  %v11458_v51 = vpop.f32.mrb[156].mxu0 }
 0x409   :  { %v3198_v0 = vpack.c.bf16 %v16257_v39, %v16253_v32  ;;  %v16261_v42 = vpop.f32.mrb[11].mxu1  ;;  %v11459_v59 = vpop.f32.mrb[157].mxu0 }
 0x40a   :  { %v3197_v2 = vpack.c.bf16 %v16261_v42, %v16255_v63  ;;  %v11460_v24 = vadd.f32 %v11459_v59, %v11458_v51  ;;  %v11461_v49 = vpop.f32.mrb[158].mxu0 }
 0x40b   :  { %v11462_v37 = vpop.f32.mrb[159].mxu0 }
 0x40c   :  { %v16266_v16 = vadd.f32 %v11460_v24, %v16083_v9  ;;  %v11463_v8 = vadd.f32 %v11462_v37, %v11461_v49 }
 0x40d   :  { %5544 = vmatmul.mubr.bf16.gmra.mrb[8].mxu0 %v3167_v56 }
 0x40e   :  { %v16272_v30 = vadd.f32 %v11463_v8, %v16089_v31  ;;  %v16274_v61 = vpop.f32.mrb[12].mxu1  ;;  %5551 = vmatprep.mubr.bf16.mxu0 %v3184_v43  ;;  %v13795_v8 = vld [vmem:[%s19242_s6 + $0x488] sm:$0xff]  }
 0x40f   :  { %v16279_v44 = vpop.f32.mrb[13].mxu1 }
 0x410   :  { %v16281_v48 = vpop.f32.mrb[14].mxu1  ;;  %v11464_v9 = vpop.f32.mrb[160].mxu0 }
 0x411   :  { %v3200_v19 = vpack.c.bf16 %v16281_v48, %v16274_v61  ;;  %v16285_v60 = vpop.f32.mrb[15].mxu1  ;;  %v11465_v21 = vpop.f32.mrb[161].mxu0 }
 0x412   :  { %v3199_v31 = vpack.c.bf16 %v16285_v60, %v16279_v44  ;;  %v11466_v55 = vadd.f32 %v11465_v21, %v11464_v9  ;;  %v11467_v56 = vpop.f32.mrb[162].mxu0 }
 0x413   :  { %v11468_v18 = vpop.f32.mrb[163].mxu0 }
 0x414   :  { %v16290_v3 = vadd.f32 %v11466_v55, %v16107_v38  ;;  %v11469_v57 = vadd.f32 %v11468_v18, %v11467_v56  ;;  %v13793_v38 = vld [vmem:[%s19242_s6 + $0x480] sm:$0xff]  }
 0x415   :  { %5552 = vmatmul.mubr.bf16.gmra.mrb[12].mxu0 %v3168_v20 }
 0x416   :  { %v16296_v43 = vadd.f32 %v11469_v57, %v16113_v15  ;;  %v12986_v13 = vpop.f32.mrb[16].mxu1  ;;  %v13797_v57 = vld [vmem:[%s19242_s6 + $0x490] sm:$0xff]  }
 0x417   :  { %v2746_v17 = vpop.f32.mrb[17].mxu1 }
 0x418   :  { %v12987_v29 = vpop.f32.mrb[18].mxu1  ;;  %v11470_v10 = vpop.f32.mrb[164].mxu0 }
 0x419   :  { %v3210_v33 = vpack.c.bf16 %v12987_v29, %v12986_v13  ;;  %v2749_v28 = vpop.f32.mrb[19].mxu1  ;;  %v11471_v47 = vpop.f32.mrb[165].mxu0 }
 0x41a   :  { %v3209_v51 = vpack.c.bf16 %v2749_v28, %v2746_v17  ;;  %v11472_v59 = vadd.f32 %v11471_v47, %v11470_v10  ;;  %v11473_v24 = vpop.f32.mrb[166].mxu0  ;;  %v13798_v17 = vld [vmem:[%s19242_s6 + $0x4d8] sm:$0xff]  }
 0x41b   :  { %v11474_v49 = vpop.f32.mrb[167].mxu0  ;;  %v13799_v47 = vld [vmem:[%s19242_s6 + $0x498] sm:$0xff]  }
 0x41c   :  { %v16305_v52 = vadd.f32 %v11472_v59, %v16122_v14  ;;  %v11475_v20 = vadd.f32 %v11474_v49, %v11473_v24  ;;  %5592 = vmatprep.mubr.bf16.mxu0 %v3209_v51  ;;  %v13796_v14 = vld [vmem:[%s19242_s6 + $0x4d0] sm:$0xff]  }
 0x41d   :  { %5593 = vmatmul.mubr.bf16.vlgmr.msra.gmra.mrb[16].mxu0 %v3193_v58 }
 0x41e   :  { %v16311_v15 = vadd.f32 %v11475_v20, %v16128_v1  ;;  %v12990_v37 = vpop.f32.mrb[20].mxu1  ;;  %5600 = vmatprep.mubr.bf16.mxu0 %v3210_v33  ;;  %11745 = vmatpush3.bf16.msra.mxu0 %v13793_v38 }
 0x41f   :  { %v2762_v9 = vpop.f32.mrb[21].mxu1  ;;  %11746 = vmatprep.subr.bf16.mxu0 %v13794_v45  ;;  %v13801_v45 = vld [vmem:[%s19242_s6 + $0x4a0] sm:$0xff]  }
 0x420   :  { %v12991_v21 = vpop.f32.mrb[22].mxu1  ;;  %v11476_v55 = vpop.f32.mrb[168].mxu0 }
 0x421   :  { %v3212_v25 = vpack.c.bf16 %v12991_v21, %v12990_v37  ;;  %v2765_v34 = vpop.f32.mrb[23].mxu1  ;;  %v11477_v58 = vpop.f32.mrb[169].mxu0  ;;  %v13802_v37 = vld [vmem:[%s19242_s6 + $0x4e8] sm:$0xff]  }
 0x422   :  { %v3211_v1 = vpack.c.bf16 %v2765_v34, %v2762_v9  ;;  %v11478_v56 = vadd.f32 %v11477_v58, %v11476_v55  ;;  %v11479_v18 = vpop.f32.mrb[170].mxu0  ;;  %11747 = vmatpush3.bf16.msra.mxu0 %v13795_v8  ;;  %v13803_v55 = vld [vmem:[%s19242_s6 + $0x4a8] sm:$0xff]  }
 0x423   :  { %v11480_v13 = vpop.f32.mrb[171].mxu0  ;;  %11748 = vmatprep.subr.bf16.mxu0 %v13796_v14 }
 0x424   :  { %v16326_v29 = vadd.f32 %v11478_v56, %v16143_v11  ;;  %v11481_v10 = vadd.f32 %v11480_v13, %v11479_v18  ;;  %v13800_v11 = vld [vmem:[%s19242_s6 + $0x4e0] sm:$0xff]   ;;  %v13805_v18 = vld [vmem:[%s19242_s6 + $0x4b0] sm:$0xff]   ;;  %v13806_v13 = vld [vmem:[%s19242_s6 + $0x4f8] sm:$0xff]  }
 0x425   :  { %5601 = vmatmul.mubr.bf16.gmra.mrb[20].mxu0 %v3194_v36 }
 0x426   :  { %v16332_v33 = vadd.f32 %v11481_v10, %v16149_v5  ;;  %v16334_v28 = vpop.f32.mrb[24].mxu1  ;;  %5608 = vmatprep.mubr.bf16.mxu0 %v3211_v1  ;;  %11749 = vmatpush3.bf16.msra.mxu0 %v13797_v57 }
 0x427   :  { %v2778_v51 = vpop.f32.mrb[25].mxu1  ;;  %11750 = vmatprep.subr.bf16.mxu0 %v13798_v17 }
 0x428   :  { %v12995_v59 = vpop.f32.mrb[26].mxu1  ;;  %v11482_v26 = vpop.f32.mrb[172].mxu0 }
 0x429   :  { %v3214_v6 = vpack.c.bf16 %v12995_v59, %v16334_v28  ;;  %v2781_v5 = vpop.f32.mrb[27].mxu1  ;;  %v11483_v36 = vpop.f32.mrb[173].mxu0 }
 0x42a   :  { %v3213_v24 = vpack.c.bf16 %v2781_v5, %v2778_v51  ;;  %v11484_v38 = vadd.f32 %v11483_v36, %v11482_v26  ;;  %v11485_v49 = vpop.f32.mrb[174].mxu0  ;;  %11751 = vmatpush3.bf16.msra.mxu0 %v13799_v47  ;;  %v13807_v51 = vld [vmem:[%s19242_s6 + $0x4b8] sm:$0xff]  }
 0x42b   :  { %v11486_v20 = vpop.f32.mrb[175].mxu0  ;;  %11752 = vmatprep.subr.bf16.mxu0 %v13800_v11 }
 0x42c   :  { %v16350_v8 = vadd.f32 %v11484_v38, %v16170_v40  ;;  %v11487_v9 = vadd.f32 %v11486_v20, %v11485_v49  ;;  %v13804_v40 = vld [vmem:[%s19242_s6 + $0x4f0] sm:$0xff]  }
 0x42d   :  { %5609 = vmatmul.mubr.bf16.gmra.mrb[24].mxu0 %v3195_v41 }
 0x42e   :  { %v16356_v14 = vadd.f32 %v11487_v9, %v16176_v22  ;;  %v16358_v21 = vpop.f32.mrb[28].mxu1  ;;  %5616 = vmatprep.mubr.bf16.mxu0 %v3212_v25  ;;  %11753 = vmatpush3.bf16.msra.mxu0 %v13801_v45 }
 0x42f   :  { %v2794_v34 = vpop.f32.mrb[29].mxu1  ;;  %11754 = vmatprep.subr.bf16.mxu0 %v13802_v37 }
 0x430   :  { %v16366_v58 = vpop.f32.mrb[30].mxu1  ;;  %v11504_v12 = vpop.f32.mrb[176].mxu0 }
 0x431   :  { %v3216_v22 = vpack.c.bf16 %v16366_v58, %v16358_v21  ;;  %v2797_v50 = vpop.f32.mrb[31].mxu1  ;;  %v11505_v41 = vpop.f32.mrb[177].mxu0 }
 0x432   :  { %v3215_v25 = vpack.c.bf16 %v2797_v50, %v2794_v34  ;;  %v11506_v1 = vadd.f32 %v11505_v41, %v11504_v12  ;;  %v11507_v56 = vpop.f32.mrb[178].mxu0  ;;  %11755 = vmatpush3.bf16.msra.mxu0 %v13803_v55 }
 0x433   :  { %v11508_v57 = vpop.f32.mrb[179].mxu0  ;;  %11756 = vmatprep.subr.bf16.mxu0 %v13804_v40 }
 0x434   :  { %v16377_v17 = vadd.f32 %v11506_v1, %v16197_v46  ;;  %v11509_v10 = vadd.f32 %v11508_v57, %v11507_v56 }
 0x435   :  { %5617 = vmatmul.mubr.bf16.gmra.mrb[28].mxu0 %v3196_v7 }
 0x436   :  { %v16383_v28 = vadd.f32 %v11509_v10, %v16203_v4  ;;  %v16385_v47 = vpop.f32.mrb[32].mxu1  ;;  %5624 = vmatprep.mubr.bf16.mxu0 %v3213_v24  ;;  %11757 = vmatpush3.bf16.msra.mxu0 %v13805_v18 }
 0x437   :  { %v16390_v11 = vpop.f32.mrb[33].mxu1  ;;  %11758 = vmatprep.subr.bf16.mxu0 %v13806_v13 }
 0x438   :  { %v16392_v46 = vpop.f32.mrb[34].mxu1  ;;  %v11510_v59 = vpop.f32.mrb[180].mxu0 }
 0x439   :  { %v3226_v27 = vpack.c.bf16 %v16392_v46, %v16385_v47  ;;  %v16396_v54 = vpop.f32.mrb[35].mxu1  ;;  %v11511_v4 = vpop.f32.mrb[181].mxu0 }
 0x43a   :  { %v3225_v7 = vpack.c.bf16 %v16396_v54, %v16390_v11  ;;  %v11512_v26 = vadd.f32 %v11511_v4, %v11510_v59  ;;  %v11513_v5 = vpop.f32.mrb[182].mxu0  ;;  %11759 = vmatpush3.bf16.msra.mxu0 %v13807_v51 }
 0x43b   :  { %v11514_v36 = vpop.f32.mrb[183].mxu0 }
 0x43c   :  { %v16401_v24 = vadd.f32 %v11512_v26, %v16224_v53  ;;  %v11515_v38 = vadd.f32 %v11514_v36, %v11513_v5 }
 0x43d   :  { %5625 = vmatmul.mubr.bf16.gmra.mrb[32].mxu0 %v3197_v2 }
 0x43e   :  { %v16407_v49 = vadd.f32 %v11515_v38, %v16230_v62  ;;  %v16409_v45 = vpop.f32.mrb[36].mxu1  ;;  %5632 = vmatprep.mubr.bf16.mxu0 %v3214_v6 }
 0x43f   :  { %v16411_v20 = vpop.f32.mrb[37].mxu1 }
 0x440   :  { %v16413_v37 = vpop.f32.mrb[38].mxu1  ;;  %v11516_v9 = vpop.f32.mrb[184].mxu0 }
 0x441   :  { %v3228_v53 = vpack.c.bf16 %v16413_v37, %v16409_v45  ;;  %v16417_v55 = vpop.f32.mrb[39].mxu1  ;;  %v11517_v34 = vpop.f32.mrb[185].mxu0 }
 0x442   :  { %v3227_v63 = vpack.c.bf16 %v16417_v55, %v16411_v20  ;;  %v11518_v42 = vadd.f32 %v11517_v34, %v11516_v9  ;;  %v11519_v62 = vpop.f32.mrb[186].mxu0 }
 0x443   :  { %v11520_v2 = vpop.f32.mrb[187].mxu0 }
 0x444   :  { %v16422_v40 = vadd.f32 %v11518_v42, %v16245_v23  ;;  %v11521_v6 = vadd.f32 %v11520_v2, %v11519_v62 }
 0x445   :  { %5633 = vmatmul.mubr.bf16.gmra.mrb[36].mxu0 %v3198_v0 }
 0x446   :  { %v16428_v12 = vadd.f32 %v11521_v6, %v16251_v35  ;;  %v16430_v50 = vpop.f32.mrb[40].mxu1  ;;  %5640 = vmatprep.mubr.bf16.mxu0 %v3215_v25 }
 0x447   :  { %v16432_v41 = vpop.f32.mrb[41].mxu1 }
 0x448   :  { %v16434_v1 = vpop.f32.mrb[42].mxu1  ;;  %v11522_v56 = vpop.f32.mrb[188].mxu0 }
 0x449   :  { %v3230_v23 = vpack.c.bf16 %v16434_v1, %v16430_v50  ;;  %v16438_v18 = vpop.f32.mrb[43].mxu1  ;;  %v11523_v57 = vpop.f32.mrb[189].mxu0 }
 0x44a   :  { %v3229_v32 = vpack.c.bf16 %v16438_v18, %v16432_v41  ;;  %v11524_v39 = vadd.f32 %v11523_v57, %v11522_v56  ;;  %v11525_v35 = vpop.f32.mrb[190].mxu0 }
 0x44b   :  { %v11526_v0 = vpop.f32.mrb[191].mxu0 }
 0x44c   :  { %v16443_v13 = vadd.f32 %v11524_v39, %v16266_v16  ;;  %v11527_v25 = vadd.f32 %v11526_v0, %v11525_v35 }
 0x44d   :  { %5641 = vmatmul.mubr.bf16.gmra.mrb[40].mxu0 %v3199_v31 }
 0x44e   :  { %v16449_v10 = vadd.f32 %v11527_v25, %v16272_v30  ;;  %v16451_v51 = vpop.f32.mrb[44].mxu1  ;;  %5648 = vmatprep.mubr.bf16.mxu0 %v3216_v22 }
 0x44f   :  { %v16456_v59 = vpop.f32.mrb[45].mxu1 }
 0x450   :  { %v16458_v4 = vpop.f32.mrb[46].mxu1  ;;  %v11528_v16 = vpop.f32.mrb[192].mxu0 }
 0x451   :  { %v3232_v26 = vpack.c.bf16 %v16458_v4, %v16451_v51  ;;  %v16462_v5 = vpop.f32.mrb[47].mxu1  ;;  %v11529_v44 = vpop.f32.mrb[193].mxu0 }
 0x452   :  { %v3231_v30 = vpack.c.bf16 %v16462_v5, %v16456_v59  ;;  %v11530_v60 = vadd.f32 %v11529_v44, %v11528_v16  ;;  %v11531_v31 = vpop.f32.mrb[194].mxu0 }
 0x453   :  { %v11532_v36 = vpop.f32.mrb[195].mxu0 }
 0x454   :  { %v16467_v21 = vadd.f32 %v11530_v60, %v16290_v3  ;;  %v11533_v58 = vadd.f32 %v11532_v36, %v11531_v31 }
 0x455   :  { %5649 = vmatmul.mubr.bf16.gmra.mrb[44].mxu0 %v3200_v19 }
 0x456   :  { %v16473_v22 = vadd.f32 %v11533_v58, %v16296_v43  ;;  %v13018_v38 = vpop.f32.mrb[48].mxu1 }
 0x457   :  { %v2874_v9 = vpop.f32.mrb[49].mxu1 }
 0x458   :  { %v13019_v34 = vpop.f32.mrb[50].mxu1  ;;  %v11534_v42 = vpop.f32.mrb[196].mxu0 }
 0x459   :  { %v3242_v62 = vpack.c.bf16 %v13019_v34, %v13018_v38  ;;  %v2877_v2 = vpop.f32.mrb[51].mxu1  ;;  %v11535_v6 = vpop.f32.mrb[197].mxu0 }
 0x45a   :  { %v3241_v56 = vpack.c.bf16 %v2877_v2, %v2874_v9  ;;  %v11536_v57 = vadd.f32 %v11535_v6, %v11534_v42  ;;  %v11537_v39 = vpop.f32.mrb[198].mxu0 }
 0x45b   :  { %v11538_v3 = vpop.f32.mrb[199].mxu0 }
 0x45c   :  { %v16476_v35 = vadd.f32 %v11536_v57, %v16305_v52  ;;  %v11539_v0 = vadd.f32 %v11538_v3, %v11537_v39  ;;  %5689 = vmatprep.mubr.bf16.mxu0 %v3241_v56 }
 0x45d   :  { %5690 = vmatmul.mubr.bf16.vlgmr.msra.gmra.mrb[48].mxu0 %v3225_v7 }
 0x45e   :  { %v16482_v61 = vadd.f32 %v11539_v0, %v16311_v15  ;;  %5697 = vmatprep.mubr.bf16.mxu0 %v3242_v62  ;;  %v13022_v48 = vpop.f32.mrb[52].mxu1 }
 0x45f   :  { %v2890_v19 = vpop.f32.mrb[53].mxu1 }
 0x460   :  { %v11540_v43 = vpop.f32.mrb[200].mxu0  ;;  %v13023_v25 = vpop.f32.mrb[54].mxu1 }
 0x461   :  { %v11541_v16 = vpop.f32.mrb[201].mxu0  ;;  %v3244_v44 = vpack.c.bf16 %v13023_v25, %v13022_v48  ;;  %v2893_v60 = vpop.f32.mrb[55].mxu1 }
 0x462   :  { %v11542_v31 = vadd.f32 %v11541_v16, %v11540_v43  ;;  %v11543_v52 = vpop.f32.mrb[202].mxu0  ;;  %v3243_v36 = vpack.c.bf16 %v2893_v60, %v2890_v19 }
 0x463   :  { %v11544_v58 = vpop.f32.mrb[203].mxu0 }
 0x464   :  { %v16485_v38 = vadd.f32 %v11542_v31, %v16326_v29  ;;  %v11545_v11 = vadd.f32 %v11544_v58, %v11543_v52 }
 0x465   :  { %5698 = vmatmul.mubr.bf16.gmra.mrb[52].mxu0 %v3226_v27 }
 0x466   :  { %v16491_v15 = vadd.f32 %v11545_v11, %v16332_v33  ;;  %5705 = vmatprep.mubr.bf16.mxu0 %v3243_v36  ;;  %v13026_v54 = vpop.f32.mrb[56].mxu1 }
 0x467   :  { %v2906_v7 = vpop.f32.mrb[57].mxu1 }
 0x468   :  { %v11546_v9 = vpop.f32.mrb[204].mxu0  ;;  %v13027_v34 = vpop.f32.mrb[58].mxu1 }
 0x469   :  { %v11547_v42 = vpop.f32.mrb[205].mxu0  ;;  %v3246_v62 = vpack.c.bf16 %v13027_v34, %v13026_v54  ;;  %v2909_v2 = vpop.f32.mrb[59].mxu1 }
 0x46a   :  { %v11548_v6 = vadd.f32 %v11547_v42, %v11546_v9  ;;  %v11549_v56 = vpop.f32.mrb[206].mxu0  ;;  %v3245_v29 = vpack.c.bf16 %v2909_v2, %v2906_v7 }
 0x46b   :  { %v11550_v57 = vpop.f32.mrb[207].mxu0 }
 0x46c   :  { %v16494_v39 = vadd.f32 %v11548_v6, %v16350_v8  ;;  %v11551_v47 = vadd.f32 %v11550_v57, %v11549_v56 }
 0x46d   :  { %5706 = vmatmul.mubr.bf16.gmra.mrb[56].mxu0 %v3227_v63 }
 0x46e   :  { %v16500_v33 = vadd.f32 %v11551_v47, %v16356_v14  ;;  %5713 = vmatprep.mubr.bf16.mxu0 %v3244_v44  ;;  %v13030_v46 = vpop.f32.mrb[60].mxu1 }
 0x46f   :  { %v2922_v27 = vpop.f32.mrb[61].mxu1 }
 0x470   :  { %v11568_v3 = vpop.f32.mrb[208].mxu0  ;;  %v13031_v0 = vpop.f32.mrb[62].mxu1 }
 0x471   :  { %v11569_v48 = vpop.f32.mrb[209].mxu0  ;;  %v3248_v19 = vpack.c.bf16 %v13031_v0, %v13030_v46  ;;  %v2925_v43 = vpop.f32.mrb[63].mxu1 }
 0x472   :  { %v11570_v25 = vadd.f32 %v11569_v48, %v11568_v3  ;;  %v11571_v16 = vpop.f32.mrb[210].mxu0  ;;  %v3247_v8 = vpack.c.bf16 %v2925_v43, %v2922_v27 }
 0x473   :  { %v11572_v60 = vpop.f32.mrb[211].mxu0 }
 0x474   :  { %v16503_v31 = vadd.f32 %v11570_v25, %v16377_v17  ;;  %v11573_v20 = vadd.f32 %v11572_v60, %v11571_v16 }
 0x475   :  { %5714 = vmatmul.mubr.bf16.gmra.mrb[60].mxu0 %v3228_v53 }
 0x476   :  { %v16509_v14 = vadd.f32 %v11573_v20, %v16383_v28  ;;  %v16511_v55 = vpop.f32.mrb[64].mxu1  ;;  %5721 = vmatprep.mubr.bf16.mxu0 %v3245_v29 }
 0x477   :  { %v16513_v63 = vpop.f32.mrb[65].mxu1 }
 0x478   :  { %v11574_v44 = vpop.f32.mrb[212].mxu0  ;;  %v16515_v52 = vpop.f32.mrb[66].mxu1 }
 0x479   :  { %v11575_v36 = vpop.f32.mrb[213].mxu0  ;;  %v16517_v58 = vpop.f32.mrb[67].mxu1 }
 0x47a   :  { %v11576_v17 = vadd.f32 %v11575_v36, %v11574_v44  ;;  %v11577_v11 = vpop.f32.mrb[214].mxu0 }
 0x47b   :  { %v11578_v54 = vpop.f32.mrb[215].mxu0 }
 0x47c   :  { %v16520_v45 = vadd.f32 %v11576_v17, %v16401_v24  ;;  %v11579_v37 = vadd.f32 %v11578_v54, %v11577_v11 }
 0x47d   :  { %5722 = vmatmul.mubr.bf16.gmra.mrb[64].mxu0 %v3229_v32 }
 0x47e   :  { %v16526_v28 = vadd.f32 %v11579_v37, %v16407_v49  ;;  %5729 = vmatprep.mubr.bf16.mxu0 %v3246_v62  ;;  %v16528_v53 = vpop.f32.mrb[68].mxu1 }
 0x47f   :  { %v16530_v7 = vpop.f32.mrb[69].mxu1 }
 0x480   :  { %v11580_v9 = vpop.f32.mrb[216].mxu0  ;;  %v16532_v34 = vpop.f32.mrb[70].mxu1 }
 0x481   :  { %v11581_v42 = vpop.f32.mrb[217].mxu0  ;;  %v16534_v2 = vpop.f32.mrb[71].mxu1 }
 0x482   :  { %v11582_v24 = vadd.f32 %v11581_v42, %v11580_v9  ;;  %v11583_v6 = vpop.f32.mrb[218].mxu0 }
 0x483   :  { %v11584_v56 = vpop.f32.mrb[219].mxu0 }
 0x484   :  { %v16537_v41 = vadd.f32 %v11582_v24, %v16422_v40  ;;  %v11585_v18 = vadd.f32 %v11584_v56, %v11583_v6 }
 0x485   :  { %5730 = vmatmul.mubr.bf16.gmra.mrb[68].mxu0 %v3230_v23 }
 0x486   :  { %v16543_v49 = vadd.f32 %v11585_v18, %v16428_v12  ;;  %v16545_v32 = vpop.f32.mrb[72].mxu1  ;;  %5737 = vmatprep.mubr.bf16.mxu0 %v3247_v8 }
 0x487   :  { %v16547_v62 = vpop.f32.mrb[73].mxu1 }
 0x488   :  { %v11586_v29 = vpop.f32.mrb[220].mxu0  ;;  %v16549_v57 = vpop.f32.mrb[74].mxu1 }
 0x489   :  { %v11587_v47 = vpop.f32.mrb[221].mxu0  ;;  %v16551_v46 = vpop.f32.mrb[75].mxu1 }
 0x48a   :  { %v11588_v40 = vadd.f32 %v11587_v47, %v11586_v29  ;;  %v11589_v27 = vpop.f32.mrb[222].mxu0 }
 0x48b   :  { %v11590_v3 = vpop.f32.mrb[223].mxu0 }
 0x48c   :  { %v16554_v50 = vadd.f32 %v11588_v40, %v16443_v13  ;;  %v11591_v1 = vadd.f32 %v11590_v3, %v11589_v27 }
 0x48d   :  { %5738 = vmatmul.mubr.bf16.gmra.mrb[72].mxu0 %v3231_v30  ;;  %v14048_v30 = vld [vmem:[%s19238_s1] sm:$0xff]  }
 0x48e   :  { %v16560_v12 = vadd.f32 %v11591_v1, %v16449_v10  ;;  %5745 = vmatprep.mubr.bf16.mxu0 %v3248_v19  ;;  %v16562_v23 = vpop.f32.mrb[76].mxu1 }
 0x48f   :  { %v16564_v0 = vpop.f32.mrb[77].mxu1 }
 0x490   :  { %v11592_v48 = vpop.f32.mrb[224].mxu0  ;;  %v16566_v43 = vpop.f32.mrb[78].mxu1 }
 0x491   :  { %v11593_v25 = vpop.f32.mrb[225].mxu0  ;;  %v16568_v16 = vpop.f32.mrb[79].mxu1 }
 0x492   :  { %v11594_v13 = vadd.f32 %v11593_v25, %v11592_v48  ;;  %v11595_v8 = vpop.f32.mrb[226].mxu0 }
 0x493   :  { %v11596_v60 = vpop.f32.mrb[227].mxu0 }
 0x494   :  { %v16571_v59 = vadd.f32 %v11594_v13, %v16467_v21  ;;  %v11597_v5 = vadd.f32 %v11596_v60, %v11595_v8 }
 0x495   :  { %5746 = vmatmul.mubr.bf16.gmra.mrb[76].mxu0 %v3232_v26 }
 0x496   :  { %v16577_v10 = vadd.f32 %v11597_v5, %v16473_v22  ;;  %13080 = vmatprep.mubr.bf16.mxu0 %v14048_v30 }
 0x498   :  { %v11598_v19 = vpop.f32.mrb[228].mxu0 }
 0x499   :  { %v11599_v20 = vpop.f32.mrb[229].mxu0 }
 0x49a   :  { %v11600_v44 = vadd.f32 %v11599_v20, %v11598_v19  ;;  %v11601_v36 = vpop.f32.mrb[230].mxu0 }
 0x49b   :  { %v11602_v17 = vpop.f32.mrb[231].mxu0 }
 0x49c   :  { %v16583_v21 = vadd.f32 %v11600_v44, %v16476_v35  ;;  %v11603_v11 = vadd.f32 %v11602_v17, %v11601_v36 }
 0x49e   :  { %v16586_v51 = vadd.f32 %v11603_v11, %v16482_v61 }
 0x4a0   :  { %v11604_v4 = vpop.f32.mrb[232].mxu0 }
 0x4a1   :  { %v11605_v26 = vpop.f32.mrb[233].mxu0 }
 0x4a2   :  { %v11606_v22 = vadd.f32 %v11605_v26, %v11604_v4  ;;  %v11607_v54 = vpop.f32.mrb[234].mxu0 }
 0x4a3   :  { %v11608_v37 = vpop.f32.mrb[235].mxu0 }
 0x4a4   :  { %v16589_v9 = vadd.f32 %v11606_v22, %v16485_v38  ;;  %v11609_v42 = vadd.f32 %v11608_v37, %v11607_v54 }
 0x4a6   :  { %v16592_v24 = vadd.f32 %v11609_v42, %v16491_v15 }
 0x4a8   :  { %v11610_v6 = vpop.f32.mrb[236].mxu0 }
 0x4a9   :  { %v11611_v56 = vpop.f32.mrb[237].mxu0 }
 0x4aa   :  { %v11612_v35 = vadd.f32 %v11611_v56, %v11610_v6  ;;  %v11613_v18 = vpop.f32.mrb[238].mxu0 }
 0x4ab   :  { %v11614_v29 = vpop.f32.mrb[239].mxu0 }
 0x4ac   :  { %v16595_v61 = vadd.f32 %v11612_v35, %v16494_v39  ;;  %v11615_v47 = vadd.f32 %v11614_v29, %v11613_v18 }
 0x4ae   :  { %v16598_v40 = vadd.f32 %v11615_v47, %v16500_v33 }
 0x4b0   :  { %v11632_v27 = vpop.f32.mrb[240].mxu0 }
 0x4b1   :  { %v11633_v3 = vpop.f32.mrb[241].mxu0 }
 0x4b2   :  { %v11634_v38 = vadd.f32 %v11633_v3, %v11632_v27  ;;  %v11635_v1 = vpop.f32.mrb[242].mxu0 }
 0x4b3   :  { %v11636_v48 = vpop.f32.mrb[243].mxu0 }
 0x4b4   :  { %v16601_v15 = vadd.f32 %v11634_v38, %v16503_v31  ;;  %v11637_v25 = vadd.f32 %v11636_v48, %v11635_v1 }
 0x4b6   :  { %v16604_v13 = vadd.f32 %v11637_v25, %v16509_v14 }
 0x4b8   :  { %v11638_v8 = vpop.f32.mrb[244].mxu0 }
 0x4b9   :  { %v11639_v60 = vpop.f32.mrb[245].mxu0 }
 0x4ba   :  { %v11640_v39 = vadd.f32 %v11639_v60, %v11638_v8  ;;  %v11641_v5 = vpop.f32.mrb[246].mxu0 }
 0x4bb   :  { %v11642_v30 = vpop.f32.mrb[247].mxu0 }
 0x4bc   :  { %v16607_v33 = vadd.f32 %v11640_v39, %v16520_v45  ;;  %v11643_v19 = vadd.f32 %v11642_v30, %v11641_v5 }
 0x4be   :  { %v16610_v20 = vadd.f32 %v11643_v19, %v16526_v28 }
 0x4c0   :  { %v11644_v44 = vpop.f32.mrb[248].mxu0 }
 0x4c1   :  { %v11645_v36 = vpop.f32.mrb[249].mxu0 }
 0x4c2   :  { %v11646_v31 = vadd.f32 %v11645_v36, %v11644_v44  ;;  %v11647_v17 = vpop.f32.mrb[250].mxu0 }
 0x4c3   :  { %v11648_v11 = vpop.f32.mrb[251].mxu0 }
 0x4c4   :  { %v16613_v14 = vadd.f32 %v11646_v31, %v16537_v41  ;;  %v11649_v4 = vadd.f32 %v11648_v11, %v11647_v17 }
 0x4c6   :  { %v16616_v26 = vadd.f32 %v11649_v4, %v16543_v49 }
 0x4c8   :  { %v11650_v22 = vpop.f32.mrb[252].mxu0 }
 0x4c9   :  { %v11651_v54 = vpop.f32.mrb[253].mxu0 }
 0x4ca   :  { %v11652_v45 = vadd.f32 %v11651_v54, %v11650_v22  ;;  %v11653_v37 = vpop.f32.mrb[254].mxu0 }
 0x4cb   :  { %v11654_v42 = vpop.f32.mrb[255].mxu0 }
 0x4cc   :  { %v16619_v28 = vadd.f32 %v11652_v45, %v16554_v50  ;;  %v11655_v6 = vadd.f32 %v11654_v42, %v11653_v37 }
 0x4ce   :  { %v16622_v56 = vadd.f32 %v11655_v6, %v16560_v12 }
 0x4d0   :  { %v11656_v35 = vpop.f32.mrb[0].mxu0 }
 0x4d1   :  { %v11657_v18 = vpop.f32.mrb[1].mxu0 }
 0x4d2   :  { %v11658_v41 = vadd.f32 %v11657_v18, %v11656_v35  ;;  %v11659_v29 = vpop.f32.mrb[2].mxu0 }
 0x4d3   :  { %v11660_v47 = vpop.f32.mrb[3].mxu0 }
 0x4d4   :  { %v16625_v49 = vadd.f32 %v11658_v41, %v16571_v59  ;;  %v11661_v27 = vadd.f32 %v11660_v47, %v11659_v29 }
 0x4d6   :  { %v16628_v3 = vadd.f32 %v11661_v27, %v16577_v10 }
 0x4d8   :  { %v11662_v38 = vpop.f32.mrb[4].mxu0 }
 0x4d9   :  { %v11663_v1 = vpop.f32.mrb[5].mxu0 }
 0x4da   :  { %v11664_v50 = vadd.f32 %v11663_v1, %v11662_v38  ;;  %v11665_v48 = vpop.f32.mrb[6].mxu0 }
 0x4db   :  { %v11666_v25 = vpop.f32.mrb[7].mxu0 }
 0x4dc   :  { %v16631_v12 = vadd.f32 %v11664_v50, %v16583_v21  ;;  %v11667_v8 = vadd.f32 %v11666_v25, %v11665_v48 }
 0x4de   :  { %v16634_v60 = vadd.f32 %v11667_v8, %v16586_v51 }
 0x4e0   :  { %v11668_v39 = vpop.f32.mrb[8].mxu0 }
 0x4e1   :  { %v11669_v5 = vpop.f32.mrb[9].mxu0 }
 0x4e2   :  { %v11670_v59 = vadd.f32 %v11669_v5, %v11668_v39  ;;  %v11671_v30 = vpop.f32.mrb[10].mxu0 }
 0x4e3   :  { %v11672_v19 = vpop.f32.mrb[11].mxu0 }
 0x4e4   :  { %v16637_v10 = vadd.f32 %v11670_v59, %v16589_v9  ;;  %v11673_v44 = vadd.f32 %v11672_v19, %v11671_v30 }
 0x4e6   :  { %v16640_v36 = vadd.f32 %v11673_v44, %v16592_v24 }
 0x4e8   :  { %v11674_v31 = vpop.f32.mrb[12].mxu0 }
 0x4e9   :  { %v11675_v17 = vpop.f32.mrb[13].mxu0 }
 0x4ea   :  { %v11676_v21 = vadd.f32 %v11675_v17, %v11674_v31  ;;  %v11677_v11 = vpop.f32.mrb[14].mxu0 }
 0x4eb   :  { %v11678_v4 = vpop.f32.mrb[15].mxu0 }
 0x4ec   :  { %v16643_v51 = vadd.f32 %v11676_v21, %v16595_v61  ;;  %v11679_v22 = vadd.f32 %v11678_v4, %v11677_v11 }
 0x4ee   :  { %v16646_v54 = vadd.f32 %v11679_v22, %v16598_v40 }
 0x4f0   :  { %v11696_v45 = vpop.f32.mrb[16].mxu0 }
 0x4f1   :  { %v11697_v37 = vpop.f32.mrb[17].mxu0 }
 0x4f2   :  { %v11698_v9 = vadd.f32 %v11697_v37, %v11696_v45  ;;  %v11699_v42 = vpop.f32.mrb[18].mxu0 }
 0x4f3   :  { %v11700_v6 = vpop.f32.mrb[19].mxu0 }
 0x4f4   :  { %v16649_v24 = vadd.f32 %v11698_v9, %v16601_v15  ;;  %v11701_v35 = vadd.f32 %v11700_v6, %v11699_v42 }
 0x4f6   :  { %v16652_v18 = vadd.f32 %v11701_v35, %v16604_v13 }
 0x4f8   :  { %v11702_v41 = vpop.f32.mrb[20].mxu0 }
 0x4f9   :  { %v11703_v29 = vpop.f32.mrb[21].mxu0 }
 0x4fa   :  { %v11704_v61 = vadd.f32 %v11703_v29, %v11702_v41  ;;  %v11705_v47 = vpop.f32.mrb[22].mxu0 }
 0x4fb   :  { %v11706_v27 = vpop.f32.mrb[23].mxu0 }
 0x4fc   :  { %v16655_v40 = vadd.f32 %v11704_v61, %v16607_v33  ;;  %v11707_v38 = vadd.f32 %v11706_v27, %v11705_v47 }
 0x4fe   :  { %v16658_v1 = vadd.f32 %v11707_v38, %v16610_v20 }
 0x500   :  { %v11708_v50 = vpop.f32.mrb[24].mxu0 }
 0x501   :  { %v11709_v48 = vpop.f32.mrb[25].mxu0 }
 0x502   :  { %v11710_v15 = vadd.f32 %v11709_v48, %v11708_v50  ;;  %v11711_v25 = vpop.f32.mrb[26].mxu0 }
 0x503   :  { %v11712_v8 = vpop.f32.mrb[27].mxu0 }
 0x504   :  { %v16661_v13 = vadd.f32 %v11710_v15, %v16613_v14  ;;  %v11713_v39 = vadd.f32 %v11712_v8, %v11711_v25 }
 0x506   :  { %v16664_v5 = vadd.f32 %v11713_v39, %v16616_v26 }
 0x508   :  { %v11714_v59 = vpop.f32.mrb[28].mxu0 }
 0x509   :  { %v11715_v30 = vpop.f32.mrb[29].mxu0 }
 0x50a   :  { %v11716_v33 = vadd.f32 %v11715_v30, %v11714_v59  ;;  %v11717_v19 = vpop.f32.mrb[30].mxu0 }
 0x50b   :  { %v11718_v44 = vpop.f32.mrb[31].mxu0 }
 0x50c   :  { %v16667_v20 = vadd.f32 %v11716_v33, %v16619_v28  ;;  %v11719_v31 = vadd.f32 %v11718_v44, %v11717_v19 }
 0x50e   :  { %v16670_v17 = vadd.f32 %v11719_v31, %v16622_v56 }
 0x510   :  { %v11720_v21 = vpop.f32.mrb[32].mxu0 }
 0x511   :  { %v11721_v11 = vpop.f32.mrb[33].mxu0 }
 0x512   :  { %v11722_v14 = vadd.f32 %v11721_v11, %v11720_v21  ;;  %v11723_v4 = vpop.f32.mrb[34].mxu0 }
 0x513   :  { %v11724_v22 = vpop.f32.mrb[35].mxu0 }
 0x514   :  { %v16673_v26 = vadd.f32 %v11722_v14, %v16625_v49  ;;  %v11725_v45 = vadd.f32 %v11724_v22, %v11723_v4 }
 0x516   :  { %v16676_v37 = vadd.f32 %v11725_v45, %v16628_v3 }
 0x518   :  { %v11726_v9 = vpop.f32.mrb[36].mxu0 }
 0x519   :  { %v11727_v42 = vpop.f32.mrb[37].mxu0 }
 0x51a   :  { %v11728_v28 = vadd.f32 %v11727_v42, %v11726_v9  ;;  %v11729_v6 = vpop.f32.mrb[38].mxu0 }
 0x51b   :  { %v11730_v35 = vpop.f32.mrb[39].mxu0 }
 0x51c   :  { %v16679_v56 = vadd.f32 %v11728_v28, %v16631_v12  ;;  %v11731_v41 = vadd.f32 %v11730_v35, %v11729_v6 }
 0x51e   :  { %v16682_v29 = vadd.f32 %v11731_v41, %v16634_v60 }
 0x520   :  { %v11732_v61 = vpop.f32.mrb[40].mxu0 }
 0x521   :  { %v11733_v47 = vpop.f32.mrb[41].mxu0 }
 0x522   :  { %v11734_v49 = vadd.f32 %v11733_v47, %v11732_v61  ;;  %v11735_v27 = vpop.f32.mrb[42].mxu0 }
 0x523   :  { %v11736_v38 = vpop.f32.mrb[43].mxu0 }
 0x524   :  { %v16685_v3 = vadd.f32 %v11734_v49, %v16637_v10  ;;  %v11737_v50 = vadd.f32 %v11736_v38, %v11735_v27 }
 0x526   :  { %v16688_v48 = vadd.f32 %v11737_v50, %v16640_v36 }
 0x528   :  { %v11738_v15 = vpop.f32.mrb[44].mxu0 }
 0x529   :  { %v11739_v25 = vpop.f32.mrb[45].mxu0 }
 0x52a   :  { %v11740_v12 = vadd.f32 %v11739_v25, %v11738_v15  ;;  %v11741_v8 = vpop.f32.mrb[46].mxu0 }
 0x52b   :  { %v11742_v39 = vpop.f32.mrb[47].mxu0 }
 0x52c   :  { %v16691_v60 = vadd.f32 %v11740_v12, %v16643_v51  ;;  %v11743_v59 = vadd.f32 %v11742_v39, %v11741_v8 }
 0x52e   :  { %v16694_v30 = vadd.f32 %v11743_v59, %v16646_v54 }
 0x530   :  { %v11760_v33 = vpop.f32.mrb[48].mxu0 }
 0x531   :  { %v11761_v19 = vpop.f32.mrb[49].mxu0 }
 0x532   :  { %v11762_v10 = vadd.f32 %v11761_v19, %v11760_v33  ;;  %v11763_v44 = vpop.f32.mrb[50].mxu0 }
 0x533   :  { %v11764_v31 = vpop.f32.mrb[51].mxu0 }
 0x534   :  { %v5692_v36 = vadd.f32 %v11762_v10, %v16649_v24  ;;  %v11765_v21 = vadd.f32 %v11764_v31, %v11763_v44 }
 0x536   :  { %v5695_v11 = vadd.f32 %v11765_v21, %v16652_v18  ;;  %v5789_v14 = vadd.f32 %v16513_v63, %v5692_v36 }
 0x538   :  { %v11766_v4 = vpop.f32.mrb[52].mxu0  ;;  %v5792_v51 = vadd.f32 %v16517_v58, %v5695_v11  ;;  %v5851_v54 = vmax.f32 %v5789_v14, 0.0 }
 0x539   :  { %v11767_v22 = vpop.f32.mrb[53].mxu0 }
 0x53a   :  { %v11768_v45 = vadd.f32 %v11767_v22, %v11766_v4  ;;  %v11769_v9 = vpop.f32.mrb[54].mxu0  ;;  %v5852_v42 = vmax.f32 %v5792_v51, 0.0 }
 0x53b   :  { %v11770_v28 = vpop.f32.mrb[55].mxu0 }
 0x53c   :  { %v5700_v6 = vadd.f32 %v11768_v45, %v16655_v40  ;;  %v11771_v35 = vadd.f32 %v11770_v28, %v11769_v9  ;;  %v16701_v41 = vpack.c.bf16 %v5852_v42, %v5851_v54 }
 0x53e   :  { %v5703_v24 = vadd.f32 %v11771_v35, %v16658_v1  ;;  %13064 = vmatprep.subr.bf16.mxu0 %v16701_v41  ;;  %v5797_v63 = vadd.f32 %v16511_v55, %v5700_v6 }
 0x53f   :  { %13065 = vmatpush3.bf16.msra.mxu0 %v16701_v41 }
 0x540   :  { %v11772_v58 = vpop.f32.mrb[56].mxu0  ;;  %v5800_v18 = vadd.f32 %v16515_v52, %v5703_v24  ;;  %v5853_v27 = vmax.f32 %v5797_v63, 0.0 }
 0x541   :  { %v11773_v61 = vpop.f32.mrb[57].mxu0 }
 0x542   :  { %v11774_v47 = vadd.f32 %v11773_v61, %v11772_v58  ;;  %v11775_v49 = vpop.f32.mrb[58].mxu0  ;;  %v5854_v38 = vmax.f32 %v5800_v18, 0.0 }
 0x543   :  { %v11776_v40 = vpop.f32.mrb[59].mxu0 }
 0x544   :  { %v5708_v50 = vadd.f32 %v11774_v47, %v16661_v13  ;;  %v11777_v15 = vadd.f32 %v11776_v40, %v11775_v49  ;;  %v16709_v25 = vpack.c.bf16 %v5854_v38, %v5853_v27 }
 0x546   :  { %v5711_v1 = vadd.f32 %v11777_v15, %v16664_v5  ;;  %13066 = vmatprep.subr.bf16.mxu0 %v16709_v25  ;;  %v5805_v55 = vadd.f32 %v16530_v7, %v5708_v50 }
 0x547   :  { %13067 = vmatpush3.bf16.msra.mxu0 %v16709_v25 }
 0x548   :  { %v11778_v52 = vpop.f32.mrb[60].mxu0  ;;  %v5808_v12 = vadd.f32 %v16534_v2, %v5711_v1  ;;  %v5855_v33 = vmax.f32 %v5805_v55, 0.0 }
 0x549   :  { %v11779_v8 = vpop.f32.mrb[61].mxu0 }
 0x54a   :  { %v11780_v39 = vadd.f32 %v11779_v8, %v11778_v52  ;;  %v11781_v59 = vpop.f32.mrb[62].mxu0  ;;  %v5856_v19 = vmax.f32 %v5808_v12, 0.0 }
 0x54b   :  { %v11782_v13 = vpop.f32.mrb[63].mxu0 }
 0x54c   :  { %v5716_v10 = vadd.f32 %v11780_v39, %v16667_v20  ;;  %v11783_v44 = vadd.f32 %v11782_v13, %v11781_v59  ;;  %v16717_v31 = vpack.c.bf16 %v5856_v19, %v5855_v33 }
 0x54e   :  { %v5719_v5 = vadd.f32 %v11783_v44, %v16670_v17  ;;  %13068 = vmatprep.subr.bf16.mxu0 %v16717_v31  ;;  %v5813_v7 = vadd.f32 %v16528_v53, %v5716_v10 }
 0x54f   :  { %13069 = vmatpush3.bf16.msra.mxu0 %v16717_v31 }
 0x550   :  { %v11784_v2 = vpop.f32.mrb[64].mxu0  ;;  %v5816_v36 = vadd.f32 %v16532_v34, %v5719_v5  ;;  %v5857_v4 = vmax.f32 %v5813_v7, 0.0  ;;  %v14053_v7 = vld [vmem:[%s19238_s1 + $0x28] sm:$0xff]  }
 0x551   :  { %v11785_v21 = vpop.f32.mrb[65].mxu0 }
 0x552   :  { %v11786_v11 = vadd.f32 %v11785_v21, %v11784_v2  ;;  %v11787_v14 = vpop.f32.mrb[66].mxu0  ;;  %v5858_v51 = vmax.f32 %v5816_v36, 0.0  ;;  %v14054_v2 = vld [vmem:[%s19238_s1 + $0x30] sm:$0xff]   ;;  %v14055_v36 = vld [vmem:[%s19238_s1 + $0x38] sm:$0xff]   ;;  %v14056_v21 = vld [vmem:[%s19238_s1 + $0x40] sm:$0xff]  }
 0x553   :  { %v11788_v20 = vpop.f32.mrb[67].mxu0 }
 0x554   :  { %v5724_v22 = vadd.f32 %v11786_v11, %v16673_v26  ;;  %v11789_v45 = vadd.f32 %v11788_v20, %v11787_v14  ;;  %v16725_v9 = vpack.c.bf16 %v5858_v51, %v5857_v4  ;;  %v14057_v11 = vld [vmem:[%s19238_s1 + $0x48] sm:$0xff]   ;;  %v14058_v14 = vld [vmem:[%s19238_s1 + $0x50] sm:$0xff]   ;;  %v14059_v4 = vld [vmem:[%s19238_s1 + $0x58] sm:$0xff]  }
 0x555   :  { %v14060_v51 = vld [vmem:[%s19238_s1 + $0x60] sm:$0xff]   ;;  %v14061_v20 = vld [vmem:[%s19238_s1 + $0x68] sm:$0xff]  }
 0x556   :  { %v5727_v17 = vadd.f32 %v11789_v45, %v16676_v37  ;;  %13070 = vmatprep.subr.bf16.mxu0 %v16725_v9  ;;  %v5821_v53 = vadd.f32 %v16547_v62, %v5724_v22  ;;  %v14062_v22 = vld [vmem:[%s19238_s1 + $0x70] sm:$0xff]   ;;  %v14063_v45 = vld [vmem:[%s19238_s1 + $0x78] sm:$0xff]  }
 0x557   :  { %13071 = vmatpush3.bf16.msra.mxu0 %v16725_v9 }
 0x558   :  { %v11790_v34 = vpop.f32.mrb[68].mxu0  ;;  %v5824_v54 = vadd.f32 %v16551_v46, %v5727_v17  ;;  %v5859_v35 = vmax.f32 %v5821_v53, 0.0  ;;  %v14064_v17 = vld [vmem:[%s19238_s1 + $0x80] sm:$0xff]   ;;  %v14065_v53 = vld [vmem:[%s19238_s1 + $0x88] sm:$0xff]  }
 0x559   :  { %v11791_v42 = vpop.f32.mrb[69].mxu0 }
 0x55a   :  { %v11792_v28 = vadd.f32 %v11791_v42, %v11790_v34  ;;  %v11793_v6 = vpop.f32.mrb[70].mxu0  ;;  %v5860_v24 = vmax.f32 %v5824_v54, 0.0  ;;  %v14066_v34 = vld [vmem:[%s19238_s1 + $0x90] sm:$0xff]   ;;  %v14067_v54 = vld [vmem:[%s19238_s1 + $0x98] sm:$0xff]   ;;  %v14068_v42 = vld [vmem:[%s19238_s1 + $0xa0] sm:$0xff]  }
 0x55b   :  { %v11794_v26 = vpop.f32.mrb[71].mxu0 }
 0x55c   :  { %v5732_v63 = vadd.f32 %v11792_v28, %v16679_v56  ;;  %v11795_v58 = vadd.f32 %v11794_v26, %v11793_v6  ;;  %v16733_v18 = vpack.c.bf16 %v5860_v24, %v5859_v35  ;;  %v14069_v28 = vld [vmem:[%s19238_s1 + $0xa8] sm:$0xff]   ;;  %v14070_v6 = vld [vmem:[%s19238_s1 + $0xb0] sm:$0xff]   ;;  %v14071_v35 = vld [vmem:[%s19238_s1 + $0xb8] sm:$0xff]  }
 0x55d   :  { %v13808_v24 = vld [vmem:[%s19244_s8 + $0x40] sm:$0xff]  }
 0x55e   :  { %v5735_v37 = vadd.f32 %v11795_v58, %v16682_v29  ;;  %13072 = vmatprep.subr.bf16.mxu0 %v16733_v18  ;;  %v5829_v62 = vadd.f32 %v16545_v32, %v5732_v63  ;;  %v14072_v26 = vld [vmem:[%s19238_s1 + $0xc0] sm:$0xff]   ;;  %11992 = vmatprep.subr.bf16.mxu1 %v13808_v24  ;;  %v13810_v58 = vld [vmem:[%s19244_s8 + $0x48] sm:$0xff]   ;;  %v14103_v24 = vld [vmem:[%s19238_s1 + $0x1b8] sm:$0xff]  }
 0x55f   :  { %13073 = vmatpush3.bf16.msra.mxu0 %v16733_v18  ;;  %v13809_v63 = vld [vmem:[%s19244_s8] sm:$0xff]  }
 0x560   :  { %v11796_v46 = vpop.f32.mrb[72].mxu0  ;;  %v5832_v61 = vadd.f32 %v16549_v57, %v5735_v37  ;;  %v5861_v38 = vmax.f32 %v5829_v62, 0.0  ;;  %11993 = vmatpush3.bf16.msra.mxu1 %v13809_v63  ;;  %v13811_v37 = vld [vmem:[%s19244_s8 + $0x8] sm:$0xff]  }
 0x561   :  { %v11797_v47 = vpop.f32.mrb[73].mxu0  ;;  %11994 = vmatprep.subr.bf16.mxu1 %v13810_v58  ;;  %v14073_v62 = vld [vmem:[%s19238_s1 + $0xc8] sm:$0xff]  }
 0x562   :  { %v11798_v49 = vadd.f32 %v11797_v47, %v11796_v46  ;;  %v11799_v27 = vpop.f32.mrb[74].mxu0  ;;  %v5862_v40 = vmax.f32 %v5832_v61, 0.0  ;;  %v13812_v46 = vld [vmem:[%s19244_s8 + $0x500] sm:$0xff]   ;;  %v13813_v61 = vld [vmem:[%s19244_s8 + $0x50] sm:$0xff]  }
 0x563   :  { %v11800_v56 = vpop.f32.mrb[75].mxu0  ;;  %v13814_v47 = vld [vmem:[%s19244_s8 + $0x10] sm:$0xff]  }
 0x564   :  { %v5740_v50 = vadd.f32 %v11798_v49, %v16685_v3  ;;  %v11801_v15 = vadd.f32 %v11800_v56, %v11799_v27  ;;  %v16741_v1 = vpack.c.bf16 %v5862_v40, %v5861_v38  ;;  %11995 = vmatpush3.bf16.msra.mxu1 %v13811_v37  ;;  %v14074_v49 = vld [vmem:[%s19238_s1 + $0xd0] sm:$0xff]   ;;  %v13815_v27 = vld [vmem:[%s19244_s8 + $0x58] sm:$0xff]   ;;  %v13817_v56 = vld [vmem:[%s19244_s8 + $0x60] sm:$0xff]  }
 0x565   :  { %11996 = vmatprep.subr.bf16.mxu1 %v13813_v61  ;;  %v13816_v38 = vld [vmem:[%s19244_s8 + $0x18] sm:$0xff]  }
 0x566   :  { %v5743_v29 = vadd.f32 %v11801_v15, %v16688_v48  ;;  %13074 = vmatprep.subr.bf16.mxu0 %v16741_v1  ;;  %v5837_v32 = vadd.f32 %v16564_v0, %v5740_v50  ;;  %v14075_v40 = vld [vmem:[%s19238_s1 + $0xd8] sm:$0xff]   ;;  %v13818_v50 = vld [vmem:[%s19244_s8 + $0x20] sm:$0xff]  }
 0x567   :  { %13075 = vmatpush3.bf16.msra.mxu0 %v16741_v1  ;;  %v14076_v15 = vld [vmem:[%s19238_s1 + $0xe0] sm:$0xff]  }
 0x568   :  { %v11802_v57 = vpop.f32.mrb[76].mxu0  ;;  %v5840_v55 = vadd.f32 %v16568_v16, %v5743_v29  ;;  %v5863_v39 = vmax.f32 %v5837_v32, 0.0  ;;  %11997 = vmatpush3.bf16.msra.mxu1 %v13814_v47  ;;  %v13819_v29 = vld [vmem:[%s19244_s8 + $0x68] sm:$0xff]  }
 0x569   :  { %v11803_v52 = vpop.f32.mrb[77].mxu0  ;;  %11998 = vmatprep.subr.bf16.mxu1 %v13815_v27  ;;  %v13820_v32 = vld [vmem:[%s19244_s8 + $0x28] sm:$0xff]  }
 0x56a   :  { %v11804_v12 = vadd.f32 %v11803_v52, %v11802_v57  ;;  %v11805_v8 = vpop.f32.mrb[78].mxu0  ;;  %v5864_v59 = vmax.f32 %v5840_v55, 0.0  ;;  %v14077_v57 = vld [vmem:[%s19238_s1 + $0xe8] sm:$0xff]   ;;  %v13821_v55 = vld [vmem:[%s19244_s8 + $0x70] sm:$0xff]  }
 0x56b   :  { %v11806_v3 = vpop.f32.mrb[79].mxu0  ;;  %v14078_v52 = vld [vmem:[%s19238_s1 + $0xf0] sm:$0xff]   ;;  %v14105_v47 = vld [vmem:[%s19238_s1 + $0x1c8] sm:$0xff]  }
 0x56c   :  { %v5748_v33 = vadd.f32 %v11804_v12, %v16691_v60  ;;  %v11807_v19 = vadd.f32 %v11806_v3, %v11805_v8  ;;  %v16749_v13 = vpack.c.bf16 %v5864_v59, %v5863_v39  ;;  %v14049_v60 = vld [vmem:[%s19238_s1 + $0x8] sm:$0xff]   ;;  %11999 = vmatpush3.bf16.msra.mxu1 %v13816_v38  ;;  %v13822_v12 = vld [vmem:[%s19244_s8 + $0x30] sm:$0xff]   ;;  %v13823_v8 = vld [vmem:[%s19244_s8 + $0x78] sm:$0xff]  }
 0x56d   :  { %12000 = vmatprep.subr.bf16.mxu1 %v13817_v56  ;;  %v13824_v39 = vld [vmem:[%s19244_s8 + $0x38] sm:$0xff]   ;;  %v14080_v3 = vld [vmem:[%s19238_s1 + $0x100] sm:$0xff]  }
 0x56e   :  { %v5751_v48 = vadd.f32 %v11807_v19, %v16694_v30  ;;  %13076 = vmatprep.subr.bf16.mxu0 %v16749_v13  ;;  %v5845_v0 = vadd.f32 %v16562_v23, %v5748_v33  ;;  %v14050_v23 = vld [vmem:[%s19238_s1 + $0x10] sm:$0xff]   ;;  %v14052_v30 = vld [vmem:[%s19238_s1 + $0x20] sm:$0xff]   ;;  %v14079_v59 = vld [vmem:[%s19238_s1 + $0xf8] sm:$0xff]  }
 0x56f   :  { %13077 = vmatpush3.bf16.msra.mxu0 %v16749_v13  ;;  %v13825_v33 = vld [vmem:[%s19244_s8 + $0xc0] sm:$0xff]   ;;  %v14081_v19 = vld [vmem:[%s19238_s1 + $0x108] sm:$0xff]  }
 0x570   :  { %v5848_v16 = vadd.f32 %v16566_v43, %v5751_v48  ;;  %v5865_v10 = vmax.f32 %v5845_v0, 0.0  ;;  %v14051_v43 = vld [vmem:[%s19238_s1 + $0x18] sm:$0xff]   ;;  %12001 = vmatpush3.bf16.msra.mxu1 %v13818_v50  ;;  %v14082_v48 = vld [vmem:[%s19238_s1 + $0x110] sm:$0xff]  }
 0x571   :  { %12002 = vmatprep.subr.bf16.mxu1 %v13819_v29  ;;  %v14083_v0 = vld [vmem:[%s19238_s1 + $0x118] sm:$0xff]  }
 0x572   :  { %v5866_v44 = vmax.f32 %v5848_v16, 0.0  ;;  %v14084_v16 = vld [vmem:[%s19238_s1 + $0x120] sm:$0xff]   ;;  %v14107_v29 = vld [vmem:[%s19238_s1 + $0x1d8] sm:$0xff]  }
 0x574   :  { %v16756_v5 = vpack.c.bf16 %v5866_v44, %v5865_v10  ;;  %12003 = vmatpush3.bf16.msra.mxu1 %v13820_v32  ;;  %v14085_v10 = vld [vmem:[%s19238_s1 + $0x128] sm:$0xff]   ;;  %v14086_v44 = vld [vmem:[%s19238_s1 + $0x130] sm:$0xff]   ;;  %v14108_v32 = vld [vmem:[%s19238_s1 + $0x1e0] sm:$0xff]  }
 0x575   :  { %12004 = vmatprep.subr.bf16.mxu1 %v13821_v55 }
 0x576   :  { %13078 = vmatprep.subr.bf16.mxu0 %v16756_v5 }
 0x577   :  { %13079 = vmatpush3.bf16.msra.mxu0 %v16756_v5 }
 0x578   :  { %13400 = vmatprep.subr.bf16.mxu0 %v13812_v46  ;;  %12005 = vmatpush3.bf16.msra.mxu1 %v13822_v12 }
 0x579   :  { %12006 = vmatprep.subr.bf16.mxu1 %v13823_v8 }
 0x57a   :  { %13081 = vmatmul.mubr.bf16.vlgmr.msra.gmra.mrb[80].mxu0 %v14049_v60  ;;  %v14087_v60 = vld [vmem:[%s19238_s1 + $0x138] sm:$0xff]  }
 0x57b   :  { %13084 = vmatprep.mubr.bf16.mxu0 %v14050_v23  ;;  %13401 = vmatpush3.bf16.msra.mxu0 %v13812_v46  ;;  %v14088_v23 = vld [vmem:[%s19238_s1 + $0x140] sm:$0xff]  }
 0x57c   :  { %12007 = vmatpush3.bf16.msra.mxu1 %v13824_v39 }
 0x57d   :  { %12056 = vmatprep.subr.bf16.mxu1 %v13825_v33 }
 0x582   :  { %13085 = vmatmul.mubr.bf16.gmra.mrb[84].mxu0 %v14051_v43  ;;  %v14089_v43 = vld [vmem:[%s19238_s1 + $0x148] sm:$0xff]  }
 0x583   :  { %13088 = vmatprep.mubr.bf16.mxu0 %v14052_v30  ;;  %v14090_v30 = vld [vmem:[%s19238_s1 + $0x150] sm:$0xff]  }
 0x58a   :  { %13089 = vmatmul.mubr.bf16.gmra.mrb[88].mxu0 %v14053_v7  ;;  %v14091_v7 = vld [vmem:[%s19238_s1 + $0x158] sm:$0xff]  }
 0x58b   :  { %13092 = vmatprep.mubr.bf16.mxu0 %v14054_v2  ;;  %v14092_v2 = vld [vmem:[%s19238_s1 + $0x160] sm:$0xff]  }
 0x592   :  { %13093 = vmatmul.mubr.bf16.gmra.mrb[92].mxu0 %v14055_v36  ;;  %v14093_v36 = vld [vmem:[%s19238_s1 + $0x168] sm:$0xff]  }
 0x593   :  { %13096 = vmatprep.mubr.bf16.mxu0 %v14056_v21  ;;  %v13839_v21 = vld [vmem:[%s19244_s8 + $0x508] sm:$0xff]  }
 0x594   :  { %13402 = vmatprep.subr.bf16.mxu0 %v13839_v21 }
 0x595   :  { %13403 = vmatpush3.bf16.msra.mxu0 %v13839_v21 }
 0x59a   :  { %13097 = vmatmul.mubr.bf16.gmra.mrb[96].mxu0 %v14057_v11  ;;  %v14094_v11 = vld [vmem:[%s19238_s1 + $0x170] sm:$0xff]  }
 0x59b   :  { %13100 = vmatprep.mubr.bf16.mxu0 %v14058_v14  ;;  %v14095_v14 = vld [vmem:[%s19238_s1 + $0x178] sm:$0xff]  }
 0x5a2   :  { %13101 = vmatmul.mubr.bf16.gmra.mrb[100].mxu0 %v14059_v4  ;;  %v14096_v4 = vld [vmem:[%s19238_s1 + $0x180] sm:$0xff]  }
 0x5a3   :  { %13104 = vmatprep.mubr.bf16.mxu0 %v14060_v51  ;;  %v14097_v51 = vld [vmem:[%s19238_s1 + $0x188] sm:$0xff]  }
 0x5aa   :  { %13105 = vmatmul.mubr.bf16.gmra.mrb[104].mxu0 %v14061_v20  ;;  %v14098_v20 = vld [vmem:[%s19238_s1 + $0x190] sm:$0xff]  }
 0x5ab   :  { %13108 = vmatprep.mubr.bf16.mxu0 %v14062_v22  ;;  %v14099_v22 = vld [vmem:[%s19238_s1 + $0x198] sm:$0xff]  }
 0x5b2   :  { %13109 = vmatmul.mubr.bf16.gmra.mrb[108].mxu0 %v14063_v45  ;;  %v14100_v45 = vld [vmem:[%s19238_s1 + $0x1a0] sm:$0xff]  }
 0x5b3   :  { %13112 = vmatprep.mubr.bf16.mxu0 %v14064_v17  ;;  %v14101_v17 = vld [vmem:[%s19238_s1 + $0x1a8] sm:$0xff]  }
 0x5ba   :  { %13113 = vmatmul.mubr.bf16.gmra.mrb[112].mxu0 %v14065_v53  ;;  %v14102_v53 = vld [vmem:[%s19238_s1 + $0x1b0] sm:$0xff]  }
 0x5bb   :  { %13116 = vmatprep.mubr.bf16.mxu0 %v14066_v34 }
 0x5c2   :  { %13117 = vmatmul.mubr.bf16.gmra.mrb[116].mxu0 %v14067_v54 }
 0x5c3   :  { %13120 = vmatprep.mubr.bf16.mxu0 %v14068_v42 }
 0x5ca   :  { %13121 = vmatmul.mubr.bf16.gmra.mrb[120].mxu0 %v14069_v28 }
 0x5cb   :  { %13124 = vmatprep.mubr.bf16.mxu0 %v14070_v6 }
 0x5d2   :  { %13125 = vmatmul.mubr.bf16.gmra.mrb[124].mxu0 %v14071_v35 }
 0x5d3   :  { %13128 = vmatprep.mubr.bf16.mxu0 %v14072_v26  ;;  %v14104_v26 = vld [vmem:[%s19238_s1 + $0x1c0] sm:$0xff]  }
 0x5da   :  { %13129 = vmatmul.mubr.bf16.gmra.mrb[128].mxu0 %v14073_v62 }
 0x5db   :  { %13132 = vmatprep.mubr.bf16.mxu0 %v14074_v49  ;;  %v14106_v49 = vld [vmem:[%s19238_s1 + $0x1d0] sm:$0xff]  }
 0x5e2   :  { %13133 = vmatmul.mubr.bf16.gmra.mrb[132].mxu0 %v14075_v40 }
 0x5e3   :  { %13136 = vmatprep.mubr.bf16.mxu0 %v14076_v15 }
 0x5ea   :  { %13137 = vmatmul.mubr.bf16.gmra.mrb[136].mxu0 %v14077_v57 }
 0x5eb   :  { %13140 = vmatprep.mubr.bf16.mxu0 %v14078_v52 }
 0x5f2   :  { %13141 = vmatmul.mubr.bf16.gmra.mrb[140].mxu0 %v14079_v59  ;;  %v14109_v59 = vld [vmem:[%s19238_s1 + $0x1e8] sm:$0xff]  }
 0x5f3   :  { %13144 = vmatprep.mubr.bf16.mxu0 %v14080_v3  ;;  %v14110_v3 = vld [vmem:[%s19238_s1 + $0x1f0] sm:$0xff]  }
 0x5fa   :  { %13145 = vmatmul.mubr.bf16.gmra.mrb[144].mxu0 %v14081_v19 }
 0x5fb   :  { %13148 = vmatprep.mubr.bf16.mxu0 %v14082_v48 }
 0x602   :  { %13149 = vmatmul.mubr.bf16.gmra.mrb[148].mxu0 %v14083_v0 }
 0x603   :  { %13152 = vmatprep.mubr.bf16.mxu0 %v14084_v16 }
 0x60a   :  { %13153 = vmatmul.mubr.bf16.gmra.mrb[152].mxu0 %v14085_v10 }
 0x60b   :  { %13156 = vmatprep.mubr.bf16.mxu0 %v14086_v44  ;;  %v13826_v44 = vld [vmem:[%s19244_s8 + $0x80] sm:$0xff]  }
 0x612   :  { %13157 = vmatmul.mubr.bf16.gmra.mrb[156].mxu0 %v14087_v60  ;;  %v14111_v60 = vld [vmem:[%s19238_s1 + $0x1f8] sm:$0xff]  }
 0x613   :  { %13160 = vmatprep.mubr.bf16.mxu0 %v14088_v23  ;;  %v13827_v23 = vld [vmem:[%s19244_s8 + $0xc8] sm:$0xff]  }
 0x61a   :  { %13161 = vmatmul.mubr.bf16.gmra.mrb[160].mxu0 %v14089_v43  ;;  %v14112_v43 = vld [vmem:[%s19238_s1 + $0x200] sm:$0xff]  }
 0x61b   :  { %13164 = vmatprep.mubr.bf16.mxu0 %v14090_v30 }
 0x622   :  { %13165 = vmatmul.mubr.bf16.gmra.mrb[164].mxu0 %v14091_v7  ;;  %v13828_v7 = vld [vmem:[%s19244_s8 + $0x88] sm:$0xff]  }
 0x623   :  { %13168 = vmatprep.mubr.bf16.mxu0 %v14092_v2 }
 0x62a   :  { %13169 = vmatmul.mubr.bf16.gmra.mrb[168].mxu0 %v14093_v36  ;;  %v13829_v36 = vld [vmem:[%s19244_s8 + $0xd0] sm:$0xff]  }
 0x62b   :  { %13172 = vmatprep.mubr.bf16.mxu0 %v14094_v11 }
 0x632   :  { %13173 = vmatmul.mubr.bf16.gmra.mrb[172].mxu0 %v14095_v14 }
 0x633   :  { %13176 = vmatprep.mubr.bf16.mxu0 %v14096_v4 }
 0x63a   :  { %13177 = vmatmul.mubr.bf16.gmra.mrb[176].mxu0 %v14097_v51  ;;  %v13830_v51 = vld [vmem:[%s19244_s8 + $0x90] sm:$0xff]  }
 0x63b   :  { %13180 = vmatprep.mubr.bf16.mxu0 %v14098_v20  ;;  %v14113_v20 = vld [vmem:[%s19238_s1 + $0x208] sm:$0xff]  }
 0x642   :  { %13181 = vmatmul.mubr.bf16.gmra.mrb[180].mxu0 %v14099_v22  ;;  %v13831_v22 = vld [vmem:[%s19244_s8 + $0xd8] sm:$0xff]  }
 0x643   :  { %13184 = vmatprep.mubr.bf16.mxu0 %v14100_v45  ;;  %v13860_v45 = vld [vmem:[%s19244_s8 + $0x510] sm:$0xff]  }
 0x644   :  { %13404 = vmatprep.subr.bf16.mxu0 %v13860_v45 }
 0x645   :  { %13405 = vmatpush3.bf16.msra.mxu0 %v13860_v45 }
 0x64a   :  { %13185 = vmatmul.mubr.bf16.gmra.mrb[184].mxu0 %v14101_v17  ;;  %v14114_v17 = vld [vmem:[%s19238_s1 + $0x210] sm:$0xff]  }
 0x64b   :  { %13188 = vmatprep.mubr.bf16.mxu0 %v14102_v53 }
 0x64d   :  { %v16979_v34 = vpop.f32.mrb[80].mxu0 }
 0x64e   :  { %v5909_v54 = vpop.f32.mrb[81].mxu0 }
 0x64f   :  { %v16981_v42 = vpop.f32.mrb[82].mxu0 }
 0x650   :  { %v7189_v28 = vpack.c.bf16 %v16981_v42, %v16979_v34  ;;  %v5912_v6 = vpop.f32.mrb[83].mxu0  ;;  %v13834_v42 = vld [vmem:[%s19244_s8 + $0xa0] sm:$0xff]  }
 0x651   :  { %v7188_v35 = vpack.c.bf16 %v5912_v6, %v5909_v54  ;;  %v13832_v54 = vld [vmem:[%s19244_s8 + $0x98] sm:$0xff]  }
 0x652   :  { %13189 = vmatmul.mubr.bf16.gmra.mrb[188].mxu0 %v14103_v24 }
 0x653   :  { %13192 = vmatprep.mubr.bf16.mxu0 %v14104_v26 }
 0x655   :  { %v16991_v63 = vpop.f32.mrb[84].mxu0 }
 0x656   :  { %v16993_v58 = vpop.f32.mrb[85].mxu0 }
 0x657   :  { %v16995_v37 = vpop.f32.mrb[86].mxu0 }
 0x658   :  { %v7191_v62 = vpack.c.bf16 %v16995_v37, %v16991_v63  ;;  %v16999_v46 = vpop.f32.mrb[87].mxu0 }
 0x659   :  { %v7190_v61 = vpack.c.bf16 %v16999_v46, %v16993_v58  ;;  %v13838_v58 = vld [vmem:[%s19244_s8 + $0xb0] sm:$0xff]   ;;  %v14117_v46 = vld [vmem:[%s19238_s1 + $0x228] sm:$0xff]  }
 0x65a   :  { %13193 = vmatmul.mubr.bf16.gmra.mrb[192].mxu0 %v14105_v47 }
 0x65b   :  { %13196 = vmatprep.mubr.bf16.mxu0 %v14106_v49  ;;  %v13835_v49 = vld [vmem:[%s19244_s8 + $0xe8] sm:$0xff]  }
 0x65d   :  { %v17009_v27 = vpop.f32.mrb[88].mxu0 }
 0x65e   :  { %v17011_v38 = vpop.f32.mrb[89].mxu0 }
 0x65f   :  { %v17013_v40 = vpop.f32.mrb[90].mxu0 }
 0x660   :  { %v7193_v56 = vpack.c.bf16 %v17013_v40, %v17009_v27  ;;  %v17017_v50 = vpop.f32.mrb[91].mxu0  ;;  %v14123_v27 = vld [vmem:[%s19238_s1 + $0x258] sm:$0xff]   ;;  %v14124_v40 = vld [vmem:[%s19238_s1 + $0x260] sm:$0xff]  }
 0x661   :  { %v7192_v15 = vpack.c.bf16 %v17017_v50, %v17011_v38  ;;  %v14121_v38 = vld [vmem:[%s19238_s1 + $0x248] sm:$0xff]   ;;  %v14122_v50 = vld [vmem:[%s19238_s1 + $0x250] sm:$0xff]  }
 0x662   :  { %13197 = vmatmul.mubr.bf16.gmra.mrb[196].mxu0 %v14107_v29  ;;  %v14116_v29 = vld [vmem:[%s19238_s1 + $0x220] sm:$0xff]  }
 0x663   :  { %13200 = vmatprep.mubr.bf16.mxu0 %v14108_v32 }
 0x665   :  { %v17027_v57 = vpop.f32.mrb[92].mxu0 }
 0x666   :  { %v17029_v55 = vpop.f32.mrb[93].mxu0 }
 0x667   :  { %v17031_v52 = vpop.f32.mrb[94].mxu0 }
 0x668   :  { %v7195_v12 = vpack.c.bf16 %v17031_v52, %v17027_v57  ;;  %v17035_v8 = vpop.f32.mrb[95].mxu0  ;;  %v13844_v57 = vld [vmem:[%s19244_s8 + $0x148] sm:$0xff]   ;;  %v14128_v52 = vld [vmem:[%s19238_s1 + $0x280] sm:$0xff]  }
 0x669   :  { %v7194_v39 = vpack.c.bf16 %v17035_v8, %v17029_v55  ;;  %v14125_v55 = vld [vmem:[%s19238_s1 + $0x268] sm:$0xff]   ;;  %v14126_v8 = vld [vmem:[%s19238_s1 + $0x270] sm:$0xff]  }
 0x66a   :  { %13201 = vmatmul.mubr.bf16.gmra.mrb[200].mxu0 %v14109_v59  ;;  %v13836_v59 = vld [vmem:[%s19244_s8 + $0xa8] sm:$0xff]  }
 0x66b   :  { %13204 = vmatprep.mubr.bf16.mxu0 %v14110_v3 }
 0x66d   :  { %v13098_v33 = vpop.f32.mrb[96].mxu0 }
 0x66e   :  { %v5973_v19 = vpop.f32.mrb[97].mxu0 }
 0x66f   :  { %v13099_v48 = vpop.f32.mrb[98].mxu0 }
 0x670   :  { %v7205_v0 = vpack.c.bf16 %v13099_v48, %v13098_v33  ;;  %v5976_v16 = vpop.f32.mrb[99].mxu0  ;;  %v13837_v33 = vld [vmem:[%s19244_s8 + $0xf0] sm:$0xff]  }
 0x671   :  { %v7204_v10 = vpack.c.bf16 %v5976_v16, %v5973_v19 }
 0x672   :  { %13205 = vmatmul.mubr.bf16.gmra.mrb[204].mxu0 %v14111_v60  ;;  %v13841_v60 = vld [vmem:[%s19244_s8 + $0xb8] sm:$0xff]  }
 0x673   :  { %9067 = vmatprep.mubr.bf16.mxu1 %v7204_v10  ;;  %13208 = vmatprep.mubr.bf16.mxu0 %v14112_v43  ;;  %v14118_v10 = vld [vmem:[%s19238_s1 + $0x230] sm:$0xff]   ;;  %v13842_v43 = vld [vmem:[%s19244_s8 + $0x140] sm:$0xff]  }
 0x674   :  { %9068 = vmatmul.mubr.bf16.vlgmr.msra.gmra.mrb[80].mxu1 %v7188_v35  ;;  %v13833_v35 = vld [vmem:[%s19244_s8 + $0xe0] sm:$0xff]  }
 0x675   :  { %9075 = vmatprep.mubr.bf16.mxu1 %v7205_v0  ;;  %v13102_v30 = vpop.f32.mrb[100].mxu0  ;;  %12057 = vmatpush3.bf16.msra.mxu1 %v13826_v44 }
 0x676   :  { %v5989_v2 = vpop.f32.mrb[101].mxu0  ;;  %12058 = vmatprep.subr.bf16.mxu1 %v13827_v23 }
 0x677   :  { %v13103_v21 = vpop.f32.mrb[102].mxu0 }
 0x678   :  { %v7207_v11 = vpack.c.bf16 %v13103_v21, %v13102_v30  ;;  %v5992_v14 = vpop.f32.mrb[103].mxu0 }
 0x679   :  { %v7206_v4 = vpack.c.bf16 %v5992_v14, %v5989_v2  ;;  %12059 = vmatpush3.bf16.msra.mxu1 %v13828_v7  ;;  %v14119_v7 = vld [vmem:[%s19238_s1 + $0x238] sm:$0xff]   ;;  %v14120_v2 = vld [vmem:[%s19238_s1 + $0x240] sm:$0xff]  }
 0x67a   :  { %13209 = vmatmul.mubr.bf16.gmra.mrb[208].mxu0 %v14113_v20  ;;  %12060 = vmatprep.subr.bf16.mxu1 %v13829_v36 }
 0x67b   :  { %13212 = vmatprep.mubr.bf16.mxu0 %v14114_v17 }
 0x67c   :  { %9076 = vmatmul.mubr.bf16.gmra.mrb[84].mxu1 %v7189_v28  ;;  %v14115_v28 = vld [vmem:[%s19238_s1 + $0x218] sm:$0xff]  }
 0x67d   :  { %9083 = vmatprep.mubr.bf16.mxu1 %v7206_v4  ;;  %v13106_v53 = vpop.f32.mrb[104].mxu0  ;;  %12061 = vmatpush3.bf16.msra.mxu1 %v13830_v51 }
 0x67e   :  { %v6005_v6 = vpop.f32.mrb[105].mxu0  ;;  %12062 = vmatprep.subr.bf16.mxu1 %v13831_v22 }
 0x67f   :  { %v13107_v24 = vpop.f32.mrb[106].mxu0 }
 0x680   :  { %v7209_v26 = vpack.c.bf16 %v13107_v24, %v13106_v53  ;;  %v6008_v47 = vpop.f32.mrb[107].mxu0 }
 0x681   :  { %v7208_v34 = vpack.c.bf16 %v6008_v47, %v6005_v6  ;;  %12063 = vmatpush3.bf16.msra.mxu1 %v13832_v54 }
 0x682   :  { %13213 = vmatmul.mubr.bf16.gmra.mrb[212].mxu0 %v14115_v28  ;;  %12064 = vmatprep.subr.bf16.mxu1 %v13833_v35 }
 0x683   :  { %13216 = vmatprep.mubr.bf16.mxu0 %v14116_v29  ;;  %v13843_v29 = vld [vmem:[%s19244_s8 + $0x100] sm:$0xff]  }
 0x684   :  { %9084 = vmatmul.mubr.bf16.gmra.mrb[88].mxu1 %v7190_v61  ;;  %v13840_v61 = vld [vmem:[%s19244_s8 + $0xf8] sm:$0xff]  }
 0x685   :  { %9091 = vmatprep.mubr.bf16.mxu1 %v7207_v11  ;;  %v13110_v32 = vpop.f32.mrb[108].mxu0  ;;  %12065 = vmatpush3.bf16.msra.mxu1 %v13834_v42 }
 0x686   :  { %v6021_v3 = vpop.f32.mrb[109].mxu0  ;;  %12066 = vmatprep.subr.bf16.mxu1 %v13835_v49 }
 0x687   :  { %v13111_v19 = vpop.f32.mrb[110].mxu0 }
 0x688   :  { %v7211_v48 = vpack.c.bf16 %v13111_v19, %v13110_v32  ;;  %v6024_v0 = vpop.f32.mrb[111].mxu0  ;;  %v14127_v32 = vld [vmem:[%s19238_s1 + $0x278] sm:$0xff]  }
 0x689   :  { %v7210_v16 = vpack.c.bf16 %v6024_v0, %v6021_v3  ;;  %12067 = vmatpush3.bf16.msra.mxu1 %v13836_v59  ;;  %v13845_v59 = vld [vmem:[%s19244_s8 + $0x108] sm:$0xff]  }
 0x68a   :  { %13217 = vmatmul.mubr.bf16.gmra.mrb[216].mxu0 %v14117_v46  ;;  %12068 = vmatprep.subr.bf16.mxu1 %v13837_v33  ;;  %v13846_v33 = vld [vmem:[%s19244_s8 + $0x150] sm:$0xff]   ;;  %v14129_v46 = vld [vmem:[%s19238_s1 + $0x288] sm:$0xff]  }
 0x68b   :  { %13220 = vmatprep.mubr.bf16.mxu0 %v14118_v10  ;;  %v14130_v10 = vld [vmem:[%s19238_s1 + $0x290] sm:$0xff]  }
 0x68c   :  { %9092 = vmatmul.mubr.bf16.gmra.mrb[92].mxu1 %v7191_v62 }
 0x68d   :  { %9099 = vmatprep.mubr.bf16.mxu1 %v7208_v34  ;;  %v17123_v44 = vpop.f32.mrb[112].mxu0  ;;  %12069 = vmatpush3.bf16.msra.mxu1 %v13838_v58  ;;  %v13847_v58 = vld [vmem:[%s19244_s8 + $0x110] sm:$0xff]  }
 0x68e   :  { %v17128_v23 = vpop.f32.mrb[113].mxu0  ;;  %12070 = vmatprep.subr.bf16.mxu1 %v13840_v61  ;;  %v13848_v61 = vld [vmem:[%s19244_s8 + $0x158] sm:$0xff]  }
 0x68f   :  { %v17133_v30 = vpop.f32.mrb[114].mxu0 }
 0x690   :  { %v7221_v63 = vpack.c.bf16 %v17133_v30, %v17123_v44  ;;  %v6040_v37 = vpop.f32.mrb[115].mxu0  ;;  %v13851_v44 = vld [vmem:[%s19244_s8 + $0x120] sm:$0xff]   ;;  %v14131_v30 = vld [vmem:[%s19238_s1 + $0x298] sm:$0xff]  }
 0x691   :  { %v7220_v62 = vpack.c.bf16 %v6040_v37, %v17128_v23  ;;  %12071 = vmatpush3.bf16.msra.mxu1 %v13841_v60  ;;  %v13849_v23 = vld [vmem:[%s19244_s8 + $0x118] sm:$0xff]   ;;  %v13850_v37 = vld [vmem:[%s19244_s8 + $0x160] sm:$0xff]  }
 0x692   :  { %13221 = vmatmul.mubr.bf16.gmra.mrb[220].mxu0 %v14119_v7  ;;  %12120 = vmatprep.subr.bf16.mxu1 %v13842_v43 }
 0x693   :  { %13224 = vmatprep.mubr.bf16.mxu0 %v14120_v2 }
 0x694   :  { %9100 = vmatmul.mubr.bf16.gmra.mrb[96].mxu1 %v7192_v15 }
 0x695   :  { %9107 = vmatprep.mubr.bf16.mxu1 %v7209_v26  ;;  %v17147_v36 = vpop.f32.mrb[116].mxu0 }
 0x696   :  { %v17149_v21 = vpop.f32.mrb[117].mxu0 }
 0x697   :  { %v17151_v11 = vpop.f32.mrb[118].mxu0 }
 0x698   :  { %v7223_v14 = vpack.c.bf16 %v17151_v11, %v17147_v36  ;;  %v17155_v4 = vpop.f32.mrb[119].mxu0  ;;  %v13858_v36 = vld [vmem:[%s19244_s8 + $0x1c0] sm:$0xff]  }
 0x699   :  { %v7222_v51 = vpack.c.bf16 %v17155_v4, %v17149_v21  ;;  %v13855_v4 = vld [vmem:[%s19244_s8 + $0x130] sm:$0xff]  }
 0x69a   :  { %13225 = vmatmul.mubr.bf16.gmra.mrb[224].mxu0 %v14121_v38 }
 0x69b   :  { %13228 = vmatprep.mubr.bf16.mxu0 %v14122_v50  ;;  %v14132_v50 = vld [vmem:[%s19238_s1 + $0x2a0] sm:$0xff]  }
 0x69c   :  { %9108 = vmatmul.mubr.bf16.gmra.mrb[100].mxu1 %v7193_v56 }
 0x69d   :  { %9115 = vmatprep.mubr.bf16.mxu1 %v7210_v16  ;;  %v17168_v15 = vpop.f32.mrb[120].mxu0 }
 0x69e   :  { %v17170_v20 = vpop.f32.mrb[121].mxu0 }
 0x69f   :  { %v17172_v22 = vpop.f32.mrb[122].mxu0 }
 0x6a0   :  { %v7225_v45 = vpack.c.bf16 %v17172_v22, %v17168_v15  ;;  %v17176_v17 = vpop.f32.mrb[123].mxu0  ;;  %v14139_v15 = vld [vmem:[%s19238_s1 + $0x2d8] sm:$0xff]   ;;  %v14140_v22 = vld [vmem:[%s19238_s1 + $0x2e0] sm:$0xff]  }
 0x6a1   :  { %v7224_v53 = vpack.c.bf16 %v17176_v17, %v17170_v20  ;;  %v14137_v20 = vld [vmem:[%s19238_s1 + $0x2c8] sm:$0xff]   ;;  %v14138_v17 = vld [vmem:[%s19238_s1 + $0x2d0] sm:$0xff]  }
 0x6a2   :  { %13229 = vmatmul.mubr.bf16.gmra.mrb[228].mxu0 %v14123_v27 }
 0x6a3   :  { %13232 = vmatprep.mubr.bf16.mxu0 %v14124_v40  ;;  %v13853_v40 = vld [vmem:[%s19244_s8 + $0x128] sm:$0xff]  }
 0x6a4   :  { %9116 = vmatmul.mubr.bf16.gmra.mrb[104].mxu1 %v7194_v39 }
 0x6a5   :  { %9123 = vmatprep.mubr.bf16.mxu1 %v7211_v48  ;;  %v17189_v56 = vpop.f32.mrb[124].mxu0 }
 0x6a6   :  { %v17191_v54 = vpop.f32.mrb[125].mxu0 }
 0x6a7   :  { %v17193_v6 = vpop.f32.mrb[126].mxu0 }
 0x6a8   :  { %v7227_v35 = vpack.c.bf16 %v17193_v6, %v17189_v56  ;;  %v17197_v24 = vpop.f32.mrb[127].mxu0  ;;  %v13861_v56 = vld [vmem:[%s19244_s8 + $0x1c8] sm:$0xff]   ;;  %v14144_v6 = vld [vmem:[%s19238_s1 + $0x300] sm:$0xff]  }
 0x6a9   :  { %v7226_v26 = vpack.c.bf16 %v17197_v24, %v17191_v54  ;;  %v14141_v54 = vld [vmem:[%s19238_s1 + $0x2e8] sm:$0xff]   ;;  %v14142_v24 = vld [vmem:[%s19238_s1 + $0x2f0] sm:$0xff]  }
 0x6aa   :  { %13233 = vmatmul.mubr.bf16.gmra.mrb[232].mxu0 %v14125_v55 }
 0x6ab   :  { %13236 = vmatprep.mubr.bf16.mxu0 %v14126_v8  ;;  %v13854_v8 = vld [vmem:[%s19244_s8 + $0x170] sm:$0xff]  }
 0x6ac   :  { %9124 = vmatmul.mubr.bf16.gmra.mrb[108].mxu1 %v7195_v12 }
 0x6ad   :  { %v13130_v39 = vpop.f32.mrb[128].mxu0 }
 0x6ae   :  { %v6101_v47 = vpop.f32.mrb[129].mxu0 }
 0x6af   :  { %v13131_v34 = vpop.f32.mrb[130].mxu0 }
 0x6b0   :  { %v7237_v42 = vpack.c.bf16 %v13131_v34, %v13130_v39  ;;  %v6104_v28 = vpop.f32.mrb[131].mxu0 }
 0x6b1   :  { %v7236_v49 = vpack.c.bf16 %v6104_v28, %v6101_v47  ;;  %v14134_v28 = vld [vmem:[%s19238_s1 + $0x2b0] sm:$0xff]  }
 0x6b2   :  { %13237 = vmatmul.mubr.bf16.gmra.mrb[236].mxu0 %v14127_v32  ;;  %v13881_v32 = vld [vmem:[%s19244_s8 + $0x518] sm:$0xff]  }
 0x6b3   :  { %9164 = vmatprep.mubr.bf16.mxu1 %v7236_v49  ;;  %13240 = vmatprep.mubr.bf16.mxu0 %v14128_v52 }
 0x6b4   :  { %9165 = vmatmul.mubr.bf16.vlgmr.msra.gmra.mrb[112].mxu1 %v7220_v62  ;;  %13406 = vmatprep.subr.bf16.mxu0 %v13881_v32 }
 0x6b5   :  { %9172 = vmatprep.mubr.bf16.mxu1 %v7237_v42  ;;  %v13134_v12 = vpop.f32.mrb[132].mxu0  ;;  %12121 = vmatpush3.bf16.msra.mxu1 %v13843_v29  ;;  %v13856_v42 = vld [vmem:[%s19244_s8 + $0x178] sm:$0xff]  }
 0x6b6   :  { %v6117_v3 = vpop.f32.mrb[133].mxu0  ;;  %12122 = vmatprep.subr.bf16.mxu1 %v13844_v57  ;;  %v13857_v29 = vld [vmem:[%s19244_s8 + $0x138] sm:$0xff]   ;;  %13407 = vmatpush3.bf16.msra.mxu0 %v13881_v32 }
 0x6b7   :  { %v13135_v19 = vpop.f32.mrb[134].mxu0 }
 0x6b8   :  { %v7239_v48 = vpack.c.bf16 %v13135_v19, %v13134_v12  ;;  %v6120_v0 = vpop.f32.mrb[135].mxu0 }
 0x6b9   :  { %v7238_v16 = vpack.c.bf16 %v6120_v0, %v6117_v3  ;;  %12123 = vmatpush3.bf16.msra.mxu1 %v13845_v59  ;;  %v14135_v59 = vld [vmem:[%s19238_s1 + $0x2b8] sm:$0xff]   ;;  %v14136_v3 = vld [vmem:[%s19238_s1 + $0x2c0] sm:$0xff]  }
 0x6ba   :  { %13241 = vmatmul.mubr.bf16.gmra.mrb[240].mxu0 %v14129_v46  ;;  %12124 = vmatprep.subr.bf16.mxu1 %v13846_v33 }
 0x6bb   :  { %13244 = vmatprep.mubr.bf16.mxu0 %v14130_v10 }
 0x6bc   :  { %9173 = vmatmul.mubr.bf16.gmra.mrb[116].mxu1 %v7221_v63  ;;  %v13852_v63 = vld [vmem:[%s19244_s8 + $0x168] sm:$0xff]  }
 0x6bd   :  { %9180 = vmatprep.mubr.bf16.mxu1 %v7238_v16  ;;  %v13138_v60 = vpop.f32.mrb[136].mxu0  ;;  %12125 = vmatpush3.bf16.msra.mxu1 %v13847_v58 }
 0x6be   :  { %v6133_v43 = vpop.f32.mrb[137].mxu0  ;;  %12126 = vmatprep.subr.bf16.mxu1 %v13848_v61 }
 0x6bf   :  { %v13139_v62 = vpop.f32.mrb[138].mxu0 }
 0x6c0   :  { %v7241_v7 = vpack.c.bf16 %v13139_v62, %v13138_v60  ;;  %v6136_v2 = vpop.f32.mrb[139].mxu0 }
 0x6c1   :  { %v7240_v38 = vpack.c.bf16 %v6136_v2, %v6133_v43  ;;  %12127 = vmatpush3.bf16.msra.mxu1 %v13849_v23 }
 0x6c2   :  { %13245 = vmatmul.mubr.bf16.gmra.mrb[244].mxu0 %v14131_v30  ;;  %12128 = vmatprep.subr.bf16.mxu1 %v13850_v37 }
 0x6c3   :  { %13248 = vmatprep.mubr.bf16.mxu0 %v14132_v50 }
 0x6c4   :  { %9181 = vmatmul.mubr.bf16.gmra.mrb[120].mxu1 %v7222_v51  ;;  %v14133_v51 = vld [vmem:[%s19238_s1 + $0x2a8] sm:$0xff]  }
 0x6c5   :  { %9188 = vmatprep.mubr.bf16.mxu1 %v7239_v48  ;;  %v17264_v27 = vpop.f32.mrb[140].mxu0  ;;  %12129 = vmatpush3.bf16.msra.mxu1 %v13851_v44 }
 0x6c6   :  { %v6149_v55 = vpop.f32.mrb[141].mxu0  ;;  %12130 = vmatprep.subr.bf16.mxu1 %v13852_v63 }
 0x6c7   :  { %v13143_v39 = vpop.f32.mrb[142].mxu0 }
 0x6c8   :  { %v7243_v47 = vpack.c.bf16 %v13143_v39, %v17264_v27  ;;  %v6152_v34 = vpop.f32.mrb[143].mxu0  ;;  %v13859_v27 = vld [vmem:[%s19244_s8 + $0x180] sm:$0xff]   ;;  %v13863_v39 = vld [vmem:[%s19244_s8 + $0x1d0] sm:$0xff]  }
 0x6c9   :  { %v7242_v21 = vpack.c.bf16 %v6152_v34, %v6149_v55  ;;  %12131 = vmatpush3.bf16.msra.mxu1 %v13853_v40  ;;  %v14143_v40 = vld [vmem:[%s19238_s1 + $0x2f8] sm:$0xff]   ;;  %v13862_v55 = vld [vmem:[%s19244_s8 + $0x188] sm:$0xff]  }
 0x6ca   :  { %13249 = vmatmul.mubr.bf16.gmra.mrb[248].mxu0 %v14133_v51  ;;  %12132 = vmatprep.subr.bf16.mxu1 %v13854_v8  ;;  %v13864_v51 = vld [vmem:[%s19244_s8 + $0x190] sm:$0xff]  }
 0x6cb   :  { %13252 = vmatprep.mubr.bf16.mxu0 %v14134_v28  ;;  %v13865_v28 = vld [vmem:[%s19244_s8 + $0x1d8] sm:$0xff]  }
 0x6cc   :  { %9189 = vmatmul.mubr.bf16.gmra.mrb[124].mxu1 %v7223_v14 }
 0x6cd   :  { %9196 = vmatprep.mubr.bf16.mxu1 %v7240_v38  ;;  %v17288_v49 = vpop.f32.mrb[144].mxu0  ;;  %12133 = vmatpush3.bf16.msra.mxu1 %v13855_v4 }
 0x6ce   :  { %v17296_v57 = vpop.f32.mrb[145].mxu0  ;;  %12134 = vmatprep.subr.bf16.mxu1 %v13856_v42  ;;  %v14145_v42 = vld [vmem:[%s19238_s1 + $0x308] sm:$0xff]  }
 0x6cf   :  { %v17301_v11 = vpop.f32.mrb[146].mxu0 }
 0x6d0   :  { %v7253_v14 = vpack.c.bf16 %v17301_v11, %v17288_v49  ;;  %v6168_v52 = vpop.f32.mrb[147].mxu0  ;;  %v13868_v49 = vld [vmem:[%s19244_s8 + $0x1a0] sm:$0xff]   ;;  %v14147_v11 = vld [vmem:[%s19238_s1 + $0x318] sm:$0xff]  }
 0x6d1   :  { %v7252_v12 = vpack.c.bf16 %v6168_v52, %v17296_v57  ;;  %12135 = vmatpush3.bf16.msra.mxu1 %v13857_v29  ;;  %v14146_v29 = vld [vmem:[%s19238_s1 + $0x310] sm:$0xff]   ;;  %v13866_v57 = vld [vmem:[%s19244_s8 + $0x198] sm:$0xff]   ;;  %v13867_v52 = vld [vmem:[%s19244_s8 + $0x1e0] sm:$0xff]  }
 0x6d2   :  { %13253 = vmatmul.mubr.bf16.gmra.mrb[252].mxu0 %v14135_v59  ;;  %12184 = vmatprep.subr.bf16.mxu1 %v13858_v36 }
 0x6d3   :  { %13256 = vmatprep.mubr.bf16.mxu0 %v14136_v3 }
 0x6d4   :  { %9197 = vmatmul.mubr.bf16.gmra.mrb[128].mxu1 %v7224_v53 }
 0x6d5   :  { %9204 = vmatprep.mubr.bf16.mxu1 %v7241_v7  ;;  %v17315_v33 = vpop.f32.mrb[148].mxu0 }
 0x6d6   :  { %v17317_v19 = vpop.f32.mrb[149].mxu0 }
 0x6d7   :  { %v17319_v48 = vpop.f32.mrb[150].mxu0 }
 0x6d8   :  { %v7255_v0 = vpack.c.bf16 %v17319_v48, %v17315_v33  ;;  %v17323_v16 = vpop.f32.mrb[151].mxu0 }
 0x6d9   :  { %v7254_v58 = vpack.c.bf16 %v17323_v16, %v17317_v19  ;;  %v13872_v16 = vld [vmem:[%s19244_s8 + $0x1b0] sm:$0xff]  }
 0x6da   :  { %13257 = vmatmul.mubr.bf16.gmra.mrb[0].mxu0 %v14137_v20 }
 0x6db   :  { %13260 = vmatprep.mubr.bf16.mxu0 %v14138_v17  ;;  %v14148_v17 = vld [vmem:[%s19238_s1 + $0x320] sm:$0xff]  }
 0x6dc   :  { %9205 = vmatmul.mubr.bf16.gmra.mrb[132].mxu1 %v7225_v45 }
 0x6dd   :  { %9212 = vmatprep.mubr.bf16.mxu1 %v7242_v21  ;;  %v17336_v53 = vpop.f32.mrb[152].mxu0 }
 0x6de   :  { %v17338_v46 = vpop.f32.mrb[153].mxu0 }
 0x6df   :  { %v17340_v61 = vpop.f32.mrb[154].mxu0 }
 0x6e0   :  { %v7257_v10 = vpack.c.bf16 %v17340_v61, %v17336_v53  ;;  %v17344_v60 = vpop.f32.mrb[155].mxu0  ;;  %v14155_v61 = vld [vmem:[%s19238_s1 + $0x358] sm:$0xff]  }
 0x6e1   :  { %v7256_v23 = vpack.c.bf16 %v17344_v60, %v17338_v46  ;;  %v14153_v46 = vld [vmem:[%s19238_s1 + $0x348] sm:$0xff]   ;;  %v14154_v60 = vld [vmem:[%s19238_s1 + $0x350] sm:$0xff]  }
 0x6e2   :  { %13261 = vmatmul.mubr.bf16.gmra.mrb[4].mxu0 %v14139_v15 }
 0x6e3   :  { %13264 = vmatprep.mubr.bf16.mxu0 %v14140_v22  ;;  %v13870_v22 = vld [vmem:[%s19244_s8 + $0x1a8] sm:$0xff]  }
 0x6e4   :  { %9213 = vmatmul.mubr.bf16.gmra.mrb[136].mxu1 %v7226_v26 }
 0x6e5   :  { %9220 = vmatprep.mubr.bf16.mxu1 %v7243_v47  ;;  %v17357_v45 = vpop.f32.mrb[156].mxu0 }
 0x6e6   :  { %v17359_v43 = vpop.f32.mrb[157].mxu0 }
 0x6e7   :  { %v17361_v37 = vpop.f32.mrb[158].mxu0 }
 0x6e8   :  { %v7259_v62 = vpack.c.bf16 %v17361_v37, %v17357_v45  ;;  %v17365_v7 = vpop.f32.mrb[159].mxu0  ;;  %v13877_v45 = vld [vmem:[%s19244_s8 + $0x248] sm:$0xff]   ;;  %v14160_v37 = vld [vmem:[%s19238_s1 + $0x380] sm:$0xff]  }
 0x6e9   :  { %v7258_v2 = vpack.c.bf16 %v17365_v7, %v17359_v43  ;;  %v14157_v43 = vld [vmem:[%s19238_s1 + $0x368] sm:$0xff]   ;;  %v14158_v7 = vld [vmem:[%s19238_s1 + $0x370] sm:$0xff]  }
 0x6ea   :  { %13265 = vmatmul.mubr.bf16.gmra.mrb[8].mxu0 %v14141_v54 }
 0x6eb   :  { %13268 = vmatprep.mubr.bf16.mxu0 %v14142_v24  ;;  %v13871_v24 = vld [vmem:[%s19244_s8 + $0x1f0] sm:$0xff]  }
 0x6ec   :  { %9221 = vmatmul.mubr.bf16.gmra.mrb[140].mxu1 %v7227_v35 }
 0x6ed   :  { %v13162_v26 = vpop.f32.mrb[160].mxu0 }
 0x6ee   :  { %v6229_v38 = vpop.f32.mrb[161].mxu0 }
 0x6ef   :  { %v13163_v44 = vpop.f32.mrb[162].mxu0 }
 0x6f0   :  { %v7269_v30 = vpack.c.bf16 %v13163_v44, %v13162_v26  ;;  %v6232_v63 = vpop.f32.mrb[163].mxu0 }
 0x6f1   :  { %v7268_v50 = vpack.c.bf16 %v6232_v63, %v6229_v38  ;;  %v14150_v63 = vld [vmem:[%s19238_s1 + $0x330] sm:$0xff]  }
 0x6f2   :  { %13269 = vmatmul.mubr.bf16.gmra.mrb[12].mxu0 %v14143_v40 }
 0x6f3   :  { %9261 = vmatprep.mubr.bf16.mxu1 %v7268_v50  ;;  %13272 = vmatprep.mubr.bf16.mxu0 %v14144_v6 }
 0x6f4   :  { %9262 = vmatmul.mubr.bf16.vlgmr.msra.gmra.mrb[144].mxu1 %v7252_v12 }
 0x6f5   :  { %9269 = vmatprep.mubr.bf16.mxu1 %v7269_v30  ;;  %v13166_v35 = vpop.f32.mrb[164].mxu0  ;;  %12185 = vmatpush3.bf16.msra.mxu1 %v13859_v27  ;;  %v13873_v30 = vld [vmem:[%s19244_s8 + $0x1f8] sm:$0xff]  }
 0x6f6   :  { %v6245_v8 = vpop.f32.mrb[165].mxu0  ;;  %12186 = vmatprep.subr.bf16.mxu1 %v13861_v56  ;;  %v13874_v27 = vld [vmem:[%s19244_s8 + $0x1b8] sm:$0xff]   ;;  %v13875_v56 = vld [vmem:[%s19244_s8 + $0x240] sm:$0xff]  }
 0x6f7   :  { %v13167_v47 = vpop.f32.mrb[166].mxu0 }
 0x6f8   :  { %v7271_v34 = vpack.c.bf16 %v13167_v47, %v13166_v35  ;;  %v6248_v21 = vpop.f32.mrb[167].mxu0  ;;  %v14151_v35 = vld [vmem:[%s19238_s1 + $0x338] sm:$0xff]  }
 0x6f9   :  { %v7270_v4 = vpack.c.bf16 %v6248_v21, %v6245_v8  ;;  %12187 = vmatpush3.bf16.msra.mxu1 %v13862_v55  ;;  %v14152_v55 = vld [vmem:[%s19238_s1 + $0x340] sm:$0xff]  }
 0x6fa   :  { %13273 = vmatmul.mubr.bf16.gmra.mrb[16].mxu0 %v14145_v42  ;;  %12188 = vmatprep.subr.bf16.mxu1 %v13863_v39 }
 0x6fb   :  { %13276 = vmatprep.mubr.bf16.mxu0 %v14146_v29 }
 0x6fc   :  { %9270 = vmatmul.mubr.bf16.gmra.mrb[148].mxu1 %v7253_v14  ;;  %v13869_v14 = vld [vmem:[%s19244_s8 + $0x1e8] sm:$0xff]  }
 0x6fd   :  { %9277 = vmatprep.mubr.bf16.mxu1 %v7270_v4  ;;  %v13170_v32 = vpop.f32.mrb[168].mxu0  ;;  %12189 = vmatpush3.bf16.msra.mxu1 %v13864_v51  ;;  %v13902_v51 = vld [vmem:[%s19244_s8 + $0x520] sm:$0xff]  }
 0x6fe   :  { %v6261_v36 = vpop.f32.mrb[169].mxu0  ;;  %12190 = vmatprep.subr.bf16.mxu1 %v13865_v28  ;;  %13408 = vmatprep.subr.bf16.mxu0 %v13902_v51 }
 0x6ff   :  { %v13171_v12 = vpop.f32.mrb[170].mxu0  ;;  %13409 = vmatpush3.bf16.msra.mxu0 %v13902_v51  ;;  %v14164_v51 = vld [vmem:[%s19238_s1 + $0x3a0] sm:$0xff]  }
 0x700   :  { %v7273_v59 = vpack.c.bf16 %v13171_v12, %v13170_v32  ;;  %v6264_v3 = vpop.f32.mrb[171].mxu0 }
 0x701   :  { %v7272_v20 = vpack.c.bf16 %v6264_v3, %v6261_v36  ;;  %12191 = vmatpush3.bf16.msra.mxu1 %v13866_v57 }
 0x702   :  { %13277 = vmatmul.mubr.bf16.gmra.mrb[20].mxu0 %v14147_v11  ;;  %12192 = vmatprep.subr.bf16.mxu1 %v13867_v52 }
 0x703   :  { %13280 = vmatprep.mubr.bf16.mxu0 %v14148_v17 }
 0x704   :  { %9278 = vmatmul.mubr.bf16.gmra.mrb[152].mxu1 %v7254_v58  ;;  %v14149_v58 = vld [vmem:[%s19238_s1 + $0x328] sm:$0xff]  }
 0x705   :  { %9285 = vmatprep.mubr.bf16.mxu1 %v7271_v34  ;;  %v17432_v15 = vpop.f32.mrb[172].mxu0  ;;  %12193 = vmatpush3.bf16.msra.mxu1 %v13868_v49 }
 0x706   :  { %v6277_v54 = vpop.f32.mrb[173].mxu0  ;;  %12194 = vmatprep.subr.bf16.mxu1 %v13869_v14 }
 0x707   :  { %v13175_v26 = vpop.f32.mrb[174].mxu0 }
 0x708   :  { %v7275_v38 = vpack.c.bf16 %v13175_v26, %v17432_v15  ;;  %v6280_v44 = vpop.f32.mrb[175].mxu0  ;;  %v13876_v15 = vld [vmem:[%s19244_s8 + $0x200] sm:$0xff]   ;;  %v13879_v26 = vld [vmem:[%s19244_s8 + $0x250] sm:$0xff]  }
 0x709   :  { %v7274_v19 = vpack.c.bf16 %v6280_v44, %v6277_v54  ;;  %12195 = vmatpush3.bf16.msra.mxu1 %v13870_v22  ;;  %v14159_v22 = vld [vmem:[%s19238_s1 + $0x378] sm:$0xff]   ;;  %v13878_v54 = vld [vmem:[%s19244_s8 + $0x208] sm:$0xff]  }
 0x70a   :  { %13281 = vmatmul.mubr.bf16.gmra.mrb[24].mxu0 %v14149_v58  ;;  %12196 = vmatprep.subr.bf16.mxu1 %v13871_v24  ;;  %v13880_v58 = vld [vmem:[%s19244_s8 + $0x210] sm:$0xff]  }
 0x70b   :  { %13284 = vmatprep.mubr.bf16.mxu0 %v14150_v63  ;;  %v13882_v63 = vld [vmem:[%s19244_s8 + $0x258] sm:$0xff]  }
 0x70c   :  { %9286 = vmatmul.mubr.bf16.gmra.mrb[156].mxu1 %v7255_v0 }
 0x70d   :  { %9293 = vmatprep.mubr.bf16.mxu1 %v7272_v20  ;;  %v17456_v50 = vpop.f32.mrb[176].mxu0  ;;  %12197 = vmatpush3.bf16.msra.mxu1 %v13872_v16 }
 0x70e   :  { %v17461_v40 = vpop.f32.mrb[177].mxu0  ;;  %12198 = vmatprep.subr.bf16.mxu1 %v13873_v30  ;;  %v14161_v30 = vld [vmem:[%s19238_s1 + $0x388] sm:$0xff]  }
 0x70f   :  { %v17466_v6 = vpop.f32.mrb[178].mxu0 }
 0x710   :  { %v7285_v33 = vpack.c.bf16 %v17466_v6, %v17456_v50  ;;  %v6296_v48 = vpop.f32.mrb[179].mxu0 }
 0x711   :  { %v7284_v0 = vpack.c.bf16 %v6296_v48, %v17461_v40  ;;  %12199 = vmatpush3.bf16.msra.mxu1 %v13874_v27  ;;  %v14162_v27 = vld [vmem:[%s19238_s1 + $0x390] sm:$0xff]  }
 0x712   :  { %13285 = vmatmul.mubr.bf16.gmra.mrb[28].mxu0 %v14151_v35  ;;  %12248 = vmatprep.subr.bf16.mxu1 %v13875_v56  ;;  %v13883_v56 = vld [vmem:[%s19244_s8 + $0x218] sm:$0xff]  }
 0x713   :  { %13288 = vmatprep.mubr.bf16.mxu0 %v14152_v55  ;;  %v13885_v55 = vld [vmem:[%s19244_s8 + $0x220] sm:$0xff]  }
 0x714   :  { %9294 = vmatmul.mubr.bf16.gmra.mrb[160].mxu1 %v7256_v23 }
 0x715   :  { %9301 = vmatprep.mubr.bf16.mxu1 %v7273_v59  ;;  %v17480_v8 = vpop.f32.mrb[180].mxu0 }
 0x716   :  { %v17482_v39 = vpop.f32.mrb[181].mxu0 }
 0x717   :  { %v17484_v47 = vpop.f32.mrb[182].mxu0 }
 0x718   :  { %v7287_v34 = vpack.c.bf16 %v17484_v47, %v17480_v8  ;;  %v17488_v21 = vpop.f32.mrb[183].mxu0 }
 0x719   :  { %v7286_v4 = vpack.c.bf16 %v17488_v21, %v17482_v39 }
 0x71a   :  { %13289 = vmatmul.mubr.bf16.gmra.mrb[32].mxu0 %v14153_v46  ;;  %v14163_v46 = vld [vmem:[%s19238_s1 + $0x398] sm:$0xff]  }
 0x71b   :  { %13292 = vmatprep.mubr.bf16.mxu0 %v14154_v60  ;;  %v13886_v60 = vld [vmem:[%s19244_s8 + $0x268] sm:$0xff]  }
 0x71c   :  { %9302 = vmatmul.mubr.bf16.gmra.mrb[164].mxu1 %v7257_v10  ;;  %v14156_v10 = vld [vmem:[%s19238_s1 + $0x360] sm:$0xff]  }
 0x71d   :  { %9309 = vmatprep.mubr.bf16.mxu1 %v7274_v19  ;;  %v17501_v23 = vpop.f32.mrb[184].mxu0 }
 0x71e   :  { %v17506_v42 = vpop.f32.mrb[185].mxu0 }
 0x71f   :  { %v17508_v28 = vpop.f32.mrb[186].mxu0 }
 0x720   :  { %v7289_v29 = vpack.c.bf16 %v17508_v28, %v17501_v23  ;;  %v17512_v32 = vpop.f32.mrb[187].mxu0  ;;  %v14171_v28 = vld [vmem:[%s19238_s1 + $0x3d8] sm:$0xff]  }
 0x721   :  { %v7288_v53 = vpack.c.bf16 %v17512_v32, %v17506_v42  ;;  %v14169_v32 = vld [vmem:[%s19238_s1 + $0x3c8] sm:$0xff]  }
 0x722   :  { %13293 = vmatmul.mubr.bf16.gmra.mrb[36].mxu0 %v14155_v61 }
 0x723   :  { %13296 = vmatprep.mubr.bf16.mxu0 %v14156_v10  ;;  %v13887_v10 = vld [vmem:[%s19244_s8 + $0x228] sm:$0xff]  }
 0x724   :  { %9310 = vmatmul.mubr.bf16.gmra.mrb[168].mxu1 %v7258_v2 }
 0x725   :  { %9317 = vmatprep.mubr.bf16.mxu1 %v7275_v38  ;;  %v17525_v57 = vpop.f32.mrb[188].mxu0 }
 0x726   :  { %v17527_v36 = vpop.f32.mrb[189].mxu0 }
 0x727   :  { %v17529_v52 = vpop.f32.mrb[190].mxu0 }
 0x728   :  { %v7291_v12 = vpack.c.bf16 %v17529_v52, %v17525_v57  ;;  %v17533_v59 = vpop.f32.mrb[191].mxu0 }
 0x729   :  { %v7290_v3 = vpack.c.bf16 %v17533_v59, %v17527_v36 }
 0x72a   :  { %13297 = vmatmul.mubr.bf16.gmra.mrb[40].mxu0 %v14157_v43 }
 0x72b   :  { %13300 = vmatprep.mubr.bf16.mxu0 %v14158_v7  ;;  %v13888_v7 = vld [vmem:[%s19244_s8 + $0x270] sm:$0xff]  }
 0x72c   :  { %9318 = vmatmul.mubr.bf16.gmra.mrb[172].mxu1 %v7259_v62 }
 0x72d   :  { %v13194_v2 = vpop.f32.mrb[192].mxu0 }
 0x72e   :  { %v6357_v20 = vpop.f32.mrb[193].mxu0 }
 0x72f   :  { %v13195_v49 = vpop.f32.mrb[194].mxu0 }
 0x730   :  { %v7301_v11 = vpack.c.bf16 %v13195_v49, %v13194_v2  ;;  %v6360_v14 = vpop.f32.mrb[195].mxu0 }
 0x731   :  { %v7300_v17 = vpack.c.bf16 %v6360_v14, %v6357_v20 }
 0x732   :  { %13301 = vmatmul.mubr.bf16.gmra.mrb[44].mxu0 %v14159_v22 }
 0x733   :  { %9358 = vmatprep.mubr.bf16.mxu1 %v7300_v17  ;;  %13304 = vmatprep.mubr.bf16.mxu0 %v14160_v37  ;;  %v13889_v17 = vld [vmem:[%s19244_s8 + $0x230] sm:$0xff]  }
 0x734   :  { %9359 = vmatmul.mubr.bf16.vlgmr.msra.gmra.mrb[176].mxu1 %v7284_v0  ;;  %v13884_v0 = vld [vmem:[%s19244_s8 + $0x260] sm:$0xff]  }
 0x735   :  { %9366 = vmatprep.mubr.bf16.mxu1 %v7301_v11  ;;  %v13198_v62 = vpop.f32.mrb[196].mxu0  ;;  %12249 = vmatpush3.bf16.msra.mxu1 %v13876_v15  ;;  %v14165_v15 = vld [vmem:[%s19238_s1 + $0x3a8] sm:$0xff]  }
 0x736   :  { %v6373_v24 = vpop.f32.mrb[197].mxu0  ;;  %12250 = vmatprep.subr.bf16.mxu1 %v13877_v45  ;;  %v13890_v45 = vld [vmem:[%s19244_s8 + $0x278] sm:$0xff]  }
 0x737   :  { %v13199_v38 = vpop.f32.mrb[198].mxu0 }
 0x738   :  { %v7303_v44 = vpack.c.bf16 %v13199_v38, %v13198_v62  ;;  %v6376_v19 = vpop.f32.mrb[199].mxu0  ;;  %v14166_v62 = vld [vmem:[%s19238_s1 + $0x3b0] sm:$0xff]   ;;  %v13892_v38 = vld [vmem:[%s19244_s8 + $0x2c0] sm:$0xff]  }
 0x739   :  { %v7302_v16 = vpack.c.bf16 %v6376_v19, %v6373_v24  ;;  %12251 = vmatpush3.bf16.msra.mxu1 %v13878_v54  ;;  %v13891_v24 = vld [vmem:[%s19244_s8 + $0x238] sm:$0xff]  }
 0x73a   :  { %13305 = vmatmul.mubr.bf16.gmra.mrb[48].mxu0 %v14161_v30  ;;  %12252 = vmatprep.subr.bf16.mxu1 %v13879_v26 }
 0x73b   :  { %13308 = vmatprep.mubr.bf16.mxu0 %v14162_v27 }
 0x73c   :  { %9367 = vmatmul.mubr.bf16.gmra.mrb[180].mxu1 %v7285_v33 }
 0x73d   :  { %9374 = vmatprep.mubr.bf16.mxu1 %v7302_v16  ;;  %v17579_v40 = vpop.f32.mrb[200].mxu0  ;;  %12253 = vmatpush3.bf16.msra.mxu1 %v13880_v58 }
 0x73e   :  { %v6389_v48 = vpop.f32.mrb[201].mxu0  ;;  %12254 = vmatprep.subr.bf16.mxu1 %v13882_v63  ;;  %v14167_v63 = vld [vmem:[%s19238_s1 + $0x3b8] sm:$0xff]  }
 0x73f   :  { %v17587_v35 = vpop.f32.mrb[202].mxu0 }
 0x740   :  { %v7305_v50 = vpack.c.bf16 %v17587_v35, %v17579_v40  ;;  %v6392_v6 = vpop.f32.mrb[203].mxu0 }
 0x741   :  { %v7304_v33 = vpack.c.bf16 %v6392_v6, %v6389_v48  ;;  %12255 = vmatpush3.bf16.msra.mxu1 %v13883_v56  ;;  %v14168_v56 = vld [vmem:[%s19238_s1 + $0x3c0] sm:$0xff]  }
 0x742   :  { %13309 = vmatmul.mubr.bf16.gmra.mrb[52].mxu0 %v14163_v46  ;;  %12256 = vmatprep.subr.bf16.mxu1 %v13884_v0 }
 0x743   :  { %13312 = vmatprep.mubr.bf16.mxu0 %v14164_v51 }
 0x744   :  { %9375 = vmatmul.mubr.bf16.gmra.mrb[184].mxu1 %v7286_v4 }
 0x745   :  { %9382 = vmatprep.mubr.bf16.mxu1 %v7303_v44  ;;  %v17606_v61 = vpop.f32.mrb[204].mxu0  ;;  %12257 = vmatpush3.bf16.msra.mxu1 %v13885_v55 }
 0x746   :  { %v17611_v43 = vpop.f32.mrb[205].mxu0  ;;  %12258 = vmatprep.subr.bf16.mxu1 %v13886_v60 }
 0x747   :  { %v12008_v2 = vpop.f32.mrb[80].mxu1  ;;  %v17616_v20 = vpop.f32.mrb[206].mxu0 }
 0x748   :  { %v12009_v39 = vpop.f32.mrb[81].mxu1  ;;  %v7307_v21 = vpack.c.bf16 %v17616_v20, %v17606_v61  ;;  %v6408_v4 = vpop.f32.mrb[207].mxu0 }
 0x749   :  { %v17620_v49 = vadd.f32 %v12009_v39, %v12008_v2  ;;  %v12011_v11 = vpop.f32.mrb[82].mxu1  ;;  %v7306_v14 = vpack.c.bf16 %v6408_v4, %v17611_v43  ;;  %12259 = vmatpush3.bf16.msra.mxu1 %v13887_v10  ;;  %v14170_v10 = vld [vmem:[%s19238_s1 + $0x3d0] sm:$0xff]  }
 0x74a   :  { %13313 = vmatmul.mubr.bf16.gmra.mrb[56].mxu0 %v14165_v15  ;;  %v12012_v22 = vpop.f32.mrb[83].mxu1  ;;  %12260 = vmatprep.subr.bf16.mxu1 %v13888_v7 }
 0x74b   :  { %v17632_v37 = vadd.f32 %v12012_v22, %v12011_v11  ;;  %13316 = vmatprep.mubr.bf16.mxu0 %v14166_v62 }
 0x74c   :  { %9383 = vmatmul.mubr.bf16.gmra.mrb[188].mxu1 %v7287_v34 }
 0x74d   :  { %9390 = vmatprep.mubr.bf16.mxu1 %v7304_v33  ;;  %v17640_v54 = vpop.f32.mrb[208].mxu0  ;;  %12261 = vmatpush3.bf16.msra.mxu1 %v13889_v17 }
 0x74e   :  { %v17645_v26 = vpop.f32.mrb[209].mxu0  ;;  %12262 = vmatprep.subr.bf16.mxu1 %v13890_v45  ;;  %v14172_v45 = vld [vmem:[%s19238_s1 + $0x3e0] sm:$0xff]  }
 0x74f   :  { %v12014_v44 = vpop.f32.mrb[84].mxu1  ;;  %v17650_v19 = vpop.f32.mrb[210].mxu0 }
 0x750   :  { %v12015_v8 = vpop.f32.mrb[85].mxu1  ;;  %v7317_v47 = vpack.c.bf16 %v17650_v19, %v17640_v54  ;;  %v17654_v34 = vpop.f32.mrb[211].mxu0 }
 0x751   :  { %v17656_v16 = vadd.f32 %v12015_v8, %v12014_v44  ;;  %v12017_v58 = vpop.f32.mrb[86].mxu1  ;;  %v7316_v30 = vpack.c.bf16 %v17654_v34, %v17645_v26  ;;  %12263 = vmatpush3.bf16.msra.mxu1 %v13891_v24 }
 0x752   :  { %13317 = vmatmul.mubr.bf16.gmra.mrb[60].mxu0 %v14167_v63  ;;  %v12018_v27 = vpop.f32.mrb[87].mxu1  ;;  %12312 = vmatprep.subr.bf16.mxu1 %v13892_v38 }
 0x753   :  { %v17663_v40 = vadd.f32 %v12018_v27, %v12017_v58  ;;  %13320 = vmatprep.mubr.bf16.mxu0 %v14168_v56  ;;  %v13923_v56 = vld [vmem:[%s19244_s8 + $0x528] sm:$0xff]  }
 0x754   :  { %9391 = vmatmul.mubr.bf16.gmra.mrb[192].mxu1 %v7288_v53  ;;  %13410 = vmatprep.subr.bf16.mxu0 %v13923_v56 }
 0x755   :  { %9398 = vmatprep.mubr.bf16.mxu1 %v7305_v50  ;;  %v17671_v48 = vpop.f32.mrb[212].mxu0  ;;  %13411 = vmatpush3.bf16.msra.mxu0 %v13923_v56  ;;  %v13896_v56 = vld [vmem:[%s19244_s8 + $0x2d0] sm:$0xff]  }
 0x756   :  { %v17673_v0 = vpop.f32.mrb[213].mxu0 }
 0x757   :  { %v12020_v35 = vpop.f32.mrb[88].mxu1  ;;  %v17675_v6 = vpop.f32.mrb[214].mxu0 }
 0x758   :  { %v12021_v33 = vpop.f32.mrb[89].mxu1  ;;  %v7319_v55 = vpack.c.bf16 %v17675_v6, %v17671_v48  ;;  %v17679_v46 = vpop.f32.mrb[215].mxu0 }
 0x759   :  { %v17681_v60 = vadd.f32 %v12021_v33, %v12020_v35  ;;  %v12023_v51 = vpop.f32.mrb[90].mxu1  ;;  %v7318_v42 = vpack.c.bf16 %v17679_v46, %v17673_v0  ;;  %v13905_v0 = vld [vmem:[%s19244_s8 + $0x2f0] sm:$0xff]  }
 0x75a   :  { %13321 = vmatmul.mubr.bf16.gmra.mrb[64].mxu0 %v14169_v32  ;;  %v12024_v53 = vpop.f32.mrb[91].mxu1 }
 0x75b   :  { %v17688_v50 = vadd.f32 %v12024_v53, %v12023_v51  ;;  %13324 = vmatprep.mubr.bf16.mxu0 %v14170_v10 }
 0x75c   :  { %9399 = vmatmul.mubr.bf16.gmra.mrb[196].mxu1 %v7289_v29 }
 0x75d   :  { %9406 = vmatprep.mubr.bf16.mxu1 %v7306_v14  ;;  %v17696_v43 = vpop.f32.mrb[216].mxu0 }
 0x75e   :  { %v17698_v7 = vpop.f32.mrb[217].mxu0 }
 0x75f   :  { %v12026_v2 = vpop.f32.mrb[92].mxu1  ;;  %v17700_v39 = vpop.f32.mrb[218].mxu0 }
 0x760   :  { %v12027_v4 = vpop.f32.mrb[93].mxu1  ;;  %v7321_v11 = vpack.c.bf16 %v17700_v39, %v17696_v43  ;;  %v17704_v17 = vpop.f32.mrb[219].mxu0 }
 0x761   :  { %v17706_v15 = vadd.f32 %v12027_v4, %v12026_v2  ;;  %v12029_v22 = vpop.f32.mrb[94].mxu1  ;;  %v7320_v23 = vpack.c.bf16 %v17704_v17, %v17698_v7  ;;  %v13926_v4 = vld [vmem:[%s19244_s8 + $0x530] sm:$0xff]  }
 0x762   :  { %13325 = vmatmul.mubr.bf16.gmra.mrb[68].mxu0 %v14171_v28  ;;  %v12030_v29 = vpop.f32.mrb[95].mxu1  ;;  %v14175_v28 = vld [vmem:[%s19238_s1 + $0x3f8] sm:$0xff]   ;;  %13412 = vmatprep.subr.bf16.mxu0 %v13926_v4 }
 0x763   :  { %v17713_v14 = vadd.f32 %v12030_v29, %v12029_v22  ;;  %13328 = vmatprep.mubr.bf16.mxu0 %v14172_v45  ;;  %v13894_v45 = vld [vmem:[%s19244_s8 + $0x2c8] sm:$0xff]   ;;  %13413 = vmatpush3.bf16.msra.mxu0 %v13926_v4 }
 0x764   :  { %9407 = vmatmul.mubr.bf16.gmra.mrb[200].mxu1 %v7290_v3  ;;  %v14173_v3 = vld [vmem:[%s19238_s1 + $0x3e8] sm:$0xff]  }
 0x765   :  { %9414 = vmatprep.mubr.bf16.mxu1 %v7307_v21  ;;  %v17724_v62 = vpop.f32.mrb[220].mxu0  ;;  %v14174_v21 = vld [vmem:[%s19238_s1 + $0x3f0] sm:$0xff]  }
 0x766   :  { %v17726_v24 = vpop.f32.mrb[221].mxu0 }
 0x767   :  { %v12032_v38 = vpop.f32.mrb[96].mxu1  ;;  %v17728_v44 = vpop.f32.mrb[222].mxu0 }
 0x768   :  { %v12033_v8 = vpop.f32.mrb[97].mxu1  ;;  %v7323_v58 = vpack.c.bf16 %v17728_v44, %v17724_v62  ;;  %v17732_v63 = vpop.f32.mrb[223].mxu0  ;;  %v13910_v62 = vld [vmem:[%s19244_s8 + $0x300] sm:$0xff]   ;;  %v14191_v44 = vld [vmem:[%s19238_s1 + $0x478] sm:$0xff]  }
 0x769   :  { %v17734_v27 = vadd.f32 %v12033_v8, %v12032_v38  ;;  %v12035_v36 = vpop.f32.mrb[98].mxu1  ;;  %v7322_v59 = vpack.c.bf16 %v17732_v63, %v17726_v24  ;;  %v14176_v8 = vld [vmem:[%s19238_s1 + $0x400] sm:$0xff]  }
 0x76a   :  { %13329 = vmatmul.mubr.bf16.gmra.mrb[72].mxu0 %v14173_v3  ;;  %v12036_v61 = vpop.f32.mrb[99].mxu1 }
 0x76b   :  { %v17741_v20 = vadd.f32 %v12036_v61, %v12035_v36  ;;  %13332 = vmatprep.mubr.bf16.mxu0 %v14174_v21  ;;  %v13927_v36 = vld [vmem:[%s19244_s8 + $0x538] sm:$0xff]   ;;  %v13895_v61 = vld [vmem:[%s19244_s8 + $0x288] sm:$0xff]  }
 0x76c   :  { %9415 = vmatmul.mubr.bf16.gmra.mrb[204].mxu1 %v7291_v12  ;;  %v13893_v12 = vld [vmem:[%s19244_s8 + $0x280] sm:$0xff]   ;;  %13414 = vmatprep.subr.bf16.mxu0 %v13927_v36 }
 0x76d   :  { %v13226_v35 = vpop.f32.mrb[224].mxu0  ;;  %13415 = vmatpush3.bf16.msra.mxu0 %v13927_v36 }
 0x76e   :  { %v6485_v33 = vpop.f32.mrb[225].mxu0 }
 0x76f   :  { %v13227_v51 = vpop.f32.mrb[226].mxu0  ;;  %v12038_v32 = vpop.f32.mrb[100].mxu1 }
 0x770   :  { %v7333_v53 = vpack.c.bf16 %v13227_v51, %v13226_v35  ;;  %v6488_v10 = vpop.f32.mrb[227].mxu0  ;;  %v12039_v2 = vpop.f32.mrb[101].mxu1 }
 0x771   :  { %v7332_v22 = vpack.c.bf16 %v6488_v10, %v6485_v33  ;;  %v17755_v57 = vadd.f32 %v12039_v2, %v12038_v32  ;;  %v12041_v52 = vpop.f32.mrb[102].mxu1  ;;  %v13897_v10 = vld [vmem:[%s19244_s8 + $0x290] sm:$0xff]   ;;  %v14177_v2 = vld [vmem:[%s19238_s1 + $0x408] sm:$0xff]  }
 0x772   :  { %13333 = vmatmul.mubr.bf16.gmra.mrb[76].mxu0 %v14175_v28  ;;  %v12042_v29 = vpop.f32.mrb[103].mxu1 }
 0x773   :  { %v17766_v38 = vadd.f32 %v12042_v29, %v12041_v52  ;;  %9455 = vmatprep.mubr.bf16.mxu1 %v7332_v22  ;;  %13336 = vmatprep.mubr.bf16.mxu0 %v14176_v8  ;;  %v13898_v22 = vld [vmem:[%s19244_s8 + $0x2d8] sm:$0xff]   ;;  %v13900_v8 = vld [vmem:[%s19244_s8 + $0x2e0] sm:$0xff]  }
 0x774   :  { %9456 = vmatmul.mubr.bf16.vlgmr.msra.gmra.mrb[208].mxu1 %v7316_v30  ;;  %v13899_v29 = vld [vmem:[%s19244_s8 + $0x298] sm:$0xff]  }
 0x775   :  { %9463 = vmatprep.mubr.bf16.mxu1 %v7333_v53  ;;  %v13230_v3 = vpop.f32.mrb[228].mxu0  ;;  %12313 = vmatpush3.bf16.msra.mxu1 %v13893_v12  ;;  %v14178_v12 = vld [vmem:[%s19238_s1 + $0x410] sm:$0xff]  }
 0x776   :  { %v6501_v21 = vpop.f32.mrb[229].mxu0  ;;  %12314 = vmatprep.subr.bf16.mxu1 %v13894_v45 }
 0x777   :  { %v12044_v26 = vpop.f32.mrb[104].mxu1  ;;  %v13231_v34 = vpop.f32.mrb[230].mxu0 }
 0x778   :  { %v12045_v30 = vpop.f32.mrb[105].mxu1  ;;  %v7335_v35 = vpack.c.bf16 %v13231_v34, %v13230_v3  ;;  %v6504_v33 = vpop.f32.mrb[231].mxu0  ;;  %v14179_v34 = vld [vmem:[%s19238_s1 + $0x418] sm:$0xff]  }
 0x779   :  { %v17783_v51 = vadd.f32 %v12045_v30, %v12044_v26  ;;  %v12047_v32 = vpop.f32.mrb[106].mxu1  ;;  %v7334_v53 = vpack.c.bf16 %v6504_v33, %v6501_v21  ;;  %12315 = vmatpush3.bf16.msra.mxu1 %v13895_v61  ;;  %v13901_v26 = vld [vmem:[%s19244_s8 + $0x2a0] sm:$0xff]   ;;  %v13903_v33 = vld [vmem:[%s19244_s8 + $0x2e8] sm:$0xff]  }
 0x77a   :  { %13337 = vmatmul.mubr.bf16.gmra.mrb[80].mxu0 %v14177_v2  ;;  %v12048_v4 = vpop.f32.mrb[107].mxu1  ;;  %12316 = vmatprep.subr.bf16.mxu1 %v13896_v56  ;;  %v13904_v2 = vld [vmem:[%s19244_s8 + $0x2a8] sm:$0xff]  }
 0x77b   :  { %v17794_v52 = vadd.f32 %v12048_v4, %v12047_v32  ;;  %13340 = vmatprep.mubr.bf16.mxu0 %v14178_v12  ;;  %v17841_v4 = vld [vmem:[%s19245_s9] ss:$0 sm:$0xff] }
 0x77c   :  { %9464 = vmatmul.mubr.bf16.gmra.mrb[212].mxu1 %v7317_v47  ;;  %v9086_v7 = vadd.f32 %v17681_v60, %v17841_v4  ;;  %v14186_v60 = vld [vmem:[%s19238_s1 + $0x450] sm:$0xff]   ;;  %v9094_v43 = vadd.f32 %v17706_v15, %v17841_v4  ;;  %v14188_v15 = vld [vmem:[%s19238_s1 + $0x460] sm:$0xff]   ;;  %v9102_v24 = vadd.f32 %v17734_v27, %v17841_v4 }
 0x77d   :  { %9471 = vmatprep.mubr.bf16.mxu1 %v7334_v53  ;;  %v17802_v28 = vpop.f32.mrb[232].mxu0  ;;  %12317 = vmatpush3.bf16.msra.mxu1 %v13897_v10  ;;  %v14180_v53 = vld [vmem:[%s19238_s1 + $0x420] sm:$0xff]  }
 0x77e   :  { %v6517_v45 = vpop.f32.mrb[233].mxu0  ;;  %12318 = vmatprep.subr.bf16.mxu1 %v13898_v22 }
 0x77f   :  { %v12050_v36 = vpop.f32.mrb[108].mxu1  ;;  %v17810_v3 = vpop.f32.mrb[234].mxu0 }
 0x780   :  { %v12051_v61 = vpop.f32.mrb[109].mxu1  ;;  %v7337_v54 = vpack.c.bf16 %v17810_v3, %v17802_v28  ;;  %v6520_v19 = vpop.f32.mrb[235].mxu0  ;;  %v14185_v3 = vld [vmem:[%s19238_s1 + $0x448] sm:$0xff]  }
 0x781   :  { %v17814_v47 = vadd.f32 %v12051_v61, %v12050_v36  ;;  %v12053_v21 = vpop.f32.mrb[110].mxu1  ;;  %v7336_v56 = vpack.c.bf16 %v6520_v19, %v6517_v45  ;;  %12319 = vmatpush3.bf16.msra.mxu1 %v13899_v29  ;;  %v9070_v45 = vadd.f32 %v17620_v49, %v17841_v4  ;;  %v13906_v19 = vld [vmem:[%s19244_s8 + $0x2b0] sm:$0xff]   ;;  %v13907_v49 = vld [vmem:[%s19244_s8 + $0x2f8] sm:$0xff]  }
 0x782   :  { %13341 = vmatmul.mubr.bf16.gmra.mrb[84].mxu0 %v14179_v34  ;;  %v12054_v30 = vpop.f32.mrb[111].mxu1  ;;  %12320 = vmatprep.subr.bf16.mxu1 %v13900_v8  ;;  %v9073_v34 = vadd.f32 %v17632_v37, %v17841_v4  ;;  %v13908_v37 = vld [vmem:[%s19244_s8 + $0x2b8] sm:$0xff]  }
 0x783   :  { %v17825_v32 = vadd.f32 %v12054_v30, %v12053_v21  ;;  %13344 = vmatprep.mubr.bf16.mxu0 %v14180_v53  ;;  %v14181_v21 = vld [vmem:[%s19238_s1 + $0x428] sm:$0xff]   ;;  %v14182_v53 = vld [vmem:[%s19238_s1 + $0x430] sm:$0xff]  }
 0x784   :  { %9472 = vmatmul.mubr.bf16.gmra.mrb[216].mxu1 %v7318_v42 }
 0x785   :  { %9479 = vmatprep.mubr.bf16.mxu1 %v7335_v35  ;;  %v17833_v10 = vpop.f32.mrb[236].mxu0  ;;  %12321 = vmatpush3.bf16.msra.mxu1 %v13901_v26 }
 0x786   :  { %v17843_v22 = vpop.f32.mrb[237].mxu0  ;;  %12322 = vmatprep.subr.bf16.mxu1 %v13903_v33 }
 0x787   :  { %v12072_v46 = vpop.f32.mrb[112].mxu1  ;;  %v17848_v42 = vpop.f32.mrb[238].mxu0 }
 0x788   :  { %v12073_v35 = vpop.f32.mrb[113].mxu1  ;;  %v7339_v12 = vpack.c.bf16 %v17848_v42, %v17833_v10  ;;  %v17852_v29 = vpop.f32.mrb[239].mxu0  ;;  %v14189_v42 = vld [vmem:[%s19238_s1 + $0x468] sm:$0xff]  }
 0x789   :  { %v12074_v8 = vadd.f32 %v12073_v35, %v12072_v46  ;;  %v12075_v36 = vpop.f32.mrb[114].mxu1  ;;  %v7338_v61 = vpack.c.bf16 %v17852_v29, %v17843_v22  ;;  %12323 = vmatpush3.bf16.msra.mxu1 %v13904_v2  ;;  %v13909_v35 = vld [vmem:[%s19244_s8 + $0x340] sm:$0xff]   ;;  %v14187_v29 = vld [vmem:[%s19238_s1 + $0x458] sm:$0xff]  }
 0x78a   :  { %13345 = vmatmul.mubr.bf16.gmra.mrb[88].mxu0 %v14181_v21  ;;  %v12076_v26 = vpop.f32.mrb[115].mxu1  ;;  %12324 = vmatprep.subr.bf16.mxu1 %v13905_v0 }
 0x78b   :  { %v17869_v30 = vadd.f32 %v12074_v8, %v9070_v45  ;;  %v12077_v33 = vadd.f32 %v12076_v26, %v12075_v36  ;;  %13348 = vmatprep.mubr.bf16.mxu0 %v14182_v53  ;;  %v9078_v8 = vadd.f32 %v17656_v16, %v17841_v4  ;;  %v14183_v26 = vld [vmem:[%s19238_s1 + $0x438] sm:$0xff]   ;;  %v14184_v16 = vld [vmem:[%s19238_s1 + $0x440] sm:$0xff]  }
 0x78c   :  { %9480 = vmatmul.mubr.bf16.gmra.mrb[220].mxu1 %v7319_v55 }
 0x78d   :  { %v17877_v2 = vadd.f32 %v12077_v33, %v9073_v34  ;;  %9487 = vmatprep.mubr.bf16.mxu1 %v7336_v56  ;;  %v17879_v0 = vpop.f32.mrb[240].mxu0  ;;  %12325 = vmatpush3.bf16.msra.mxu1 %v13906_v19  ;;  %v9081_v34 = vadd.f32 %v17663_v40, %v17841_v4 }
 0x78e   :  { %v17884_v46 = vpop.f32.mrb[241].mxu0  ;;  %12326 = vmatprep.subr.bf16.mxu1 %v13907_v49 }
 0x78f   :  { %v12078_v45 = vpop.f32.mrb[116].mxu1  ;;  %v17889_v48 = vpop.f32.mrb[242].mxu0 }
 0x790   :  { %v12079_v6 = vpop.f32.mrb[117].mxu1  ;;  %v7349_v55 = vpack.c.bf16 %v17889_v48, %v17879_v0  ;;  %v17893_v56 = vpop.f32.mrb[243].mxu0 }
 0x791   :  { %v12080_v36 = vadd.f32 %v12079_v6, %v12078_v45  ;;  %v12081_v19 = vpop.f32.mrb[118].mxu1  ;;  %v7348_v21 = vpack.c.bf16 %v17893_v56, %v17884_v46  ;;  %12327 = vmatpush3.bf16.msra.mxu1 %v13908_v37 }
 0x792   :  { %13349 = vmatmul.mubr.bf16.gmra.mrb[92].mxu0 %v14183_v26  ;;  %v12082_v49 = vpop.f32.mrb[119].mxu1  ;;  %12376 = vmatprep.subr.bf16.mxu1 %v13909_v35  ;;  %v9089_v26 = vadd.f32 %v17688_v50, %v17841_v4 }
 0x793   :  { %v17904_v33 = vadd.f32 %v12080_v36, %v9078_v8  ;;  %v12083_v53 = vadd.f32 %v12082_v49, %v12081_v19  ;;  %13352 = vmatprep.mubr.bf16.mxu0 %v14184_v16 }
 0x794   :  { %9488 = vmatmul.mubr.bf16.gmra.mrb[224].mxu1 %v7320_v23 }
 0x795   :  { %v17912_v37 = vadd.f32 %v12083_v53, %v9081_v34  ;;  %9495 = vmatprep.mubr.bf16.mxu1 %v7337_v54  ;;  %v17917_v35 = vpop.f32.mrb[244].mxu0 }
 0x796   :  { %v17919_v40 = vpop.f32.mrb[245].mxu0 }
 0x797   :  { %v12084_v45 = vpop.f32.mrb[120].mxu1  ;;  %v17921_v6 = vpop.f32.mrb[246].mxu0 }
 0x798   :  { %v12085_v8 = vpop.f32.mrb[121].mxu1  ;;  %v7351_v36 = vpack.c.bf16 %v17921_v6, %v17917_v35  ;;  %v17925_v19 = vpop.f32.mrb[247].mxu0 }
 0x799   :  { %v12086_v17 = vadd.f32 %v12085_v8, %v12084_v45  ;;  %v12087_v23 = vpop.f32.mrb[122].mxu1  ;;  %v7350_v28 = vpack.c.bf16 %v17925_v19, %v17919_v40 }
 0x79a   :  { %13353 = vmatmul.mubr.bf16.gmra.mrb[96].mxu0 %v14185_v3  ;;  %v12088_v54 = vpop.f32.mrb[123].mxu1  ;;  %v9097_v3 = vadd.f32 %v17713_v14, %v17841_v4 }
 0x79b   :  { %v17936_v49 = vadd.f32 %v12086_v17, %v9086_v7  ;;  %v12089_v34 = vadd.f32 %v12088_v54, %v12087_v23  ;;  %13356 = vmatprep.mubr.bf16.mxu0 %v14186_v60 }
 0x79c   :  { %9496 = vmatmul.mubr.bf16.gmra.mrb[228].mxu1 %v7321_v11 }
 0x79d   :  { %v17944_v53 = vadd.f32 %v12089_v34, %v9089_v26  ;;  %9503 = vmatprep.mubr.bf16.mxu1 %v7338_v61  ;;  %v17949_v16 = vpop.f32.mrb[248].mxu0 }
 0x79e   :  { %v17951_v50 = vpop.f32.mrb[249].mxu0 }
 0x79f   :  { %v12090_v45 = vpop.f32.mrb[124].mxu1  ;;  %v17953_v8 = vpop.f32.mrb[250].mxu0 }
 0x7a0   :  { %v12091_v7 = vpop.f32.mrb[125].mxu1  ;;  %v7353_v17 = vpack.c.bf16 %v17953_v8, %v17949_v16  ;;  %v17957_v23 = vpop.f32.mrb[251].mxu0 }
 0x7a1   :  { %v12092_v39 = vadd.f32 %v12091_v7, %v12090_v45  ;;  %v12093_v11 = vpop.f32.mrb[126].mxu1  ;;  %v7352_v22 = vpack.c.bf16 %v17957_v23, %v17951_v50 }
 0x7a2   :  { %13357 = vmatmul.mubr.bf16.gmra.mrb[100].mxu0 %v14187_v29  ;;  %v12094_v61 = vpop.f32.mrb[127].mxu1  ;;  %v9105_v29 = vadd.f32 %v17741_v20, %v17841_v4 }
 0x7a3   :  { %v17968_v54 = vadd.f32 %v12092_v39, %v9094_v43  ;;  %v12095_v26 = vadd.f32 %v12094_v61, %v12093_v11  ;;  %13360 = vmatprep.mubr.bf16.mxu0 %v14188_v15 }
 0x7a4   :  { %9504 = vmatmul.mubr.bf16.gmra.mrb[232].mxu1 %v7322_v59 }
 0x7a5   :  { %v17976_v34 = vadd.f32 %v12095_v26, %v9097_v3  ;;  %9511 = vmatprep.mubr.bf16.mxu1 %v7339_v12  ;;  %v17981_v60 = vpop.f32.mrb[252].mxu0  ;;  %v14190_v3 = vld [vmem:[%s19238_s1 + $0x470] sm:$0xff]  }
 0x7a6   :  { %v17983_v14 = vpop.f32.mrb[253].mxu0 }
 0x7a7   :  { %v12096_v45 = vpop.f32.mrb[128].mxu1  ;;  %v17985_v7 = vpop.f32.mrb[254].mxu0 }
 0x7a8   :  { %v12097_v43 = vpop.f32.mrb[129].mxu1  ;;  %v17989_v11 = vpop.f32.mrb[255].mxu0 }
 0x7a9   :  { %v12098_v63 = vadd.f32 %v12097_v43, %v12096_v45  ;;  %v12099_v59 = vpop.f32.mrb[130].mxu1 }
 0x7aa   :  { %13361 = vmatmul.mubr.bf16.gmra.mrb[104].mxu0 %v14189_v42  ;;  %v12100_v12 = vpop.f32.mrb[131].mxu1 }
 0x7ab   :  { %v12101_v61 = vadd.f32 %v12100_v12, %v12099_v59  ;;  %13364 = vmatprep.mubr.bf16.mxu0 %v14190_v3  ;;  %v18003_v27 = vadd.f32 %v12098_v63, %v9102_v24  ;;  %v9110_v12 = vadd.f32 %v17755_v57, %v17841_v4  ;;  %v13911_v63 = vld [vmem:[%s19244_s8 + $0x348] sm:$0xff]   ;;  %v9113_v57 = vadd.f32 %v17766_v38, %v17841_v4 }
 0x7ac   :  { %9512 = vmatmul.mubr.bf16.gmra.mrb[236].mxu1 %v7323_v58  ;;  %v13912_v38 = vld [vmem:[%s19244_s8 + $0x308] sm:$0xff]  }
 0x7ad   :  { %v13258_v26 = vpop.f32.mrb[0].mxu0  ;;  %v18008_v15 = vadd.f32 %v12101_v61, %v9105_v29  ;;  %v14192_v61 = vld [vmem:[%s19238_s1 + $0x480] sm:$0xff]  }
 0x7ae   :  { %v6613_v45 = vpop.f32.mrb[1].mxu0 }
 0x7af   :  { %v13259_v43 = vpop.f32.mrb[2].mxu0  ;;  %v12102_v42 = vpop.f32.mrb[132].mxu1 }
 0x7b0   :  { %v7365_v39 = vpack.c.bf16 %v13259_v43, %v13258_v26  ;;  %v6616_v20 = vpop.f32.mrb[3].mxu0  ;;  %v12103_v59 = vpop.f32.mrb[133].mxu1 }
 0x7b1   :  { %v7364_v10 = vpack.c.bf16 %v6616_v20, %v6613_v45  ;;  %v12104_v3 = vadd.f32 %v12103_v59, %v12102_v42  ;;  %v12105_v24 = vpop.f32.mrb[134].mxu1  ;;  %v13913_v42 = vld [vmem:[%s19244_s8 + $0x350] sm:$0xff]  }
 0x7b2   :  { %13365 = vmatmul.mubr.bf16.gmra.mrb[108].mxu0 %v14191_v44  ;;  %v12106_v58 = vpop.f32.mrb[135].mxu1  ;;  %v14193_v44 = vld [vmem:[%s19238_s1 + $0x488] sm:$0xff]  }
 0x7b3   :  { %v12107_v29 = vadd.f32 %v12106_v58, %v12105_v24  ;;  %9552 = vmatprep.mubr.bf16.mxu1 %v7364_v10  ;;  %13368 = vmatprep.mubr.bf16.mxu0 %v14192_v61  ;;  %v18026_v26 = vadd.f32 %v12104_v3, %v9110_v12 }
 0x7b4   :  { %9553 = vmatmul.mubr.bf16.vlgmr.msra.gmra.mrb[240].mxu1 %v7348_v21  ;;  %v9118_v21 = vadd.f32 %v17783_v51, %v17841_v4  ;;  %v9121_v51 = vadd.f32 %v17794_v52, %v17841_v4  ;;  %v13916_v52 = vld [vmem:[%s19244_s8 + $0x318] sm:$0xff]  }
 0x7b5   :  { %9560 = vmatprep.mubr.bf16.mxu1 %v7365_v39  ;;  %v13262_v45 = vpop.f32.mrb[4].mxu0  ;;  %12377 = vmatpush3.bf16.msra.mxu1 %v13910_v62  ;;  %v18034_v43 = vadd.f32 %v12107_v29, %v9113_v57  ;;  %v13914_v62 = vld [vmem:[%s19244_s8 + $0x310] sm:$0xff]  }
 0x7b6   :  { %v6629_v10 = vpop.f32.mrb[5].mxu0  ;;  %12378 = vmatprep.subr.bf16.mxu1 %v13911_v63  ;;  %v13915_v63 = vld [vmem:[%s19244_s8 + $0x358] sm:$0xff]   ;;  %v14194_v29 = vld [vmem:[%s19238_s1 + $0x490] sm:$0xff]  }
 0x7b7   :  { %v12108_v20 = vpop.f32.mrb[136].mxu1  ;;  %v13263_v59 = vpop.f32.mrb[6].mxu0 }
 0x7b8   :  { %v12109_v12 = vpop.f32.mrb[137].mxu1  ;;  %v7367_v46 = vpack.c.bf16 %v13263_v59, %v13262_v45  ;;  %v6632_v56 = vpop.f32.mrb[7].mxu0 }
 0x7b9   :  { %v12110_v39 = vadd.f32 %v12109_v12, %v12108_v20  ;;  %v12111_v3 = vpop.f32.mrb[138].mxu1  ;;  %v7366_v24 = vpack.c.bf16 %v6632_v56, %v6629_v10  ;;  %12379 = vmatpush3.bf16.msra.mxu1 %v13912_v38  ;;  %v9126_v12 = vadd.f32 %v17814_v47, %v17841_v4  ;;  %v9129_v47 = vadd.f32 %v17825_v32, %v17841_v4  ;;  %v13920_v32 = vld [vmem:[%s19244_s8 + $0x328] sm:$0xff]  }
 0x7ba   :  { %13369 = vmatmul.mubr.bf16.gmra.mrb[112].mxu0 %v14193_v44  ;;  %v12112_v58 = vpop.f32.mrb[139].mxu1  ;;  %12380 = vmatprep.subr.bf16.mxu1 %v13913_v42  ;;  %v13917_v42 = vld [vmem:[%s19244_s8 + $0x360] sm:$0xff]   ;;  %v13919_v44 = vld [vmem:[%s19244_s8 + $0x368] sm:$0xff]  }
 0x7bb   :  { %v12113_v57 = vadd.f32 %v12112_v58, %v12111_v3  ;;  %13372 = vmatprep.mubr.bf16.mxu0 %v14194_v29  ;;  %v18055_v61 = vadd.f32 %v12110_v39, %v9118_v21  ;;  %v13918_v3 = vld [vmem:[%s19244_s8 + $0x320] sm:$0xff]  }
 0x7bc   :  { %9561 = vmatmul.mubr.bf16.gmra.mrb[244].mxu1 %v7349_v55 }
 0x7bd   :  { %9568 = vmatprep.mubr.bf16.mxu1 %v7366_v24  ;;  %v18060_v45 = vpop.f32.mrb[8].mxu0  ;;  %12381 = vmatpush3.bf16.msra.mxu1 %v13914_v62  ;;  %v18065_v38 = vadd.f32 %v12113_v57, %v9121_v51  ;;  %v14195_v24 = vld [vmem:[%s19238_s1 + $0x498] sm:$0xff]  }
 0x7be   :  { %v6645_v10 = vpop.f32.mrb[9].mxu0  ;;  %12382 = vmatprep.subr.bf16.mxu1 %v13915_v63  ;;  %v14196_v63 = vld [vmem:[%s19238_s1 + $0x4a0] sm:$0xff]  }
 0x7bf   :  { %v12114_v20 = vpop.f32.mrb[140].mxu1  ;;  %v18070_v59 = vpop.f32.mrb[10].mxu0 }
 0x7c0   :  { %v12115_v0 = vpop.f32.mrb[141].mxu1  ;;  %v7369_v48 = vpack.c.bf16 %v18070_v59, %v18060_v45  ;;  %v6648_v55 = vpop.f32.mrb[11].mxu0 }
 0x7c1   :  { %v12116_v56 = vadd.f32 %v12115_v0, %v12114_v20  ;;  %v12117_v21 = vpop.f32.mrb[142].mxu1  ;;  %v7368_v39 = vpack.c.bf16 %v6648_v55, %v6645_v10  ;;  %12383 = vmatpush3.bf16.msra.mxu1 %v13916_v52  ;;  %v13921_v52 = vld [vmem:[%s19244_s8 + $0x370] sm:$0xff]  }
 0x7c2   :  { %13373 = vmatmul.mubr.bf16.gmra.mrb[116].mxu0 %v14195_v24  ;;  %v12118_v62 = vpop.f32.mrb[143].mxu1  ;;  %12384 = vmatprep.subr.bf16.mxu1 %v13917_v42  ;;  %v13922_v55 = vld [vmem:[%s19244_s8 + $0x330] sm:$0xff]  }
 0x7c3   :  { %v12119_v58 = vadd.f32 %v12118_v62, %v12117_v21  ;;  %13376 = vmatprep.mubr.bf16.mxu0 %v14196_v63  ;;  %v18090_v51 = vadd.f32 %v12116_v56, %v9126_v12  ;;  %v14197_v12 = vld [vmem:[%s19238_s1 + $0x4a8] sm:$0xff]   ;;  %v13924_v21 = vld [vmem:[%s19244_s8 + $0x378] sm:$0xff]   ;;  %v14198_v24 = vld [vmem:[%s19238_s1 + $0x4b0] sm:$0xff]  }
 0x7c4   :  { %9569 = vmatmul.mubr.bf16.gmra.mrb[248].mxu1 %v7350_v28 }
 0x7c5   :  { %9576 = vmatprep.mubr.bf16.mxu1 %v7367_v46  ;;  %v18095_v57 = vpop.f32.mrb[12].mxu0  ;;  %12385 = vmatpush3.bf16.msra.mxu1 %v13918_v3  ;;  %v18100_v4 = vadd.f32 %v12119_v58, %v9129_v47  ;;  %v13925_v47 = vld [vmem:[%s19244_s8 + $0x338] sm:$0xff]  }
 0x7c6   :  { %v18102_v29 = vpop.f32.mrb[13].mxu0  ;;  %12386 = vmatprep.subr.bf16.mxu1 %v13919_v44 }
 0x7c7   :  { %v12136_v10 = vpop.f32.mrb[144].mxu1  ;;  %v18107_v40 = vpop.f32.mrb[14].mxu0 }
 0x7c8   :  { %v12137_v19 = vpop.f32.mrb[145].mxu1  ;;  %v7371_v28 = vpack.c.bf16 %v18107_v40, %v18095_v57  ;;  %v6664_v46 = vpop.f32.mrb[15].mxu0 }
 0x7c9   :  { %v12138_v42 = vadd.f32 %v12137_v19, %v12136_v10  ;;  %v12139_v20 = vpop.f32.mrb[146].mxu1  ;;  %v7370_v0 = vpack.c.bf16 %v6664_v46, %v18102_v29  ;;  %12387 = vmatpush3.bf16.msra.mxu1 %v13920_v32  ;;  %v14199_v10 = vld [vmem:[%s19238_s1 + $0x4b8] sm:$0xff]  }
 0x7ca   :  { %13377 = vmatmul.mubr.bf16.gmra.mrb[120].mxu0 %v14197_v12  ;;  %v12140_v56 = vpop.f32.mrb[147].mxu1  ;;  %12388 = vmatprep.subr.bf16.mxu1 %v13921_v52 }
 0x7cb   :  { %v12141_v3 = vadd.f32 %v12140_v56, %v12139_v20  ;;  %13380 = vmatprep.mubr.bf16.mxu0 %v14198_v24  ;;  %v18125_v62 = vadd.f32 %v12138_v42, %v17869_v30  ;;  %v13928_v30 = vld [vmem:[%s19244_s8 + $0x3c0] sm:$0xff]  }
 0x7cc   :  { %9577 = vmatmul.mubr.bf16.gmra.mrb[252].mxu1 %v7351_v36  ;;  %v14200_v42 = vld [vmem:[%s19238_s1 + $0x4c0] sm:$0xff]  }
 0x7cd   :  { %9584 = vmatprep.mubr.bf16.mxu1 %v7368_v39  ;;  %v18130_v44 = vpop.f32.mrb[16].mxu0  ;;  %12389 = vmatpush3.bf16.msra.mxu1 %v13922_v55  ;;  %v18136_v58 = vadd.f32 %v12141_v3, %v17877_v2 }
 0x7ce   :  { %v18138_v63 = vpop.f32.mrb[17].mxu0  ;;  %12390 = vmatprep.subr.bf16.mxu1 %v13924_v21 }
 0x7cf   :  { %v12142_v35 = vpop.f32.mrb[148].mxu1  ;;  %v18143_v6 = vpop.f32.mrb[18].mxu0 }
 0x7d0   :  { %v12143_v36 = vpop.f32.mrb[149].mxu1  ;;  %v7381_v39 = vpack.c.bf16 %v18143_v6, %v18130_v44  ;;  %v18147_v32 = vpop.f32.mrb[19].mxu0 }
 0x7d1   :  { %v12144_v29 = vadd.f32 %v12143_v36, %v12142_v35  ;;  %v12145_v52 = vpop.f32.mrb[150].mxu1  ;;  %v7380_v2 = vpack.c.bf16 %v18147_v32, %v18138_v63  ;;  %12391 = vmatpush3.bf16.msra.mxu1 %v13925_v47  ;;  %v14202_v47 = vld [vmem:[%s19238_s1 + $0x4d0] sm:$0xff]  }
 0x7d2   :  { %13381 = vmatmul.mubr.bf16.gmra.mrb[124].mxu0 %v14199_v10  ;;  %v12146_v19 = vpop.f32.mrb[151].mxu1  ;;  %12440 = vmatprep.subr.bf16.mxu1 %v13928_v30 }
 0x7d3   :  { %v12147_v46 = vadd.f32 %v12146_v19, %v12145_v52  ;;  %13384 = vmatprep.mubr.bf16.mxu0 %v14200_v42  ;;  %v18158_v20 = vadd.f32 %v12144_v29, %v17904_v33 }
 0x7d4   :  { %9585 = vmatmul.mubr.bf16.gmra.mrb[0].mxu1 %v7352_v22 }
 0x7d5   :  { %9592 = vmatprep.mubr.bf16.mxu1 %v7369_v48  ;;  %v18166_v55 = vpop.f32.mrb[20].mxu0  ;;  %v18169_v12 = vadd.f32 %v12147_v46, %v17912_v37  ;;  %v14201_v37 = vld [vmem:[%s19238_s1 + $0x4c8] sm:$0xff]  }
 0x7d6   :  { %v18171_v56 = vpop.f32.mrb[21].mxu0 }
 0x7d7   :  { %v12148_v21 = vpop.f32.mrb[152].mxu1  ;;  %v18173_v3 = vpop.f32.mrb[22].mxu0 }
 0x7d8   :  { %v12149_v33 = vpop.f32.mrb[153].mxu1  ;;  %v7383_v24 = vpack.c.bf16 %v18173_v3, %v18166_v55  ;;  %v18177_v50 = vpop.f32.mrb[23].mxu0 }
 0x7d9   :  { %v12150_v23 = vadd.f32 %v12149_v33, %v12148_v21  ;;  %v12151_v22 = vpop.f32.mrb[154].mxu1  ;;  %v7382_v45 = vpack.c.bf16 %v18177_v50, %v18171_v56  ;;  %v14204_v21 = vld [vmem:[%s19238_s1 + $0x4e0] sm:$0xff]  }
 0x7da   :  { %13385 = vmatmul.mubr.bf16.gmra.mrb[128].mxu0 %v14201_v37  ;;  %v12152_v59 = vpop.f32.mrb[155].mxu1 }
 0x7db   :  { %v12153_v48 = vadd.f32 %v12152_v59, %v12151_v22  ;;  %13388 = vmatprep.mubr.bf16.mxu0 %v14202_v47  ;;  %v18188_v30 = vadd.f32 %v12150_v23, %v17936_v49  ;;  %v19251_v23 = vpack.c.bf16 %v17989_v11, %v17983_v14 }
 0x7dc   :  { %9593 = vmatmul.mubr.bf16.gmra.mrb[4].mxu1 %v7353_v17 }
 0x7dd   :  { %9600 = vmatprep.mubr.bf16.mxu1 %v7370_v0  ;;  %v18193_v35 = vpop.f32.mrb[24].mxu0  ;;  %v18196_v36 = vadd.f32 %v12153_v48, %v17944_v53  ;;  %v14203_v53 = vld [vmem:[%s19238_s1 + $0x4d8] sm:$0xff]  }
 0x7de   :  { %v18198_v29 = vpop.f32.mrb[25].mxu0 }
 0x7df   :  { %v12154_v52 = vpop.f32.mrb[156].mxu1  ;;  %v18200_v10 = vpop.f32.mrb[26].mxu0 }
 0x7e0   :  { %v12155_v19 = vpop.f32.mrb[157].mxu1  ;;  %v7385_v49 = vpack.c.bf16 %v18200_v10, %v18193_v35  ;;  %v18204_v46 = vpop.f32.mrb[27].mxu0 }
 0x7e1   :  { %v12156_v42 = vadd.f32 %v12155_v19, %v12154_v52  ;;  %v12157_v16 = vpop.f32.mrb[158].mxu1  ;;  %v7384_v8 = vpack.c.bf16 %v18204_v46, %v18198_v29 }
 0x7e2   :  { %13389 = vmatmul.mubr.bf16.gmra.mrb[132].mxu0 %v14203_v53  ;;  %v12158_v17 = vpop.f32.mrb[159].mxu1  ;;  %v19252_v53 = vpack.c.bf16 %v17985_v7, %v17981_v60  ;;  %v14207_v60 = vld [vmem:[%s19238_s1 + $0x4f8] sm:$0xff]  }
 0x7e3   :  { %v12159_v0 = vadd.f32 %v12158_v17, %v12157_v16  ;;  %13392 = vmatprep.mubr.bf16.mxu0 %v14204_v21  ;;  %v18215_v33 = vadd.f32 %v12156_v42, %v17968_v54  ;;  %v14206_v16 = vld [vmem:[%s19238_s1 + $0x4f0] sm:$0xff]  }
 0x7e4   :  { %9601 = vmatmul.mubr.bf16.gmra.mrb[8].mxu1 %v19251_v23 }
 0x7e5   :  { %9608 = vmatprep.mubr.bf16.mxu1 %v7371_v28  ;;  %v18223_v22 = vpop.f32.mrb[28].mxu0  ;;  %v18226_v37 = vadd.f32 %v12159_v0, %v17976_v34  ;;  %v14205_v34 = vld [vmem:[%s19238_s1 + $0x4e8] sm:$0xff]  }
 0x7e6   :  { %v18228_v59 = vpop.f32.mrb[29].mxu0 }
 0x7e7   :  { %v12160_v48 = vpop.f32.mrb[160].mxu1  ;;  %v18230_v47 = vpop.f32.mrb[30].mxu0 }
 0x7e8   :  { %v12161_v54 = vpop.f32.mrb[161].mxu1  ;;  %v7387_v52 = vpack.c.bf16 %v18230_v47, %v18223_v22  ;;  %v18234_v14 = vpop.f32.mrb[31].mxu0  ;;  %v13946_v22 = vld [vmem:[%s19244_s8 + $0x448] sm:$0xff]  }
 0x7e9   :  { %v12162_v11 = vadd.f32 %v12161_v54, %v12160_v48  ;;  %v12163_v19 = vpop.f32.mrb[162].mxu1  ;;  %v7386_v57 = vpack.c.bf16 %v18234_v14, %v18228_v59 }
 0x7ea   :  { %13393 = vmatmul.mubr.bf16.gmra.mrb[136].mxu0 %v14205_v34  ;;  %v12164_v40 = vpop.f32.mrb[163].mxu1 }
 0x7eb   :  { %v18242_v28 = vadd.f32 %v12162_v11, %v18003_v27  ;;  %v12165_v42 = vadd.f32 %v12164_v40, %v12163_v19  ;;  %13396 = vmatprep.mubr.bf16.mxu0 %v14206_v16  ;;  %v13929_v16 = vld [vmem:[%s19244_s8 + $0x380] sm:$0xff]  }
 0x7ec   :  { %9609 = vmatmul.mubr.bf16.gmra.mrb[12].mxu1 %v19252_v53 }
 0x7ed   :  { %v18251_v17 = vadd.f32 %v12165_v42, %v18008_v15  ;;  %v13290_v0 = vpop.f32.mrb[32].mxu0  ;;  %v13930_v15 = vld [vmem:[%s19244_s8 + $0x3c8] sm:$0xff]  }
 0x7ee   :  { %v6741_v21 = vpop.f32.mrb[33].mxu0 }
 0x7ef   :  { %v13291_v23 = vpop.f32.mrb[34].mxu0  ;;  %v12166_v48 = vpop.f32.mrb[164].mxu1 }
 0x7f0   :  { %v7397_v54 = vpack.c.bf16 %v13291_v23, %v13290_v0  ;;  %v6744_v27 = vpop.f32.mrb[35].mxu0  ;;  %v12167_v11 = vpop.f32.mrb[165].mxu1  ;;  %v13931_v23 = vld [vmem:[%s19244_s8 + $0x388] sm:$0xff]  }
 0x7f1   :  { %v7396_v19 = vpack.c.bf16 %v6744_v27, %v6741_v21  ;;  %v12168_v34 = vadd.f32 %v12167_v11, %v12166_v48  ;;  %v12169_v40 = vpop.f32.mrb[166].mxu1 }
 0x7f2   :  { %13397 = vmatmul.mubr.bf16.gmra.mrb[140].mxu0 %v14207_v60  ;;  %v12170_v7 = vpop.f32.mrb[167].mxu1 }
 0x7f3   :  { %v18263_v42 = vadd.f32 %v12168_v34, %v18026_v26  ;;  %v12171_v53 = vadd.f32 %v12170_v7, %v12169_v40  ;;  %9649 = vmatprep.mubr.bf16.mxu1 %v7396_v19  ;;  %13416 = vmatprep.mubr.bf16.mxu0 %v16701_v41  ;;  %v13932_v41 = vld [vmem:[%s19244_s8 + $0x3d0] sm:$0xff]   ;;  %v13934_v40 = vld [vmem:[%s19244_s8 + $0x3d8] sm:$0xff]  }
 0x7f4   :  { %9650 = vmatmul.mubr.bf16.vlgmr.msra.gmra.mrb[16].mxu1 %v7380_v2  ;;  %v13933_v19 = vld [vmem:[%s19244_s8 + $0x390] sm:$0xff]  }
 0x7f5   :  { %v18270_v0 = vadd.f32 %v12171_v53, %v18034_v43  ;;  %9657 = vmatprep.mubr.bf16.mxu1 %v7397_v54  ;;  %v13294_v21 = vpop.f32.mrb[36].mxu0  ;;  %12441 = vmatpush3.bf16.msra.mxu1 %v13929_v16 }
 0x7f6   :  { %v6757_v26 = vpop.f32.mrb[37].mxu0  ;;  %12442 = vmatprep.subr.bf16.mxu1 %v13930_v15  ;;  %v13935_v15 = vld [vmem:[%s19244_s8 + $0x398] sm:$0xff]  }
 0x7f7   :  { %v12172_v48 = vpop.f32.mrb[168].mxu1  ;;  %v13295_v27 = vpop.f32.mrb[38].mxu0 }
 0x7f8   :  { %v12173_v63 = vpop.f32.mrb[169].mxu1  ;;  %v7399_v32 = vpack.c.bf16 %v13295_v27, %v13294_v21  ;;  %v6760_v2 = vpop.f32.mrb[39].mxu0  ;;  %v13938_v27 = vld [vmem:[%s19244_s8 + $0x3e8] sm:$0xff]  }
 0x7f9   :  { %v12174_v43 = vadd.f32 %v12173_v63, %v12172_v48  ;;  %v12175_v11 = vpop.f32.mrb[170].mxu1  ;;  %v7398_v54 = vpack.c.bf16 %v6760_v2, %v6757_v26  ;;  %12443 = vmatpush3.bf16.msra.mxu1 %v13931_v23 }
 0x7fa   :  { %v12176_v34 = vpop.f32.mrb[171].mxu1  ;;  %13417 = vmatmul.mubr.bf16.vlgmr.msra.gmra.mrb[144].mxu0 %v16709_v25  ;;  %12444 = vmatprep.subr.bf16.mxu1 %v13932_v41  ;;  %v13937_v41 = vld [vmem:[%s19244_s8 + $0x3a0] sm:$0xff]  }
 0x7fb   :  { %v18286_v16 = vadd.f32 %v12174_v43, %v18055_v61  ;;  %v12177_v60 = vadd.f32 %v12176_v34, %v12175_v11  ;;  %13420 = vmatprep.mubr.bf16.mxu0 %v16717_v31  ;;  %v13936_v31 = vld [vmem:[%s19244_s8 + $0x3e0] sm:$0xff]   ;;  %v13939_v11 = vld [vmem:[%s19244_s8 + $0x3a8] sm:$0xff]  }
 0x7fc   :  { %9658 = vmatmul.mubr.bf16.gmra.mrb[20].mxu1 %v7381_v39 }
 0x7fd   :  { %v18293_v7 = vadd.f32 %v12177_v60, %v18065_v38  ;;  %9665 = vmatprep.mubr.bf16.mxu1 %v7398_v54  ;;  %v18295_v25 = vpop.f32.mrb[40].mxu0  ;;  %12445 = vmatpush3.bf16.msra.mxu1 %v13933_v19 }
 0x7fe   :  { %v6773_v61 = vpop.f32.mrb[41].mxu0  ;;  %12446 = vmatprep.subr.bf16.mxu1 %v13934_v40  ;;  %v13941_v40 = vld [vmem:[%s19244_s8 + $0x3b0] sm:$0xff]  }
 0x7ff   :  { %v12178_v53 = vpop.f32.mrb[172].mxu1  ;;  %v18303_v44 = vpop.f32.mrb[42].mxu0 }
 0x800   :  { %v12179_v6 = vpop.f32.mrb[173].mxu1  ;;  %v7401_v38 = vpack.c.bf16 %v18303_v44, %v18295_v25  ;;  %v6776_v39 = vpop.f32.mrb[43].mxu0 }
 0x801   :  { %v12180_v21 = vadd.f32 %v12179_v6, %v12178_v53  ;;  %v12181_v23 = vpop.f32.mrb[174].mxu1  ;;  %v7400_v26 = vpack.c.bf16 %v6776_v39, %v6773_v61  ;;  %12447 = vmatpush3.bf16.msra.mxu1 %v13935_v15  ;;  %v13942_v15 = vld [vmem:[%s19244_s8 + $0x3f8] sm:$0xff]  }
 0x802   :  { %v12182_v48 = vpop.f32.mrb[175].mxu1  ;;  %13421 = vmatmul.mubr.bf16.gmra.mrb[148].mxu0 %v16725_v9  ;;  %12448 = vmatprep.subr.bf16.mxu1 %v13936_v31  ;;  %v13943_v6 = vld [vmem:[%s19244_s8 + $0x3b8] sm:$0xff]  }
 0x803   :  { %v18315_v63 = vadd.f32 %v12180_v21, %v18090_v51  ;;  %v12183_v2 = vadd.f32 %v12182_v48, %v12181_v23  ;;  %13424 = vmatprep.mubr.bf16.mxu0 %v16733_v18  ;;  %v13940_v18 = vld [vmem:[%s19244_s8 + $0x3f0] sm:$0xff]  }
 0x804   :  { %9666 = vmatmul.mubr.bf16.gmra.mrb[24].mxu1 %v7382_v45 }
 0x805   :  { %v18322_v43 = vadd.f32 %v12183_v2, %v18100_v4  ;;  %9673 = vmatprep.mubr.bf16.mxu1 %v7399_v32  ;;  %v18324_v9 = vpop.f32.mrb[44].mxu0  ;;  %12449 = vmatpush3.bf16.msra.mxu1 %v13937_v41 }
 0x806   :  { %v6789_v51 = vpop.f32.mrb[45].mxu0  ;;  %12450 = vmatprep.subr.bf16.mxu1 %v13938_v27 }
 0x807   :  { %v12200_v54 = vpop.f32.mrb[176].mxu1  ;;  %v18332_v56 = vpop.f32.mrb[46].mxu0 }
 0x808   :  { %v12201_v50 = vpop.f32.mrb[177].mxu1  ;;  %v7403_v4 = vpack.c.bf16 %v18332_v56, %v18324_v9  ;;  %v6792_v45 = vpop.f32.mrb[47].mxu0 }
 0x809   :  { %v12202_v32 = vadd.f32 %v12201_v50, %v12200_v54  ;;  %v12203_v19 = vpop.f32.mrb[178].mxu1  ;;  %v7402_v34 = vpack.c.bf16 %v6792_v45, %v6789_v51  ;;  %12451 = vmatpush3.bf16.msra.mxu1 %v13939_v11 }
 0x80a   :  { %v12204_v60 = vpop.f32.mrb[179].mxu1  ;;  %13425 = vmatmul.mubr.bf16.gmra.mrb[152].mxu0 %v16741_v1  ;;  %12452 = vmatprep.subr.bf16.mxu1 %v13940_v18 }
 0x80b   :  { %v18344_v61 = vadd.f32 %v12202_v32, %v18125_v62  ;;  %v12205_v31 = vadd.f32 %v12204_v60, %v12203_v19  ;;  %13428 = vmatprep.mubr.bf16.mxu0 %v16749_v13  ;;  %v13944_v13 = vld [vmem:[%s19244_s8 + $0x440] sm:$0xff]  }
 0x80c   :  { %9674 = vmatmul.mubr.bf16.gmra.mrb[28].mxu1 %v7383_v24 }
 0x80d   :  { %v18351_v53 = vadd.f32 %v12205_v31, %v18136_v58  ;;  %9681 = vmatprep.mubr.bf16.mxu1 %v7400_v26  ;;  %v18353_v1 = vpop.f32.mrb[48].mxu0  ;;  %12453 = vmatpush3.bf16.msra.mxu1 %v13941_v40 }
 0x80e   :  { %v18358_v62 = vpop.f32.mrb[49].mxu0  ;;  %12454 = vmatprep.subr.bf16.mxu1 %v13942_v15 }
 0x80f   :  { %v12206_v55 = vpop.f32.mrb[180].mxu1  ;;  %v18363_v3 = vpop.f32.mrb[50].mxu0 }
 0x810   :  { %v12207_v58 = vpop.f32.mrb[181].mxu1  ;;  %v7413_v24 = vpack.c.bf16 %v18363_v3, %v18353_v1  ;;  %v18367_v39 = vpop.f32.mrb[51].mxu0 }
 0x811   :  { %v12208_v21 = vadd.f32 %v12207_v58, %v12206_v55  ;;  %v12209_v23 = vpop.f32.mrb[182].mxu1  ;;  %v7412_v26 = vpack.c.bf16 %v18367_v39, %v18358_v62  ;;  %12455 = vmatpush3.bf16.msra.mxu1 %v13943_v6 }
 0x812   :  { %v12210_v41 = vpop.f32.mrb[183].mxu1  ;;  %13429 = vmatmul.mubr.bf16.gmra.mrb[156].mxu0 %v16756_v5  ;;  %12504 = vmatprep.subr.bf16.mxu1 %v13944_v13 }
 0x813   :  { %v18373_v48 = vadd.f32 %v12208_v21, %v18158_v20  ;;  %v12211_v27 = vadd.f32 %v12210_v41, %v12209_v23 }
 0x814   :  { %9682 = vmatmul.mubr.bf16.gmra.mrb[32].mxu1 %v7384_v8 }
 0x815   :  { %v18379_v2 = vadd.f32 %v12211_v27, %v18169_v12  ;;  %9689 = vmatprep.mubr.bf16.mxu1 %v7401_v38  ;;  %v18384_v11 = vpop.f32.mrb[52].mxu0 }
 0x816   :  { %v18386_v51 = vpop.f32.mrb[53].mxu0 }
 0x817   :  { %v12212_v5 = vpop.f32.mrb[184].mxu1  ;;  %v18388_v18 = vpop.f32.mrb[54].mxu0 }
 0x818   :  { %v12213_v20 = vpop.f32.mrb[185].mxu1  ;;  %v7415_v54 = vpack.c.bf16 %v18388_v18, %v18384_v11  ;;  %v18392_v29 = vpop.f32.mrb[55].mxu0 }
 0x819   :  { %v12214_v46 = vadd.f32 %v12213_v20, %v12212_v5  ;;  %v12215_v12 = vpop.f32.mrb[186].mxu1  ;;  %v7414_v8 = vpack.c.bf16 %v18392_v29, %v18386_v51 }
 0x81a   :  { %v12216_v25 = vpop.f32.mrb[187].mxu1 }
 0x81b   :  { %v18397_v44 = vadd.f32 %v12214_v46, %v18188_v30  ;;  %v12217_v38 = vadd.f32 %v12216_v25, %v12215_v12 }
 0x81c   :  { %9690 = vmatmul.mubr.bf16.gmra.mrb[36].mxu1 %v7385_v49 }
 0x81d   :  { %v18403_v50 = vadd.f32 %v12217_v38, %v18196_v36  ;;  %9697 = vmatprep.mubr.bf16.mxu1 %v7402_v34  ;;  %v18405_v45 = vpop.f32.mrb[56].mxu0 }
 0x81e   :  { %v18407_v32 = vpop.f32.mrb[57].mxu0 }
 0x81f   :  { %v12218_v19 = vpop.f32.mrb[188].mxu1  ;;  %v18409_v40 = vpop.f32.mrb[58].mxu0 }
 0x820   :  { %v12219_v60 = vpop.f32.mrb[189].mxu1  ;;  %v7417_v30 = vpack.c.bf16 %v18409_v40, %v18405_v45  ;;  %v18413_v15 = vpop.f32.mrb[59].mxu0 }
 0x821   :  { %v12220_v31 = vadd.f32 %v12219_v60, %v12218_v19  ;;  %v12221_v35 = vpop.f32.mrb[190].mxu1  ;;  %v7416_v36 = vpack.c.bf16 %v18413_v15, %v18407_v32 }
 0x822   :  { %v12222_v10 = vpop.f32.mrb[191].mxu1 }
 0x823   :  { %v18418_v49 = vadd.f32 %v12220_v31, %v18215_v33  ;;  %v12223_v34 = vadd.f32 %v12222_v10, %v12221_v35 }
 0x824   :  { %9698 = vmatmul.mubr.bf16.gmra.mrb[40].mxu1 %v7386_v57 }
 0x825   :  { %v18424_v6 = vadd.f32 %v12223_v34, %v18226_v37  ;;  %9705 = vmatprep.mubr.bf16.mxu1 %v7403_v4  ;;  %v18429_v13 = vpop.f32.mrb[60].mxu0  ;;  %v13947_v34 = vld [vmem:[%s19244_s8 + $0x408] sm:$0xff]  }
 0x826   :  { %v18431_v55 = vpop.f32.mrb[61].mxu0 }
 0x827   :  { %v12224_v58 = vpop.f32.mrb[192].mxu1  ;;  %v18433_v21 = vpop.f32.mrb[62].mxu0 }
 0x828   :  { %v12225_v33 = vpop.f32.mrb[193].mxu1  ;;  %v7419_v23 = vpack.c.bf16 %v18433_v21, %v18429_v13  ;;  %v18437_v59 = vpop.f32.mrb[63].mxu0  ;;  %v13962_v13 = vld [vmem:[%s19244_s8 + $0x4c8] sm:$0xff]  }
 0x829   :  { %v12226_v14 = vadd.f32 %v12225_v33, %v12224_v58  ;;  %v12227_v37 = vpop.f32.mrb[194].mxu1  ;;  %v7418_v57 = vpack.c.bf16 %v18437_v59, %v18431_v55 }
 0x82a   :  { %v12228_v9 = vpop.f32.mrb[195].mxu1 }
 0x82b   :  { %v18442_v56 = vadd.f32 %v12226_v14, %v18242_v28  ;;  %v12229_v4 = vadd.f32 %v12228_v9, %v12227_v37  ;;  %v13945_v28 = vld [vmem:[%s19244_s8 + $0x400] sm:$0xff]  }
 0x82c   :  { %9706 = vmatmul.mubr.bf16.gmra.mrb[44].mxu1 %v7387_v52 }
 0x82d   :  { %v18448_v41 = vadd.f32 %v12229_v4, %v18251_v17  ;;  %v13322_v27 = vpop.f32.mrb[64].mxu0  ;;  %v13949_v4 = vld [vmem:[%s19244_s8 + $0x410] sm:$0xff]  }
 0x82e   :  { %v6869_v5 = vpop.f32.mrb[65].mxu0 }
 0x82f   :  { %v13323_v20 = vpop.f32.mrb[66].mxu0  ;;  %v12230_v46 = vpop.f32.mrb[196].mxu1 }
 0x830   :  { %v7429_v12 = vpack.c.bf16 %v13323_v20, %v13322_v27  ;;  %v6872_v25 = vpop.f32.mrb[67].mxu0  ;;  %v12231_v38 = vpop.f32.mrb[197].mxu1 }
 0x831   :  { %v7428_v19 = vpack.c.bf16 %v6872_v25, %v6869_v5  ;;  %v12232_v60 = vadd.f32 %v12231_v38, %v12230_v46  ;;  %v12233_v31 = vpop.f32.mrb[198].mxu1  ;;  %v13950_v5 = vld [vmem:[%s19244_s8 + $0x458] sm:$0xff]  }
 0x832   :  { %v12234_v35 = vpop.f32.mrb[199].mxu1  ;;  %v13951_v38 = vld [vmem:[%s19244_s8 + $0x418] sm:$0xff]  }
 0x833   :  { %v18457_v47 = vadd.f32 %v12232_v60, %v18263_v42  ;;  %v12235_v52 = vadd.f32 %v12234_v35, %v12233_v31  ;;  %9746 = vmatprep.mubr.bf16.mxu1 %v7428_v19  ;;  %v13948_v42 = vld [vmem:[%s19244_s8 + $0x450] sm:$0xff]  }
 0x834   :  { %9747 = vmatmul.mubr.bf16.vlgmr.msra.gmra.mrb[48].mxu1 %v7412_v26 }
 0x835   :  { %v18463_v17 = vadd.f32 %v12235_v52, %v18270_v0  ;;  %9754 = vmatprep.mubr.bf16.mxu1 %v7429_v12  ;;  %v13326_v10 = vpop.f32.mrb[68].mxu0  ;;  %12505 = vmatpush3.bf16.msra.mxu1 %v13945_v28 }
 0x836   :  { %v6885_v58 = vpop.f32.mrb[69].mxu0  ;;  %12506 = vmatprep.subr.bf16.mxu1 %v13946_v22  ;;  %v13953_v22 = vld [vmem:[%s19244_s8 + $0x420] sm:$0xff]  }
 0x837   :  { %v12236_v33 = vpop.f32.mrb[200].mxu1  ;;  %v13327_v14 = vpop.f32.mrb[70].mxu0 }
 0x838   :  { %v12237_v62 = vpop.f32.mrb[201].mxu1  ;;  %v7431_v39 = vpack.c.bf16 %v13327_v14, %v13326_v10  ;;  %v6888_v26 = vpop.f32.mrb[71].mxu0  ;;  %v13954_v10 = vld [vmem:[%s19244_s8 + $0x468] sm:$0xff]  }
 0x839   :  { %v12238_v0 = vadd.f32 %v12237_v62, %v12236_v33  ;;  %v12239_v37 = vpop.f32.mrb[202].mxu1  ;;  %v7430_v9 = vpack.c.bf16 %v6888_v26, %v6885_v58  ;;  %12507 = vmatpush3.bf16.msra.mxu1 %v13947_v34  ;;  %v13955_v14 = vld [vmem:[%s19244_s8 + $0x428] sm:$0xff]  }
 0x83a   :  { %v12240_v27 = vpop.f32.mrb[203].mxu1  ;;  %12508 = vmatprep.subr.bf16.mxu1 %v13948_v42 }
 0x83b   :  { %v18478_v20 = vadd.f32 %v12238_v0, %v18286_v16  ;;  %v12241_v46 = vadd.f32 %v12240_v27, %v12239_v37  ;;  %v13952_v16 = vld [vmem:[%s19244_s8 + $0x460] sm:$0xff]   ;;  %v13958_v27 = vld [vmem:[%s19244_s8 + $0x478] sm:$0xff]  }
 0x83c   :  { %9755 = vmatmul.mubr.bf16.gmra.mrb[52].mxu1 %v7413_v24 }
 0x83d   :  { %v18484_v12 = vadd.f32 %v12241_v46, %v18293_v7  ;;  %9762 = vmatprep.mubr.bf16.mxu1 %v7430_v9  ;;  %v18486_v25 = vpop.f32.mrb[72].mxu0  ;;  %12509 = vmatpush3.bf16.msra.mxu1 %v13949_v4  ;;  %v13957_v9 = vld [vmem:[%s19244_s8 + $0x430] sm:$0xff]  }
 0x83e   :  { %v6901_v19 = vpop.f32.mrb[73].mxu0  ;;  %12510 = vmatprep.subr.bf16.mxu1 %v13950_v5 }
 0x83f   :  { %v12242_v60 = vpop.f32.mrb[204].mxu1  ;;  %v13331_v1 = vpop.f32.mrb[74].mxu0 }
 0x840   :  { %v12243_v3 = vpop.f32.mrb[205].mxu1  ;;  %v7433_v7 = vpack.c.bf16 %v13331_v1, %v18486_v25  ;;  %v6904_v24 = vpop.f32.mrb[75].mxu0 }
 0x841   :  { %v12244_v31 = vadd.f32 %v12243_v3, %v12242_v60  ;;  %v12245_v28 = vpop.f32.mrb[206].mxu1  ;;  %v7432_v35 = vpack.c.bf16 %v6904_v24, %v6901_v19  ;;  %12511 = vmatpush3.bf16.msra.mxu1 %v13951_v38  ;;  %v13959_v19 = vld [vmem:[%s19244_s8 + $0x438] sm:$0xff]  }
 0x842   :  { %v12246_v52 = vpop.f32.mrb[207].mxu1  ;;  %12512 = vmatprep.subr.bf16.mxu1 %v13952_v16 }
 0x843   :  { %v18502_v34 = vadd.f32 %v12244_v31, %v18315_v63  ;;  %v12247_v58 = vadd.f32 %v12246_v52, %v12245_v28  ;;  %v13956_v63 = vld [vmem:[%s19244_s8 + $0x470] sm:$0xff]  }
 0x844   :  { %9763 = vmatmul.mubr.bf16.gmra.mrb[56].mxu1 %v7414_v8 }
 0x845   :  { %v18508_v42 = vadd.f32 %v12247_v58, %v18322_v43  ;;  %9770 = vmatprep.mubr.bf16.mxu1 %v7431_v39  ;;  %v18510_v33 = vpop.f32.mrb[76].mxu0  ;;  %12513 = vmatpush3.bf16.msra.mxu1 %v13953_v22 }
 0x846   :  { %v6917_v62 = vpop.f32.mrb[77].mxu0  ;;  %12514 = vmatprep.subr.bf16.mxu1 %v13954_v10 }
 0x847   :  { %v12264_v26 = vpop.f32.mrb[208].mxu1  ;;  %v18518_v51 = vpop.f32.mrb[78].mxu0 }
 0x848   :  { %v12265_v29 = vpop.f32.mrb[209].mxu1  ;;  %v7435_v43 = vpack.c.bf16 %v18518_v51, %v18510_v33  ;;  %v6920_v8 = vpop.f32.mrb[79].mxu0 }
 0x849   :  { %v12266_v39 = vadd.f32 %v12265_v29, %v12264_v26  ;;  %v12267_v0 = vpop.f32.mrb[210].mxu1  ;;  %v7434_v37 = vpack.c.bf16 %v6920_v8, %v6917_v62  ;;  %12515 = vmatpush3.bf16.msra.mxu1 %v13955_v14 }
 0x84a   :  { %v12268_v4 = vpop.f32.mrb[211].mxu1  ;;  %12516 = vmatprep.subr.bf16.mxu1 %v13956_v63 }
 0x84b   :  { %v18529_v5 = vadd.f32 %v12266_v39, %v18344_v61  ;;  %v12269_v46 = vadd.f32 %v12268_v4, %v12267_v0  ;;  %v13960_v61 = vld [vmem:[%s19244_s8 + $0x4c0] sm:$0xff]  }
 0x84c   :  { %9771 = vmatmul.mubr.bf16.gmra.mrb[60].mxu1 %v7415_v54 }
 0x84d   :  { %v18535_v25 = vadd.f32 %v12269_v46, %v18351_v53  ;;  %9778 = vmatprep.mubr.bf16.mxu1 %v7432_v35  ;;  %v18537_v38 = vpop.f32.mrb[80].mxu0  ;;  %12517 = vmatpush3.bf16.msra.mxu1 %v13957_v9 }
 0x84e   :  { %v18542_v16 = vpop.f32.mrb[81].mxu0  ;;  %12518 = vmatprep.subr.bf16.mxu1 %v13958_v27 }
 0x84f   :  { %v12270_v11 = vpop.f32.mrb[212].mxu1  ;;  %v18547_v18 = vpop.f32.mrb[82].mxu0 }
 0x850   :  { %v12271_v53 = vpop.f32.mrb[213].mxu1  ;;  %v7445_v54 = vpack.c.bf16 %v18547_v18, %v18537_v38  ;;  %v18551_v60 = vpop.f32.mrb[83].mxu0 }
 0x851   :  { %v12272_v1 = vadd.f32 %v12271_v53, %v12270_v11  ;;  %v12273_v3 = vpop.f32.mrb[214].mxu1  ;;  %v7444_v24 = vpack.c.bf16 %v18551_v60, %v18542_v16  ;;  %12519 = vmatpush3.bf16.msra.mxu1 %v13959_v19 }
 0x852   :  { %v12274_v31 = vpop.f32.mrb[215].mxu1  ;;  %12568 = vmatprep.subr.bf16.mxu1 %v13960_v61 }
 0x853   :  { %v18556_v28 = vadd.f32 %v12272_v1, %v18373_v48  ;;  %v12275_v35 = vadd.f32 %v12274_v31, %v12273_v3 }
 0x854   :  { %9779 = vmatmul.mubr.bf16.gmra.mrb[64].mxu1 %v7416_v36 }
 0x855   :  { %v18562_v22 = vadd.f32 %v12275_v35, %v18379_v2  ;;  %9786 = vmatprep.mubr.bf16.mxu1 %v7433_v7  ;;  %v18564_v52 = vpop.f32.mrb[84].mxu0 }
 0x856   :  { %v18566_v10 = vpop.f32.mrb[85].mxu0 }
 0x857   :  { %v12276_v58 = vpop.f32.mrb[216].mxu1  ;;  %v18568_v14 = vpop.f32.mrb[86].mxu0 }
 0x858   :  { %v12277_v62 = vpop.f32.mrb[217].mxu1  ;;  %v7447_v48 = vpack.c.bf16 %v18568_v14, %v18564_v52  ;;  %v18572_v63 = vpop.f32.mrb[87].mxu0 }
 0x859   :  { %v12278_v26 = vadd.f32 %v12277_v62, %v12276_v58  ;;  %v12279_v32 = vpop.f32.mrb[218].mxu1  ;;  %v7446_v2 = vpack.c.bf16 %v18572_v63, %v18566_v10 }
 0x85a   :  { %v12280_v15 = vpop.f32.mrb[219].mxu1 }
 0x85b   :  { %v18577_v36 = vadd.f32 %v12278_v26, %v18397_v44  ;;  %v12281_v7 = vadd.f32 %v12280_v15, %v12279_v32 }
 0x85c   :  { %9787 = vmatmul.mubr.bf16.gmra.mrb[68].mxu1 %v7417_v30 }
 0x85d   :  { %v18583_v29 = vadd.f32 %v12281_v7, %v18403_v50  ;;  %9794 = vmatprep.mubr.bf16.mxu1 %v7434_v37  ;;  %v18585_v8 = vpop.f32.mrb[88].mxu0 }
 0x85e   :  { %v18587_v39 = vpop.f32.mrb[89].mxu0 }
 0x85f   :  { %v12282_v0 = vpop.f32.mrb[220].mxu1  ;;  %v18589_v9 = vpop.f32.mrb[90].mxu0 }
 0x860   :  { %v12283_v4 = vpop.f32.mrb[221].mxu1  ;;  %v7449_v44 = vpack.c.bf16 %v18589_v9, %v18585_v8  ;;  %v18593_v27 = vpop.f32.mrb[91].mxu0 }
 0x861   :  { %v12284_v46 = vadd.f32 %v12283_v4, %v12282_v0  ;;  %v12285_v45 = vpop.f32.mrb[222].mxu1  ;;  %v7448_v50 = vpack.c.bf16 %v18593_v27, %v18587_v39 }
 0x862   :  { %v12286_v40 = vpop.f32.mrb[223].mxu1 }
 0x863   :  { %v18598_v30 = vadd.f32 %v12284_v46, %v18418_v49  ;;  %v12287_v37 = vadd.f32 %v12286_v40, %v12285_v45 }
 0x864   :  { %9795 = vmatmul.mubr.bf16.gmra.mrb[72].mxu1 %v7418_v57 }
 0x865   :  { %v18604_v19 = vadd.f32 %v12287_v37, %v18424_v6  ;;  %9802 = vmatprep.mubr.bf16.mxu1 %v7435_v43  ;;  %v18609_v61 = vpop.f32.mrb[92].mxu0  ;;  %v13963_v37 = vld [vmem:[%s19244_s8 + $0x488] sm:$0xff]  }
 0x866   :  { %v18611_v11 = vpop.f32.mrb[93].mxu0 }
 0x867   :  { %v12288_v53 = vpop.f32.mrb[224].mxu1  ;;  %v18613_v1 = vpop.f32.mrb[94].mxu0 }
 0x868   :  { %v12289_v49 = vpop.f32.mrb[225].mxu1  ;;  %v7451_v3 = vpack.c.bf16 %v18613_v1, %v18609_v61  ;;  %v18617_v55 = vpop.f32.mrb[95].mxu0 }
 0x869   :  { %v12290_v59 = vadd.f32 %v12289_v49, %v12288_v53  ;;  %v12291_v6 = vpop.f32.mrb[226].mxu1  ;;  %v7450_v57 = vpack.c.bf16 %v18617_v55, %v18611_v11 }
 0x86a   :  { %v12292_v33 = vpop.f32.mrb[227].mxu1 }
 0x86b   :  { %v18622_v51 = vadd.f32 %v12290_v59, %v18442_v56  ;;  %v12293_v43 = vadd.f32 %v12292_v33, %v12291_v6  ;;  %v13961_v56 = vld [vmem:[%s19244_s8 + $0x480] sm:$0xff]  }
 0x86c   :  { %9803 = vmatmul.mubr.bf16.gmra.mrb[76].mxu1 %v7419_v23 }
 0x86d   :  { %v18628_v31 = vadd.f32 %v12293_v43, %v18448_v41  ;;  %v13354_v35 = vpop.f32.mrb[96].mxu0  ;;  %v13965_v43 = vld [vmem:[%s19244_s8 + $0x490] sm:$0xff]  }
 0x86e   :  { %v6997_v58 = vpop.f32.mrb[97].mxu0 }
 0x86f   :  { %v13355_v62 = vpop.f32.mrb[98].mxu0  ;;  %v12294_v26 = vpop.f32.mrb[228].mxu1 }
 0x870   :  { %v7461_v32 = vpack.c.bf16 %v13355_v62, %v13354_v35  ;;  %v7000_v15 = vpop.f32.mrb[99].mxu0  ;;  %v12295_v7 = vpop.f32.mrb[229].mxu1 }
 0x871   :  { %v7460_v0 = vpack.c.bf16 %v7000_v15, %v6997_v58  ;;  %v12296_v4 = vadd.f32 %v12295_v7, %v12294_v26  ;;  %v12297_v46 = vpop.f32.mrb[230].mxu1  ;;  %v13966_v58 = vld [vmem:[%s19244_s8 + $0x4d8] sm:$0xff]  }
 0x872   :  { %v12298_v45 = vpop.f32.mrb[231].mxu1  ;;  %v13967_v7 = vld [vmem:[%s19244_s8 + $0x498] sm:$0xff]  }
 0x873   :  { %v18637_v21 = vadd.f32 %v12296_v4, %v18457_v47  ;;  %v12299_v23 = vadd.f32 %v12298_v45, %v12297_v46  ;;  %9843 = vmatprep.mubr.bf16.mxu1 %v7460_v0  ;;  %v13964_v47 = vld [vmem:[%s19244_s8 + $0x4d0] sm:$0xff]  }
 0x874   :  { %9844 = vmatmul.mubr.bf16.vlgmr.msra.gmra.mrb[80].mxu1 %v7444_v24 }
 0x875   :  { %v18643_v41 = vadd.f32 %v12299_v23, %v18463_v17  ;;  %9851 = vmatprep.mubr.bf16.mxu1 %v7461_v32  ;;  %v13358_v40 = vpop.f32.mrb[100].mxu0  ;;  %12569 = vmatpush3.bf16.msra.mxu1 %v13961_v56 }
 0x876   :  { %v7013_v53 = vpop.f32.mrb[101].mxu0  ;;  %12570 = vmatprep.subr.bf16.mxu1 %v13962_v13  ;;  %v13969_v13 = vld [vmem:[%s19244_s8 + $0x4a0] sm:$0xff]  }
 0x877   :  { %v12300_v49 = vpop.f32.mrb[232].mxu1  ;;  %v13359_v59 = vpop.f32.mrb[102].mxu0 }
 0x878   :  { %v12301_v16 = vpop.f32.mrb[233].mxu1  ;;  %v7463_v60 = vpack.c.bf16 %v13359_v59, %v13358_v40  ;;  %v7016_v24 = vpop.f32.mrb[103].mxu0  ;;  %v13970_v40 = vld [vmem:[%s19244_s8 + $0x4e8] sm:$0xff]  }
 0x879   :  { %v12302_v17 = vadd.f32 %v12301_v16, %v12300_v49  ;;  %v12303_v6 = vpop.f32.mrb[234].mxu1  ;;  %v7462_v33 = vpack.c.bf16 %v7016_v24, %v7013_v53  ;;  %12571 = vmatpush3.bf16.msra.mxu1 %v13963_v37  ;;  %v13971_v59 = vld [vmem:[%s19244_s8 + $0x4a8] sm:$0xff]  }
 0x87a   :  { %v12304_v35 = vpop.f32.mrb[235].mxu1  ;;  %12572 = vmatprep.subr.bf16.mxu1 %v13964_v47 }
 0x87b   :  { %v18658_v62 = vadd.f32 %v12302_v17, %v18478_v20  ;;  %v12305_v26 = vadd.f32 %v12304_v35, %v12303_v6  ;;  %v13968_v20 = vld [vmem:[%s19244_s8 + $0x4e0] sm:$0xff]   ;;  %v13974_v35 = vld [vmem:[%s19244_s8 + $0x4f8] sm:$0xff]  }
 0x87c   :  { %9852 = vmatmul.mubr.bf16.gmra.mrb[84].mxu1 %v7445_v54 }
 0x87d   :  { %v18664_v32 = vadd.f32 %v12305_v26, %v18484_v12  ;;  %9859 = vmatprep.mubr.bf16.mxu1 %v7462_v33  ;;  %v18666_v15 = vpop.f32.mrb[104].mxu0  ;;  %12573 = vmatpush3.bf16.msra.mxu1 %v13965_v43  ;;  %v13973_v33 = vld [vmem:[%s19244_s8 + $0x4b0] sm:$0xff]  }
 0x87e   :  { %v7029_v0 = vpop.f32.mrb[105].mxu0  ;;  %12574 = vmatprep.subr.bf16.mxu1 %v13966_v58 }
 0x87f   :  { %v12306_v4 = vpop.f32.mrb[236].mxu1  ;;  %v13363_v38 = vpop.f32.mrb[106].mxu0 }
 0x880   :  { %v12307_v18 = vpop.f32.mrb[237].mxu1  ;;  %v7465_v12 = vpack.c.bf16 %v13363_v38, %v18666_v15  ;;  %v7032_v54 = vpop.f32.mrb[107].mxu0 }
 0x881   :  { %v12308_v46 = vadd.f32 %v12307_v18, %v12306_v4  ;;  %v12309_v56 = vpop.f32.mrb[238].mxu1  ;;  %v7464_v45 = vpack.c.bf16 %v7032_v54, %v7029_v0  ;;  %12575 = vmatpush3.bf16.msra.mxu1 %v13967_v7  ;;  %v13975_v0 = vld [vmem:[%s19244_s8 + $0x4b8] sm:$0xff]  }
 0x882   :  { %v12310_v23 = vpop.f32.mrb[239].mxu1  ;;  %12576 = vmatprep.subr.bf16.mxu1 %v13968_v20 }
 0x883   :  { %v18682_v37 = vadd.f32 %v12308_v46, %v18502_v34  ;;  %v12311_v53 = vadd.f32 %v12310_v23, %v12309_v56  ;;  %v13972_v34 = vld [vmem:[%s19244_s8 + $0x4f0] sm:$0xff]  }
 0x884   :  { %9860 = vmatmul.mubr.bf16.gmra.mrb[88].mxu1 %v7446_v2 }
 0x885   :  { %v18688_v47 = vadd.f32 %v12311_v53, %v18508_v42  ;;  %9867 = vmatprep.mubr.bf16.mxu1 %v7463_v60  ;;  %v18690_v49 = vpop.f32.mrb[108].mxu0  ;;  %12577 = vmatpush3.bf16.msra.mxu1 %v13969_v13 }
 0x886   :  { %v7045_v16 = vpop.f32.mrb[109].mxu0  ;;  %12578 = vmatprep.subr.bf16.mxu1 %v13970_v40 }
 0x887   :  { %v12328_v24 = vpop.f32.mrb[240].mxu1  ;;  %v18698_v10 = vpop.f32.mrb[110].mxu0 }
 0x888   :  { %v12329_v63 = vpop.f32.mrb[241].mxu1  ;;  %v7467_v42 = vpack.c.bf16 %v18698_v10, %v18690_v49  ;;  %v7048_v2 = vpop.f32.mrb[111].mxu0 }
 0x889   :  { %v12330_v60 = vadd.f32 %v12329_v63, %v12328_v24  ;;  %v12331_v17 = vpop.f32.mrb[242].mxu1  ;;  %v7466_v6 = vpack.c.bf16 %v7048_v2, %v7045_v16  ;;  %12579 = vmatpush3.bf16.msra.mxu1 %v13971_v59 }
 0x88a   :  { %v12332_v43 = vpop.f32.mrb[243].mxu1  ;;  %12580 = vmatprep.subr.bf16.mxu1 %v13972_v34 }
 0x88b   :  { %v18709_v58 = vadd.f32 %v12330_v60, %v18529_v5  ;;  %v12333_v26 = vadd.f32 %v12332_v43, %v12331_v17 }
 0x88c   :  { %9868 = vmatmul.mubr.bf16.gmra.mrb[92].mxu1 %v7447_v48 }
 0x88d   :  { %v18715_v15 = vadd.f32 %v12333_v26, %v18535_v25  ;;  %9875 = vmatprep.mubr.bf16.mxu1 %v7464_v45  ;;  %v18717_v7 = vpop.f32.mrb[112].mxu0  ;;  %12581 = vmatpush3.bf16.msra.mxu1 %v13973_v33 }
 0x88e   :  { %v18722_v20 = vpop.f32.mrb[113].mxu0  ;;  %12582 = vmatprep.subr.bf16.mxu1 %v13974_v35 }
 0x88f   :  { %v12334_v5 = vpop.f32.mrb[244].mxu1  ;;  %v18724_v4 = vpop.f32.mrb[114].mxu0 }
 0x890   :  { %v12335_v38 = vpop.f32.mrb[245].mxu1  ;;  %v7477_v52 = vpack.c.bf16 %v18724_v4, %v18717_v7  ;;  %v18728_v25 = vpop.f32.mrb[115].mxu0 }
 0x891   :  { %v12336_v14 = vadd.f32 %v12335_v38, %v12334_v5  ;;  %v12337_v48 = vpop.f32.mrb[246].mxu1  ;;  %v7476_v18 = vpack.c.bf16 %v18728_v25, %v18722_v20  ;;  %12583 = vmatpush3.bf16.msra.mxu1 %v13975_v0 }
 0x892   :  { %v12338_v54 = vpop.f32.mrb[247].mxu1 }
 0x893   :  { %v18733_v46 = vadd.f32 %v12336_v14, %v18556_v28  ;;  %v12339_v56 = vadd.f32 %v12338_v54, %v12337_v48 }
 0x894   :  { %9876 = vmatmul.mubr.bf16.gmra.mrb[96].mxu1 %v7448_v50 }
 0x895   :  { %v18739_v45 = vadd.f32 %v12339_v56, %v18562_v22  ;;  %9883 = vmatprep.mubr.bf16.mxu1 %v7465_v12  ;;  %v18741_v13 = vpop.f32.mrb[116].mxu0 }
 0x896   :  { %v18743_v23 = vpop.f32.mrb[117].mxu0 }
 0x897   :  { %v12340_v40 = vpop.f32.mrb[248].mxu1  ;;  %v18745_v53 = vpop.f32.mrb[118].mxu0 }
 0x898   :  { %v12341_v59 = vpop.f32.mrb[249].mxu1  ;;  %v7479_v28 = vpack.c.bf16 %v18745_v53, %v18741_v13  ;;  %v18749_v16 = vpop.f32.mrb[119].mxu0 }
 0x899   :  { %v12342_v34 = vadd.f32 %v12341_v59, %v12340_v40  ;;  %v12343_v39 = vpop.f32.mrb[250].mxu1  ;;  %v7478_v22 = vpack.c.bf16 %v18749_v16, %v18743_v23 }
 0x89a   :  { %v12344_v27 = vpop.f32.mrb[251].mxu1 }
 0x89b   :  { %v18754_v50 = vadd.f32 %v12342_v34, %v18577_v36  ;;  %v12345_v12 = vadd.f32 %v12344_v27, %v12343_v39 }
 0x89c   :  { %9884 = vmatmul.mubr.bf16.gmra.mrb[100].mxu1 %v7449_v44 }
 0x89d   :  { %v18760_v24 = vadd.f32 %v12345_v12, %v18583_v29  ;;  %9891 = vmatprep.mubr.bf16.mxu1 %v7466_v6  ;;  %v18762_v63 = vpop.f32.mrb[120].mxu0 }
 0x89e   :  { %v18764_v2 = vpop.f32.mrb[121].mxu0 }
 0x89f   :  { %v12346_v60 = vpop.f32.mrb[252].mxu1  ;;  %v18766_v17 = vpop.f32.mrb[122].mxu0 }
 0x8a0   :  { %v12347_v33 = vpop.f32.mrb[253].mxu1  ;;  %v7481_v36 = vpack.c.bf16 %v18766_v17, %v18762_v63  ;;  %v18770_v43 = vpop.f32.mrb[123].mxu0 }
 0x8a1   :  { %v12348_v35 = vadd.f32 %v12347_v33, %v12346_v60  ;;  %v12349_v8 = vpop.f32.mrb[254].mxu1  ;;  %v7480_v29 = vpack.c.bf16 %v18770_v43, %v18764_v2 }
 0x8a2   :  { %v12350_v9 = vpop.f32.mrb[255].mxu1 }
 0x8a3   :  { %v18775_v44 = vadd.f32 %v12348_v35, %v18598_v30  ;;  %v12351_v6 = vadd.f32 %v12350_v9, %v12349_v8 }
 0x8a4   :  { %9892 = vmatmul.mubr.bf16.gmra.mrb[104].mxu1 %v7450_v57 }
 0x8a5   :  { %v18781_v26 = vadd.f32 %v12351_v6, %v18604_v19  ;;  %9899 = vmatprep.mubr.bf16.mxu1 %v7467_v42  ;;  %v18786_v0 = vpop.f32.mrb[124].mxu0 }
 0x8a6   :  { %v18788_v5 = vpop.f32.mrb[125].mxu0 }
 0x8a7   :  { %v12352_v38 = vpop.f32.mrb[0].mxu1  ;;  %v18790_v14 = vpop.f32.mrb[126].mxu0 }
 0x8a8   :  { %v12353_v30 = vpop.f32.mrb[1].mxu1  ;;  %v7483_v48 = vpack.c.bf16 %v18790_v14, %v18786_v0  ;;  %v18794_v11 = vpop.f32.mrb[127].mxu0 }
 0x8a9   :  { %v12354_v55 = vadd.f32 %v12353_v30, %v12352_v38  ;;  %v12355_v19 = vpop.f32.mrb[2].mxu1  ;;  %v7482_v57 = vpack.c.bf16 %v18794_v11, %v18788_v5 }
 0x8aa   :  { %v12356_v49 = vpop.f32.mrb[3].mxu1 }
 0x8ab   :  { %v18799_v10 = vadd.f32 %v12354_v55, %v18622_v51  ;;  %v12357_v42 = vadd.f32 %v12356_v49, %v12355_v19 }
 0x8ac   :  { %9900 = vmatmul.mubr.bf16.gmra.mrb[108].mxu1 %v7451_v3 }
 0x8ad   :  { %v18805_v54 = vadd.f32 %v12357_v42, %v18628_v31  ;;  %v13386_v56 = vpop.f32.mrb[128].mxu0 }
 0x8ae   :  { %v7125_v40 = vpop.f32.mrb[129].mxu0 }
 0x8af   :  { %v13387_v59 = vpop.f32.mrb[130].mxu0  ;;  %v12358_v34 = vpop.f32.mrb[4].mxu1 }
 0x8b0   :  { %v7493_v39 = vpack.c.bf16 %v13387_v59, %v13386_v56  ;;  %v7128_v27 = vpop.f32.mrb[131].mxu0  ;;  %v12359_v12 = vpop.f32.mrb[5].mxu1 }
 0x8b1   :  { %v7492_v60 = vpack.c.bf16 %v7128_v27, %v7125_v40  ;;  %v12360_v33 = vadd.f32 %v12359_v12, %v12358_v34  ;;  %v12361_v35 = vpop.f32.mrb[6].mxu1 }
 0x8b2   :  { %v12362_v51 = vpop.f32.mrb[7].mxu1 }
 0x8b3   :  { %v18808_v8 = vadd.f32 %v12360_v33, %v18637_v21  ;;  %v12363_v9 = vadd.f32 %v12362_v51, %v12361_v35  ;;  %9940 = vmatprep.mubr.bf16.mxu1 %v7492_v60 }
 0x8b4   :  { %9941 = vmatmul.mubr.bf16.vlgmr.msra.gmra.mrb[112].mxu1 %v7476_v18 }
 0x8b5   :  { %v18814_v61 = vadd.f32 %v12363_v9, %v18643_v41  ;;  %9948 = vmatprep.mubr.bf16.mxu1 %v7493_v39  ;;  %v13390_v1 = vpop.f32.mrb[132].mxu0 }
 0x8b6   :  { %v7141_v3 = vpop.f32.mrb[133].mxu0 }
 0x8b7   :  { %v12364_v31 = vpop.f32.mrb[8].mxu1  ;;  %v13391_v6 = vpop.f32.mrb[134].mxu0 }
 0x8b8   :  { %v12365_v38 = vpop.f32.mrb[9].mxu1  ;;  %v7495_v30 = vpack.c.bf16 %v13391_v6, %v13390_v1  ;;  %v7144_v55 = vpop.f32.mrb[135].mxu0 }
 0x8b9   :  { %v12366_v19 = vadd.f32 %v12365_v38, %v12364_v31  ;;  %v12367_v21 = vpop.f32.mrb[10].mxu1  ;;  %v7494_v49 = vpack.c.bf16 %v7144_v55, %v7141_v3 }
 0x8ba   :  { %v12368_v42 = vpop.f32.mrb[11].mxu1 }
 0x8bb   :  { %v18817_v56 = vadd.f32 %v12366_v19, %v18658_v62  ;;  %v12369_v20 = vadd.f32 %v12368_v42, %v12367_v21 }
 0x8bc   :  { %9949 = vmatmul.mubr.bf16.gmra.mrb[116].mxu1 %v7477_v52 }
 0x8bd   :  { %v18823_v41 = vadd.f32 %v12369_v20, %v18664_v32  ;;  %9956 = vmatprep.mubr.bf16.mxu1 %v7494_v49  ;;  %v13394_v25 = vpop.f32.mrb[136].mxu0 }
 0x8be   :  { %v7157_v18 = vpop.f32.mrb[137].mxu0 }
 0x8bf   :  { %v12370_v40 = vpop.f32.mrb[12].mxu1  ;;  %v13395_v59 = vpop.f32.mrb[138].mxu0 }
 0x8c0   :  { %v12371_v34 = vpop.f32.mrb[13].mxu1  ;;  %v7497_v39 = vpack.c.bf16 %v13395_v59, %v13394_v25  ;;  %v7160_v27 = vpop.f32.mrb[139].mxu0 }
 0x8c1   :  { %v12372_v12 = vadd.f32 %v12371_v34, %v12370_v40  ;;  %v12373_v60 = vpop.f32.mrb[14].mxu1  ;;  %v7496_v62 = vpack.c.bf16 %v7160_v27, %v7157_v18 }
 0x8c2   :  { %v12374_v33 = vpop.f32.mrb[15].mxu1 }
 0x8c3   :  { %v18826_v35 = vadd.f32 %v12372_v12, %v18682_v37  ;;  %v12375_v7 = vadd.f32 %v12374_v33, %v12373_v60 }
 0x8c4   :  { %9957 = vmatmul.mubr.bf16.gmra.mrb[120].mxu1 %v7478_v22 }
 0x8c5   :  { %v18832_v32 = vadd.f32 %v12375_v7, %v18688_v47  ;;  %9964 = vmatprep.mubr.bf16.mxu1 %v7495_v30  ;;  %v13398_v4 = vpop.f32.mrb[140].mxu0 }
 0x8c6   :  { %v7173_v52 = vpop.f32.mrb[141].mxu0 }
 0x8c7   :  { %v12392_v51 = vpop.f32.mrb[16].mxu1  ;;  %v13399_v9 = vpop.f32.mrb[142].mxu0 }
 0x8c8   :  { %v12393_v1 = vpop.f32.mrb[17].mxu1  ;;  %v7499_v3 = vpack.c.bf16 %v13399_v9, %v13398_v4  ;;  %v7176_v31 = vpop.f32.mrb[143].mxu0 }
 0x8c9   :  { %v12394_v6 = vadd.f32 %v12393_v1, %v12392_v51  ;;  %v12395_v38 = vpop.f32.mrb[18].mxu1  ;;  %v7498_v37 = vpack.c.bf16 %v7176_v31, %v7173_v52 }
 0x8ca   :  { %v12396_v55 = vpop.f32.mrb[19].mxu1 }
 0x8cb   :  { %v18835_v19 = vadd.f32 %v12394_v6, %v18709_v58  ;;  %v12397_v23 = vadd.f32 %v12396_v55, %v12395_v38 }
 0x8cc   :  { %9965 = vmatmul.mubr.bf16.gmra.mrb[124].mxu1 %v7479_v28 }
 0x8cd   :  { %v18841_v47 = vadd.f32 %v12397_v23, %v18715_v15  ;;  %v18843_v16 = vpop.f32.mrb[144].mxu0  ;;  %9972 = vmatprep.mubr.bf16.mxu1 %v7496_v62 }
 0x8ce   :  { %v18845_v22 = vpop.f32.mrb[145].mxu0 }
 0x8cf   :  { %v12398_v30 = vpop.f32.mrb[20].mxu1  ;;  %v18847_v21 = vpop.f32.mrb[146].mxu0 }
 0x8d0   :  { %v12399_v49 = vpop.f32.mrb[21].mxu1  ;;  %v18849_v42 = vpop.f32.mrb[147].mxu0 }
 0x8d1   :  { %v12400_v58 = vadd.f32 %v12399_v49, %v12398_v30  ;;  %v12401_v20 = vpop.f32.mrb[22].mxu1 }
 0x8d2   :  { %v12402_v25 = vpop.f32.mrb[23].mxu1 }
 0x8d3   :  { %v18852_v13 = vadd.f32 %v12400_v58, %v18733_v46  ;;  %v12403_v53 = vadd.f32 %v12402_v25, %v12401_v20 }
 0x8d4   :  { %9973 = vmatmul.mubr.bf16.gmra.mrb[128].mxu1 %v7480_v29 }
 0x8d5   :  { %v18858_v15 = vadd.f32 %v12403_v53, %v18739_v45  ;;  %9980 = vmatprep.mubr.bf16.mxu1 %v7497_v39  ;;  %v18860_v28 = vpop.f32.mrb[148].mxu0 }
 0x8d6   :  { %v18862_v18 = vpop.f32.mrb[149].mxu0 }
 0x8d7   :  { %v12404_v40 = vpop.f32.mrb[24].mxu1  ;;  %v18864_v59 = vpop.f32.mrb[150].mxu0 }
 0x8d8   :  { %v12405_v34 = vpop.f32.mrb[25].mxu1  ;;  %v18866_v27 = vpop.f32.mrb[151].mxu0 }
 0x8d9   :  { %v12406_v46 = vadd.f32 %v12405_v34, %v12404_v40  ;;  %v12407_v12 = vpop.f32.mrb[26].mxu1  ;;  %v13976_v34 = vld [vmem:[%s19246_s10] sm:$0xff]  }
 0x8da   :  { %v12408_v60 = vpop.f32.mrb[27].mxu1  ;;  %13432 = vmatprep.subr.bf16.mxu1 %v13976_v34 }
 0x8db   :  { %v18869_v2 = vadd.f32 %v12406_v46, %v18754_v50  ;;  %v12409_v43 = vadd.f32 %v12408_v60, %v12407_v12  ;;  %13433 = vmatpush3.bf16.msra.mxu1 %v13976_v34  ;;  %v13977_v46 = vld [vmem:[%s19246_s10 + $0x8] sm:$0xff]  }
 0x8dc   :  { %9981 = vmatmul.mubr.bf16.gmra.mrb[132].mxu1 %v7481_v36  ;;  %13434 = vmatprep.subr.bf16.mxu1 %v13977_v46 }
 0x8dd   :  { %v18875_v45 = vadd.f32 %v12409_v43, %v18760_v24  ;;  %v18877_v29 = vpop.f32.mrb[152].mxu0  ;;  %9988 = vmatprep.mubr.bf16.mxu1 %v7498_v37 }
 0x8de   :  { %v18879_v39 = vpop.f32.mrb[153].mxu0 }
 0x8df   :  { %v12410_v62 = vpop.f32.mrb[28].mxu1  ;;  %v18881_v33 = vpop.f32.mrb[154].mxu0  ;;  %13435 = vmatpush3.bf16.msra.mxu1 %v13977_v46 }
 0x8e0   :  { %v12411_v7 = vpop.f32.mrb[29].mxu1  ;;  %v18883_v4 = vpop.f32.mrb[155].mxu0 }
 0x8e1   :  { %v12412_v50 = vadd.f32 %v12411_v7, %v12410_v62  ;;  %v12413_v52 = vpop.f32.mrb[30].mxu1 }
 0x8e2   :  { %v12414_v51 = vpop.f32.mrb[31].mxu1 }
 0x8e3   :  { %v18886_v63 = vadd.f32 %v12412_v50, %v18775_v44  ;;  %v12415_v17 = vadd.f32 %v12414_v51, %v12413_v52  ;;  %v13979_v51 = vld [vmem:[%s19246_s10 + $0x18] sm:$0xff]  }
 0x8e4   :  { %9989 = vmatmul.mubr.bf16.gmra.mrb[136].mxu1 %v7482_v57 }
 0x8e5   :  { %v18892_v24 = vadd.f32 %v12415_v17, %v18781_v26  ;;  %9996 = vmatprep.mubr.bf16.mxu1 %v7499_v3  ;;  %v18894_v36 = vpop.f32.mrb[156].mxu0 }
 0x8e6   :  { %v18896_v9 = vpop.f32.mrb[157].mxu0 }
 0x8e7   :  { %v12416_v1 = vpop.f32.mrb[32].mxu1  ;;  %v18898_v31 = vpop.f32.mrb[158].mxu0 }
 0x8e8   :  { %v12417_v6 = vpop.f32.mrb[33].mxu1  ;;  %v18900_v38 = vpop.f32.mrb[159].mxu0 }
 0x8e9   :  { %v12418_v44 = vadd.f32 %v12417_v6, %v12416_v1  ;;  %v12419_v37 = vpop.f32.mrb[34].mxu1 }
 0x8ea   :  { %v12420_v55 = vpop.f32.mrb[35].mxu1 }
 0x8eb   :  { %v18903_v5 = vadd.f32 %v12418_v44, %v18799_v10  ;;  %v12421_v11 = vadd.f32 %v12420_v55, %v12419_v37 }
 0x8ec   :  { %9997 = vmatmul.mubr.bf16.gmra.mrb[140].mxu1 %v7483_v48 }
 0x8ed   :  { %v18909_v26 = vadd.f32 %v12421_v11, %v18805_v54 }
 0x8ef   :  { %v12422_v57 = vpop.f32.mrb[36].mxu1 }
 0x8f0   :  { %v12423_v3 = vpop.f32.mrb[37].mxu1 }
 0x8f1   :  { %v12424_v23 = vadd.f32 %v12423_v3, %v12422_v57  ;;  %v12425_v30 = vpop.f32.mrb[38].mxu1  ;;  %v13981_v57 = vld [vmem:[%s19246_s10 + $0x28] sm:$0xff]  }
 0x8f2   :  { %v12426_v49 = vpop.f32.mrb[39].mxu1 }
 0x8f3   :  { %v18912_v58 = vadd.f32 %v12424_v23, %v18808_v8  ;;  %v12427_v20 = vadd.f32 %v12426_v49, %v12425_v30 }
 0x8f5   :  { %v18915_v10 = vadd.f32 %v12427_v20, %v18814_v61 }
 0x8f7   :  { %v12428_v25 = vpop.f32.mrb[40].mxu1 }
 0x8f8   :  { %v12429_v53 = vpop.f32.mrb[41].mxu1 }
 0x8f9   :  { %v12430_v40 = vadd.f32 %v12429_v53, %v12428_v25  ;;  %v12431_v0 = vpop.f32.mrb[42].mxu1 }
 0x8fa   :  { %v12432_v14 = vpop.f32.mrb[43].mxu1 }
 0x8fb   :  { %v18918_v48 = vadd.f32 %v12430_v40, %v18817_v56  ;;  %v12433_v54 = vadd.f32 %v12432_v14, %v12431_v0  ;;  %v13983_v40 = vld [vmem:[%s19246_s10 + $0x38] sm:$0xff]  }
 0x8fd   :  { %v18924_v8 = vadd.f32 %v12433_v54, %v18823_v41  ;;  %v13978_v41 = vld [vmem:[%s19246_s10 + $0x10] sm:$0xff]  }
 0x8fe   :  { %13436 = vmatprep.subr.bf16.mxu1 %v13978_v41 }
 0x8ff   :  { %v12434_v61 = vpop.f32.mrb[44].mxu1  ;;  %13437 = vmatpush3.bf16.msra.mxu1 %v13978_v41 }
 0x900   :  { %v12435_v12 = vpop.f32.mrb[45].mxu1  ;;  %13438 = vmatprep.subr.bf16.mxu1 %v13979_v51 }
 0x901   :  { %v12436_v60 = vadd.f32 %v12435_v12, %v12434_v61  ;;  %v12437_v43 = vpop.f32.mrb[46].mxu1 }
 0x902   :  { %v12438_v56 = vpop.f32.mrb[47].mxu1 }
 0x903   :  { %v18930_v62 = vadd.f32 %v12436_v60, %v18826_v35  ;;  %v12439_v7 = vadd.f32 %v12438_v56, %v12437_v43  ;;  %13439 = vmatpush3.bf16.msra.mxu1 %v13979_v51 }
 0x905   :  { %v18936_v50 = vadd.f32 %v12439_v7, %v18832_v32  ;;  %v13980_v32 = vld [vmem:[%s19246_s10 + $0x20] sm:$0xff]  }
 0x906   :  { %13440 = vmatprep.subr.bf16.mxu1 %v13980_v32 }
 0x907   :  { %v12456_v52 = vpop.f32.mrb[48].mxu1  ;;  %13441 = vmatpush3.bf16.msra.mxu1 %v13980_v32 }
 0x908   :  { %v12457_v17 = vpop.f32.mrb[49].mxu1  ;;  %13442 = vmatprep.subr.bf16.mxu1 %v13981_v57 }
 0x909   :  { %v12458_v1 = vadd.f32 %v12457_v17, %v12456_v52  ;;  %v12459_v6 = vpop.f32.mrb[50].mxu1 }
 0x90a   :  { %v12460_v35 = vpop.f32.mrb[51].mxu1 }
 0x90b   :  { %v18942_v44 = vadd.f32 %v12458_v1, %v18835_v19  ;;  %v12461_v37 = vadd.f32 %v12460_v35, %v12459_v6  ;;  %13443 = vmatpush3.bf16.msra.mxu1 %v13981_v57 }
 0x90d   :  { %v18948_v55 = vadd.f32 %v12461_v37, %v18841_v47  ;;  %v13982_v47 = vld [vmem:[%s19246_s10 + $0x30] sm:$0xff]  }
 0x90e   :  { %13444 = vmatprep.subr.bf16.mxu1 %v13982_v47 }
 0x90f   :  { %v12462_v11 = vpop.f32.mrb[52].mxu1  ;;  %13445 = vmatpush3.bf16.msra.mxu1 %v13982_v47 }
 0x910   :  { %v12463_v3 = vpop.f32.mrb[53].mxu1  ;;  %13446 = vmatprep.subr.bf16.mxu1 %v13983_v40 }
 0x911   :  { %v12464_v23 = vadd.f32 %v12463_v3, %v12462_v11  ;;  %v12465_v30 = vpop.f32.mrb[54].mxu1 }
 0x912   :  { %v12466_v19 = vpop.f32.mrb[55].mxu1 }
 0x913   :  { %v18954_v49 = vadd.f32 %v12464_v23, %v18852_v13  ;;  %v12467_v20 = vadd.f32 %v12466_v19, %v12465_v30  ;;  %13447 = vmatpush3.bf16.msra.mxu1 %v13983_v40 }
 0x915   :  { %v18960_v25 = vadd.f32 %v12467_v20, %v18858_v15 }
 0x917   :  { %v12468_v53 = vpop.f32.mrb[56].mxu1 }
 0x918   :  { %v12469_v0 = vpop.f32.mrb[57].mxu1 }
 0x919   :  { %v12470_v14 = vadd.f32 %v12469_v0, %v12468_v53  ;;  %v12471_v54 = vpop.f32.mrb[58].mxu1 }
 0x91a   :  { %v12472_v13 = vpop.f32.mrb[59].mxu1 }
 0x91b   :  { %v18966_v34 = vadd.f32 %v12470_v14, %v18869_v2  ;;  %v12473_v61 = vadd.f32 %v12472_v13, %v12471_v54 }
 0x91d   :  { %v18969_v15 = vadd.f32 %v12473_v61, %v18875_v45 }
 0x91f   :  { %v12474_v46 = vpop.f32.mrb[60].mxu1 }
 0x920   :  { %v12475_v12 = vpop.f32.mrb[61].mxu1 }
 0x921   :  { %v12476_v60 = vadd.f32 %v12475_v12, %v12474_v46  ;;  %v12477_v43 = vpop.f32.mrb[62].mxu1 }
 0x922   :  { %v12478_v56 = vpop.f32.mrb[63].mxu1 }
 0x923   :  { %v18972_v7 = vadd.f32 %v12476_v60, %v18886_v63  ;;  %v12479_v41 = vadd.f32 %v12478_v56, %v12477_v43 }
 0x925   :  { %v18975_v52 = vadd.f32 %v12479_v41, %v18892_v24 }
 0x927   :  { %v12480_v51 = vpop.f32.mrb[64].mxu1 }
 0x928   :  { %v12481_v17 = vpop.f32.mrb[65].mxu1 }
 0x929   :  { %v12482_v2 = vadd.f32 %v12481_v17, %v12480_v51  ;;  %v12483_v1 = vpop.f32.mrb[66].mxu1 }
 0x92a   :  { %v12484_v6 = vpop.f32.mrb[67].mxu1 }
 0x92b   :  { %v18978_v45 = vadd.f32 %v12482_v2, %v18903_v5  ;;  %v12485_v35 = vadd.f32 %v12484_v6, %v12483_v1 }
 0x92d   :  { %v18981_v37 = vadd.f32 %v12485_v35, %v18909_v26 }
 0x92f   :  { %v12486_v32 = vpop.f32.mrb[68].mxu1 }
 0x930   :  { %v12487_v11 = vpop.f32.mrb[69].mxu1 }
 0x931   :  { %v12488_v63 = vadd.f32 %v12487_v11, %v12486_v32  ;;  %v12489_v57 = vpop.f32.mrb[70].mxu1 }
 0x932   :  { %v12490_v3 = vpop.f32.mrb[71].mxu1 }
 0x933   :  { %v18984_v24 = vadd.f32 %v12488_v63, %v18912_v58  ;;  %v12491_v23 = vadd.f32 %v12490_v3, %v12489_v57 }
 0x935   :  { %v18987_v30 = vadd.f32 %v12491_v23, %v18915_v10 }
 0x937   :  { %v12492_v19 = vpop.f32.mrb[72].mxu1 }
 0x938   :  { %v12493_v20 = vpop.f32.mrb[73].mxu1 }
 0x939   :  { %v12494_v5 = vadd.f32 %v12493_v20, %v12492_v19  ;;  %v12495_v47 = vpop.f32.mrb[74].mxu1 }
 0x93a   :  { %v12496_v53 = vpop.f32.mrb[75].mxu1 }
 0x93b   :  { %v18990_v26 = vadd.f32 %v12494_v5, %v18918_v48  ;;  %v12497_v40 = vadd.f32 %v12496_v53, %v12495_v47 }
 0x93d   :  { %v18993_v0 = vadd.f32 %v12497_v40, %v18924_v8 }
 0x93f   :  { %v12498_v14 = vpop.f32.mrb[76].mxu1 }
 0x940   :  { %v12499_v54 = vpop.f32.mrb[77].mxu1 }
 0x941   :  { %v12500_v58 = vadd.f32 %v12499_v54, %v12498_v14  ;;  %v12501_v13 = vpop.f32.mrb[78].mxu1 }
 0x942   :  { %v12502_v61 = vpop.f32.mrb[79].mxu1 }
 0x943   :  { %v18996_v10 = vadd.f32 %v12500_v58, %v18930_v62  ;;  %v12503_v46 = vadd.f32 %v12502_v61, %v12501_v13 }
 0x945   :  { %v18999_v12 = vadd.f32 %v12503_v46, %v18936_v50 }
 0x947   :  { %v12520_v60 = vpop.f32.mrb[80].mxu1 }
 0x948   :  { %v12521_v43 = vpop.f32.mrb[81].mxu1 }
 0x949   :  { %v12522_v48 = vadd.f32 %v12521_v43, %v12520_v60  ;;  %v12523_v56 = vpop.f32.mrb[82].mxu1 }
 0x94a   :  { %v12524_v41 = vpop.f32.mrb[83].mxu1 }
 0x94b   :  { %v19002_v8 = vadd.f32 %v12522_v48, %v18942_v44  ;;  %v12525_v51 = vadd.f32 %v12524_v41, %v12523_v56 }
 0x94d   :  { %v19005_v17 = vadd.f32 %v12525_v51, %v18948_v55 }
 0x94f   :  { %v12526_v2 = vpop.f32.mrb[84].mxu1 }
 0x950   :  { %v12527_v1 = vpop.f32.mrb[85].mxu1 }
 0x951   :  { %v12528_v62 = vadd.f32 %v12527_v1, %v12526_v2  ;;  %v12529_v6 = vpop.f32.mrb[86].mxu1 }
 0x952   :  { %v12530_v35 = vpop.f32.mrb[87].mxu1 }
 0x953   :  { %v19008_v50 = vadd.f32 %v12528_v62, %v18954_v49  ;;  %v12531_v32 = vadd.f32 %v12530_v35, %v12529_v6 }
 0x955   :  { %v19011_v11 = vadd.f32 %v12531_v32, %v18960_v25 }
 0x957   :  { %v12532_v63 = vpop.f32.mrb[88].mxu1 }
 0x958   :  { %v12533_v57 = vpop.f32.mrb[89].mxu1 }
 0x959   :  { %v12534_v44 = vadd.f32 %v12533_v57, %v12532_v63  ;;  %v12535_v3 = vpop.f32.mrb[90].mxu1 }
 0x95a   :  { %v12536_v23 = vpop.f32.mrb[91].mxu1 }
 0x95b   :  { %v19014_v55 = vadd.f32 %v12534_v44, %v18966_v34  ;;  %v12537_v19 = vadd.f32 %v12536_v23, %v12535_v3 }
 0x95d   :  { %v19017_v20 = vadd.f32 %v12537_v19, %v18969_v15 }
 0x95f   :  { %v12538_v5 = vpop.f32.mrb[92].mxu1 }
 0x960   :  { %v12539_v47 = vpop.f32.mrb[93].mxu1 }
 0x961   :  { %v12540_v49 = vadd.f32 %v12539_v47, %v12538_v5  ;;  %v12541_v53 = vpop.f32.mrb[94].mxu1 }
 0x962   :  { %v12542_v40 = vpop.f32.mrb[95].mxu1 }
 0x963   :  { %v19020_v25 = vadd.f32 %v12540_v49, %v18972_v7  ;;  %v12543_v14 = vadd.f32 %v12542_v40, %v12541_v53 }
 0x965   :  { %v19023_v54 = vadd.f32 %v12543_v14, %v18975_v52 }
 0x967   :  { %v12544_v58 = vpop.f32.mrb[96].mxu1 }
 0x968   :  { %v12545_v13 = vpop.f32.mrb[97].mxu1 }
 0x969   :  { %v12546_v34 = vadd.f32 %v12545_v13, %v12544_v58  ;;  %v12547_v61 = vpop.f32.mrb[98].mxu1 }
 0x96a   :  { %v12548_v46 = vpop.f32.mrb[99].mxu1 }
 0x96b   :  { %v19026_v15 = vadd.f32 %v12546_v34, %v18978_v45  ;;  %v12549_v60 = vadd.f32 %v12548_v46, %v12547_v61 }
 0x96d   :  { %v19029_v43 = vadd.f32 %v12549_v60, %v18981_v37 }
 0x96f   :  { %v12550_v48 = vpop.f32.mrb[100].mxu1 }
 0x970   :  { %v12551_v56 = vpop.f32.mrb[101].mxu1 }
 0x971   :  { %v12552_v7 = vadd.f32 %v12551_v56, %v12550_v48  ;;  %v12553_v41 = vpop.f32.mrb[102].mxu1 }
 0x972   :  { %v12554_v51 = vpop.f32.mrb[103].mxu1 }
 0x973   :  { %v19032_v52 = vadd.f32 %v12552_v7, %v18984_v24  ;;  %v12555_v2 = vadd.f32 %v12554_v51, %v12553_v41 }
 0x975   :  { %v19035_v1 = vadd.f32 %v12555_v2, %v18987_v30 }
 0x977   :  { %v12556_v62 = vpop.f32.mrb[104].mxu1 }
 0x978   :  { %v12557_v6 = vpop.f32.mrb[105].mxu1 }
 0x979   :  { %v12558_v45 = vadd.f32 %v12557_v6, %v12556_v62  ;;  %v12559_v35 = vpop.f32.mrb[106].mxu1 }
 0x97a   :  { %v12560_v32 = vpop.f32.mrb[107].mxu1 }
 0x97b   :  { %v19038_v37 = vadd.f32 %v12558_v45, %v18990_v26  ;;  %v12561_v63 = vadd.f32 %v12560_v32, %v12559_v35 }
 0x97d   :  { %v19041_v57 = vadd.f32 %v12561_v63, %v18993_v0 }
 0x97f   :  { %v12562_v44 = vpop.f32.mrb[108].mxu1 }
 0x980   :  { %v12563_v3 = vpop.f32.mrb[109].mxu1 }
 0x981   :  { %v12564_v24 = vadd.f32 %v12563_v3, %v12562_v44  ;;  %v12565_v23 = vpop.f32.mrb[110].mxu1 }
 0x982   :  { %v12566_v19 = vpop.f32.mrb[111].mxu1 }
 0x983   :  { %v19044_v30 = vadd.f32 %v12564_v24, %v18996_v10  ;;  %v12567_v5 = vadd.f32 %v12566_v19, %v12565_v23 }
 0x985   :  { %v19047_v47 = vadd.f32 %v12567_v5, %v18999_v12 }
 0x987   :  { %v12584_v49 = vpop.f32.mrb[112].mxu1 }
 0x988   :  { %v12585_v53 = vpop.f32.mrb[113].mxu1 }
 0x989   :  { %v12586_v26 = vadd.f32 %v12585_v53, %v12584_v49  ;;  %v12587_v40 = vpop.f32.mrb[114].mxu1 }
 0x98a   :  { %v12588_v14 = vpop.f32.mrb[115].mxu1 }
 0x98b   :  { %v9943_v0 = vadd.f32 %v12586_v26, %v19002_v8  ;;  %v12589_v58 = vadd.f32 %v12588_v14, %v12587_v40 }
 0x98d   :  { %v10040_v13 = vadd.f32 %v18845_v22, %v9943_v0  ;;  %v9946_v34 = vadd.f32 %v12589_v58, %v19005_v17 }
 0x98f   :  { %v10043_v61 = vadd.f32 %v18849_v42, %v9946_v34  ;;  %v12590_v10 = vpop.f32.mrb[116].mxu1  ;;  %v10102_v60 = vmax.f32 %v10040_v13, 0.0 }
 0x990   :  { %v12591_v46 = vpop.f32.mrb[117].mxu1 }
 0x991   :  { %v10103_v48 = vmax.f32 %v10043_v61, 0.0  ;;  %v12592_v12 = vadd.f32 %v12591_v46, %v12590_v10  ;;  %v12593_v56 = vpop.f32.mrb[118].mxu1 }
 0x992   :  { %v12594_v7 = vpop.f32.mrb[119].mxu1 }
 0x993   :  { %v9951_v41 = vadd.f32 %v12592_v12, %v19008_v50  ;;  %v12595_v51 = vadd.f32 %v12594_v7, %v12593_v56  ;;  %v10118_v2 = vpack.c.bf16 %v10103_v48, %v10102_v60 }
 0x995   :  { %v10048_v8 = vadd.f32 %v18843_v16, %v9951_v41  ;;  %v9954_v62 = vadd.f32 %v12595_v51, %v19011_v11  ;;  %13448 = vmatprep.mubr.bf16.mxu1 %v10118_v2 }
 0x997   :  { %v10051_v22 = vadd.f32 %v18847_v21, %v9954_v62  ;;  %v12596_v17 = vpop.f32.mrb[120].mxu1  ;;  %v10104_v6 = vmax.f32 %v10048_v8, 0.0 }
 0x998   :  { %v12597_v42 = vpop.f32.mrb[121].mxu1 }
 0x999   :  { %v10105_v45 = vmax.f32 %v10051_v22, 0.0  ;;  %v12598_v35 = vadd.f32 %v12597_v42, %v12596_v17  ;;  %v12599_v32 = vpop.f32.mrb[122].mxu1 }
 0x99a   :  { %v12600_v63 = vpop.f32.mrb[123].mxu1 }
 0x99b   :  { %v10119_v44 = vpack.c.bf16 %v10105_v45, %v10104_v6  ;;  %v9959_v3 = vadd.f32 %v12598_v35, %v19014_v55  ;;  %v12601_v50 = vadd.f32 %v12600_v63, %v12599_v32 }
 0x99d   :  { %v10056_v24 = vadd.f32 %v18862_v18, %v9959_v3  ;;  %v9962_v16 = vadd.f32 %v12601_v50, %v19017_v20  ;;  %13449 = vmatmul.mubr.bf16.vlgmr.msra.gmra.mrb[144].mxu1 %v10119_v44 }
 0x99f   :  { %v10059_v11 = vadd.f32 %v18866_v27, %v9962_v16  ;;  %v12602_v23 = vpop.f32.mrb[124].mxu1  ;;  %v10106_v19 = vmax.f32 %v10056_v24, 0.0 }
 0x9a0   :  { %v12603_v21 = vpop.f32.mrb[125].mxu1 }
 0x9a1   :  { %v10107_v5 = vmax.f32 %v10059_v11, 0.0  ;;  %v12604_v49 = vadd.f32 %v12603_v21, %v12602_v23  ;;  %v12605_v53 = vpop.f32.mrb[126].mxu1 }
 0x9a2   :  { %v12606_v26 = vpop.f32.mrb[127].mxu1 }
 0x9a3   :  { %v9967_v40 = vadd.f32 %v12604_v49, %v19020_v25  ;;  %v12607_v14 = vadd.f32 %v12606_v26, %v12605_v53  ;;  %v10120_v0 = vpack.c.bf16 %v10107_v5, %v10106_v19 }
 0x9a5   :  { %v10064_v55 = vadd.f32 %v18860_v28, %v9967_v40  ;;  %v9970_v18 = vadd.f32 %v12607_v14, %v19023_v54  ;;  %13452 = vmatprep.mubr.bf16.mxu1 %v10120_v0  ;;  %v10975_v14 = vld [vmem:[%s19247_s11] ss:$0 sm:$0xff] }
 0x9a7   :  { %v10067_v20 = vadd.f32 %v18864_v59, %v9970_v18  ;;  %v12608_v58 = vpop.f32.mrb[128].mxu1  ;;  %v10108_v13 = vmax.f32 %v10064_v55, 0.0 }
 0x9a8   :  { %v12609_v27 = vpop.f32.mrb[129].mxu1 }
 0x9a9   :  { %v10109_v34 = vmax.f32 %v10067_v20, 0.0  ;;  %v12610_v61 = vadd.f32 %v12609_v27, %v12608_v58  ;;  %v12611_v10 = vpop.f32.mrb[130].mxu1 }
 0x9aa   :  { %v12612_v46 = vpop.f32.mrb[131].mxu1 }
 0x9ab   :  { %v10121_v60 = vpack.c.bf16 %v10109_v34, %v10108_v13  ;;  %v9975_v48 = vadd.f32 %v12610_v61, %v19026_v15  ;;  %v12613_v25 = vadd.f32 %v12612_v46, %v12611_v10 }
 0x9ad   :  { %v10072_v12 = vadd.f32 %v18879_v39, %v9975_v48  ;;  %v9978_v28 = vadd.f32 %v12613_v25, %v19029_v43  ;;  %13453 = vmatmul.mubr.bf16.gmra.mrb[148].mxu1 %v10121_v60 }
 0x9af   :  { %v10075_v54 = vadd.f32 %v18883_v4, %v9978_v28  ;;  %v12614_v56 = vpop.f32.mrb[132].mxu1  ;;  %v10110_v7 = vmax.f32 %v10072_v12, 0.0 }
 0x9b0   :  { %v12615_v59 = vpop.f32.mrb[133].mxu1 }
 0x9b1   :  { %v10111_v41 = vmax.f32 %v10075_v54, 0.0  ;;  %v12616_v51 = vadd.f32 %v12615_v59, %v12614_v56  ;;  %v12617_v2 = vpop.f32.mrb[134].mxu1 }
 0x9b2   :  { %v12618_v8 = vpop.f32.mrb[135].mxu1 }
 0x9b3   :  { %v9983_v62 = vadd.f32 %v12616_v51, %v19032_v52  ;;  %v12619_v22 = vadd.f32 %v12618_v8, %v12617_v2  ;;  %v10122_v17 = vpack.c.bf16 %v10111_v41, %v10110_v7 }
 0x9b5   :  { %v10080_v15 = vadd.f32 %v18877_v29, %v9983_v62  ;;  %v9986_v39 = vadd.f32 %v12619_v22, %v19035_v1  ;;  %13456 = vmatprep.mubr.bf16.mxu1 %v10122_v17 }
 0x9b7   :  { %v10083_v43 = vadd.f32 %v18881_v33, %v9986_v39  ;;  %v12620_v42 = vpop.f32.mrb[136].mxu1  ;;  %v10112_v6 = vmax.f32 %v10080_v15, 0.0 }
 0x9b8   :  { %v12621_v4 = vpop.f32.mrb[137].mxu1 }
 0x9b9   :  { %v10113_v45 = vmax.f32 %v10083_v43, 0.0  ;;  %v12622_v35 = vadd.f32 %v12621_v4, %v12620_v42  ;;  %v12623_v32 = vpop.f32.mrb[138].mxu1 }
 0x9ba   :  { %v12624_v63 = vpop.f32.mrb[139].mxu1 }
 0x9bb   :  { %v10123_v44 = vpack.c.bf16 %v10113_v45, %v10112_v6  ;;  %v9991_v3 = vadd.f32 %v12622_v35, %v19038_v37  ;;  %v12625_v52 = vadd.f32 %v12624_v63, %v12623_v32 }
 0x9bd   :  { %v10088_v50 = vadd.f32 %v18896_v9, %v9991_v3  ;;  %v9994_v29 = vadd.f32 %v12625_v52, %v19041_v57  ;;  %13457 = vmatmul.mubr.bf16.gmra.mrb[152].mxu1 %v10123_v44 }
 0x9bf   :  { %v10091_v1 = vadd.f32 %v18900_v38, %v9994_v29  ;;  %v12626_v24 = vpop.f32.mrb[140].mxu1  ;;  %v10114_v16 = vmax.f32 %v10088_v50, 0.0 }
 0x9c0   :  { %v12627_v33 = vpop.f32.mrb[141].mxu1 }
 0x9c1   :  { %v10115_v11 = vmax.f32 %v10091_v1, 0.0  ;;  %v12628_v23 = vadd.f32 %v12627_v33, %v12626_v24  ;;  %v12629_v21 = vpop.f32.mrb[142].mxu1 }
 0x9c2   :  { %v12630_v19 = vpop.f32.mrb[143].mxu1 }
 0x9c3   :  { %v9999_v5 = vadd.f32 %v12628_v23, %v19044_v30  ;;  %v12631_v49 = vadd.f32 %v12630_v19, %v12629_v21  ;;  %v10124_v53 = vpack.c.bf16 %v10115_v11, %v10114_v16 }
 0x9c5   :  { %v10096_v37 = vadd.f32 %v18894_v36, %v9999_v5  ;;  %v10002_v9 = vadd.f32 %v12631_v49, %v19047_v47  ;;  %13460 = vmatprep.mubr.bf16.mxu1 %v10124_v53 }
 0x9c7   :  { %v10099_v57 = vadd.f32 %v18898_v31, %v10002_v9  ;;  %v10116_v26 = vmax.f32 %v10096_v37, 0.0 }
 0x9c9   :  { %v10117_v38 = vmax.f32 %v10099_v57, 0.0 }
 0x9cb   :  { %v10125_v40 = vpack.c.bf16 %v10117_v38, %v10116_v26 }
 0x9cd   :  { %13461 = vmatmul.mubr.bf16.gmra.mrb[156].mxu1 %v10125_v40 }
 0xa70   :  { %v13450_v0 = vpop.f32.mrb[144].mxu1 }
 0xa71   :  { %v10240_v55 = vadd.f32 %v13450_v0, %v10975_v14  ;;  %v10231_v30 = vpop.f32.mrb[145].mxu1 }
 0xa72   :  { %v10232_v18 = vadd.f32 %v10975_v14, %v10231_v30  ;;  %v13451_v20 = vpop.f32.mrb[146].mxu1 }
 0xa73   :  { %10298 = vmax.xlane.f32.xlu1 %v10240_v55  ;;  %v10234_v36 = vpop.f32.mrb[147].mxu1  ;;  %v10243_v47 = vadd.f32 %v13451_v20, %v10975_v14 }
 0xa74   :  { %10294 = vmax.xlane.f32.xlu0 %v10232_v18  ;;  %v10235_v58 = vadd.f32 %v10975_v14, %v10234_v36 }
 0xa77   :  { %10300 = vmax.xlane.f32.xlu1 %v10243_v47 }
 0xa78   :  { %10296 = vmax.xlane.f32.xlu0 %v10235_v58 }
 0xa80   :  { %v13454_v31 = vpop.f32.mrb[148].mxu1 }
 0xa81   :  { %v10256_v27 = vadd.f32 %v13454_v31, %v10975_v14  ;;  %v10247_v13 = vpop.f32.mrb[149].mxu1 }
 0xa82   :  { %v13455_v34 = vpop.f32.mrb[150].mxu1  ;;  %v19084_v46 = vadd.f32 %v10975_v14, %v10247_v13 }
 0xa83   :  { %v10259_v61 = vadd.f32 %v13455_v34, %v10975_v14  ;;  %v10250_v10 = vpop.f32.mrb[151].mxu1  ;;  %10306 = vmax.xlane.f32.xlu0 %v10256_v27 }
 0xa84   :  { %v19086_v60 = vadd.f32 %v10975_v14, %v10250_v10 }
 0xa85   :  { %10308 = vmax.xlane.f32.xlu1 %v10259_v61 }
 0xa87   :  { %10302 = vmax.xlane.f32.xlu0 %v19084_v46 }
 0xa89   :  { %10304 = vmax.xlane.f32.xlu1 %v19086_v60 }
 0xa90   :  { %v13458_v48 = vpop.f32.mrb[152].mxu1 }
 0xa91   :  { %v19090_v25 = vadd.f32 %v13458_v48, %v10975_v14  ;;  %v10263_v12 = vpop.f32.mrb[153].mxu1 }
 0xa92   :  { %v13459_v28 = vpop.f32.mrb[154].mxu1  ;;  %v19095_v59 = vadd.f32 %v10975_v14, %v10263_v12 }
 0xa93   :  { %v19092_v54 = vadd.f32 %v13459_v28, %v10975_v14  ;;  %v10266_v56 = vpop.f32.mrb[155].mxu1  ;;  %10314 = vmax.xlane.f32.xlu0 %v19090_v25 }
 0xa94   :  { %v19098_v7 = vadd.f32 %v10975_v14, %v10266_v56 }
 0xa95   :  { %10316 = vmax.xlane.f32.xlu1 %v19092_v54 }
 0xa97   :  { %10310 = vmax.xlane.f32.xlu0 %v19095_v59 }
 0xa99   :  { %10312 = vmax.xlane.f32.xlu1 %v19098_v7 }
 0xaa0   :  { %v13462_v41 = vpop.f32.mrb[156].mxu1 }
 0xaa1   :  { %v10279_v51 = vpop.f32.mrb[157].mxu1  ;;  %v19107_v17 = vadd.f32 %v13462_v41, %v10975_v14 }
 0xaa2   :  { %v19102_v2 = vadd.f32 %v10975_v14, %v10279_v51  ;;  %v13463_v8 = vpop.f32.mrb[158].mxu1 }
 0xaa3   :  { %v10282_v62 = vpop.f32.mrb[159].mxu1  ;;  %v19110_v15 = vadd.f32 %v13463_v8, %v10975_v14 }
 0xaa4   :  { %v19104_v22 = vadd.f32 %v10975_v14, %v10282_v62  ;;  %10318 = vmax.xlane.f32.xlu0 %v19102_v2 }
 0xaa6   :  { %10320 = vmax.xlane.f32.xlu1 %v19104_v22 }
 0xaa8   :  { %10322 = vmax.xlane.f32.xlu0 %v19107_v17 }
 0xaaa   :  { %10324 = vmax.xlane.f32.xlu1 %v19110_v15 }
 0xb00   :  { %v10299_v39 = vpop.xlane.xlu1 %10298 }
 0xb01   :  { %v10328_v43 = vsub.f32 %v10240_v55, %v10299_v39  ;;  %v10295_v42 = vpop.xlane.xlu0 %10294 }
 0xb02   :  { %v10326_v4 = vsub.f32 %v10232_v18, %v10295_v42 }
 0xb03   :  { %v10346_v6 = vmul.f32 1.442695, %v10328_v43 }
 0xb04   :  { %v10342_v45 = vmul.f32 1.442695, %v10326_v4  ;;  %v10301_v35 = vpop.xlane.xlu1 %10300 }
 0xb05   :  { %13984 = vpow2.f32 %v10346_v6  ;;  %v10329_v32 = vsub.f32 %v10243_v47, %v10301_v35  ;;  %v10297_v63 = vpop.xlane.xlu0 %10296 }
 0xb06   :  { %v10327_v44 = vsub.f32 %v10235_v58, %v10297_v63  ;;  %13986 = vpow2.f32 %v10342_v45 }
 0xb07   :  { %v10348_v3 = vmul.f32 1.442695, %v10329_v32 }
 0xb08   :  { %v10344_v52 = vmul.f32 1.442695, %v10327_v44 }
 0xb09   :  { %13988 = vpow2.f32 %v10348_v3 }
 0xb0a   :  { %13990 = vpow2.f32 %v10344_v52 }
 0xb0f   :  { %v19114_v50 = vpop.eup %13984 }
 0xb10   :  { %v10307_v29 = vpop.xlane.xlu0 %10306  ;;  %10378 = vadd.xlane.f32.xlu0 %v19114_v50  ;;  %v19117_v24 = vpop.eup %13986 }
 0xb11   :  { %v10332_v1 = vsub.f32 %v10256_v27, %v10307_v29 }
 0xb12   :  { %v10309_v33 = vpop.xlane.xlu1 %10308 }
 0xb13   :  { %v19119_v16 = vpop.eup %13988  ;;  %v10354_v11 = vmul.f32 1.442695, %v10332_v1  ;;  %v10333_v23 = vsub.f32 %v10259_v61, %v10309_v33 }
 0xb14   :  { %v10303_v21 = vpop.xlane.xlu0 %10302  ;;  %10380 = vadd.xlane.f32.xlu1 %v19119_v16  ;;  %10374 = vadd.xlane.f32.xlu0 %v19117_v24  ;;  %v19124_v53 = vpop.eup %13990 }
 0xb15   :  { %13992 = vpow2.f32 %v10354_v11  ;;  %v10356_v19 = vmul.f32 1.442695, %v10333_v23  ;;  %v10330_v5 = vsub.f32 %v19084_v46, %v10303_v21 }
 0xb16   :  { %v10305_v49 = vpop.xlane.xlu1 %10304 }
 0xb17   :  { %13994 = vpow2.f32 %v10356_v19  ;;  %v10350_v37 = vmul.f32 1.442695, %v10330_v5  ;;  %v10331_v9 = vsub.f32 %v19086_v60, %v10305_v49 }
 0xb18   :  { %10376 = vadd.xlane.f32.xlu1 %v19124_v53 }
 0xb19   :  { %13996 = vpow2.f32 %v10350_v37  ;;  %v10352_v57 = vmul.f32 1.442695, %v10331_v9 }
 0xb1b   :  { %13998 = vpow2.f32 %v10352_v57 }
 0xb1f   :  { %v19128_v26 = vpop.eup %13992 }
 0xb20   :  { %v10315_v38 = vpop.xlane.xlu0 %10314  ;;  %10386 = vadd.xlane.f32.xlu0 %v19128_v26 }
 0xb21   :  { %v19131_v40 = vpop.eup %13994  ;;  %v10336_v14 = vsub.f32 %v19090_v25, %v10315_v38 }
 0xb22   :  { %v10317_v0 = vpop.xlane.xlu1 %10316  ;;  %10388 = vadd.xlane.f32.xlu1 %v19131_v40 }
 0xb23   :  { %v19135_v55 = vpop.eup %13996  ;;  %v10362_v30 = vmul.f32 1.442695, %v10336_v14  ;;  %v10337_v18 = vsub.f32 %v19092_v54, %v10317_v0 }
 0xb24   :  { %v10311_v20 = vpop.xlane.xlu0 %10310  ;;  %10382 = vadd.xlane.f32.xlu0 %v19135_v55 }
 0xb25   :  { %v19139_v36 = vpop.eup %13998  ;;  %14000 = vpow2.f32 %v10362_v30  ;;  %v10364_v47 = vmul.f32 1.442695, %v10337_v18  ;;  %v10334_v58 = vsub.f32 %v19095_v59, %v10311_v20 }
 0xb26   :  { %v10313_v31 = vpop.xlane.xlu1 %10312  ;;  %10384 = vadd.xlane.f32.xlu1 %v19139_v36 }
 0xb27   :  { %14002 = vpow2.f32 %v10364_v47  ;;  %v10358_v27 = vmul.f32 1.442695, %v10334_v58  ;;  %v10335_v13 = vsub.f32 %v19098_v7, %v10313_v31 }
 0xb29   :  { %14004 = vpow2.f32 %v10358_v27  ;;  %v10360_v34 = vmul.f32 1.442695, %v10335_v13 }
 0xb2b   :  { %14006 = vpow2.f32 %v10360_v34 }
 0xb2f   :  { %v19144_v61 = vpop.eup %14000 }
 0xb30   :  { %10394 = vadd.xlane.f32.xlu0 %v19144_v61 }
 0xb31   :  { %v19147_v10 = vpop.eup %14002  ;;  %v10319_v46 = vpop.xlane.xlu0 %10318 }
 0xb32   :  { %v10338_v60 = vsub.f32 %v19102_v2, %v10319_v46  ;;  %10396 = vadd.xlane.f32.xlu1 %v19147_v10 }
 0xb33   :  { %v19151_v48 = vpop.eup %14004  ;;  %v10321_v25 = vpop.xlane.xlu1 %10320 }
 0xb34   :  { %v10366_v12 = vmul.f32 1.442695, %v10338_v60  ;;  %v10339_v28 = vsub.f32 %v19104_v22, %v10321_v25  ;;  %10390 = vadd.xlane.f32.xlu0 %v19151_v48 }
 0xb35   :  { %v19155_v54 = vpop.eup %14006  ;;  %v10323_v56 = vpop.xlane.xlu0 %10322 }
 0xb36   :  { %14008 = vpow2.f32 %v10366_v12  ;;  %v10368_v59 = vmul.f32 1.442695, %v10339_v28  ;;  %v10340_v7 = vsub.f32 %v19107_v17, %v10323_v56  ;;  %10392 = vadd.xlane.f32.xlu1 %v19155_v54 }
 0xb37   :  { %v10325_v41 = vpop.xlane.xlu1 %10324 }
 0xb38   :  { %14010 = vpow2.f32 %v10368_v59  ;;  %v10370_v51 = vmul.f32 1.442695, %v10340_v7  ;;  %v10341_v2 = vsub.f32 %v19110_v15, %v10325_v41 }
 0xb3a   :  { %14012 = vpow2.f32 %v10370_v51  ;;  %v10372_v8 = vmul.f32 1.442695, %v10341_v2 }
 0xb3c   :  { %14014 = vpow2.f32 %v10372_v8 }
 0xb40   :  { %v19160_v62 = vpop.eup %14008 }
 0xb41   :  { %10398 = vadd.xlane.f32.xlu0 %v19160_v62 }
 0xb42   :  { %v19163_v22 = vpop.eup %14010 }
 0xb43   :  { %10400 = vadd.xlane.f32.xlu1 %v19163_v22 }
 0xb44   :  { %v19166_v39 = vpop.eup %14012 }
 0xb45   :  { %10402 = vadd.xlane.f32.xlu0 %v19166_v39 }
 0xb46   :  { %v19169_v17 = vpop.eup %14014 }
 0xb47   :  { %10404 = vadd.xlane.f32.xlu1 %v19169_v17 }
 0xb9d   :  { %v10379_v15 = vpop.xlane.xlu0 %10378 }
 0xb9e   :  { %14016 = vrcp.f32 %v10379_v15 }
 0xba1   :  { %v10381_v43 = vpop.xlane.xlu1 %10380  ;;  %v10375_v42 = vpop.xlane.xlu0 %10374 }
 0xba2   :  { %14018 = vrcp.f32 %v10381_v43 }
 0xba3   :  { %14020 = vrcp.f32 %v10375_v42 }
 0xba5   :  { %v10377_v4 = vpop.xlane.xlu1 %10376 }
 0xba6   :  { %14022 = vrcp.f32 %v10377_v4 }
 0xba8   :  { %v14017_v6 = vpop.eup %14016 }
 0xba9   :  { %v10424_v45 = vmul.f32 %v14017_v6, %v19114_v50 }
 0xbab   :  { %10440 = vst [vmem:[%s19248_s12 + $0x10] sm:$0xff] %v10424_v45 }
 0xbac   :  { %v14019_v35 = vpop.eup %14018 }
 0xbad   :  { %v14021_v32 = vpop.eup %14020  ;;  %v10425_v63 = vmul.f32 %v14019_v35, %v19119_v16  ;;  %v10387_v44 = vpop.xlane.xlu0 %10386 }
 0xbae   :  { %v10422_v3 = vmul.f32 %v14021_v32, %v19117_v24  ;;  %14024 = vrcp.f32 %v10387_v44 }
 0xbaf   :  { %10441 = vst [vmem:[%s19248_s12 + $0x18] sm:$0xff] %v10425_v63  ;;  %v10389_v52 = vpop.xlane.xlu1 %10388 }
 0xbb0   :  { %v14023_v29 = vpop.eup %14022  ;;  %10438 = vst [vmem:[%s19248_s12] sm:$0xff] %v10422_v3  ;;  %14026 = vrcp.f32 %v10389_v52 }
 0xbb1   :  { %v10423_v50 = vmul.f32 %v14023_v29, %v19124_v53  ;;  %v10383_v1 = vpop.xlane.xlu0 %10382 }
 0xbb2   :  { %14028 = vrcp.f32 %v10383_v1 }
 0xbb3   :  { %10439 = vst [vmem:[%s19248_s12 + $0x8] sm:$0xff] %v10423_v50  ;;  %v10385_v24 = vpop.xlane.xlu1 %10384 }
 0xbb4   :  { %14030 = vrcp.f32 %v10385_v24 }
 0xbb8   :  { %v14025_v33 = vpop.eup %14024 }
 0xbb9   :  { %v10428_v16 = vmul.f32 %v14025_v33, %v19128_v26 }
 0xbba   :  { %v14027_v11 = vpop.eup %14026 }
 0xbbb   :  { %10444 = vst [vmem:[%s19248_s12 + $0x30] sm:$0xff] %v10428_v16  ;;  %v10429_v23 = vmul.f32 %v14027_v11, %v19131_v40 }
 0xbbc   :  { %v14029_v21 = vpop.eup %14028 }
 0xbbd   :  { %10445 = vst [vmem:[%s19248_s12 + $0x38] sm:$0xff] %v10429_v23  ;;  %v10426_v19 = vmul.f32 %v14029_v21, %v19135_v55  ;;  %v10395_v5 = vpop.xlane.xlu0 %10394 }
 0xbbe   :  { %v14031_v49 = vpop.eup %14030  ;;  %14032 = vrcp.f32 %v10395_v5 }
 0xbbf   :  { %10442 = vst [vmem:[%s19248_s12 + $0x20] sm:$0xff] %v10426_v19  ;;  %v10427_v53 = vmul.f32 %v14031_v49, %v19139_v36  ;;  %v10397_v37 = vpop.xlane.xlu1 %10396 }
 0xbc0   :  { %14034 = vrcp.f32 %v10397_v37 }
 0xbc1   :  { %10443 = vst [vmem:[%s19248_s12 + $0x28] sm:$0xff] %v10427_v53  ;;  %v10391_v9 = vpop.xlane.xlu0 %10390 }
 0xbc2   :  { %14036 = vrcp.f32 %v10391_v9 }
 0xbc3   :  { %v10393_v57 = vpop.xlane.xlu1 %10392 }
 0xbc4   :  { %14038 = vrcp.f32 %v10393_v57 }
 0xbc8   :  { %v14033_v26 = vpop.eup %14032 }
 0xbc9   :  { %v10432_v38 = vmul.f32 %v14033_v26, %v19144_v61 }
 0xbca   :  { %v14035_v40 = vpop.eup %14034 }
 0xbcb   :  { %10448 = vst [vmem:[%s19248_s12 + $0x50] sm:$0xff] %v10432_v38  ;;  %v10433_v14 = vmul.f32 %v14035_v40, %v19147_v10 }
 0xbcc   :  { %v14037_v0 = vpop.eup %14036 }
 0xbcd   :  { %10449 = vst [vmem:[%s19248_s12 + $0x58] sm:$0xff] %v10433_v14  ;;  %v10430_v55 = vmul.f32 %v14037_v0, %v19151_v48 }
 0xbce   :  { %v14039_v30 = vpop.eup %14038  ;;  %v10399_v18 = vpop.xlane.xlu0 %10398 }
 0xbcf   :  { %10446 = vst [vmem:[%s19248_s12 + $0x40] sm:$0xff] %v10430_v55  ;;  %v10431_v20 = vmul.f32 %v14039_v30, %v19155_v54  ;;  %14040 = vrcp.f32 %v10399_v18 }
 0xbd0   :  { %v10401_v36 = vpop.xlane.xlu1 %10400 }
 0xbd1   :  { %10447 = vst [vmem:[%s19248_s12 + $0x48] sm:$0xff] %v10431_v20  ;;  %14042 = vrcp.f32 %v10401_v36 }
 0xbd2   :  { %v10403_v47 = vpop.xlane.xlu0 %10402 }
 0xbd3   :  { %14044 = vrcp.f32 %v10403_v47 }
 0xbd4   :  { %v10405_v58 = vpop.xlane.xlu1 %10404 }
 0xbd5   :  { %14046 = vrcp.f32 %v10405_v58 }
 0xbd9   :  { %v14041_v31 = vpop.eup %14040 }
 0xbda   :  { %v10434_v27 = vmul.f32 %v14041_v31, %v19160_v62 }
 0xbdb   :  { %v14043_v13 = vpop.eup %14042 }
 0xbdc   :  { %10450 = vst [vmem:[%s19248_s12 + $0x60] sm:$0xff] %v10434_v27  ;;  %v10435_v34 = vmul.f32 %v14043_v13, %v19163_v22 }
 0xbdd   :  { %v14045_v61 = vpop.eup %14044 }
 0xbde   :  { %10451 = vst [vmem:[%s19248_s12 + $0x68] sm:$0xff] %v10435_v34  ;;  %v10436_v10 = vmul.f32 %v14045_v61, %v19166_v39 }
 0xbdf   :  { %v14047_v46 = vpop.eup %14046 }
 0xbe0   :  { %10452 = vst [vmem:[%s19248_s12 + $0x70] sm:$0xff] %v10436_v10  ;;  %v10437_v60 = vmul.f32 %v14047_v46, %v19169_v17 }
 0xbe2   :  { %10453 = vst [vmem:[%s19248_s12 + $0x78] sm:$0xff] %v10437_v60 }

</bundles_post_ra>
